<compile_context>
chip_gen: v7x
topology: tpu7x:2x2x1
jax: 0.10.0
libtpu: 0.0.40
codegen_flags: <defaults>
</compile_context>

<pallas_src>
import functools

import jax
import jax.numpy as jnp
from jax.experimental import pallas as pl
from jax.experimental.pallas import tpu as pltpu

# ---- model hyper-parameters (module __init__) -------------------------------
N_CELLS = 4
INPUT_SIZE = 32
LSTM_HIDDEN = 32
FC_SIZE = 256          # fixed in module
FINAL_HIDDEN = 256     # fixed in module
OUTPUT_SIZE = 20       # fixed in module

# ---- kernel tiling -----------------------------------------------------------
BLOCK_B = 256                      # MXU-M-filling batch tile (v6e/v7x)
OUT_PAD = 128                      # lane-dense padded output width (>= OUTPUT_SIZE)
FC_ALL = N_CELLS * FC_SIZE         # 1024: fused FC output width
X_ALL = N_CELLS * INPUT_SIZE       # 128: fused FC input width
BIAS_ROWS = N_CELLS + 3            # [bfc_all | (bih+bhh)_0..3 | b1 | b2]
BIAS_COLS = FC_ALL                 # 1024


def _bf16_eup_supported():
    """bf16 transcendentals only on v6/v7 TPUs (v5e and older lack bf16 EUP/VPU)."""
    try:
        kind = jax.devices()[0].device_kind.lower()
    except Exception:
        return False
    return ("v6" in kind) or ("v7" in kind)


def feature_mapper_kernel(xs_ref, hx_ref, cx_ref,
                          wfc_ref, wih_ref, whh_ref, w1_ref, w2_ref,
                          bias_ref, out_ref, *, use_bf16_eup):
    H = LSTM_HIDDEN
    bf16 = jnp.bfloat16
    tdt = bf16 if use_bf16_eup else jnp.float32   # transcendental dtype

    h = hx_ref[...]                                  # (B, H)  f32
    c = cx_ref[...]                                  # (B, H)  f32
    B = h.shape[0]

    # Fused per-cell FC: one K=128, N=1024 block-diagonal matmul + bias + ReLU
    # replaces four K=32 matmuls (hoisted out of the recurrence entirely).
    bfc_all = bias_ref[pl.ds(0, 1), :]               # (1, 1024) f32
    fc_all = jnp.dot(xs_ref[...], wfc_ref[...],
                     preferred_element_type=jnp.float32)
    fc_all = jnp.maximum(fc_all + bfc_all, 0.0)      # (B, 1024) f32

    z1 = jnp.zeros((B, FINAL_HIDDEN), jnp.float32)

    # n_cells is a small static constant -> unroll in Python.
    for i in range(N_CELLS):
        fc_i = fc_all[:, i * FC_SIZE:(i + 1) * FC_SIZE]       # lane-aligned (B, 256)

        # LSTMCell(256, H): gates = fc @ Wih + h @ Whh + (bih + bhh)
        bg_i = bias_ref[pl.ds(1 + i, 1), pl.ds(0, 4 * H)]     # (1, 4H) f32
        gates = (jnp.dot(fc_i.astype(bf16), wih_ref[i],
                         preferred_element_type=jnp.float32)
                 + jnp.dot(h.astype(bf16), whh_ref[i],
                           preferred_element_type=jnp.float32)
                 + bg_i)                              # (B, 4H) f32, PyTorch i|f|g|o

        # One full-width sigmoid pass over the whole gates vreg; tanh on g only.
        # bf16 EUP on v6/v7; f32 on v5e.
        sig = jax.nn.sigmoid(gates.astype(tdt)).astype(jnp.float32)
        i_g = sig[:, 0 * H:1 * H]
        f_g = sig[:, 1 * H:2 * H]
        o_g = sig[:, 3 * H:4 * H]
        g_g = jnp.tanh(gates[:, 2 * H:3 * H].astype(tdt)).astype(jnp.float32)

        c = f_g * c + i_g * g_g                       # f32 elementwise
        h = o_g * jnp.tanh(c.astype(tdt)).astype(jnp.float32)

        # Running accumulator replaces concat(h_0..h_3) @ W1.
        z1 = z1 + jnp.dot(h.astype(bf16), w1_ref[i],
                          preferred_element_type=jnp.float32)

    # final_fcs: Linear -> ReLU -> Linear -> ReLU  (output lane-padded to 128)
    b1 = bias_ref[pl.ds(1 + N_CELLS, 1), pl.ds(0, FINAL_HIDDEN)]   # (1, 256)
    b2 = bias_ref[pl.ds(2 + N_CELLS, 1), pl.ds(0, OUT_PAD)]        # (1, 128)
    z1 = jnp.maximum(z1 + b1, 0.0)                                 # (B, 256)
    z2 = jnp.dot(z1.astype(bf16), w2_ref[...],
                 preferred_element_type=jnp.float32)
    z2 = jnp.maximum(z2 + b2, 0.0)                                 # (B, 128)

    out_ref[...] = z2.astype(out_ref.dtype)


@functools.partial(jax.jit, static_argnames=("use_bf16_eup",))
def feature_mapper(xs, hx, cx, params, *, use_bf16_eup=False):
    """xs: (N_CELLS, B, INPUT_SIZE); hx/cx: (B, LSTM_HIDDEN).  Any B (padded here)."""
    wfc, bfc, wih, bih, whh, bhh, w1, b1, w2, b2 = params
    total_b = xs.shape[1]
    bf16 = jnp.bfloat16
    H = LSTM_HIDDEN

    num_blocks = pl.cdiv(total_b, BLOCK_B)
    padded_b = num_blocks * BLOCK_B
    pad = padded_b - total_b

    # (N, B, IN) -> (B, N*IN): lane-dense 128-wide xs tile feeding one fused FC matmul.
    xs_all = jnp.transpose(xs, (1, 0, 2)).reshape(total_b, X_ALL).astype(bf16)
    if pad:
        xs_all = jnp.pad(xs_all, ((0, pad), (0, 0)))
        hx = jnp.pad(hx, ((0, pad), (0, 0)))
        cx = jnp.pad(cx, ((0, pad), (0, 0)))

    # Block-diagonal fused FC weight (128, 1024) bf16 (zero off-diagonal blocks are
    # free FLOPs: the MXU is nowhere near saturated at this size).
    wfc_bd = jnp.zeros((X_ALL, FC_ALL), bf16)
    for i in range(N_CELLS):
        wfc_bd = wfc_bd.at[i * INPUT_SIZE:(i + 1) * INPUT_SIZE,
                           i * FC_SIZE:(i + 1) * FC_SIZE].set(wfc[i].astype(bf16))

    # bf16 weights for the MXU (activations cast in-kernel; elementwise stays f32).
    wih_b = wih.astype(bf16)                                    # (N, 256, 4H)
    whh_b = whh.astype(bf16)                                    # (N, H, 4H)
    w1_b = w1.reshape(N_CELLS, H, FINAL_HIDDEN).astype(bf16)    # pre-split per cell
    w2_p = jnp.zeros((FINAL_HIDDEN, OUT_PAD), bf16)
    w2_p = w2_p.at[:, :OUTPUT_SIZE].set(w2.astype(bf16))        # lane-padded

    # Pack all biases (with bih+bhh pre-folded) into one small f32 VMEM array.
    bias = jnp.zeros((BIAS_ROWS, BIAS_COLS), jnp.float32)
    bias = bias.at[0, :].set(bfc.reshape(FC_ALL))
    bias = bias.at[1:1 + N_CELLS, :4 * H].set((bih + bhh).reshape(N_CELLS, 4 * H))
    bias = bias.at[1 + N_CELLS, :FINAL_HIDDEN].set(b1.reshape(FINAL_HIDDEN))
    bias = bias.at[2 + N_CELLS, :OUTPUT_SIZE].set(b2.reshape(OUTPUT_SIZE))

    const2 = lambda b: (0, 0)     # weights: same block every step -> stay in VMEM
    const3 = lambda b: (0, 0, 0)

    kernel = functools.partial(feature_mapper_kernel, use_bf16_eup=use_bf16_eup)

    out = pl.pallas_call(
        kernel,
        out_shape=jax.ShapeDtypeStruct((padded_b, OUT_PAD), bf16),
        grid_spec=pltpu.PrefetchScalarGridSpec(
            num_scalar_prefetch=0,
            grid=(num_blocks,),
            in_specs=[
                pl.BlockSpec((BLOCK_B, X_ALL), lambda b: (b, 0)),
                pl.BlockSpec((BLOCK_B, H), lambda b: (b, 0)),
                pl.BlockSpec((BLOCK_B, H), lambda b: (b, 0)),
                pl.BlockSpec((X_ALL, FC_ALL), const2),
                pl.BlockSpec((N_CELLS, FC_SIZE, 4 * H), const3),
                pl.BlockSpec((N_CELLS, H, 4 * H), const3),
                pl.BlockSpec((N_CELLS, H, FINAL_HIDDEN), const3),
                pl.BlockSpec((FINAL_HIDDEN, OUT_PAD), const2),
                pl.BlockSpec((BIAS_ROWS, BIAS_COLS), const2),
            ],
            out_specs=pl.BlockSpec((BLOCK_B, OUT_PAD), lambda b: (b, 0)),
        ),
        compiler_params=pltpu.CompilerParams(
            dimension_semantics=("parallel",)),   # shards batch blocks across v7x's 2 TCs
    )(xs_all, hx, cx, wfc_bd, wih_b, whh_b, w1_b, w2_p, bias)

    return out[:total_b, :OUTPUT_SIZE]


def init_params(key):
    """Deterministic synthetic parameters (shapes as in module __init__),
    already pre-transposed to (in_features, out_features)."""
    ks = jax.random.split(key, 10)
    scale = 0.1
    wfc = scale * jax.random.normal(ks[0], (N_CELLS, INPUT_SIZE, FC_SIZE), jnp.float32)
    bfc = scale * jax.random.normal(ks[1], (N_CELLS, 1, FC_SIZE), jnp.float32)
    wih = scale * jax.random.normal(ks[2], (N_CELLS, FC_SIZE, 4 * LSTM_HIDDEN), jnp.float32)
    bih = scale * jax.random.normal(ks[3], (N_CELLS, 1, 4 * LSTM_HIDDEN), jnp.float32)
    whh = scale * jax.random.normal(ks[4], (N_CELLS, LSTM_HIDDEN, 4 * LSTM_HIDDEN), jnp.float32)
    bhh = scale * jax.random.normal(ks[5], (N_CELLS, 1, 4 * LSTM_HIDDEN), jnp.float32)
    w1 = scale * jax.random.normal(ks[6], (LSTM_HIDDEN * N_CELLS, FINAL_HIDDEN), jnp.float32)
    b1 = scale * jax.random.normal(ks[7], (1, FINAL_HIDDEN), jnp.float32)
    w2 = scale * jax.random.normal(ks[8], (FINAL_HIDDEN, OUTPUT_SIZE), jnp.float32)
    b2 = scale * jax.random.normal(ks[9], (1, OUTPUT_SIZE), jnp.float32)
    return (wfc, bfc, wih, bih, whh, bhh, w1, b1, w2, b2)


def reference_forward(xs, hx, cx, params, *, use_bf16_eup=False):
    """Pure-JAX reference mirroring the kernel's numerics (bf16 MXU, f32 math,
    bf16 transcendentals when enabled, bf16 output)."""
    wfc, bfc, wih, bih, whh, bhh, w1, b1, w2, b2 = params
    bf16 = jnp.bfloat16
    tdt = bf16 if use_bf16_eup else jnp.float32
    w1s = w1.reshape(N_CELLS, LSTM_HIDDEN, FINAL_HIDDEN)
    h, c = hx, cx
    z1 = jnp.zeros((xs.shape[1], FINAL_HIDDEN), jnp.float32)
    for i in range(N_CELLS):
        x = xs[i].astype(bf16)
        fc = jnp.dot(x, wfc[i].astype(bf16), preferred_element_type=jnp.float32)
        fc = jnp.maximum(fc + bfc[i], 0.0)
        gates = (jnp.dot(fc.astype(bf16), wih[i].astype(bf16),
                         preferred_element_type=jnp.float32)
                 + jnp.dot(h.astype(bf16), whh[i].astype(bf16),
                           preferred_element_type=jnp.float32)
                 + (bih[i] + bhh[i]))
        ig, fg, gg, og = jnp.split(gates, 4, axis=-1)
        ig = jax.nn.sigmoid(ig.astype(tdt)).astype(jnp.float32)
        fg = jax.nn.sigmoid(fg.astype(tdt)).astype(jnp.float32)
        og = jax.nn.sigmoid(og.astype(tdt)).astype(jnp.float32)
        gg = jnp.tanh(gg.astype(tdt)).astype(jnp.float32)
        c = fg * c + ig * gg
        h = og * jnp.tanh(c.astype(tdt)).astype(jnp.float32)
        z1 = z1 + jnp.dot(h.astype(bf16), w1s[i].astype(bf16),
                          preferred_element_type=jnp.float32)
    z1 = jnp.maximum(z1 + b1, 0.0)
    z2 = jnp.dot(z1.astype(bf16), w2.astype(bf16),
                 preferred_element_type=jnp.float32)
    return jnp.maximum(z2 + b2, 0.0).astype(bf16)


if __name__ == "__main__":
    key = jax.random.PRNGKey(0)
    k_x, k_h, k_c, k_p = jax.random.split(key, 4)

    # 300 rows -> 2 grid blocks of 256 with a padded tail: exercises grid + padding.
    TOTAL_B = 300
    xs = jax.random.normal(k_x, (N_CELLS, TOTAL_B, INPUT_SIZE), jnp.float32)
    hx = jax.random.normal(k_h, (TOTAL_B, LSTM_HIDDEN), jnp.float32)
    cx = jax.random.normal(k_c, (TOTAL_B, LSTM_HIDDEN), jnp.float32)
    params = init_params(k_p)

    use_bf16_eup = _bf16_eup_supported()
    out = feature_mapper(xs, hx, cx, params, use_bf16_eup=use_bf16_eup)
    out = jax.block_until_ready(out)

    ref = reference_forward(xs, hx, cx, params, use_bf16_eup=use_bf16_eup)
    assert out.shape == (TOTAL_B, OUTPUT_SIZE)
    assert jnp.allclose(out.astype(jnp.float32), ref.astype(jnp.float32),
                        rtol=1e-2, atol=1e-2), "mismatch vs JAX reference"

    print("KERNEL_OK")
</pallas_src>

<mosaic_0001>
module attributes {stable_mosaic.version = 11 : i64} {
  func.func @feature_mapper_kernel(%arg0: i32, %arg1: memref<256x128xbf16, #tpu.memory_space<vmem>>, %arg2: memref<256x32xf32, #tpu.memory_space<vmem>>, %arg3: memref<256x32xf32, #tpu.memory_space<vmem>>, %arg4: memref<128x1024xbf16, #tpu.memory_space<vmem>>, %arg5: memref<4x256x128xbf16, #tpu.memory_space<vmem>>, %arg6: memref<4x32x128xbf16, #tpu.memory_space<vmem>>, %arg7: memref<4x32x256xbf16, #tpu.memory_space<vmem>>, %arg8: memref<256x128xbf16, #tpu.memory_space<vmem>>, %arg9: memref<7x1024xf32, #tpu.memory_space<vmem>>, %arg10: memref<256x128xbf16, #tpu.memory_space<vmem>>) attributes {dimension_semantics = [#tpu.dimension_semantics<parallel>], iteration_bounds = array<i64: 2>, scalar_prefetch = 0 : i64, scratch_operands = 0 : i64, tpu.core_type = #tpu.core_type<tc>, window_params = [{transform_indices = @transform_0, window_bounds = array<i64: 256, 128>}, {transform_indices = @transform_1, window_bounds = array<i64: 256, 32>}, {transform_indices = @transform_2, window_bounds = array<i64: 256, 32>}, {pipeline_mode = #tpu.pipeline_mode<synchronous>, transform_indices = @transform_3, window_bounds = array<i64: 128, 1024>}, {pipeline_mode = #tpu.pipeline_mode<synchronous>, transform_indices = @transform_4, window_bounds = array<i64: 4, 256, 128>}, {pipeline_mode = #tpu.pipeline_mode<synchronous>, transform_indices = @transform_5, window_bounds = array<i64: 4, 32, 128>}, {pipeline_mode = #tpu.pipeline_mode<synchronous>, transform_indices = @transform_6, window_bounds = array<i64: 4, 32, 256>}, {pipeline_mode = #tpu.pipeline_mode<synchronous>, transform_indices = @transform_7, window_bounds = array<i64: 256, 128>}, {pipeline_mode = #tpu.pipeline_mode<synchronous>, transform_indices = @transform_8, window_bounds = array<i64: 7, 1024>}, {transform_indices = @transform_9, window_bounds = array<i64: 256, 128>}]} {
    %c0 = arith.constant 0 : index
    %c0_0 = arith.constant 0 : index
    %0 = vector.load %arg2[%c0, %c0_0] : memref<256x32xf32, #tpu.memory_space<vmem>>, vector<256x32xf32>
    %c0_1 = arith.constant 0 : index
    %c0_2 = arith.constant 0 : index
    %1 = vector.load %arg3[%c0_1, %c0_2] : memref<256x32xf32, #tpu.memory_space<vmem>>, vector<256x32xf32>
    %c0_3 = arith.constant 0 : index
    %c0_4 = arith.constant 0 : index
    %2 = vector.load %arg9[%c0_3, %c0_4] : memref<7x1024xf32, #tpu.memory_space<vmem>>, vector<1x1024xf32>
    %c0_5 = arith.constant 0 : index
    %c0_6 = arith.constant 0 : index
    %3 = vector.load %arg1[%c0_5, %c0_6] : memref<256x128xbf16, #tpu.memory_space<vmem>>, vector<256x128xbf16>
    %c0_7 = arith.constant 0 : index
    %c0_8 = arith.constant 0 : index
    %4 = vector.load %arg4[%c0_7, %c0_8] : memref<128x1024xbf16, #tpu.memory_space<vmem>>, vector<128x1024xbf16>
    %cst = arith.constant dense<0.000000e+00> : vector<256x1024xf32>
    %5 = tpu.matmul %3, %4, %cst {dimension_numbers = #tpu.dot_dimension_numbers<[1], [0], [0], [1], [0, 0, 1, 1], [], []>} : vector<256x128xbf16>, vector<128x1024xbf16>, vector<256x1024xf32> -> vector<256x1024xf32>
    %6 = vector.broadcast %2 : vector<1x1024xf32> to vector<256x1024xf32>
    %7 = arith.addf %5, %6 : vector<256x1024xf32>
    %cst_9 = arith.constant 0.000000e+00 : f32
    %8 = vector.broadcast %cst_9 : f32 to vector<256x1024xf32>
    %9 = arith.maximumf %7, %8 : vector<256x1024xf32>
    %cst_10 = arith.constant 0.000000e+00 : f32
    %10 = vector.broadcast %cst_10 : f32 to vector<256x256xf32>
    %11 = vector.extract_strided_slice %9 {offsets = [0, 0], sizes = [256, 256], strides = [1, 1]} : vector<256x1024xf32> to vector<256x256xf32>
    %c1 = arith.constant 1 : index
    %c0_11 = arith.constant 0 : index
    %12 = vector.load %arg9[%c1, %c0_11] : memref<7x1024xf32, #tpu.memory_space<vmem>>, vector<1x128xf32>
    %13 = arith.truncf %11 : vector<256x256xf32> to vector<256x256xbf16>
    %c0_12 = arith.constant 0 : index
    %c0_13 = arith.constant 0 : index
    %c0_14 = arith.constant 0 : index
    %14 = vector.load %arg5[%c0_12, %c0_13, %c0_14] : memref<4x256x128xbf16, #tpu.memory_space<vmem>>, vector<1x256x128xbf16>
    %15 = vector.shape_cast %14 : vector<1x256x128xbf16> to vector<256x128xbf16>
    %cst_15 = arith.constant dense<0.000000e+00> : vector<256x128xf32>
    %16 = tpu.matmul %13, %15, %cst_15 {dimension_numbers = #tpu.dot_dimension_numbers<[1], [0], [0], [1], [0, 0, 1, 1], [], []>} : vector<256x256xbf16>, vector<256x128xbf16>, vector<256x128xf32> -> vector<256x128xf32>
    %17 = arith.truncf %0 : vector<256x32xf32> to vector<256x32xbf16>
    %c0_16 = arith.constant 0 : index
    %c0_17 = arith.constant 0 : index
    %c0_18 = arith.constant 0 : index
    %18 = vector.load %arg6[%c0_16, %c0_17, %c0_18] : memref<4x32x128xbf16, #tpu.memory_space<vmem>>, vector<1x32x128xbf16>
    %19 = vector.shape_cast %18 : vector<1x32x128xbf16> to vector<32x128xbf16>
    %cst_19 = arith.constant dense<0.000000e+00> : vector<256x128xf32>
    %20 = tpu.matmul %17, %19, %cst_19 {dimension_numbers = #tpu.dot_dimension_numbers<[1], [0], [0], [1], [0, 0, 1, 1], [], []>} : vector<256x32xbf16>, vector<32x128xbf16>, vector<256x128xf32> -> vector<256x128xf32>
    %21 = arith.addf %16, %20 : vector<256x128xf32>
    %22 = vector.broadcast %12 : vector<1x128xf32> to vector<256x128xf32>
    %23 = arith.addf %21, %22 : vector<256x128xf32>
    %24 = arith.negf %23 : vector<256x128xf32>
    %25 = math.exp %24 : vector<256x128xf32>
    %cst_20 = arith.constant 1.000000e+00 : f32
    %26 = vector.broadcast %cst_20 : f32 to vector<256x128xf32>
    %27 = arith.addf %26, %25 : vector<256x128xf32>
    %28 = arith.divf %26, %27 : vector<256x128xf32>
    %29 = vector.extract_strided_slice %28 {offsets = [0, 0], sizes = [256, 32], strides = [1, 1]} : vector<256x128xf32> to vector<256x32xf32>
    %30 = vector.extract_strided_slice %28 {offsets = [0, 32], sizes = [256, 32], strides = [1, 1]} : vector<256x128xf32> to vector<256x32xf32>
    %31 = vector.extract_strided_slice %28 {offsets = [0, 96], sizes = [256, 32], strides = [1, 1]} : vector<256x128xf32> to vector<256x32xf32>
    %32 = vector.extract_strided_slice %23 {offsets = [0, 64], sizes = [256, 32], strides = [1, 1]} : vector<256x128xf32> to vector<256x32xf32>
    %33 = math.tanh %32 : vector<256x32xf32>
    %34 = arith.mulf %30, %1 : vector<256x32xf32>
    %35 = arith.mulf %29, %33 : vector<256x32xf32>
    %36 = arith.addf %34, %35 : vector<256x32xf32>
    %37 = math.tanh %36 : vector<256x32xf32>
    %38 = arith.mulf %31, %37 : vector<256x32xf32>
    %39 = arith.truncf %38 : vector<256x32xf32> to vector<256x32xbf16>
    %c0_21 = arith.constant 0 : index
    %c0_22 = arith.constant 0 : index
    %c0_23 = arith.constant 0 : index
    %40 = vector.load %arg7[%c0_21, %c0_22, %c0_23] : memref<4x32x256xbf16, #tpu.memory_space<vmem>>, vector<1x32x256xbf16>
    %41 = vector.shape_cast %40 : vector<1x32x256xbf16> to vector<32x256xbf16>
    %cst_24 = arith.constant dense<0.000000e+00> : vector<256x256xf32>
    %42 = tpu.matmul %39, %41, %cst_24 {dimension_numbers = #tpu.dot_dimension_numbers<[1], [0], [0], [1], [0, 0, 1, 1], [], []>} : vector<256x32xbf16>, vector<32x256xbf16>, vector<256x256xf32> -> vector<256x256xf32>
    %43 = arith.addf %10, %42 : vector<256x256xf32>
    %44 = vector.extract_strided_slice %9 {offsets = [0, 256], sizes = [256, 256], strides = [1, 1]} : vector<256x1024xf32> to vector<256x256xf32>
    %c2 = arith.constant 2 : index
    %c0_25 = arith.constant 0 : index
    %45 = vector.load %arg9[%c2, %c0_25] : memref<7x1024xf32, #tpu.memory_space<vmem>>, vector<1x128xf32>
    %46 = arith.truncf %44 : vector<256x256xf32> to vector<256x256xbf16>
    %c1_26 = arith.constant 1 : index
    %c0_27 = arith.constant 0 : index
    %c0_28 = arith.constant 0 : index
    %47 = vector.load %arg5[%c1_26, %c0_27, %c0_28] : memref<4x256x128xbf16, #tpu.memory_space<vmem>>, vector<1x256x128xbf16>
    %48 = vector.shape_cast %47 : vector<1x256x128xbf16> to vector<256x128xbf16>
    %cst_29 = arith.constant dense<0.000000e+00> : vector<256x128xf32>
    %49 = tpu.matmul %46, %48, %cst_29 {dimension_numbers = #tpu.dot_dimension_numbers<[1], [0], [0], [1], [0, 0, 1, 1], [], []>} : vector<256x256xbf16>, vector<256x128xbf16>, vector<256x128xf32> -> vector<256x128xf32>
    %50 = arith.truncf %38 : vector<256x32xf32> to vector<256x32xbf16>
    %c1_30 = arith.constant 1 : index
    %c0_31 = arith.constant 0 : index
    %c0_32 = arith.constant 0 : index
    %51 = vector.load %arg6[%c1_30, %c0_31, %c0_32] : memref<4x32x128xbf16, #tpu.memory_space<vmem>>, vector<1x32x128xbf16>
    %52 = vector.shape_cast %51 : vector<1x32x128xbf16> to vector<32x128xbf16>
    %cst_33 = arith.constant dense<0.000000e+00> : vector<256x128xf32>
    %53 = tpu.matmul %50, %52, %cst_33 {dimension_numbers = #tpu.dot_dimension_numbers<[1], [0], [0], [1], [0, 0, 1, 1], [], []>} : vector<256x32xbf16>, vector<32x128xbf16>, vector<256x128xf32> -> vector<256x128xf32>
    %54 = arith.addf %49, %53 : vector<256x128xf32>
    %55 = vector.broadcast %45 : vector<1x128xf32> to vector<256x128xf32>
    %56 = arith.addf %54, %55 : vector<256x128xf32>
    %57 = arith.negf %56 : vector<256x128xf32>
    %58 = math.exp %57 : vector<256x128xf32>
    %cst_34 = arith.constant 1.000000e+00 : f32
    %59 = vector.broadcast %cst_34 : f32 to vector<256x128xf32>
    %60 = arith.addf %59, %58 : vector<256x128xf32>
    %61 = arith.divf %59, %60 : vector<256x128xf32>
    %62 = vector.extract_strided_slice %61 {offsets = [0, 0], sizes = [256, 32], strides = [1, 1]} : vector<256x128xf32> to vector<256x32xf32>
    %63 = vector.extract_strided_slice %61 {offsets = [0, 32], sizes = [256, 32], strides = [1, 1]} : vector<256x128xf32> to vector<256x32xf32>
    %64 = vector.extract_strided_slice %61 {offsets = [0, 96], sizes = [256, 32], strides = [1, 1]} : vector<256x128xf32> to vector<256x32xf32>
    %65 = vector.extract_strided_slice %56 {offsets = [0, 64], sizes = [256, 32], strides = [1, 1]} : vector<256x128xf32> to vector<256x32xf32>
    %66 = math.tanh %65 : vector<256x32xf32>
    %67 = arith.mulf %63, %36 : vector<256x32xf32>
    %68 = arith.mulf %62, %66 : vector<256x32xf32>
    %69 = arith.addf %67, %68 : vector<256x32xf32>
    %70 = math.tanh %69 : vector<256x32xf32>
    %71 = arith.mulf %64, %70 : vector<256x32xf32>
    %72 = arith.truncf %71 : vector<256x32xf32> to vector<256x32xbf16>
    %c1_35 = arith.constant 1 : index
    %c0_36 = arith.constant 0 : index
    %c0_37 = arith.constant 0 : index
    %73 = vector.load %arg7[%c1_35, %c0_36, %c0_37] : memref<4x32x256xbf16, #tpu.memory_space<vmem>>, vector<1x32x256xbf16>
    %74 = vector.shape_cast %73 : vector<1x32x256xbf16> to vector<32x256xbf16>
    %cst_38 = arith.constant dense<0.000000e+00> : vector<256x256xf32>
    %75 = tpu.matmul %72, %74, %cst_38 {dimension_numbers = #tpu.dot_dimension_numbers<[1], [0], [0], [1], [0, 0, 1, 1], [], []>} : vector<256x32xbf16>, vector<32x256xbf16>, vector<256x256xf32> -> vector<256x256xf32>
    %76 = arith.addf %43, %75 : vector<256x256xf32>
    %77 = vector.extract_strided_slice %9 {offsets = [0, 512], sizes = [256, 256], strides = [1, 1]} : vector<256x1024xf32> to vector<256x256xf32>
    %c3 = arith.constant 3 : index
    %c0_39 = arith.constant 0 : index
    %78 = vector.load %arg9[%c3, %c0_39] : memref<7x1024xf32, #tpu.memory_space<vmem>>, vector<1x128xf32>
    %79 = arith.truncf %77 : vector<256x256xf32> to vector<256x256xbf16>
    %c2_40 = arith.constant 2 : index
    %c0_41 = arith.constant 0 : index
    %c0_42 = arith.constant 0 : index
    %80 = vector.load %arg5[%c2_40, %c0_41, %c0_42] : memref<4x256x128xbf16, #tpu.memory_space<vmem>>, vector<1x256x128xbf16>
    %81 = vector.shape_cast %80 : vector<1x256x128xbf16> to vector<256x128xbf16>
    %cst_43 = arith.constant dense<0.000000e+00> : vector<256x128xf32>
    %82 = tpu.matmul %79, %81, %cst_43 {dimension_numbers = #tpu.dot_dimension_numbers<[1], [0], [0], [1], [0, 0, 1, 1], [], []>} : vector<256x256xbf16>, vector<256x128xbf16>, vector<256x128xf32> -> vector<256x128xf32>
    %83 = arith.truncf %71 : vector<256x32xf32> to vector<256x32xbf16>
    %c2_44 = arith.constant 2 : index
    %c0_45 = arith.constant 0 : index
    %c0_46 = arith.constant 0 : index
    %84 = vector.load %arg6[%c2_44, %c0_45, %c0_46] : memref<4x32x128xbf16, #tpu.memory_space<vmem>>, vector<1x32x128xbf16>
    %85 = vector.shape_cast %84 : vector<1x32x128xbf16> to vector<32x128xbf16>
    %cst_47 = arith.constant dense<0.000000e+00> : vector<256x128xf32>
    %86 = tpu.matmul %83, %85, %cst_47 {dimension_numbers = #tpu.dot_dimension_numbers<[1], [0], [0], [1], [0, 0, 1, 1], [], []>} : vector<256x32xbf16>, vector<32x128xbf16>, vector<256x128xf32> -> vector<256x128xf32>
    %87 = arith.addf %82, %86 : vector<256x128xf32>
    %88 = vector.broadcast %78 : vector<1x128xf32> to vector<256x128xf32>
    %89 = arith.addf %87, %88 : vector<256x128xf32>
    %90 = arith.negf %89 : vector<256x128xf32>
    %91 = math.exp %90 : vector<256x128xf32>
    %cst_48 = arith.constant 1.000000e+00 : f32
    %92 = vector.broadcast %cst_48 : f32 to vector<256x128xf32>
    %93 = arith.addf %92, %91 : vector<256x128xf32>
    %94 = arith.divf %92, %93 : vector<256x128xf32>
    %95 = vector.extract_strided_slice %94 {offsets = [0, 0], sizes = [256, 32], strides = [1, 1]} : vector<256x128xf32> to vector<256x32xf32>
    %96 = vector.extract_strided_slice %94 {offsets = [0, 32], sizes = [256, 32], strides = [1, 1]} : vector<256x128xf32> to vector<256x32xf32>
    %97 = vector.extract_strided_slice %94 {offsets = [0, 96], sizes = [256, 32], strides = [1, 1]} : vector<256x128xf32> to vector<256x32xf32>
    %98 = vector.extract_strided_slice %89 {offsets = [0, 64], sizes = [256, 32], strides = [1, 1]} : vector<256x128xf32> to vector<256x32xf32>
    %99 = math.tanh %98 : vector<256x32xf32>
    %100 = arith.mulf %96, %69 : vector<256x32xf32>
    %101 = arith.mulf %95, %99 : vector<256x32xf32>
    %102 = arith.addf %100, %101 : vector<256x32xf32>
    %103 = math.tanh %102 : vector<256x32xf32>
    %104 = arith.mulf %97, %103 : vector<256x32xf32>
    %105 = arith.truncf %104 : vector<256x32xf32> to vector<256x32xbf16>
    %c2_49 = arith.constant 2 : index
    %c0_50 = arith.constant 0 : index
    %c0_51 = arith.constant 0 : index
    %106 = vector.load %arg7[%c2_49, %c0_50, %c0_51] : memref<4x32x256xbf16, #tpu.memory_space<vmem>>, vector<1x32x256xbf16>
    %107 = vector.shape_cast %106 : vector<1x32x256xbf16> to vector<32x256xbf16>
    %cst_52 = arith.constant dense<0.000000e+00> : vector<256x256xf32>
    %108 = tpu.matmul %105, %107, %cst_52 {dimension_numbers = #tpu.dot_dimension_numbers<[1], [0], [0], [1], [0, 0, 1, 1], [], []>} : vector<256x32xbf16>, vector<32x256xbf16>, vector<256x256xf32> -> vector<256x256xf32>
    %109 = arith.addf %76, %108 : vector<256x256xf32>
    %110 = vector.extract_strided_slice %9 {offsets = [0, 768], sizes = [256, 256], strides = [1, 1]} : vector<256x1024xf32> to vector<256x256xf32>
    %c4 = arith.constant 4 : index
    %c0_53 = arith.constant 0 : index
    %111 = vector.load %arg9[%c4, %c0_53] : memref<7x1024xf32, #tpu.memory_space<vmem>>, vector<1x128xf32>
    %112 = arith.truncf %110 : vector<256x256xf32> to vector<256x256xbf16>
    %c3_54 = arith.constant 3 : index
    %c0_55 = arith.constant 0 : index
    %c0_56 = arith.constant 0 : index
    %113 = vector.load %arg5[%c3_54, %c0_55, %c0_56] : memref<4x256x128xbf16, #tpu.memory_space<vmem>>, vector<1x256x128xbf16>
    %114 = vector.shape_cast %113 : vector<1x256x128xbf16> to vector<256x128xbf16>
    %cst_57 = arith.constant dense<0.000000e+00> : vector<256x128xf32>
    %115 = tpu.matmul %112, %114, %cst_57 {dimension_numbers = #tpu.dot_dimension_numbers<[1], [0], [0], [1], [0, 0, 1, 1], [], []>} : vector<256x256xbf16>, vector<256x128xbf16>, vector<256x128xf32> -> vector<256x128xf32>
    %116 = arith.truncf %104 : vector<256x32xf32> to vector<256x32xbf16>
    %c3_58 = arith.constant 3 : index
    %c0_59 = arith.constant 0 : index
    %c0_60 = arith.constant 0 : index
    %117 = vector.load %arg6[%c3_58, %c0_59, %c0_60] : memref<4x32x128xbf16, #tpu.memory_space<vmem>>, vector<1x32x128xbf16>
    %118 = vector.shape_cast %117 : vector<1x32x128xbf16> to vector<32x128xbf16>
    %cst_61 = arith.constant dense<0.000000e+00> : vector<256x128xf32>
    %119 = tpu.matmul %116, %118, %cst_61 {dimension_numbers = #tpu.dot_dimension_numbers<[1], [0], [0], [1], [0, 0, 1, 1], [], []>} : vector<256x32xbf16>, vector<32x128xbf16>, vector<256x128xf32> -> vector<256x128xf32>
    %120 = arith.addf %115, %119 : vector<256x128xf32>
    %121 = vector.broadcast %111 : vector<1x128xf32> to vector<256x128xf32>
    %122 = arith.addf %120, %121 : vector<256x128xf32>
    %123 = arith.negf %122 : vector<256x128xf32>
    %124 = math.exp %123 : vector<256x128xf32>
    %cst_62 = arith.constant 1.000000e+00 : f32
    %125 = vector.broadcast %cst_62 : f32 to vector<256x128xf32>
    %126 = arith.addf %125, %124 : vector<256x128xf32>
    %127 = arith.divf %125, %126 : vector<256x128xf32>
    %128 = vector.extract_strided_slice %127 {offsets = [0, 0], sizes = [256, 32], strides = [1, 1]} : vector<256x128xf32> to vector<256x32xf32>
    %129 = vector.extract_strided_slice %127 {offsets = [0, 32], sizes = [256, 32], strides = [1, 1]} : vector<256x128xf32> to vector<256x32xf32>
    %130 = vector.extract_strided_slice %127 {offsets = [0, 96], sizes = [256, 32], strides = [1, 1]} : vector<256x128xf32> to vector<256x32xf32>
    %131 = vector.extract_strided_slice %122 {offsets = [0, 64], sizes = [256, 32], strides = [1, 1]} : vector<256x128xf32> to vector<256x32xf32>
    %132 = math.tanh %131 : vector<256x32xf32>
    %133 = arith.mulf %129, %102 : vector<256x32xf32>
    %134 = arith.mulf %128, %132 : vector<256x32xf32>
    %135 = arith.addf %133, %134 : vector<256x32xf32>
    %136 = math.tanh %135 : vector<256x32xf32>
    %137 = arith.mulf %130, %136 : vector<256x32xf32>
    %138 = arith.truncf %137 : vector<256x32xf32> to vector<256x32xbf16>
    %c3_63 = arith.constant 3 : index
    %c0_64 = arith.constant 0 : index
    %c0_65 = arith.constant 0 : index
    %139 = vector.load %arg7[%c3_63, %c0_64, %c0_65] : memref<4x32x256xbf16, #tpu.memory_space<vmem>>, vector<1x32x256xbf16>
    %140 = vector.shape_cast %139 : vector<1x32x256xbf16> to vector<32x256xbf16>
    %cst_66 = arith.constant dense<0.000000e+00> : vector<256x256xf32>
    %141 = tpu.matmul %138, %140, %cst_66 {dimension_numbers = #tpu.dot_dimension_numbers<[1], [0], [0], [1], [0, 0, 1, 1], [], []>} : vector<256x32xbf16>, vector<32x256xbf16>, vector<256x256xf32> -> vector<256x256xf32>
    %142 = arith.addf %109, %141 : vector<256x256xf32>
    %c5 = arith.constant 5 : index
    %c0_67 = arith.constant 0 : index
    %143 = vector.load %arg9[%c5, %c0_67] : memref<7x1024xf32, #tpu.memory_space<vmem>>, vector<1x256xf32>
    %c6 = arith.constant 6 : index
    %c0_68 = arith.constant 0 : index
    %144 = vector.load %arg9[%c6, %c0_68] : memref<7x1024xf32, #tpu.memory_space<vmem>>, vector<1x128xf32>
    %145 = vector.broadcast %143 : vector<1x256xf32> to vector<256x256xf32>
    %146 = arith.addf %142, %145 : vector<256x256xf32>
    %cst_69 = arith.constant 0.000000e+00 : f32
    %147 = vector.broadcast %cst_69 : f32 to vector<256x256xf32>
    %148 = arith.maximumf %146, %147 : vector<256x256xf32>
    %149 = arith.truncf %148 : vector<256x256xf32> to vector<256x256xbf16>
    %c0_70 = arith.constant 0 : index
    %c0_71 = arith.constant 0 : index
    %150 = vector.load %arg8[%c0_70, %c0_71] : memref<256x128xbf16, #tpu.memory_space<vmem>>, vector<256x128xbf16>
    %cst_72 = arith.constant dense<0.000000e+00> : vector<256x128xf32>
    %151 = tpu.matmul %149, %150, %cst_72 {dimension_numbers = #tpu.dot_dimension_numbers<[1], [0], [0], [1], [0, 0, 1, 1], [], []>} : vector<256x256xbf16>, vector<256x128xbf16>, vector<256x128xf32> -> vector<256x128xf32>
    %152 = vector.broadcast %144 : vector<1x128xf32> to vector<256x128xf32>
    %153 = arith.addf %151, %152 : vector<256x128xf32>
    %cst_73 = arith.constant 0.000000e+00 : f32
    %154 = vector.broadcast %cst_73 : f32 to vector<256x128xf32>
    %155 = arith.maximumf %153, %154 : vector<256x128xf32>
    %156 = arith.truncf %155 : vector<256x128xf32> to vector<256x128xbf16>
    %c0_74 = arith.constant 0 : index
    %c0_75 = arith.constant 0 : index
    %157 = vector.load %arg10[%c0_74, %c0_75] : memref<256x128xbf16, #tpu.memory_space<vmem>>, vector<256x128xbf16>
    tpu.vector_store %arg10[%c0_74, %c0_75], %156 {strides = array<i32>} : memref<256x128xbf16, #tpu.memory_space<vmem>>, vector<256x128xbf16>,
    return
  }
  func.func @transform_0(%arg0: i32) -> (i32, i32) {
    %c0_i32 = arith.constant 0 : i32
    %c0_i32_0 = arith.constant 0 : i32
    return %arg0, %c0_i32 : i32, i32
  }
  func.func @transform_1(%arg0: i32) -> (i32, i32) {
    %c0_i32 = arith.constant 0 : i32
    %c0_i32_0 = arith.constant 0 : i32
    return %arg0, %c0_i32 : i32, i32
  }
  func.func @transform_2(%arg0: i32) -> (i32, i32) {
    %c0_i32 = arith.constant 0 : i32
    %c0_i32_0 = arith.constant 0 : i32
    return %arg0, %c0_i32 : i32, i32
  }
  func.func @transform_3(%arg0: i32) -> (i32, i32) {
    %c0_i32 = arith.constant 0 : i32
    %c0_i32_0 = arith.constant 0 : i32
    %c0_i32_1 = arith.constant 0 : i32
    return %c0_i32, %c0_i32_0 : i32, i32
  }
  func.func @transform_4(%arg0: i32) -> (i32, i32, i32) {
    %c0_i32 = arith.constant 0 : i32
    %c0_i32_0 = arith.constant 0 : i32
    %c0_i32_1 = arith.constant 0 : i32
    %c0_i32_2 = arith.constant 0 : i32
    return %c0_i32, %c0_i32_0, %c0_i32_1 : i32, i32, i32
  }
  func.func @transform_5(%arg0: i32) -> (i32, i32, i32) {
    %c0_i32 = arith.constant 0 : i32
    %c0_i32_0 = arith.constant 0 : i32
    %c0_i32_1 = arith.constant 0 : i32
    %c0_i32_2 = arith.constant 0 : i32
    return %c0_i32, %c0_i32_0, %c0_i32_1 : i32, i32, i32
  }
  func.func @transform_6(%arg0: i32) -> (i32, i32, i32) {
    %c0_i32 = arith.constant 0 : i32
    %c0_i32_0 = arith.constant 0 : i32
    %c0_i32_1 = arith.constant 0 : i32
    %c0_i32_2 = arith.constant 0 : i32
    return %c0_i32, %c0_i32_0, %c0_i32_1 : i32, i32, i32
  }
  func.func @transform_7(%arg0: i32) -> (i32, i32) {
    %c0_i32 = arith.constant 0 : i32
    %c0_i32_0 = arith.constant 0 : i32
    %c0_i32_1 = arith.constant 0 : i32
    return %c0_i32, %c0_i32_0 : i32, i32
  }
  func.func @transform_8(%arg0: i32) -> (i32, i32) {
    %c0_i32 = arith.constant 0 : i32
    %c0_i32_0 = arith.constant 0 : i32
    %c0_i32_1 = arith.constant 0 : i32
    return %c0_i32, %c0_i32_0 : i32, i32
  }
  func.func @transform_9(%arg0: i32) -> (i32, i32) {
    %c0_i32 = arith.constant 0 : i32
    %c0_i32_0 = arith.constant 0 : i32
    return %arg0, %c0_i32 : i32, i32
  }
}

</mosaic_0001>

<bundles_post_ra>
// kernel: feature_mapper.1
= control target key start
LH: loop header
LB: loop body
LE: loop exit
PB: predicated region body
PF: predicated region fallthrough
CT: control target
= control target key end

     0   :  { %s12557_s30 = smov 0   ;;  %s17078_s0 = inlined_call_operand.vmem [shape: bf16[512,128], index: 0, kind: input, shape index: {}]   ;;  %s17079_s1 = inlined_call_operand.vmem [shape: f32[512,32], index: 1, kind: input, shape index: {}]   ;;  %s17080_s2 = inlined_call_operand.vmem [shape: f32[512,32], index: 2, kind: input, shape index: {}]   ;;  %s17081_s3 = inlined_call_operand.vmem [shape: bf16[128,1024], index: 3, kind: input, shape index: {}]   ;;  %s17082_s4 = inlined_call_operand.vmem [shape: bf16[4,256,128], index: 4, kind: input, shape index: {}]   ;;  %s17083_s5 = inlined_call_operand.vmem [shape: bf16[4,32,128], index: 5, kind: input, shape index: {}]   ;;  %s17084_s6 = inlined_call_operand.vmem [shape: bf16[4,32,256], index: 6, kind: input, shape index: {}]   ;;  %s17085_s7 = inlined_call_operand.vmem [shape: bf16[256,128], index: 7, kind: input, shape index: {}]   ;;  %s17086_s8 = inlined_call_operand.vmem [shape: f32[7,1024], index: 8, kind: input, shape index: {}]   ;;  %s17087_s9 = inlined_call_operand.vmem [shape: bf16[512,128], index: 9, kind: output, shape index: {}]  }
   0x1 LB: > { %s9606_s10 = sadd.s32 4294967295, %s12502_s30   ;;  %p9610_p0 = scmp.ge.s32.totalorder %s12502_s30, 1  ;;  %s12502_s30 = sphi %s12557_s30, %s19_s30  }
   0x2   : > { %p310_p1 = scmp.lt.s32.totalorder %s12502_s30, 3 }
   0x4   : > { %p311_p2 = pnand %p9610_p0, %p310_p1 }
   0x6   : > { %314 = sbr.rel (%p311_p2) target bundleno = 4229 (0x1085), region = 56 }
   0xd   : > { %v480_v0 = vld [vmem:[%s17081_s3] sm:$0xff]  ;;  %s9611_s17 = sshll.u32 %s9606_s10, 5  ;;  %v17090_v6 = vmov 0   ;;  %v481_v32 = vld [vmem:[%s17081_s3 + $0x8] sm:$0xff]  ;;  %v482_v44 = vld [vmem:[%s17081_s3 + $0x10] sm:$0xff]  ;;  %vm2126_vm0 = vcmask 261120  }
   0xe   : > { %v484_v1 = vld [vmem:[%s17081_s3 + $0x20] sm:$0xff]  ;;  %1113 = vmatprep.mubr.bf16.mxu1 %v17090_v6  ;;  %p357_p3 = scmp.lt.s32.totalorder %s9611_s17, 63  ;;  %1033 = vmatprep.mubr.bf16.mxu0 %v17090_v6  ;;  %v485_v33 = vld [vmem:[%s17081_s3 + $0x28] sm:$0xff]  ;;  %v486_v48 = vld [vmem:[%s17081_s3 + $0x30] sm:$0xff]  ;;  %s12505_s21 = smov 32  }
   0xf   : > { %v488_v2 = vld [vmem:[%s17081_s3 + $0x40] sm:$0xff]  ;;  %v9636_v3 = vcombine.high %v480_v0, %v484_v1  ;;  %v9635_v4 = vcombine.low %v480_v0, %v484_v1  ;;  %v489_v35 = vld [vmem:[%s17081_s3 + $0x48] sm:$0xff]  ;;  %v9638_v38 = vcombine.high %v481_v32, %v485_v33  ;;  %v9637_v39 = vcombine.low %v481_v32, %v485_v33  ;;  %v490_v58 = vld [vmem:[%s17081_s3 + $0x50] sm:$0xff]  ;;  %s12506_s23 = smov 64  }
  0x10   : > { %v492_v5 = vld [vmem:[%s17081_s3 + $0x60] sm:$0xff]  ;;  %s17506_s17 = smov (!%p357_p3, %s9611_s17), 63  ;;  %v493_v36 = vld [vmem:[%s17081_s3 + $0x68] sm:$0xff]  ;;  %v9639_v51 = vcombine.low %v482_v44, %v486_v48  ;;  %v9640_v52 = vcombine.high %v482_v44, %v486_v48  ;;  %v494_v59 = vld [vmem:[%s17081_s3 + $0x70] sm:$0xff] }
  0x11   : > { %v9644_v7 = vcombine.high %v488_v2, %v492_v5  ;;  %v496_v8 = vld [vmem:[%s17081_s3 + $0x80] sm:$0xff]  ;;  %11117 = vmatprep.subr.bf16.mxu1 %v9636_v3  ;;  %1001 = vmatprep.subr.bf16.mxu0 %v9636_v3  ;;  %v9643_v10 = vcombine.low %v488_v2, %v492_v5  ;;  %s9612_s24 = sshll.u32 %s17506_s17, 2  ;;  %v497_v40 = vld [vmem:[%s17081_s3 + $0x88] sm:$0xff]  ;;  %v9646_v42 = vcombine.high %v489_v35, %v493_v36  ;;  %v518_v32 = vld [vmem:[%s17081_s3 + $0x130] sm:$0xff]  ;;  %s9614_s10 = sshll.u32 %s17506_s17, 3 }
  0x12   : > { %v500_v9 = vld [vmem:[%s17081_s3 + $0xa0] sm:$0xff]  ;;  %11125 = vmatpush1.bf16.msra.mxu1 %v9635_v4  ;;  %1002 = vmatpush1.bf16.msra.mxu0 %v9635_v4  ;;  %s12599_s11 = scalar_lea.vmem %s17078_s0, %s9612_s24  ;;  %v501_v41 = vld [vmem:[%s17081_s3 + $0xa8] sm:$0xff]  ;;  %v9645_v45 = vcombine.low %v489_v35, %v493_v36  ;;  %v9647_v63 = vcombine.low %v490_v58, %v494_v59  ;;  %v9648_v0 = vcombine.high %v490_v58, %v494_v59  ;;  %s12935_s14 = scalar_lea.vmem %s17079_s1, %s9614_s10 }
  0x13   : > { %11118 = vmatprep.subr.bf16.mxu1 %v9644_v7  ;;  %v9652_v11 = vcombine.high %v496_v8, %v500_v9  ;;  %v504_v12 = vld [vmem:[%s17081_s3 + $0xc0] sm:$0xff]  ;;  %1003 = vmatprep.subr.bf16.mxu0 %v9644_v7  ;;  %v9651_v14 = vcombine.low %v496_v8, %v500_v9  ;;  %v505_v46 = vld [vmem:[%s17081_s3 + $0xc8] sm:$0xff]  ;;  %v9654_v50 = vcombine.high %v497_v40, %v501_v41  ;;  %v12692_v1 = vld [vmem:[%s12599_s11 + $0x50] sm:$0xff]   ;;  %s13327_s20 = scalar_lea.vmem %s17080_s2, %s9614_s10  ;;  %s17027_s29 = scalar_lea.vmem %s17087_s9, %s9612_s24 }
  0x14   : > { %v508_v13 = vld [vmem:[%s17081_s3 + $0xe0] sm:$0xff]  ;;  %v509_v47 = vld [vmem:[%s17081_s3 + $0xe8] sm:$0xff]  ;;  %v9653_v53 = vcombine.low %v497_v40, %v501_v41  ;;  %v12704_v8 = vld [vmem:[%s12599_s11 + $0x10] sm:$0xff]  }
  0x15   : > { %v9660_v15 = vcombine.high %v504_v12, %v508_v13  ;;  %v512_v16 = vld [vmem:[%s17081_s3 + $0x100] sm:$0xff]  ;;  %v9659_v18 = vcombine.low %v504_v12, %v508_v13  ;;  %v12664_v49 = vld [vmem:[%s12599_s11 + $0x48] sm:$0xff]   ;;  %v9662_v56 = vcombine.high %v505_v46, %v509_v47  ;;  %v9661_v60 = vcombine.low %v505_v46, %v509_v47  ;;  %v498_v9 = vld [vmem:[%s17081_s3 + $0x90] sm:$0xff] }
  0x16   : > { %11126 = vmatpush1.bf16.msra.mxu1 %v9643_v10  ;;  %1004 = vmatpush1.bf16.msra.mxu0 %v9643_v10  ;;  %v516_v17 = vld [vmem:[%s17081_s3 + $0x120] sm:$0xff]  ;;  %v513_v54 = vld [vmem:[%s17081_s3 + $0x108] sm:$0xff]  ;;  %v502_v13 = vld [vmem:[%s17081_s3 + $0xb0] sm:$0xff] }
  0x17   : > { %11119 = vmatprep.subr.bf16.mxu1 %v9652_v11  ;;  %1005 = vmatprep.subr.bf16.mxu0 %v9652_v11  ;;  %v9668_v19 = vcombine.high %v512_v16, %v516_v17  ;;  %v520_v20 = vld [vmem:[%s17081_s3 + $0x140] sm:$0xff]  ;;  %v9667_v22 = vcombine.low %v512_v16, %v516_v17  ;;  %v517_v55 = vld [vmem:[%s17081_s3 + $0x128] sm:$0xff]  ;;  %v9655_v16 = vcombine.low %v498_v9, %v502_v13  ;;  %v12786_v44 = vld [vmem:[%s12599_s11 + $0x30] sm:$0xff]  }
  0x18   : > { %v524_v21 = vld [vmem:[%s17081_s3 + $0x160] sm:$0xff]  ;;  %v12675_v57 = vld [vmem:[%s12599_s11 + $0x8] sm:$0xff]   ;;  %v9670_v2 = vcombine.high %v513_v54, %v517_v55  ;;  %v9669_v3 = vcombine.low %v513_v54, %v517_v55  ;;  %v9656_v17 = vcombine.high %v498_v9, %v502_v13  ;;  %v534_v46 = vld [vmem:[%s17081_s3 + $0x1b0] sm:$0xff] }
  0x19   : > { %v9676_v23 = vcombine.high %v520_v20, %v524_v21  ;;  %v528_v24 = vld [vmem:[%s17081_s3 + $0x180] sm:$0xff]  ;;  %v9675_v26 = vcombine.low %v520_v20, %v524_v21  ;;  %v521_v61 = vld [vmem:[%s17081_s3 + $0x148] sm:$0xff]  ;;  %v12732_v20 = vld [vmem:[%s17081_s3 + $0x38] sm:$0xff] }
  0x1a   : > { %11127 = vmatpush1.bf16.msra.mxu1 %v9651_v14  ;;  %1006 = vmatpush1.bf16.msra.mxu0 %v9651_v14  ;;  %v532_v25 = vld [vmem:[%s17081_s3 + $0x1a0] sm:$0xff]  ;;  %v525_v62 = vld [vmem:[%s17081_s3 + $0x168] sm:$0xff]  ;;  %v12720_v14 = vld [vmem:[%s12599_s11 + $0x58] sm:$0xff]  }
  0x1b   : > { %11120 = vmatprep.subr.bf16.mxu1 %v9660_v15  ;;  %1007 = vmatprep.subr.bf16.mxu0 %v9660_v15  ;;  %v9684_v27 = vcombine.high %v528_v24, %v532_v25  ;;  %v536_v28 = vld [vmem:[%s17081_s3 + $0x1c0] sm:$0xff]  ;;  %v9683_v30 = vcombine.low %v528_v24, %v532_v25  ;;  %v529_v4 = vld [vmem:[%s17081_s3 + $0x188] sm:$0xff]  ;;  %v9678_v7 = vcombine.high %v521_v61, %v525_v62  ;;  %v510_v24 = vld [vmem:[%s17081_s3 + $0xf0] sm:$0xff] }
  0x1c   : > { %v540_v29 = vld [vmem:[%s17081_s3 + $0x1e0] sm:$0xff]  ;;  %v533_v5 = vld [vmem:[%s17081_s3 + $0x1a8] sm:$0xff]  ;;  %v9677_v10 = vcombine.low %v521_v61, %v525_v62  ;;  %v12796_v47 = vld [vmem:[%s12599_s11 + $0x78] sm:$0xff]  }
  0x1d   : > { %v9692_v31 = vcombine.high %v536_v28, %v540_v29  ;;  %v9691_v34 = vcombine.low %v536_v28, %v540_v29  ;;  %v12638_v37 = vld [vmem:[%s12599_s11 + $0x40] sm:$0xff]   ;;  %v537_v11 = vld [vmem:[%s17081_s3 + $0x1c8] sm:$0xff]  ;;  %v9686_v15 = vcombine.high %v529_v4, %v533_v5  ;;  %v491_v54 = vld [vmem:[%s17081_s3 + $0x58] sm:$0xff] }
  0x1e   : > { %11128 = vmatpush1.bf16.msra.mxu1 %v9659_v18  ;;  %1008 = vmatpush1.bf16.msra.mxu0 %v9659_v18  ;;  %v12648_v43 = vld [vmem:[%s12599_s11] sm:$0xff]   ;;  %v541_v12 = vld [vmem:[%s17081_s3 + $0x1e8] sm:$0xff]  ;;  %v9685_v18 = vcombine.low %v529_v4, %v533_v5  ;;  %v495_v55 = vld [vmem:[%s17081_s3 + $0x78] sm:$0xff] }
  0x1f   : > { %11121 = vmatprep.subr.bf16.mxu1 %v9668_v19  ;;  %1009 = vmatprep.subr.bf16.mxu0 %v9668_v19  ;;  %v12727_v19 = vld [vmem:[%s17081_s3 + $0x18] sm:$0xff]  ;;  %v9694_v21 = vcombine.high %v537_v11, %v541_v12  ;;  %v9693_v25 = vcombine.low %v537_v11, %v541_v12  ;;  %v12746_v28 = vld [vmem:[%s12599_s11 + $0x60] sm:$0xff]   ;;  %v12764_v33 = vld [vmem:[%s12599_s11 + $0x68] sm:$0xff]   ;;  %v9650_v62 = vcombine.high %v491_v54, %v495_v55 }
  0x20   : > { %v9642_v29 = vcombine.high %v12727_v19, %v12732_v20  ;;  %v12769_v36 = vld [vmem:[%s12599_s11 + $0x28] sm:$0xff]   ;;  %v9641_v59 = vcombine.low %v12727_v19, %v12732_v20  ;;  %v503_v61 = vld [vmem:[%s17081_s3 + $0xb8] sm:$0xff] }
  0x21   : > { %v511_v4 = vld [vmem:[%s17081_s3 + $0xf8] sm:$0xff] }
  0x22   : > { %11129 = vmatpush1.bf16.msra.mxu1 %v9667_v22  ;;  %1010 = vmatpush1.bf16.msra.mxu0 %v9667_v22  ;;  %v12735_v22 = vld [vmem:[%s12599_s11 + $0x18] sm:$0xff]  }
  0x23   : > { %11122 = vmatprep.subr.bf16.mxu1 %v9676_v23  ;;  %1011 = vmatprep.subr.bf16.mxu0 %v9676_v23  ;;  %v506_v23 = vld [vmem:[%s17081_s3 + $0xd0] sm:$0xff]  ;;  %v515_v9 = vld [vmem:[%s17081_s3 + $0x118] sm:$0xff] }
  0x24   : > { %v523_v13 = vld [vmem:[%s17081_s3 + $0x158] sm:$0xff] }
  0x25   : > { %v535_v19 = vld [vmem:[%s17081_s3 + $0x1b8] sm:$0xff] }
  0x26   : > { %11130 = vmatpush1.bf16.msra.mxu1 %v9675_v26  ;;  %1012 = vmatpush1.bf16.msra.mxu0 %v9675_v26  ;;  %v9663_v26 = vcombine.low %v506_v23, %v510_v24 }
  0x27   : > { %11123 = vmatprep.subr.bf16.mxu1 %v9684_v27  ;;  %1013 = vmatprep.subr.bf16.mxu0 %v9684_v27  ;;  %v9664_v27 = vcombine.high %v506_v23, %v510_v24  ;;  %v539_v23 = vld [vmem:[%s17081_s3 + $0x1d8] sm:$0xff] }
  0x28   : > { %v543_v24 = vld [vmem:[%s17081_s3 + $0x1f8] sm:$0xff] }
  0x2a   : > { %11131 = vmatpush1.bf16.msra.mxu1 %v9683_v30  ;;  %1014 = vmatpush1.bf16.msra.mxu0 %v9683_v30  ;;  %v12754_v30 = vld [vmem:[%s12599_s11 + $0x20] sm:$0xff]  }
  0x2b   : > { %11124 = vmatprep.subr.bf16.mxu1 %v9692_v31  ;;  %1015 = vmatprep.subr.bf16.mxu0 %v9692_v31  ;;  %v514_v31 = vld [vmem:[%s17081_s3 + $0x110] sm:$0xff] }
  0x2c   : > { %v9672_v35 = vcombine.high %v514_v31, %v518_v32 }
  0x2e   : > { %11132 = vmatpush1.bf16.msra.mxu1 %v9691_v34  ;;  %1016 = vmatpush1.bf16.msra.mxu0 %v9691_v34  ;;  %v9671_v34 = vcombine.low %v514_v31, %v518_v32  ;;  %v11363_v31 = vld [vmem:[%s17083_s5 + $0x8] sm:$0xff]   ;;  %v11353_v32 = vld [vmem:[%s17082_s4] sm:$0xff]  }
  0x2f   : > { %1194 = vmatprep.subr.bf16.mxu1 %v9638_v38  ;;  %1387 = vmatprep.subr.bf16.mxu0 %v9640_v52  ;;  %v522_v38 = vld [vmem:[%s17081_s3 + $0x150] sm:$0xff] }
  0x30   : > { %v538_v52 = vld [vmem:[%s17081_s3 + $0x1d0] sm:$0xff] }
  0x31   : > { %1114 = vmatmul.mubr.bf16.vlgmr.msra.gmra.mrb[0].mxu1 %v12638_v37  ;;  %1034 = vmatmul.mubr.bf16.vlgmr.msra.gmra.mrb[0].mxu0 %v12648_v43 }
  0x32   : > { %1195 = vmatpush1.bf16.msra.mxu1 %v9637_v39  ;;  %1123 = vmatprep.mubr.bf16.mxu1 %v17090_v6  ;;  %v526_v39 = vld [vmem:[%s17081_s3 + $0x170] sm:$0xff] }
  0x33   : > { %1196 = vmatprep.subr.bf16.mxu1 %v9646_v42  ;;  %1043 = vmatprep.mubr.bf16.mxu0 %v17090_v6  ;;  %v9679_v40 = vcombine.low %v522_v38, %v526_v39  ;;  %v9680_v41 = vcombine.high %v522_v38, %v526_v39  ;;  %v12780_v42 = vld [vmem:[%s12599_s11 + $0x70] sm:$0xff]   ;;  %v545_v39 = vlaneseq }
  0x34   : > { %1388 = vmatpush1.bf16.msra.mxu0 %v9639_v51  ;;  %v12801_v51 = vld [vmem:[%s12599_s11 + $0x38] sm:$0xff]   ;;  %v11357_v38 = vld [vmem:[%s17082_s4 + $0x50] sm:$0xff]  }
  0x35   : > { %1389 = vmatprep.subr.bf16.mxu0 %v9648_v0  ;;  %v11354_v0 = vld [vmem:[%s17083_s5] sm:$0xff]  }
  0x36   : > { %1197 = vmatpush1.bf16.msra.mxu1 %v9645_v45  ;;  %v530_v45 = vld [vmem:[%s17081_s3 + $0x190] sm:$0xff] }
  0x37   : > { %1198 = vmatprep.subr.bf16.mxu1 %v9654_v50  ;;  %v9687_v48 = vcombine.low %v530_v45, %v534_v46  ;;  %v9688_v50 = vcombine.high %v530_v45, %v534_v46  ;;  %v11360_v45 = vld [vmem:[%s17082_s4 + $0x18] sm:$0xff]   ;;  %v11361_v46 = vld [vmem:[%s17082_s4 + $0x60] sm:$0xff]  }
  0x38   : > { %1390 = vmatpush1.bf16.msra.mxu0 %v9647_v63  ;;  %v9649_v63 = vcombine.low %v491_v54, %v495_v55  ;;  %v385_v54 = vld [vmem:[%s12935_s14 + $0x20] sm:$0xff]  ;;  %v386_v55 = vld [vmem:[%s12935_s14 + $0x28] sm:$0xff] }
  0x39   : > { %1124 = vmatmul.mubr.bf16.gmra.mrb[4].mxu1 %v12664_v49  ;;  %1044 = vmatmul.mubr.bf16.gmra.mrb[4].mxu0 %v12675_v57 }
  0x3a   : > { %1133 = vmatprep.mubr.bf16.mxu1 %v17090_v6  ;;  %1199 = vmatpush1.bf16.msra.mxu1 %v9653_v53  ;;  %v542_v53 = vld [vmem:[%s17081_s3 + $0x1f0] sm:$0xff] }
  0x3b   : > { %1200 = vmatprep.subr.bf16.mxu1 %v9662_v56  ;;  %1053 = vmatprep.mubr.bf16.mxu0 %v17090_v6  ;;  %v9695_v56 = vcombine.low %v538_v52, %v542_v53  ;;  %v9696_v58 = vcombine.high %v538_v52, %v542_v53  ;;  %v11364_v53 = vld [vmem:[%s17082_s4 + $0x68] sm:$0xff]  }
  0x3c   : > { %1391 = vmatprep.subr.bf16.mxu0 %v9656_v17 }
  0x3d   : > { %1392 = vmatpush1.bf16.msra.mxu0 %v9655_v16 }
  0x3e   : > { %1201 = vmatpush1.bf16.msra.mxu1 %v9661_v60  ;;  %1393 = vmatprep.subr.bf16.mxu0 %v9664_v27  ;;  %v499_v60 = vld [vmem:[%s17081_s3 + $0x98] sm:$0xff]  ;;  %v9697_v27 = vcombine.low %v539_v23, %v543_v24 }
  0x3f   : > { %1202 = vmatprep.subr.bf16.mxu1 %v9670_v2  ;;  %v9658_v2 = vcombine.high %v499_v60, %v503_v61  ;;  %v9657_v5 = vcombine.low %v499_v60, %v503_v61 }
  0x41   : > { %1134 = vmatmul.mubr.bf16.gmra.mrb[8].mxu1 %v12692_v1  ;;  %1054 = vmatmul.mubr.bf16.gmra.mrb[8].mxu0 %v12704_v8 }
  0x42   : > { %1143 = vmatprep.mubr.bf16.mxu1 %v17090_v6  ;;  %1203 = vmatpush1.bf16.msra.mxu1 %v9669_v3  ;;  %v507_v3 = vld [vmem:[%s17081_s3 + $0xd8] sm:$0xff] }
  0x43   : > { %1204 = vmatprep.subr.bf16.mxu1 %v9678_v7  ;;  %1063 = vmatprep.mubr.bf16.mxu0 %v17090_v6  ;;  %v9666_v7 = vcombine.high %v507_v3, %v511_v4  ;;  %v9665_v11 = vcombine.low %v507_v3, %v511_v4 }
  0x44   : > { %1394 = vmatpush1.bf16.msra.mxu0 %v9663_v26  ;;  %v9698_v26 = vcombine.high %v539_v23, %v543_v24 }
  0x45   : > { %1395 = vmatprep.subr.bf16.mxu0 %v9672_v35  ;;  %v11356_v35 = vld [vmem:[%s17082_s4 + $0x8] sm:$0xff]  }
  0x46   : > { %1205 = vmatpush1.bf16.msra.mxu1 %v9677_v10  ;;  %v519_v10 = vld [vmem:[%s17081_s3 + $0x138] sm:$0xff] }
  0x47   : > { %1206 = vmatprep.subr.bf16.mxu1 %v9686_v15  ;;  %v9674_v12 = vcombine.high %v515_v9, %v519_v10  ;;  %v527_v15 = vld [vmem:[%s17081_s3 + $0x178] sm:$0xff]  ;;  %v9673_v16 = vcombine.low %v515_v9, %v519_v10 }
  0x48   : > { %1396 = vmatpush1.bf16.msra.mxu0 %v9671_v34  ;;  %v9682_v17 = vcombine.high %v523_v13, %v527_v15  ;;  %v9681_v20 = vcombine.low %v523_v13, %v527_v15 }
  0x49   : > { %1144 = vmatmul.mubr.bf16.gmra.mrb[12].mxu1 %v12720_v14  ;;  %1064 = vmatmul.mubr.bf16.gmra.mrb[12].mxu0 %v12735_v22 }
  0x4a   : > { %1153 = vmatprep.mubr.bf16.mxu1 %v17090_v6  ;;  %1207 = vmatpush1.bf16.msra.mxu1 %v9685_v18  ;;  %v531_v18 = vld [vmem:[%s17081_s3 + $0x198] sm:$0xff] }
  0x4b   : > { %1208 = vmatprep.subr.bf16.mxu1 %v9694_v21  ;;  %1073 = vmatprep.mubr.bf16.mxu0 %v17090_v6  ;;  %v9690_v21 = vcombine.high %v531_v18, %v535_v19 }
  0x4c   : > { %1397 = vmatprep.subr.bf16.mxu0 %v9680_v41  ;;  %v445_v41 = vld [vmem:[%s17086_s8] ss:$8 sm:$0xf] }
  0x4d   : > { %1398 = vmatpush1.bf16.msra.mxu0 %v9679_v40  ;;  %v11359_v40 = vld [vmem:[%s17082_s4 + $0x58] sm:$0xff]  }
  0x4e   : > { %1209 = vmatpush1.bf16.msra.mxu1 %v9693_v25  ;;  %1399 = vmatprep.subr.bf16.mxu0 %v9688_v50  ;;  %v9689_v25 = vcombine.low %v531_v18, %v535_v19  ;;  %v11362_v50 = vld [vmem:[%s17082_s4 + $0x20] sm:$0xff]  }
  0x4f   : > { %1580 = vmatprep.subr.bf16.mxu1 %v9642_v29  ;;  %v11352_v29 = vld [vmem:[%s17082_s4 + $0x40] sm:$0xff]  }
  0x51   : > { %1154 = vmatmul.mubr.bf16.gmra.mrb[16].mxu1 %v12746_v28  ;;  %1074 = vmatmul.mubr.bf16.gmra.mrb[16].mxu0 %v12754_v30 }
  0x52   : > { %1163 = vmatprep.mubr.bf16.mxu1 %v17090_v6  ;;  %1083 = vmatprep.mubr.bf16.mxu0 %v17090_v6 }
  0x53   : > { %1400 = vmatpush1.bf16.msra.mxu0 %v9687_v48 }
  0x54   : > { %1401 = vmatprep.subr.bf16.mxu0 %v9696_v58  ;;  %v387_v58 = vld [vmem:[%s12935_s14 + $0x30] sm:$0xff] }
  0x57   : > { %1402 = vmatpush1.bf16.msra.mxu0 %v9695_v56  ;;  %v2096_v56 = vpack.c.bf16 %v386_v55, %v385_v54  ;;  %v391_v55 = vld [vmem:[%s12935_s14 + $0x50] sm:$0xff] }
  0x58   : > { %10973 = vmatprep.subr.bf16.mxu0 %v11354_v0 }
  0x59   : > { %1164 = vmatmul.mubr.bf16.gmra.mrb[20].mxu1 %v12764_v33  ;;  %1084 = vmatmul.mubr.bf16.gmra.mrb[20].mxu0 %v12769_v36 }
  0x5a   : > { %1173 = vmatprep.mubr.bf16.mxu1 %v17090_v6  ;;  %1093 = vmatprep.mubr.bf16.mxu0 %v17090_v6 }
  0x61   : > { %1174 = vmatmul.mubr.bf16.gmra.mrb[24].mxu1 %v12780_v42  ;;  %1094 = vmatmul.mubr.bf16.gmra.mrb[24].mxu0 %v12786_v44 }
  0x62   : > { %1183 = vmatprep.mubr.bf16.mxu1 %v17090_v6  ;;  %1103 = vmatprep.mubr.bf16.mxu0 %v17090_v6 }
  0x69   : > { %1184 = vmatmul.mubr.bf16.gmra.mrb[28].mxu1 %v12796_v47  ;;  %1104 = vmatmul.mubr.bf16.gmra.mrb[28].mxu0 %v12801_v51 }
  0x6a   : > { %1226 = vmatprep.mubr.bf16.mxu1 %v17090_v6  ;;  %1419 = vmatprep.mubr.bf16.mxu0 %v17090_v6 }
  0x71   : > { %1227 = vmatmul.mubr.bf16.vlgmr.msra.gmra.mrb[32].mxu1 %v12648_v43  ;;  %1420 = vmatmul.mubr.bf16.vlgmr.msra.gmra.mrb[32].mxu0 %v12648_v43 }
  0x72   : > { %1581 = vmatpush1.bf16.msra.mxu1 %v9641_v59  ;;  %1236 = vmatprep.mubr.bf16.mxu1 %v17090_v6  ;;  %v388_v59 = vld [vmem:[%s12935_s14 + $0x38] sm:$0xff] }
  0x73   : > { %1582 = vmatprep.subr.bf16.mxu1 %v9650_v62  ;;  %1429 = vmatprep.mubr.bf16.mxu0 %v17090_v6  ;;  %v2097_v61 = vpack.c.bf16 %v388_v59, %v387_v58  ;;  %v11365_v62 = vld [vmem:[%s17082_s4 + $0x28] sm:$0xff]  }
  0x74   : > { %10974 = vmatpush3.bf16.msra.mxu0 %v11354_v0 }
  0x75   : > { %10975 = vmatprep.subr.bf16.mxu0 %v11363_v31 }
  0x76   : > { %1583 = vmatpush1.bf16.msra.mxu1 %v9649_v63 }
  0x77   : > { %1584 = vmatprep.subr.bf16.mxu1 %v9658_v2 }
  0x78   : > { %10976 = vmatpush3.bf16.msra.mxu0 %v11363_v31 }
  0x79   : > { %1237 = vmatmul.mubr.bf16.gmra.mrb[36].mxu1 %v12675_v57  ;;  %1430 = vmatmul.mubr.bf16.gmra.mrb[36].mxu0 %v12675_v57 }
  0x7a   : > { %1246 = vmatprep.mubr.bf16.mxu1 %v17090_v6  ;;  %1585 = vmatpush1.bf16.msra.mxu1 %v9657_v5  ;;  %v11367_v5 = vld [vmem:[%s17082_s4 + $0x30] sm:$0xff]  }
  0x7b   : > { %1586 = vmatprep.subr.bf16.mxu1 %v9666_v7  ;;  %1439 = vmatprep.mubr.bf16.mxu0 %v17090_v6 }
  0x7e   : > { %1587 = vmatpush1.bf16.msra.mxu1 %v9665_v11  ;;  %v11368_v11 = vld [vmem:[%s17082_s4 + $0x78] sm:$0xff]  }
  0x7f   : > { %1588 = vmatprep.subr.bf16.mxu1 %v9674_v12 }
  0x81   : > { %1247 = vmatmul.mubr.bf16.gmra.mrb[40].mxu1 %v12704_v8  ;;  %1440 = vmatmul.mubr.bf16.gmra.mrb[40].mxu0 %v12704_v8 }
  0x82   : > { %1256 = vmatprep.mubr.bf16.mxu1 %v17090_v6  ;;  %1589 = vmatpush1.bf16.msra.mxu1 %v9673_v16 }
  0x83   : > { %1590 = vmatprep.subr.bf16.mxu1 %v9682_v17  ;;  %1449 = vmatprep.mubr.bf16.mxu0 %v17090_v6 }
  0x86   : > { %1591 = vmatpush1.bf16.msra.mxu1 %v9681_v20 }
  0x87   : > { %1592 = vmatprep.subr.bf16.mxu1 %v9690_v21 }
  0x89   : > { %1257 = vmatmul.mubr.bf16.gmra.mrb[44].mxu1 %v12735_v22  ;;  %1450 = vmatmul.mubr.bf16.gmra.mrb[44].mxu0 %v12735_v22 }
  0x8a   : > { %1266 = vmatprep.mubr.bf16.mxu1 %v17090_v6  ;;  %1593 = vmatpush1.bf16.msra.mxu1 %v9689_v25  ;;  %v11369_v25 = vld [vmem:[%s17082_s4 + $0x38] sm:$0xff]  }
  0x8b   : > { %1594 = vmatprep.subr.bf16.mxu1 %v9698_v26  ;;  %1459 = vmatprep.mubr.bf16.mxu0 %v17090_v6 }
  0x8e   : > { %1595 = vmatpush1.bf16.msra.mxu1 %v9697_v27 }
  0x8f   : > { %10359 = vmatprep.subr.bf16.mxu1 %v11352_v29 }
  0x91   : > { %1267 = vmatmul.mubr.bf16.gmra.mrb[48].mxu1 %v12754_v30  ;;  %1460 = vmatmul.mubr.bf16.gmra.mrb[48].mxu0 %v12754_v30 }
  0x92   : > { %1276 = vmatprep.mubr.bf16.mxu1 %v17090_v6  ;;  %1469 = vmatprep.mubr.bf16.mxu0 %v17090_v6 }
  0x99   : > { %1277 = vmatmul.mubr.bf16.gmra.mrb[52].mxu1 %v12769_v36  ;;  %1470 = vmatmul.mubr.bf16.gmra.mrb[52].mxu0 %v12769_v36 }
  0x9a   : > { %1286 = vmatprep.mubr.bf16.mxu1 %v17090_v6  ;;  %1479 = vmatprep.mubr.bf16.mxu0 %v17090_v6 }
  0xa1   : > { %1287 = vmatmul.mubr.bf16.gmra.mrb[56].mxu1 %v12786_v44  ;;  %1480 = vmatmul.mubr.bf16.gmra.mrb[56].mxu0 %v12786_v44 }
  0xa2   : > { %1296 = vmatprep.mubr.bf16.mxu1 %v17090_v6  ;;  %1489 = vmatprep.mubr.bf16.mxu0 %v17090_v6 }
  0xa9   : > { %1297 = vmatmul.mubr.bf16.gmra.mrb[60].mxu1 %v12801_v51  ;;  %1490 = vmatmul.mubr.bf16.gmra.mrb[60].mxu0 %v12801_v51 }
  0xaa   : > { %1306 = vmatprep.mubr.bf16.mxu1 %v17090_v6  ;;  %1499 = vmatprep.mubr.bf16.mxu0 %v17090_v6 }
  0xb1   : > { %1307 = vmatmul.mubr.bf16.gmra.mrb[64].mxu1 %v12638_v37  ;;  %1500 = vmatmul.mubr.bf16.gmra.mrb[64].mxu0 %v12638_v37  ;;  %v381_v37 = vld [vmem:[%s12935_s14] sm:$0xff] }
  0xb2   : > { %1316 = vmatprep.mubr.bf16.mxu1 %v17090_v6  ;;  %1509 = vmatprep.mubr.bf16.mxu0 %v17090_v6 }
  0xb9   : > { %1317 = vmatmul.mubr.bf16.gmra.mrb[68].mxu1 %v12664_v49  ;;  %1510 = vmatmul.mubr.bf16.gmra.mrb[68].mxu0 %v12664_v49  ;;  %v382_v49 = vld [vmem:[%s12935_s14 + $0x8] sm:$0xff] }
  0xba   : > { %1326 = vmatprep.mubr.bf16.mxu1 %v17090_v6  ;;  %1519 = vmatprep.mubr.bf16.mxu0 %v17090_v6 }
  0xc1   : > { %1327 = vmatmul.mubr.bf16.gmra.mrb[72].mxu1 %v12692_v1  ;;  %1520 = vmatmul.mubr.bf16.gmra.mrb[72].mxu0 %v12692_v1  ;;  %v2094_v1 = vpack.c.bf16 %v382_v49, %v381_v37 }
  0xc2   : > { %1336 = vmatprep.mubr.bf16.mxu1 %v17090_v6  ;;  %1529 = vmatprep.mubr.bf16.mxu0 %v17090_v6 }
  0xc9   : > { %1337 = vmatmul.mubr.bf16.gmra.mrb[76].mxu1 %v12720_v14  ;;  %1530 = vmatmul.mubr.bf16.gmra.mrb[76].mxu0 %v12720_v14  ;;  %v383_v14 = vld [vmem:[%s12935_s14 + $0x10] sm:$0xff] }
  0xca   : > { %1346 = vmatprep.mubr.bf16.mxu1 %v17090_v6  ;;  %1539 = vmatprep.mubr.bf16.mxu0 %v17090_v6 }
  0xd1   : > { %1347 = vmatmul.mubr.bf16.gmra.mrb[80].mxu1 %v12746_v28  ;;  %1540 = vmatmul.mubr.bf16.gmra.mrb[80].mxu0 %v12746_v28  ;;  %v384_v28 = vld [vmem:[%s12935_s14 + $0x18] sm:$0xff] }
  0xd2   : > { %1356 = vmatprep.mubr.bf16.mxu1 %v17090_v6  ;;  %1549 = vmatprep.mubr.bf16.mxu0 %v17090_v6  ;;  %v2095_v34 = vpack.c.bf16 %v384_v28, %v383_v14 }
  0xd9   : > { %1357 = vmatmul.mubr.bf16.gmra.mrb[84].mxu1 %v12764_v33  ;;  %1550 = vmatmul.mubr.bf16.gmra.mrb[84].mxu0 %v12764_v33  ;;  %v11355_v33 = vld [vmem:[%s17082_s4 + $0x48] sm:$0xff]  }
  0xda   : > { %1366 = vmatprep.mubr.bf16.mxu1 %v17090_v6  ;;  %1559 = vmatprep.mubr.bf16.mxu0 %v17090_v6 }
  0xe1   : > { %1367 = vmatmul.mubr.bf16.gmra.mrb[88].mxu1 %v12780_v42  ;;  %1560 = vmatmul.mubr.bf16.gmra.mrb[88].mxu0 %v12780_v42  ;;  %v12967_v42 = vshrl.u32 %v545_v39, 7 }
  0xe2   : > { %1376 = vmatprep.mubr.bf16.mxu1 %v17090_v6  ;;  %1569 = vmatprep.mubr.bf16.mxu0 %v17090_v6 }
  0xe3   : > { %17161 = vst [vmem:[#allocation2_spill] sm:$0xff] %v12967_v42  ;;  %v17089_v48 = vsub.s32 0, %v12967_v42  ;;  %v17088_v52 = vsub.s32 1, %v12967_v42 }
  0xe9   : > { %1377 = vmatmul.mubr.bf16.gmra.mrb[92].mxu1 %v12796_v47  ;;  %1570 = vmatmul.mubr.bf16.gmra.mrb[92].mxu0 %v12796_v47 }
  0xea   : > { %1612 = vmatprep.mubr.bf16.mxu1 %v17090_v6  ;;  %10977 = vmatprep.mubr.msk.bf16.mxu0 %vm2126_vm0, %v2094_v1 }
  0xf1   : > { %1613 = vmatmul.mubr.bf16.vlgmr.msra.gmra.mrb[96].mxu1 %v12648_v43  ;;  %10978 = vmatmul.mubr.msk.bf16.vlgmr.msra.gmra.mrb[96].mxu0 %vm2126_vm0, %v2095_v34  ;;  %v11358_v43 = vld [vmem:[%s17082_s4 + $0x10] sm:$0xff]  }
  0xf2   : > { %10360 = vmatpush3.bf16.msra.mxu1 %v11353_v32  ;;  %1622 = vmatprep.mubr.bf16.mxu1 %v17090_v6 }
  0xf3   : > { %10361 = vmatprep.subr.bf16.mxu1 %v11355_v33  ;;  %10981 = vmatprep.mubr.msk.bf16.mxu0 %vm2126_vm0, %v2096_v56  ;;  %v392_v56 = vld [vmem:[%s12935_s14 + $0x58] sm:$0xff] }
  0xf6   : > { %10362 = vmatpush3.bf16.msra.mxu1 %v11356_v35 }
  0xf7   : > { %10363 = vmatprep.subr.bf16.mxu1 %v11357_v38 }
  0xf9   : > { %1623 = vmatmul.mubr.bf16.gmra.mrb[100].mxu1 %v12675_v57  ;;  %v446_v57 = vld [vmem:[%s17086_s8] ss:$8 sm:$0xf0]  ;;  %10982 = vmatmul.mubr.msk.bf16.gmra.mrb[100].mxu0 %vm2126_vm0, %v2097_v61 }
  0xfa   : > { %1632 = vmatprep.mubr.bf16.mxu1 %v17090_v6  ;;  %10364 = vmatpush3.bf16.msra.mxu1 %v11358_v43  ;;  %v12979_v47 = vor.u32 %v446_v57, %v445_v41  ;;  %v390_v57 = vld [vmem:[%s12935_s14 + $0x48] sm:$0xff] }
  0xfb   : > { %10365 = vmatprep.subr.bf16.mxu1 %v11359_v40 }
  0xfc   : > { %v12997_v60 = vrot.slane %v12979_v47, %v17089_v48  ;;  %v13006_v63 = vrot.slane %v12979_v47, %v17088_v52 }
  0xfe   : > { %10366 = vmatpush3.bf16.msra.mxu1 %v11360_v45  ;;  %v389_v45 = vld [vmem:[%s12935_s14 + $0x40] sm:$0xff] }
  0xff   : > { %10367 = vmatprep.subr.bf16.mxu1 %v11361_v46  ;;  %v2098_v54 = vpack.c.bf16 %v390_v57, %v389_v45 }
 0x101   : > { %1633 = vmatmul.mubr.bf16.gmra.mrb[104].mxu1 %v12704_v8  ;;  %v11366_v8 = vld [vmem:[%s17082_s4 + $0x70] sm:$0xff]   ;;  %10985 = vmatprep.mubr.msk.bf16.mxu0 %vm2126_vm0, %v2098_v54 }
 0x102   : > { %1642 = vmatprep.mubr.bf16.mxu1 %v17090_v6  ;;  %10368 = vmatpush3.bf16.msra.mxu1 %v11362_v50 }
 0x103   : > { %10369 = vmatprep.subr.bf16.mxu1 %v11364_v53 }
 0x104   : > { %v1115_v0 = vpop.f32.mrb[0].mxu1  ;;  %v1035_v7 = vpop.f32.mrb[0].mxu0 }
 0x105   : > { %v1117_v2 = vpop.f32.mrb[1].mxu1  ;;  %v1116_v3 = vadd.f32 %v1115_v0, %v12997_v60  ;;  %v1036_v12 = vadd.f32 %v1035_v7, %v12997_v60  ;;  %v1037_v13 = vpop.f32.mrb[1].mxu0  ;;  %v2099_v0 = vpack.c.bf16 %v392_v56, %v391_v55 }
 0x106   : > { %v1119_v4 = vpop.f32.mrb[2].mxu1  ;;  %10370 = vmatpush3.bf16.msra.mxu1 %v11365_v62  ;;  %v1118_v9 = vadd.f32 %v1117_v2, %v13006_v63  ;;  %v1038_v16 = vadd.f32 %v1037_v13, %v13006_v63  ;;  %v1039_v17 = vpop.f32.mrb[2].mxu0 }
 0x107   : > { %v1121_v10 = vpop.f32.mrb[3].mxu1  ;;  %10371 = vmatprep.subr.bf16.mxu1 %v11366_v8  ;;  %v1120_v15 = vadd.f32 %v1119_v4, %v12997_v60  ;;  %v1773_v19 = vmax.f32 %v1036_v12, 0.0  ;;  %v1040_v20 = vadd.f32 %v1039_v17, %v12997_v60  ;;  %v1041_v21 = vpop.f32.mrb[3].mxu0  ;;  %v1901_v23 = vmax.f32 %v1116_v3, 0.0  ;;  %10986 = vmatmul.mubr.msk.bf16.gmra.mrb[104].mxu0 %vm2126_vm0, %v2099_v0 }
 0x108   : > { %v1122_v18 = vadd.f32 %v1121_v10, %v13006_v63  ;;  %v1774_v26 = vmax.f32 %v1038_v16, 0.0  ;;  %v1042_v27 = vadd.f32 %v1041_v21, %v13006_v63  ;;  %v1902_v29 = vmax.f32 %v1118_v9, 0.0 }
 0x109   : > { %1643 = vmatmul.mubr.bf16.gmra.mrb[108].mxu1 %v12735_v22  ;;  %v1909_v24 = vmax.f32 %v1120_v15, 0.0  ;;  %v1781_v22 = vmax.f32 %v1040_v20, 0.0 }
 0x10a   : > { %1652 = vmatprep.mubr.bf16.mxu1 %v17090_v6  ;;  %10372 = vmatpush3.bf16.msra.mxu1 %v11367_v5  ;;  %v1910_v31 = vmax.f32 %v1122_v18, 0.0  ;;  %v1782_v1 = vmax.f32 %v1042_v27, 0.0 }
 0x10b   : > { %10373 = vmatprep.subr.bf16.mxu1 %v11368_v11  ;;  %v13032_v37 = vpack.c.bf16 %v1909_v24, %v1901_v23  ;;  %v13036_v32 = vpack.c.bf16 %v1781_v22, %v1773_v19 }
 0x10c   : > { %v1125_v49 = vpop.f32.mrb[4].mxu1  ;;  %v13034_v14 = vpack.c.bf16 %v1910_v31, %v1902_v29  ;;  %v1045_v35 = vpop.f32.mrb[4].mxu0  ;;  %v13039_v38 = vpack.c.bf16 %v1782_v1, %v1774_v26 }
 0x10d   : > { %v1127_v28 = vpop.f32.mrb[5].mxu1  ;;  %v1126_v33 = vadd.f32 %v1125_v49, %v12997_v60  ;;  %v1046_v40 = vadd.f32 %v1045_v35, %v12997_v60  ;;  %v1047_v41 = vpop.f32.mrb[5].mxu0 }
 0x10e   : > { %v1129_v34 = vpop.f32.mrb[6].mxu1  ;;  %10374 = vmatpush3.bf16.msra.mxu1 %v11369_v25  ;;  %v1128_v39 = vadd.f32 %v1127_v28, %v13006_v63  ;;  %v1048_v50 = vadd.f32 %v1047_v41, %v13006_v63  ;;  %v1049_v53 = vpop.f32.mrb[6].mxu0 }
 0x10f   : > { %v1131_v43 = vpop.f32.mrb[7].mxu1  ;;  %v1130_v46 = vadd.f32 %v1129_v34, %v12997_v60  ;;  %v1917_v59 = vmax.f32 %v1126_v33, 0.0  ;;  %v1789_v61 = vmax.f32 %v1046_v40, 0.0  ;;  %v1050_v62 = vadd.f32 %v1049_v53, %v12997_v60  ;;  %v1051_v8 = vpop.f32.mrb[7].mxu0 }
 0x110   : > { %v1132_v58 = vadd.f32 %v1131_v43, %v13006_v63  ;;  %v1790_v3 = vmax.f32 %v1048_v50, 0.0  ;;  %v1052_v4 = vadd.f32 %v1051_v8, %v13006_v63  ;;  %v1918_v5 = vmax.f32 %v1128_v39, 0.0  ;;  %v394_v8 = vld [vmem:[%s12935_s14 + $0x68] sm:$0xff] }
 0x111   : > { %1653 = vmatmul.mubr.bf16.gmra.mrb[112].mxu1 %v12754_v30  ;;  %v1925_v2 = vmax.f32 %v1130_v46, 0.0  ;;  %v1797_v9 = vmax.f32 %v1050_v62, 0.0  ;;  %v393_v62 = vld [vmem:[%s12935_s14 + $0x60] sm:$0xff] }
 0x112   : > { %1662 = vmatprep.mubr.bf16.mxu1 %v17090_v6  ;;  %v1926_v7 = vmax.f32 %v1132_v58, 0.0  ;;  %v1798_v11 = vmax.f32 %v1052_v4, 0.0  ;;  %v2100_v4 = vpack.c.bf16 %v394_v8, %v393_v62 }
 0x113   : > { %v13056_v10 = vpack.c.bf16 %v1925_v2, %v1917_v59  ;;  %v13060_v15 = vpack.c.bf16 %v1797_v9, %v1789_v61 }
 0x114   : > { %v1135_v30 = vpop.f32.mrb[8].mxu1  ;;  %v13058_v12 = vpack.c.bf16 %v1926_v7, %v1918_v5  ;;  %v1055_v18 = vpop.f32.mrb[8].mxu0  ;;  %v13063_v19 = vpack.c.bf16 %v1798_v11, %v1790_v3  ;;  %v395_v5 = vld [vmem:[%s12935_s14 + $0x70] sm:$0xff]  ;;  %v396_v7 = vld [vmem:[%s12935_s14 + $0x78] sm:$0xff]  ;;  %10989 = vmatprep.mubr.msk.bf16.mxu0 %vm2126_vm0, %v2100_v4 }
 0x115   : > { %v1137_v13 = vpop.f32.mrb[9].mxu1  ;;  %v1136_v16 = vadd.f32 %v1135_v30, %v12997_v60  ;;  %v1056_v23 = vadd.f32 %v1055_v18, %v12997_v60  ;;  %v1057_v24 = vpop.f32.mrb[9].mxu0 }
 0x116   : > { %v1139_v17 = vpop.f32.mrb[10].mxu1  ;;  %v1138_v20 = vadd.f32 %v1137_v13, %v13006_v63  ;;  %v1058_v26 = vadd.f32 %v1057_v24, %v13006_v63  ;;  %v1059_v27 = vpop.f32.mrb[10].mxu0 }
 0x117   : > { %v1141_v21 = vpop.f32.mrb[11].mxu1  ;;  %v1140_v25 = vadd.f32 %v1139_v17, %v12997_v60  ;;  %v1805_v31 = vmax.f32 %v1056_v23, 0.0  ;;  %v1060_v22 = vadd.f32 %v1059_v27, %v12997_v60  ;;  %v1061_v49 = vpop.f32.mrb[11].mxu0  ;;  %v1933_v1 = vmax.f32 %v1136_v16, 0.0 }
 0x118   : > { %v1142_v29 = vadd.f32 %v1141_v21, %v13006_v63  ;;  %v1806_v33 = vmax.f32 %v1058_v26, 0.0  ;;  %v1062_v34 = vadd.f32 %v1061_v49, %v13006_v63  ;;  %v1934_v35 = vmax.f32 %v1138_v20, 0.0 }
 0x119   : > { %1663 = vmatmul.mubr.bf16.gmra.mrb[116].mxu1 %v12769_v36  ;;  %v1941_v28 = vmax.f32 %v1140_v25, 0.0  ;;  %v1813_v43 = vmax.f32 %v1060_v22, 0.0  ;;  %v2101_v17 = vpack.c.bf16 %v396_v7, %v395_v5 }
 0x11a   : > { %1672 = vmatprep.mubr.bf16.mxu1 %v17090_v6  ;;  %v1942_v39 = vmax.f32 %v1142_v29, 0.0  ;;  %v1814_v36 = vmax.f32 %v1062_v34, 0.0 }
 0x11b   : > { %v13074_v40 = vpack.c.bf16 %v1941_v28, %v1933_v1  ;;  %v13078_v46 = vpack.c.bf16 %v1813_v43, %v1805_v31  ;;  %10990 = vmatmul.mubr.msk.bf16.gmra.mrb[108].mxu0 %vm2126_vm0, %v2101_v17 }
 0x11c   : > { %v1145_v41 = vpop.f32.mrb[12].mxu1  ;;  %v13076_v45 = vpack.c.bf16 %v1942_v39, %v1934_v35  ;;  %v1065_v54 = vpop.f32.mrb[12].mxu0  ;;  %v13081_v55 = vpack.c.bf16 %v1814_v36, %v1806_v33 }
 0x11d   : > { %v1147_v57 = vpop.f32.mrb[13].mxu1  ;;  %v1146_v50 = vadd.f32 %v1145_v41, %v12997_v60  ;;  %v1066_v59 = vadd.f32 %v1065_v54, %v12997_v60  ;;  %v1067_v61 = vpop.f32.mrb[13].mxu0 }
 0x11e   : > { %v1149_v53 = vpop.f32.mrb[14].mxu1  ;;  %v1148_v56 = vadd.f32 %v1147_v57, %v13006_v63  ;;  %v1068_v2 = vadd.f32 %v1067_v61, %v13006_v63  ;;  %v1069_v3 = vpop.f32.mrb[14].mxu0 }
 0x11f   : > { %v1151_v58 = vpop.f32.mrb[15].mxu1  ;;  %v1150_v0 = vadd.f32 %v1149_v53, %v12997_v60  ;;  %v1949_v30 = vmax.f32 %v1146_v50, 0.0  ;;  %v1821_v11 = vmax.f32 %v1066_v59, 0.0  ;;  %v1070_v13 = vadd.f32 %v1069_v3, %v12997_v60  ;;  %v1071_v16 = vpop.f32.mrb[15].mxu0 }
 0x120   : > { %v1152_v9 = vadd.f32 %v1151_v58, %v13006_v63  ;;  %v1822_v20 = vmax.f32 %v1068_v2, 0.0  ;;  %v1072_v21 = vadd.f32 %v1071_v16, %v13006_v63  ;;  %v1950_v23 = vmax.f32 %v1148_v56, 0.0 }
 0x121   : > { %1673 = vmatmul.mubr.bf16.gmra.mrb[120].mxu1 %v12786_v44  ;;  %v1957_v18 = vmax.f32 %v1150_v0, 0.0  ;;  %v1829_v25 = vmax.f32 %v1070_v13, 0.0 }
 0x122   : > { %1682 = vmatprep.mubr.bf16.mxu1 %v17090_v6  ;;  %v1958_v24 = vmax.f32 %v1152_v9, 0.0  ;;  %v1830_v27 = vmax.f32 %v1072_v21, 0.0 }
 0x123   : > { %v13098_v26 = vpack.c.bf16 %v1957_v18, %v1949_v30  ;;  %v13102_v22 = vpack.c.bf16 %v1829_v25, %v1821_v11 }
 0x124   : > { %v1155_v44 = vpop.f32.mrb[16].mxu1  ;;  %v13100_v29 = vpack.c.bf16 %v1958_v24, %v1950_v23  ;;  %v1075_v28 = vpop.f32.mrb[16].mxu0  ;;  %v13105_v33 = vpack.c.bf16 %v1830_v27, %v1822_v20  ;;  %v397_v23 = vld [vmem:[%s12935_s14 + $0x80] sm:$0xff]  ;;  %v398_v24 = vld [vmem:[%s12935_s14 + $0x88] sm:$0xff] }
 0x125   : > { %v1157_v31 = vpop.f32.mrb[17].mxu1  ;;  %v1156_v49 = vadd.f32 %v1155_v44, %v12997_v60  ;;  %v1076_v39 = vadd.f32 %v1075_v28, %v12997_v60  ;;  %v1077_v43 = vpop.f32.mrb[17].mxu0 }
 0x126   : > { %v1159_v1 = vpop.f32.mrb[18].mxu1  ;;  %v1158_v34 = vadd.f32 %v1157_v31, %v13006_v63  ;;  %v1078_v36 = vadd.f32 %v1077_v43, %v13006_v63  ;;  %v1079_v57 = vpop.f32.mrb[18].mxu0  ;;  %v2102_v31 = vpack.c.bf16 %v398_v24, %v397_v23 }
 0x127   : > { %v1161_v35 = vpop.f32.mrb[19].mxu1  ;;  %v1160_v41 = vadd.f32 %v1159_v1, %v12997_v60  ;;  %v1837_v53 = vmax.f32 %v1076_v39, 0.0  ;;  %v1080_v54 = vadd.f32 %v1079_v57, %v12997_v60  ;;  %v1081_v56 = vpop.f32.mrb[19].mxu0  ;;  %v1965_v58 = vmax.f32 %v1156_v49, 0.0  ;;  %v399_v49 = vld [vmem:[%s12935_s14 + $0x90] sm:$0xff]  ;;  %v400_v1 = vld [vmem:[%s12935_s14 + $0x98] sm:$0xff] }
 0x128   : > { %v1162_v50 = vadd.f32 %v1161_v35, %v13006_v63  ;;  %v1838_v61 = vmax.f32 %v1078_v36, 0.0  ;;  %v1082_v62 = vadd.f32 %v1081_v56, %v13006_v63  ;;  %v1966_v8 = vmax.f32 %v1158_v34, 0.0  ;;  %v12488_v35 = vld [vmem:[%s12599_s11 + $0x40] sm:$0xff]   ;;  %10993 = vmatprep.mubr.msk.bf16.mxu0 %vm2126_vm0, %v2102_v31 }
 0x129   : > { %1683 = vmatmul.mubr.bf16.gmra.mrb[124].mxu1 %v12801_v51  ;;  %v1973_v59 = vmax.f32 %v1160_v41, 0.0  ;;  %v1845_v2 = vmax.f32 %v1080_v54, 0.0  ;;  %v2103_v36 = vpack.c.bf16 %v400_v1, %v399_v49 }
 0x12a   : > { %1692 = vmatprep.mubr.bf16.mxu1 %v17090_v6  ;;  %v1974_v0 = vmax.f32 %v1162_v50, 0.0  ;;  %v1846_v51 = vmax.f32 %v1082_v62, 0.0 }
 0x12b   : > { %v13116_v3 = vpack.c.bf16 %v1973_v59, %v1965_v58  ;;  %v13120_v9 = vpack.c.bf16 %v1845_v2, %v1837_v53  ;;  %10994 = vmatmul.mubr.msk.bf16.gmra.mrb[112].mxu0 %vm2126_vm0, %v2103_v36 }
 0x12c   : > { %v1165_v4 = vpop.f32.mrb[20].mxu1  ;;  %v13118_v5 = vpack.c.bf16 %v1974_v0, %v1966_v8  ;;  %v1085_v13 = vpop.f32.mrb[20].mxu0  ;;  %v13123_v16 = vpack.c.bf16 %v1846_v51, %v1838_v61 }
 0x12d   : > { %v1167_v7 = vpop.f32.mrb[21].mxu1  ;;  %v1166_v30 = vadd.f32 %v1165_v4, %v12997_v60  ;;  %v1086_v20 = vadd.f32 %v1085_v13, %v12997_v60  ;;  %v1087_v21 = vpop.f32.mrb[21].mxu0 }
 0x12e   : > { %v1169_v11 = vpop.f32.mrb[22].mxu1  ;;  %v1168_v17 = vadd.f32 %v1167_v7, %v13006_v63  ;;  %v1088_v44 = vadd.f32 %v1087_v21, %v13006_v63  ;;  %v1089_v27 = vpop.f32.mrb[22].mxu0 }
 0x12f   : > { %v1171_v18 = vpop.f32.mrb[23].mxu1  ;;  %v1170_v25 = vadd.f32 %v1169_v11, %v12997_v60  ;;  %v1981_v34 = vmax.f32 %v1166_v30, 0.0  ;;  %v1853_v39 = vmax.f32 %v1086_v20, 0.0  ;;  %v1090_v43 = vadd.f32 %v1089_v27, %v12997_v60  ;;  %v1091_v41 = vpop.f32.mrb[23].mxu0 }
 0x130   : > { %v1172_v28 = vadd.f32 %v1171_v18, %v13006_v63  ;;  %v1854_v50 = vmax.f32 %v1088_v44, 0.0  ;;  %v1092_v53 = vadd.f32 %v1091_v41, %v13006_v63  ;;  %v1982_v54 = vmax.f32 %v1168_v17, 0.0 }
 0x131   : > { %1693 = vmatmul.mubr.bf16.gmra.mrb[128].mxu1 %v12488_v35  ;;  %v1989_v57 = vmax.f32 %v1170_v25, 0.0  ;;  %v1861_v58 = vmax.f32 %v1090_v43, 0.0  ;;  %v12489_v25 = vld [vmem:[%s12599_s11 + $0x48] sm:$0xff]  }
 0x132   : > { %1702 = vmatprep.mubr.bf16.mxu1 %v17090_v6  ;;  %v1990_v56 = vmax.f32 %v1172_v28, 0.0  ;;  %v1862_v62 = vmax.f32 %v1092_v53, 0.0 }
 0x133   : > { %v13140_v59 = vpack.c.bf16 %v1989_v57, %v1981_v34  ;;  %v13144_v2 = vpack.c.bf16 %v1861_v58, %v1853_v39  ;;  %v555_v57 = vsub.s32 2, %v12967_v42 }
 0x134   : > { %v1175_v61 = vpop.f32.mrb[24].mxu1  ;;  %v13142_v8 = vpack.c.bf16 %v1990_v56, %v1982_v54  ;;  %v1095_v7 = vpop.f32.mrb[24].mxu0  ;;  %v13147_v30 = vpack.c.bf16 %v1862_v62, %v1854_v50  ;;  %v559_v56 = vsub.s32 3, %v12967_v42 }
 0x135   : > { %v1177_v0 = vpop.f32.mrb[25].mxu1  ;;  %v1176_v4 = vadd.f32 %v1175_v61, %v12997_v60  ;;  %v1096_v17 = vadd.f32 %v1095_v7, %v12997_v60  ;;  %v1097_v18 = vpop.f32.mrb[25].mxu0 }
 0x136   : > { %v1179_v51 = vpop.f32.mrb[26].mxu1  ;;  %v1178_v11 = vadd.f32 %v1177_v0, %v13006_v63  ;;  %v1098_v21 = vadd.f32 %v1097_v18, %v13006_v63  ;;  %v1099_v23 = vpop.f32.mrb[26].mxu0  ;;  %v402_v18 = vld [vmem:[%s12935_s14 + $0xa8] sm:$0xff] }
 0x137   : > { %v1181_v13 = vpop.f32.mrb[27].mxu1  ;;  %v1180_v20 = vadd.f32 %v1179_v51, %v12997_v60  ;;  %v1869_v44 = vmax.f32 %v1096_v17, 0.0  ;;  %v1100_v27 = vadd.f32 %v1099_v23, %v12997_v60  ;;  %v1101_v31 = vpop.f32.mrb[27].mxu0  ;;  %v1997_v49 = vmax.f32 %v1176_v4, 0.0  ;;  %v401_v17 = vld [vmem:[%s12935_s14 + $0xa0] sm:$0xff] }
 0x138   : > { %v1182_v24 = vadd.f32 %v1181_v13, %v13006_v63  ;;  %v1870_v28 = vmax.f32 %v1098_v21, 0.0  ;;  %v1102_v34 = vadd.f32 %v1101_v31, %v13006_v63  ;;  %v1998_v35 = vmax.f32 %v1178_v11, 0.0 }
 0x139   : > { %1703 = vmatmul.mubr.bf16.gmra.mrb[132].mxu1 %v12489_v25  ;;  %v2005_v1 = vmax.f32 %v1180_v20, 0.0  ;;  %v1877_v43 = vmax.f32 %v1100_v27, 0.0  ;;  %v13175_v21 = vrot.slane %v12979_v47, %v555_v57  ;;  %v2104_v25 = vpack.c.bf16 %v402_v18, %v401_v17  ;;  %v404_v27 = vld [vmem:[%s12935_s14 + $0xb8] sm:$0xff] }
 0x13a   : > { %1712 = vmatprep.mubr.bf16.mxu1 %v17090_v6  ;;  %v2006_v39 = vmax.f32 %v1182_v24, 0.0  ;;  %v1878_v50 = vmax.f32 %v1102_v34, 0.0 }
 0x13b   : > { %v13158_v41 = vpack.c.bf16 %v2005_v1, %v1997_v49  ;;  %v13164_v58 = vpack.c.bf16 %v1877_v43, %v1869_v44  ;;  %v403_v44 = vld [vmem:[%s12935_s14 + $0xb0] sm:$0xff]  ;;  %v13183_v1 = vrot.slane %v12979_v47, %v559_v56  ;;  %10997 = vmatprep.mubr.msk.bf16.mxu0 %vm2126_vm0, %v2104_v25  ;;  %v563_v56 = vsub.s32 4, %v12967_v42 }
 0x13c   : > { %v1185_v36 = vpop.f32.mrb[28].mxu1  ;;  %v13161_v53 = vpack.c.bf16 %v2006_v39, %v1998_v35  ;;  %v1105_v0 = vpop.f32.mrb[28].mxu0  ;;  %v13167_v4 = vpack.c.bf16 %v1878_v50, %v1870_v28  ;;  %v12490_v49 = vld [vmem:[%s12599_s11 + $0x50] sm:$0xff]   ;;  %v2105_v39 = vpack.c.bf16 %v404_v27, %v403_v44 }
 0x13d   : > { %v1187_v54 = vpop.f32.mrb[29].mxu1  ;;  %v1186_v61 = vadd.f32 %v1185_v36, %v12997_v60  ;;  %v1106_v11 = vadd.f32 %v1105_v0, %v12997_v60  ;;  %v1107_v13 = vpop.f32.mrb[29].mxu0 }
 0x13e   : > { %v1189_v62 = vpop.f32.mrb[30].mxu1  ;;  %v1188_v51 = vadd.f32 %v1187_v54, %v13006_v63  ;;  %v1108_v23 = vadd.f32 %v1107_v13, %v13006_v63  ;;  %v1109_v24 = vpop.f32.mrb[30].mxu0  ;;  %10998 = vmatmul.mubr.msk.bf16.gmra.mrb[116].mxu0 %vm2126_vm0, %v2105_v39 }
 0x13f   : > { %v1191_v7 = vpop.f32.mrb[31].mxu1  ;;  %v1190_v20 = vadd.f32 %v1189_v62, %v12997_v60  ;;  %v1885_v28 = vmax.f32 %v1106_v11, 0.0  ;;  %v1110_v34 = vadd.f32 %v1109_v24, %v12997_v60  ;;  %v1111_v35 = vpop.f32.mrb[31].mxu0  ;;  %v567_v62 = vsub.s32 5, %v12967_v42 }
 0x140   : > { %v1192_v31 = vadd.f32 %v1191_v7, %v13006_v63  ;;  %v1886_v43 = vmax.f32 %v1108_v23, 0.0  ;;  %v1112_v36 = vadd.f32 %v1111_v35, %v13006_v63  ;;  %v2014_v57 = vmax.f32 %v1188_v51, 0.0 }
 0x141   : > { %1713 = vmatmul.mubr.bf16.gmra.mrb[136].mxu1 %v12490_v49  ;;  %v1893_v54 = vmax.f32 %v1110_v34, 0.0  ;;  %v2013_v11 = vmax.f32 %v1186_v61, 0.0  ;;  %v2021_v13 = vmax.f32 %v1190_v20, 0.0  ;;  %v13198_v51 = vrot.slane %v12979_v47, %v563_v56 }
 0x142   : > { %1722 = vmatprep.mubr.bf16.mxu1 %v17090_v6  ;;  %v2022_v50 = vmax.f32 %v1192_v31, 0.0  ;;  %v1894_v60 = vmax.f32 %v1112_v36, 0.0  ;;  %v13201_v23 = vrot.slane %v12979_v47, %v567_v62 }
 0x143   : > { %v13195_v18 = vpack.c.bf16 %v1893_v54, %v1885_v28  ;;  %v13206_v61 = vpack.c.bf16 %v2021_v13, %v2013_v11 }
 0x144   : > { %v1228_v0 = vpop.f32.mrb[32].mxu1  ;;  %v13192_v7 = vpack.c.bf16 %v2022_v50, %v2014_v57  ;;  %v13204_v44 = vpack.c.bf16 %v1894_v60, %v1886_v43  ;;  %v1421_v27 = vpop.f32.mrb[32].mxu0  ;;  %v12491_v50 = vld [vmem:[%s12599_s11 + $0x58] sm:$0xff]  }
 0x145   : > { %v1229_v17 = vadd.f32 %v1228_v0, %v13175_v21  ;;  %v1230_v63 = vpop.f32.mrb[33].mxu1  ;;  %v1422_v49 = vadd.f32 %v1421_v27, %v13198_v51  ;;  %v1423_v28 = vpop.f32.mrb[33].mxu0 }
 0x146   : > { %v1231_v24 = vadd.f32 %v1230_v63, %v13183_v1  ;;  %v1232_v25 = vpop.f32.mrb[34].mxu1  ;;  %v1424_v35 = vadd.f32 %v1423_v28, %v13201_v23  ;;  %v1425_v39 = vpop.f32.mrb[34].mxu0 }
 0x147   : > { %v1233_v20 = vadd.f32 %v1232_v25, %v13175_v21  ;;  %v1234_v31 = vpop.f32.mrb[35].mxu1  ;;  %v1775_v36 = vmax.f32 %v1229_v17, 0.0  ;;  %v1777_v43 = vmax.f32 %v1422_v49, 0.0  ;;  %v1426_v54 = vadd.f32 %v1425_v39, %v13198_v51  ;;  %v1427_v56 = vpop.f32.mrb[35].mxu0 }
 0x148   : > { %v1235_v34 = vadd.f32 %v1234_v31, %v13183_v1  ;;  %v1776_v62 = vmax.f32 %v1231_v24, 0.0  ;;  %v1778_v60 = vmax.f32 %v1424_v35, 0.0  ;;  %v1428_v11 = vadd.f32 %v1427_v56, %v13201_v23  ;;  %v406_v56 = vld [vmem:[%s12935_s14 + $0xc8] sm:$0xff] }
 0x149   : > { %v1783_v57 = vmax.f32 %v1233_v20, 0.0  ;;  %1723 = vmatmul.mubr.bf16.gmra.mrb[140].mxu1 %v12491_v50  ;;  %v1785_v63 = vmax.f32 %v1426_v54, 0.0  ;;  %v405_v54 = vld [vmem:[%s12935_s14 + $0xc0] sm:$0xff] }
 0x14a   : > { %v1784_v0 = vmax.f32 %v1235_v34, 0.0  ;;  %1732 = vmatprep.mubr.bf16.mxu1 %v17090_v6  ;;  %v1786_v27 = vmax.f32 %v1428_v11, 0.0 }
 0x14b   : > { %v13216_v13 = vpack.c.bf16 %v1783_v57, %v1775_v36  ;;  %v13221_v49 = vpack.c.bf16 %v1785_v63, %v1777_v43  ;;  %v2106_v63 = vpack.c.bf16 %v406_v56, %v405_v54 }
 0x14c   : > { %v13218_v17 = vpack.c.bf16 %v1784_v0, %v1776_v62  ;;  %v1238_v25 = vpop.f32.mrb[36].mxu1  ;;  %v1431_v34 = vpop.f32.mrb[36].mxu0  ;;  %v13224_v35 = vpack.c.bf16 %v1786_v27, %v1778_v60  ;;  %v12492_v60 = vld [vmem:[%s12599_s11 + $0x60] sm:$0xff]  }
 0x14d   : > { %17162 = vst [vmem:[#allocation3_spill] sm:$0xff] %v13216_v13  ;;  %v1239_v20 = vadd.f32 %v1238_v25, %v13175_v21  ;;  %v1240_v31 = vpop.f32.mrb[37].mxu1  ;;  %17164 = vst [vmem:[#allocation5_spill] sm:$0xff] %v13221_v49  ;;  %v1432_v57 = vadd.f32 %v1431_v34, %v13198_v51  ;;  %v1433_v50 = vpop.f32.mrb[37].mxu0  ;;  %v407_v25 = vld [vmem:[%s12935_s14 + $0xd0] sm:$0xff]  ;;  %11001 = vmatprep.mubr.msk.bf16.mxu0 %vm2126_vm0, %v2106_v63 }
 0x14e   : > { %17163 = vst [vmem:[#allocation4_spill] sm:$0xff] %v13218_v17  ;;  %v1241_v24 = vadd.f32 %v1240_v31, %v13183_v1  ;;  %v1242_v28 = vpop.f32.mrb[38].mxu1  ;;  %17165 = vst [vmem:[#allocation6_spill] sm:$0xff] %v13224_v35  ;;  %v1434_v0 = vadd.f32 %v1433_v50, %v13201_v23  ;;  %v1435_v11 = vpop.f32.mrb[38].mxu0  ;;  %v408_v31 = vld [vmem:[%s12935_s14 + $0xd8] sm:$0xff]  ;;  %v17166_v35 = vmov 0  }
 0x14f   : > { %v1243_v39 = vadd.f32 %v1242_v28, %v13175_v21  ;;  %v1244_v36 = vpop.f32.mrb[39].mxu1  ;;  %v1791_v62 = vmax.f32 %v1239_v20, 0.0  ;;  %v1793_v27 = vmax.f32 %v1432_v57, 0.0  ;;  %v1436_v28 = vadd.f32 %v1435_v11, %v13198_v51  ;;  %v1437_v48 = vpop.f32.mrb[39].mxu0 }
 0x150   : > { %v1245_v43 = vadd.f32 %v1244_v36, %v13183_v1  ;;  %v2107_v34 = vpack.c.bf16 %v408_v31, %v407_v25  ;;  %v1792_v6 = vmax.f32 %v1241_v24, 0.0  ;;  %v1794_v20 = vmax.f32 %v1434_v0, 0.0 }
 0x151   : > { %v1799_v52 = vmax.f32 %v1243_v39, 0.0  ;;  %1733 = vmatmul.mubr.bf16.gmra.mrb[144].mxu1 %v12492_v60  ;;  %v1438_v36 = vadd.f32 %v1437_v48, %v13201_v23  ;;  %v1801_v54 = vmax.f32 %v1436_v28, 0.0 }
 0x152   : > { %v1800_v49 = vmax.f32 %v1245_v43, 0.0  ;;  %1742 = vmatprep.mubr.bf16.mxu1 %v17166_v35  ;;  %11002 = vmatmul.mubr.msk.bf16.gmra.mrb[120].mxu0 %vm2126_vm0, %v2107_v34 }
 0x153   : > { %v13239_v50 = vpack.c.bf16 %v1799_v52, %v1791_v62  ;;  %v1802_v56 = vmax.f32 %v1438_v36, 0.0  ;;  %v13245_v43 = vpack.c.bf16 %v1801_v54, %v1793_v27  ;;  %v12493_v36 = vld [vmem:[%s12599_s11 + $0x68] sm:$0xff]  }
 0x154   : > { %v13242_v39 = vpack.c.bf16 %v1800_v49, %v1792_v6  ;;  %v1248_v57 = vpop.f32.mrb[40].mxu1  ;;  %v1441_v25 = vpop.f32.mrb[40].mxu0 }
 0x155   : > { %17167 = vst [vmem:[#allocation7_spill] sm:$0xff] %v13239_v50  ;;  %v1249_v11 = vadd.f32 %v1248_v57, %v13175_v21  ;;  %v1250_v24 = vpop.f32.mrb[41].mxu1  ;;  %17169 = vst [vmem:[#allocation9_spill] sm:$0xff] %v13245_v43  ;;  %v13248_v63 = vpack.c.bf16 %v1802_v56, %v1794_v20  ;;  %v1442_v6 = vadd.f32 %v1441_v25, %v13198_v51  ;;  %v1443_v49 = vpop.f32.mrb[41].mxu0 }
 0x156   : > { %17168 = vst [vmem:[#allocation8_spill] sm:$0xff] %v13242_v39  ;;  %v1251_v0 = vadd.f32 %v1250_v24, %v13183_v1  ;;  %v1252_v48 = vpop.f32.mrb[42].mxu1  ;;  %v1444_v60 = vadd.f32 %v1443_v49, %v13201_v23  ;;  %v1445_v28 = vpop.f32.mrb[42].mxu0 }
 0x157   : > { %17170 = vst [vmem:[#allocation10_spill] sm:$0xff] %v13248_v63  ;;  %v1253_v52 = vadd.f32 %v1252_v48, %v13175_v21  ;;  %v1254_v62 = vpop.f32.mrb[43].mxu1  ;;  %v1807_v34 = vmax.f32 %v1249_v11, 0.0  ;;  %v1809_v54 = vmax.f32 %v1442_v6, 0.0  ;;  %v1446_v57 = vadd.f32 %v1445_v28, %v13198_v51  ;;  %v1447_v20 = vpop.f32.mrb[43].mxu0  ;;  %v411_v63 = vld [vmem:[%s12935_s14 + $0xf0] sm:$0xff] }
 0x158   : > { %v1255_v31 = vadd.f32 %v1254_v62, %v13183_v1  ;;  %v1808_v56 = vmax.f32 %v1251_v0, 0.0  ;;  %v1810_v48 = vmax.f32 %v1444_v60, 0.0  ;;  %v1448_v25 = vadd.f32 %v1447_v20, %v13201_v23 }
 0x159   : > { %v1815_v27 = vmax.f32 %v1253_v52, 0.0  ;;  %1743 = vmatmul.mubr.bf16.gmra.mrb[148].mxu1 %v12493_v36  ;;  %v1817_v62 = vmax.f32 %v1446_v57, 0.0 }
 0x15a   : > { %v1816_v24 = vmax.f32 %v1255_v31, 0.0  ;;  %1752 = vmatprep.mubr.bf16.mxu1 %v17166_v35  ;;  %v1818_v49 = vmax.f32 %v1448_v25, 0.0  ;;  %v410_v25 = vld [vmem:[%s12935_s14 + $0xe8] sm:$0xff] }
 0x15b   : > { %v13258_v43 = vpack.c.bf16 %v1815_v27, %v1807_v34  ;;  %v13263_v36 = vpack.c.bf16 %v1817_v62, %v1809_v54 }
 0x15c   : > { %v13260_v11 = vpack.c.bf16 %v1816_v24, %v1808_v56  ;;  %v1258_v52 = vpop.f32.mrb[44].mxu1  ;;  %v1451_v60 = vpop.f32.mrb[44].mxu0  ;;  %v13266_v34 = vpack.c.bf16 %v1818_v49, %v1810_v48  ;;  %v409_v24 = vld [vmem:[%s12935_s14 + $0xe0] sm:$0xff]  ;;  %v12494_v48 = vld [vmem:[%s12599_s11 + $0x70] sm:$0xff]  }
 0x15d   : > { %17171 = vst [vmem:[#allocation11_spill] sm:$0xff] %v13258_v43  ;;  %v1259_v6 = vadd.f32 %v1258_v52, %v13175_v21  ;;  %v1260_v28 = vpop.f32.mrb[45].mxu1  ;;  %17173 = vst [vmem:[#allocation13_spill] sm:$0xff] %v13263_v36  ;;  %v1452_v20 = vadd.f32 %v1451_v60, %v13198_v51  ;;  %v1453_v56 = vpop.f32.mrb[45].mxu0  ;;  %v2108_v36 = vpack.c.bf16 %v410_v25, %v409_v24  ;;  %v412_v43 = vld [vmem:[%s12935_s14 + $0xf8] sm:$0xff] }
 0x15e   : > { %17172 = vst [vmem:[#allocation12_spill] sm:$0xff] %v13260_v11  ;;  %v1261_v0 = vadd.f32 %v1260_v28, %v13183_v1  ;;  %v1262_v31 = vpop.f32.mrb[46].mxu1  ;;  %17174 = vst [vmem:[#allocation14_spill] sm:$0xff] %v13266_v34  ;;  %v1454_v62 = vadd.f32 %v1453_v56, %v13201_v23  ;;  %v1455_v28 = vpop.f32.mrb[46].mxu0  ;;  %v2109_v60 = vpack.c.bf16 %v412_v43, %v411_v63 }
 0x15f   : > { %v1263_v27 = vadd.f32 %v1262_v31, %v13175_v21  ;;  %v1264_v57 = vpop.f32.mrb[47].mxu1  ;;  %v1823_v52 = vmax.f32 %v1259_v6, 0.0  ;;  %v1825_v49 = vmax.f32 %v1452_v20, 0.0  ;;  %v1456_v31 = vadd.f32 %v1455_v28, %v13198_v51  ;;  %v1457_v34 = vpop.f32.mrb[47].mxu0  ;;  %11005 = vmatprep.mubr.msk.bf16.mxu0 %vm2126_vm0, %v2108_v36 }
 0x160   : > { %v1265_v54 = vadd.f32 %v1264_v57, %v13183_v1  ;;  %v1824_v50 = vmax.f32 %v1261_v0, 0.0  ;;  %v1826_v6 = vmax.f32 %v1454_v62, 0.0  ;;  %v1458_v57 = vadd.f32 %v1457_v34, %v13201_v23  ;;  %11006 = vmatmul.mubr.msk.bf16.gmra.mrb[124].mxu0 %vm2126_vm0, %v2109_v60 }
 0x161   : > { %v1831_v11 = vmax.f32 %v1263_v27, 0.0  ;;  %1753 = vmatmul.mubr.bf16.gmra.mrb[152].mxu1 %v12494_v48  ;;  %v1833_v24 = vmax.f32 %v1456_v31, 0.0 }
 0x162   : > { %v1832_v39 = vmax.f32 %v1265_v54, 0.0  ;;  %1762 = vmatprep.mubr.bf16.mxu1 %v17166_v35  ;;  %v1834_v25 = vmax.f32 %v1458_v57, 0.0  ;;  %v12495_v57 = vld [vmem:[%s12599_s11 + $0x78] sm:$0xff]  }
 0x163   : > { %v13281_v56 = vpack.c.bf16 %v1831_v11, %v1823_v52  ;;  %v13287_v0 = vpack.c.bf16 %v1833_v24, %v1825_v49 }
 0x164   : > { %v13284_v27 = vpack.c.bf16 %v1832_v39, %v1824_v50  ;;  %v1268_v20 = vpop.f32.mrb[48].mxu1  ;;  %v1461_v62 = vpop.f32.mrb[48].mxu0  ;;  %v13290_v36 = vpack.c.bf16 %v1834_v25, %v1826_v6 }
 0x165   : > { %17175 = vst [vmem:[#allocation15_spill] sm:$0xff] %v13281_v56  ;;  %v1269_v43 = vadd.f32 %v1268_v20, %v13175_v21  ;;  %v1270_v63 = vpop.f32.mrb[49].mxu1  ;;  %17177 = vst [vmem:[#allocation17_spill] sm:$0xff] %v13287_v0  ;;  %v1462_v50 = vadd.f32 %v1461_v62, %v13198_v51  ;;  %v1463_v39 = vpop.f32.mrb[49].mxu0 }
 0x166   : > { %17176 = vst [vmem:[#allocation16_spill] sm:$0xff] %v13284_v27  ;;  %v1271_v54 = vadd.f32 %v1270_v63, %v13183_v1  ;;  %v1272_v34 = vpop.f32.mrb[50].mxu1  ;;  %17178 = vst [vmem:[#allocation18_spill] sm:$0xff] %v13290_v36  ;;  %v1464_v48 = vadd.f32 %v1463_v39, %v13201_v23  ;;  %v1465_v31 = vpop.f32.mrb[50].mxu0 }
 0x167   : > { %v1273_v11 = vadd.f32 %v1272_v34, %v13175_v21  ;;  %v1274_v52 = vpop.f32.mrb[51].mxu1  ;;  %v1839_v60 = vmax.f32 %v1269_v43, 0.0  ;;  %v1841_v24 = vmax.f32 %v1462_v50, 0.0  ;;  %v1466_v20 = vadd.f32 %v1465_v31, %v13198_v51  ;;  %v1467_v6 = vpop.f32.mrb[51].mxu0 }
 0x168   : > { %v1275_v28 = vadd.f32 %v1274_v52, %v13183_v1  ;;  %v1840_v25 = vmax.f32 %v1271_v54, 0.0  ;;  %v1842_v34 = vmax.f32 %v1464_v48, 0.0  ;;  %v1468_v62 = vadd.f32 %v1467_v6, %v13201_v23 }
 0x169   : > { %v1847_v49 = vmax.f32 %v1273_v11, 0.0  ;;  %1763 = vmatmul.mubr.bf16.gmra.mrb[156].mxu1 %v12495_v57  ;;  %v1849_v52 = vmax.f32 %v1466_v20, 0.0 }
 0x16a   : > { %v1848_v63 = vmax.f32 %v1275_v28, 0.0  ;;  %2464 = vmatprep.mubr.bf16.mxu1 %v13039_v38  ;;  %v1850_v11 = vmax.f32 %v1468_v62, 0.0 }
 0x16b   : > { %v13300_v0 = vpack.c.bf16 %v1847_v49, %v1839_v60  ;;  %v13305_v36 = vpack.c.bf16 %v1849_v52, %v1841_v24 }
 0x16c   : > { %v13302_v39 = vpack.c.bf16 %v1848_v63, %v1840_v25  ;;  %v1278_v43 = vpop.f32.mrb[52].mxu1  ;;  %v1471_v31 = vpop.f32.mrb[52].mxu0  ;;  %v13308_v38 = vpack.c.bf16 %v1850_v11, %v1842_v34 }
 0x16d   : > { %17179 = vst [vmem:[#allocation19_spill] sm:$0xff] %v13300_v0  ;;  %v1279_v57 = vadd.f32 %v1278_v43, %v13175_v21  ;;  %v1280_v50 = vpop.f32.mrb[53].mxu1  ;;  %17181 = vst [vmem:[#allocation21_spill] sm:$0xff] %v13305_v36  ;;  %v1472_v49 = vadd.f32 %v1471_v31, %v13198_v51  ;;  %v1473_v20 = vpop.f32.mrb[53].mxu0 }
 0x16e   : > { %17180 = vst [vmem:[#allocation20_spill] sm:$0xff] %v13302_v39  ;;  %v1281_v54 = vadd.f32 %v1280_v50, %v13183_v1  ;;  %v1282_v28 = vpop.f32.mrb[54].mxu1  ;;  %17182 = vst [vmem:[#allocation22_spill] sm:$0xff] %v13308_v38  ;;  %v1474_v25 = vadd.f32 %v1473_v20, %v13201_v23  ;;  %v1475_v63 = vpop.f32.mrb[54].mxu0 }
 0x16f   : > { %v1283_v48 = vadd.f32 %v1282_v28, %v13175_v21  ;;  %v1284_v60 = vpop.f32.mrb[55].mxu1  ;;  %v1855_v62 = vmax.f32 %v1279_v57, 0.0  ;;  %v1857_v52 = vmax.f32 %v1472_v49, 0.0  ;;  %v1476_v34 = vadd.f32 %v1475_v63, %v13198_v51  ;;  %v1477_v43 = vpop.f32.mrb[55].mxu0  ;;  %v413_v49 = vld [vmem:[%s13327_s20] sm:$0xff] }
 0x170   : > { %v1285_v6 = vadd.f32 %v1284_v60, %v13183_v1  ;;  %v1856_v11 = vmax.f32 %v1281_v54, 0.0  ;;  %v1858_v28 = vmax.f32 %v1474_v25, 0.0  ;;  %v1478_v31 = vadd.f32 %v1477_v43, %v13201_v23  ;;  %2881 = vrot.lane.b32.xlu0 %v413_v49, %s12505_s21 }
 0x171   : > { %v1863_v24 = vmax.f32 %v1283_v48, 0.0  ;;  %2465 = vmatmul.mubr.bf16.vlgmr.msra.gmra.mrb[160].mxu1 %v13036_v32  ;;  %v1865_v20 = vmax.f32 %v1476_v34, 0.0 }
 0x172   : > { %v1864_v50 = vmax.f32 %v1285_v6, 0.0  ;;  %2472 = vmatprep.mubr.bf16.mxu1 %v13063_v19  ;;  %v1866_v48 = vmax.f32 %v1478_v31, 0.0 }
 0x173   : > { %v13318_v60 = vpack.c.bf16 %v1863_v24, %v1855_v62  ;;  %v13330_v54 = vpack.c.bf16 %v1865_v20, %v1857_v52 }
 0x174   : > { %v13320_v36 = vpack.c.bf16 %v1864_v50, %v1856_v11  ;;  %v1288_v57 = vpop.f32.mrb[56].mxu1  ;;  %v1481_v63 = vpop.f32.mrb[56].mxu0  ;;  %v13335_v62 = vpack.c.bf16 %v1866_v48, %v1858_v28  ;;  %v414_v11 = vld [vmem:[%s13327_s20 + $0x8] sm:$0xff] }
 0x175   : > { %17183 = vst [vmem:[#allocation23_spill] sm:$0xff] %v13318_v60  ;;  %v1289_v32 = vadd.f32 %v1288_v57, %v13175_v21  ;;  %v1290_v19 = vpop.f32.mrb[57].mxu1  ;;  %17185 = vst [vmem:[#allocation25_spill] sm:$0xff] %v13330_v54  ;;  %v1482_v43 = vadd.f32 %v1481_v63, %v13198_v51  ;;  %v1483_v50 = vpop.f32.mrb[57].mxu0  ;;  %2883 = vrot.lane.b32.xlu1 %v414_v11, %s12505_s21 }
 0x176   : > { %17184 = vst [vmem:[#allocation24_spill] sm:$0xff] %v13320_v36  ;;  %v1291_v6 = vadd.f32 %v1290_v19, %v13183_v1  ;;  %v1292_v25 = vpop.f32.mrb[58].mxu1  ;;  %17186 = vst [vmem:[#allocation26_spill] sm:$0xff] %v13335_v62  ;;  %v1484_v31 = vadd.f32 %v1483_v50, %v13201_v23  ;;  %v1485_v20 = vpop.f32.mrb[58].mxu0 }
 0x177   : > { %v1293_v24 = vadd.f32 %v1292_v25, %v13175_v21  ;;  %v1294_v34 = vpop.f32.mrb[59].mxu1  ;;  %v1871_v57 = vmax.f32 %v1289_v32, 0.0  ;;  %v1873_v28 = vmax.f32 %v1482_v43, 0.0  ;;  %v1486_v48 = vadd.f32 %v1485_v20, %v13198_v51  ;;  %v1487_v49 = vpop.f32.mrb[59].mxu0 }
 0x178   : > { %v1295_v52 = vadd.f32 %v1294_v34, %v13183_v1  ;;  %v1872_v25 = vmax.f32 %v1291_v6, 0.0  ;;  %v1874_v54 = vmax.f32 %v1484_v31, 0.0  ;;  %v1488_v34 = vadd.f32 %v1487_v49, %v13201_v23  ;;  %v416_v49 = vld [vmem:[%s13327_s20 + $0x18] sm:$0xff] }
 0x179   : > { %v1879_v19 = vmax.f32 %v1293_v24, 0.0  ;;  %2473 = vmatmul.mubr.bf16.gmra.mrb[164].mxu1 %v13060_v15  ;;  %v1881_v50 = vmax.f32 %v1486_v48, 0.0  ;;  %v415_v15 = vld [vmem:[%s13327_s20 + $0x10] sm:$0xff]  ;;  %2887 = vrot.lane.b32.xlu1 %v416_v49, %s12505_s21 }
 0x17a   : > { %v1880_v63 = vmax.f32 %v1295_v52, 0.0  ;;  %2480 = vmatprep.mubr.bf16.mxu1 %v13081_v55  ;;  %v1882_v62 = vmax.f32 %v1488_v34, 0.0  ;;  %2885 = vrot.lane.b32.xlu0 %v415_v15, %s12505_s21 }
 0x17b   : > { %v13347_v11 = vpack.c.bf16 %v1879_v19, %v1871_v57  ;;  %v13353_v38 = vpack.c.bf16 %v1881_v50, %v1873_v28 }
 0x17c   : > { %v13349_v32 = vpack.c.bf16 %v1880_v63, %v1872_v25  ;;  %v1298_v24 = vpop.f32.mrb[60].mxu1  ;;  %v1491_v52 = vpop.f32.mrb[60].mxu0  ;;  %v13357_v31 = vpack.c.bf16 %v1882_v62, %v1874_v54 }
 0x17d   : > { %17187 = vst [vmem:[#allocation27_spill] sm:$0xff] %v13347_v11  ;;  %v1299_v43 = vadd.f32 %v1298_v24, %v13175_v21  ;;  %v1300_v20 = vpop.f32.mrb[61].mxu1  ;;  %17189 = vst [vmem:[#allocation29_spill] sm:$0xff] %v13353_v38  ;;  %v1492_v48 = vadd.f32 %v1491_v52, %v13198_v51  ;;  %v1493_v25 = vpop.f32.mrb[61].mxu0 }
 0x17e   : > { %17188 = vst [vmem:[#allocation28_spill] sm:$0xff] %v13349_v32  ;;  %v1301_v55 = vadd.f32 %v1300_v20, %v13183_v1  ;;  %v1302_v6 = vpop.f32.mrb[62].mxu1  ;;  %17190 = vst [vmem:[#allocation30_spill] sm:$0xff] %v13357_v31  ;;  %v1494_v28 = vadd.f32 %v1493_v25, %v13201_v23  ;;  %v1495_v34 = vpop.f32.mrb[62].mxu0 }
 0x17f   : > { %v1303_v57 = vadd.f32 %v1302_v6, %v13175_v21  ;;  %v1304_v19 = vpop.f32.mrb[63].mxu1  ;;  %v1887_v50 = vmax.f32 %v1299_v43, 0.0  ;;  %v1889_v54 = vmax.f32 %v1492_v48, 0.0  ;;  %v1496_v62 = vadd.f32 %v1495_v34, %v13198_v51  ;;  %v1497_v15 = vpop.f32.mrb[63].mxu0 }
 0x180   : > { %v1305_v63 = vadd.f32 %v1304_v19, %v13183_v1  ;;  %v1888_v20 = vmax.f32 %v1301_v55, 0.0  ;;  %v1890_v52 = vmax.f32 %v1494_v28, 0.0  ;;  %v1498_v19 = vadd.f32 %v1497_v15, %v13201_v23  ;;  %v418_v15 = vld [vmem:[%s13327_s20 + $0x28] sm:$0xff] }
 0x181   : > { %v1895_v24 = vmax.f32 %v1303_v57, 0.0  ;;  %2481 = vmatmul.mubr.bf16.gmra.mrb[168].mxu1 %v13078_v46  ;;  %v1897_v25 = vmax.f32 %v1496_v62, 0.0  ;;  %v417_v46 = vld [vmem:[%s13327_s20 + $0x20] sm:$0xff]  ;;  %2891 = vrot.lane.b32.xlu1 %v418_v15, %s12505_s21 }
 0x182   : > { %v1896_v6 = vmax.f32 %v1305_v63, 0.0  ;;  %2488 = vmatprep.mubr.bf16.mxu1 %v13105_v33  ;;  %v1898_v38 = vmax.f32 %v1498_v19, 0.0  ;;  %2889 = vrot.lane.b32.xlu0 %v417_v46, %s12505_s21 }
 0x183   : > { %v13369_v49 = vpack.c.bf16 %v1895_v24, %v1887_v50  ;;  %v13375_v31 = vpack.c.bf16 %v1897_v25, %v1889_v54 }
 0x184   : > { %v13371_v43 = vpack.c.bf16 %v1896_v6, %v1888_v20  ;;  %v1308_v57 = vpop.f32.mrb[64].mxu1  ;;  %v1501_v63 = vpop.f32.mrb[64].mxu0  ;;  %v13379_v28 = vpack.c.bf16 %v1898_v38, %v1890_v52 }
 0x185   : > { %17191 = vst [vmem:[#allocation31_spill] sm:$0xff] %v13369_v49  ;;  %v1309_v48 = vadd.f32 %v1308_v57, %v13175_v21  ;;  %v1310_v34 = vpop.f32.mrb[65].mxu1  ;;  %17193 = vst [vmem:[#allocation33_spill] sm:$0xff] %v13375_v31  ;;  %v1502_v62 = vadd.f32 %v1501_v63, %v13198_v51  ;;  %v1503_v20 = vpop.f32.mrb[65].mxu0 }
 0x186   : > { %17192 = vst [vmem:[#allocation32_spill] sm:$0xff] %v13371_v43  ;;  %v1311_v33 = vadd.f32 %v1310_v34, %v13183_v1  ;;  %v1312_v55 = vpop.f32.mrb[66].mxu1  ;;  %17194 = vst [vmem:[#allocation34_spill] sm:$0xff] %v13379_v28  ;;  %v1504_v54 = vadd.f32 %v1503_v20, %v13201_v23  ;;  %v1505_v19 = vpop.f32.mrb[66].mxu0 }
 0x187   : > { %v1313_v50 = vadd.f32 %v1312_v55, %v13175_v21  ;;  %v1314_v24 = vpop.f32.mrb[67].mxu1  ;;  %v1903_v25 = vmax.f32 %v1309_v48, 0.0  ;;  %v1905_v38 = vmax.f32 %v1502_v62, 0.0  ;;  %v1506_v52 = vadd.f32 %v1505_v19, %v13198_v51  ;;  %v1507_v46 = vpop.f32.mrb[67].mxu0 }
 0x188   : > { %v1315_v6 = vadd.f32 %v1314_v24, %v13183_v1  ;;  %v1904_v34 = vmax.f32 %v1311_v33, 0.0  ;;  %v1906_v63 = vmax.f32 %v1504_v54, 0.0  ;;  %v1508_v24 = vadd.f32 %v1507_v46, %v13201_v23  ;;  %v420_v46 = vld [vmem:[%s13327_s20 + $0x38] sm:$0xff] }
 0x189   : > { %v1911_v57 = vmax.f32 %v1313_v50, 0.0  ;;  %2489 = vmatmul.mubr.bf16.gmra.mrb[172].mxu1 %v13102_v22  ;;  %v1913_v20 = vmax.f32 %v1506_v52, 0.0  ;;  %v419_v22 = vld [vmem:[%s13327_s20 + $0x30] sm:$0xff]  ;;  %2895 = vrot.lane.b32.xlu1 %v420_v46, %s12505_s21 }
 0x18a   : > { %v1912_v55 = vmax.f32 %v1315_v6, 0.0  ;;  %2496 = vmatprep.mubr.bf16.mxu1 %v13123_v16  ;;  %v1914_v31 = vmax.f32 %v1508_v24, 0.0  ;;  %2893 = vrot.lane.b32.xlu0 %v419_v22, %s12505_s21 }
 0x18b   : > { %v13391_v15 = vpack.c.bf16 %v1911_v57, %v1903_v25  ;;  %v13397_v28 = vpack.c.bf16 %v1913_v20, %v1905_v38 }
 0x18c   : > { %v13393_v48 = vpack.c.bf16 %v1912_v55, %v1904_v34  ;;  %v1318_v50 = vpop.f32.mrb[68].mxu1  ;;  %v1511_v6 = vpop.f32.mrb[68].mxu0  ;;  %v13401_v54 = vpack.c.bf16 %v1914_v31, %v1906_v63 }
 0x18d   : > { %17195 = vst [vmem:[#allocation35_spill] sm:$0xff] %v13391_v15  ;;  %v1319_v62 = vadd.f32 %v1318_v50, %v13175_v21  ;;  %v1320_v19 = vpop.f32.mrb[69].mxu1  ;;  %17197 = vst [vmem:[#allocation37_spill] sm:$0xff] %v13397_v28  ;;  %v1512_v52 = vadd.f32 %v1511_v6, %v13198_v51  ;;  %v1513_v34 = vpop.f32.mrb[69].mxu0 }
 0x18e   : > { %17196 = vst [vmem:[#allocation36_spill] sm:$0xff] %v13393_v48  ;;  %v1321_v16 = vadd.f32 %v1320_v19, %v13183_v1  ;;  %v1322_v33 = vpop.f32.mrb[70].mxu1  ;;  %17198 = vst [vmem:[#allocation38_spill] sm:$0xff] %v13401_v54  ;;  %v1514_v38 = vadd.f32 %v1513_v34, %v13201_v23  ;;  %v1515_v24 = vpop.f32.mrb[70].mxu0 }
 0x18f   : > { %v1323_v25 = vadd.f32 %v1322_v33, %v13175_v21  ;;  %v1324_v57 = vpop.f32.mrb[71].mxu1  ;;  %v1919_v20 = vmax.f32 %v1319_v62, 0.0  ;;  %v1921_v31 = vmax.f32 %v1512_v52, 0.0  ;;  %v1516_v63 = vadd.f32 %v1515_v24, %v13198_v51  ;;  %v1517_v22 = vpop.f32.mrb[71].mxu0 }
 0x190   : > { %v1325_v55 = vadd.f32 %v1324_v57, %v13183_v1  ;;  %v1920_v19 = vmax.f32 %v1321_v16, 0.0  ;;  %v1922_v6 = vmax.f32 %v1514_v38, 0.0  ;;  %v1518_v57 = vadd.f32 %v1517_v22, %v13201_v23  ;;  %v422_v22 = vld [vmem:[%s13327_s20 + $0x48] sm:$0xff] }
 0x191   : > { %v1927_v50 = vmax.f32 %v1323_v25, 0.0  ;;  %2497 = vmatmul.mubr.bf16.gmra.mrb[176].mxu1 %v13120_v9  ;;  %v1929_v34 = vmax.f32 %v1516_v63, 0.0  ;;  %v421_v9 = vld [vmem:[%s13327_s20 + $0x40] sm:$0xff]  ;;  %2899 = vrot.lane.b32.xlu1 %v422_v22, %s12505_s21 }
 0x192   : > { %v1928_v33 = vmax.f32 %v1325_v55, 0.0  ;;  %2504 = vmatprep.mubr.bf16.mxu1 %v13147_v30  ;;  %v1930_v28 = vmax.f32 %v1518_v57, 0.0  ;;  %2897 = vrot.lane.b32.xlu0 %v421_v9, %s12505_s21 }
 0x193   : > { %v13413_v46 = vpack.c.bf16 %v1927_v50, %v1919_v20  ;;  %v13419_v54 = vpack.c.bf16 %v1929_v34, %v1921_v31 }
 0x194   : > { %v13415_v62 = vpack.c.bf16 %v1928_v33, %v1920_v19  ;;  %v1328_v25 = vpop.f32.mrb[72].mxu1  ;;  %v1521_v55 = vpop.f32.mrb[72].mxu0  ;;  %v13423_v38 = vpack.c.bf16 %v1930_v28, %v1922_v6 }
 0x195   : > { %17199 = vst [vmem:[#allocation39_spill] sm:$0xff] %v13413_v46  ;;  %v1329_v52 = vadd.f32 %v1328_v25, %v13175_v21  ;;  %v1330_v24 = vpop.f32.mrb[73].mxu1  ;;  %17201 = vst [vmem:[#allocation41_spill] sm:$0xff] %v13419_v54  ;;  %v1522_v63 = vadd.f32 %v1521_v55, %v13198_v51  ;;  %v1523_v19 = vpop.f32.mrb[73].mxu0 }
 0x196   : > { %17200 = vst [vmem:[#allocation40_spill] sm:$0xff] %v13415_v62  ;;  %v1331_v30 = vadd.f32 %v1330_v24, %v13183_v1  ;;  %v1332_v16 = vpop.f32.mrb[74].mxu1  ;;  %17202 = vst [vmem:[#allocation42_spill] sm:$0xff] %v13423_v38  ;;  %v1524_v31 = vadd.f32 %v1523_v19, %v13201_v23  ;;  %v1525_v57 = vpop.f32.mrb[74].mxu0 }
 0x197   : > { %v1333_v20 = vadd.f32 %v1332_v16, %v13175_v21  ;;  %v1334_v50 = vpop.f32.mrb[75].mxu1  ;;  %v1935_v34 = vmax.f32 %v1329_v52, 0.0  ;;  %v1937_v28 = vmax.f32 %v1522_v63, 0.0  ;;  %v1526_v6 = vadd.f32 %v1525_v57, %v13198_v51  ;;  %v1527_v9 = vpop.f32.mrb[75].mxu0 }
 0x198   : > { %v1335_v33 = vadd.f32 %v1334_v50, %v13183_v1  ;;  %v1936_v24 = vmax.f32 %v1331_v30, 0.0  ;;  %v1938_v55 = vmax.f32 %v1524_v31, 0.0  ;;  %v1528_v50 = vadd.f32 %v1527_v9, %v13201_v23  ;;  %v424_v9 = vld [vmem:[%s13327_s20 + $0x58] sm:$0xff] }
 0x199   : > { %v1943_v25 = vmax.f32 %v1333_v20, 0.0  ;;  %2505 = vmatmul.mubr.bf16.gmra.mrb[180].mxu1 %v13144_v2  ;;  %v1945_v19 = vmax.f32 %v1526_v6, 0.0  ;;  %v423_v2 = vld [vmem:[%s13327_s20 + $0x50] sm:$0xff]  ;;  %2903 = vrot.lane.b32.xlu1 %v424_v9, %s12505_s21 }
 0x19a   : > { %v1944_v16 = vmax.f32 %v1335_v33, 0.0  ;;  %2512 = vmatprep.mubr.bf16.mxu1 %v13167_v4  ;;  %v1946_v54 = vmax.f32 %v1528_v50, 0.0  ;;  %2901 = vrot.lane.b32.xlu0 %v423_v2, %s12505_s21 }
 0x19b   : > { %v13435_v22 = vpack.c.bf16 %v1943_v25, %v1935_v34  ;;  %v13441_v38 = vpack.c.bf16 %v1945_v19, %v1937_v28 }
 0x19c   : > { %v13437_v52 = vpack.c.bf16 %v1944_v16, %v1936_v24  ;;  %v1338_v20 = vpop.f32.mrb[76].mxu1  ;;  %v1531_v33 = vpop.f32.mrb[76].mxu0  ;;  %v13445_v31 = vpack.c.bf16 %v1946_v54, %v1938_v55 }
 0x19d   : > { %17203 = vst [vmem:[#allocation43_spill] sm:$0xff] %v13435_v22  ;;  %v1339_v63 = vadd.f32 %v1338_v20, %v13175_v21  ;;  %v1340_v57 = vpop.f32.mrb[77].mxu1  ;;  %17205 = vst [vmem:[#allocation45_spill] sm:$0xff] %v13441_v38  ;;  %v1532_v6 = vadd.f32 %v1531_v33, %v13198_v51  ;;  %v1533_v24 = vpop.f32.mrb[77].mxu0 }
 0x19e   : > { %17204 = vst [vmem:[#allocation44_spill] sm:$0xff] %v13437_v52  ;;  %v1341_v4 = vadd.f32 %v1340_v57, %v13183_v1  ;;  %v1342_v30 = vpop.f32.mrb[78].mxu1  ;;  %17206 = vst [vmem:[#allocation46_spill] sm:$0xff] %v13445_v31  ;;  %v1534_v28 = vadd.f32 %v1533_v24, %v13201_v23  ;;  %v1535_v50 = vpop.f32.mrb[78].mxu0 }
 0x19f   : > { %v1343_v34 = vadd.f32 %v1342_v30, %v13175_v21  ;;  %v1344_v25 = vpop.f32.mrb[79].mxu1  ;;  %v1951_v19 = vmax.f32 %v1339_v63, 0.0  ;;  %v1953_v54 = vmax.f32 %v1532_v6, 0.0  ;;  %v1536_v55 = vadd.f32 %v1535_v50, %v13198_v51  ;;  %v1537_v2 = vpop.f32.mrb[79].mxu0 }
 0x1a0   : > { %v1345_v16 = vadd.f32 %v1344_v25, %v13183_v1  ;;  %v1952_v57 = vmax.f32 %v1341_v4, 0.0  ;;  %v1954_v33 = vmax.f32 %v1534_v28, 0.0  ;;  %v1538_v25 = vadd.f32 %v1537_v2, %v13201_v23  ;;  %v426_v2 = vld [vmem:[%s13327_s20 + $0x68] sm:$0xff] }
 0x1a1   : > { %v1959_v20 = vmax.f32 %v1343_v34, 0.0  ;;  %2513 = vmatmul.mubr.bf16.gmra.mrb[184].mxu1 %v13164_v58  ;;  %v1961_v24 = vmax.f32 %v1536_v55, 0.0  ;;  %v425_v58 = vld [vmem:[%s13327_s20 + $0x60] sm:$0xff]  ;;  %2907 = vrot.lane.b32.xlu1 %v426_v2, %s12505_s21 }
 0x1a2   : > { %v1960_v30 = vmax.f32 %v1345_v16, 0.0  ;;  %2520 = vmatprep.mubr.bf16.mxu1 %v13204_v44  ;;  %v1962_v38 = vmax.f32 %v1538_v25, 0.0  ;;  %2905 = vrot.lane.b32.xlu0 %v425_v58, %s12505_s21 }
 0x1a3   : > { %v13457_v9 = vpack.c.bf16 %v1959_v20, %v1951_v19  ;;  %v13463_v31 = vpack.c.bf16 %v1961_v24, %v1953_v54 }
 0x1a4   : > { %v13459_v63 = vpack.c.bf16 %v1960_v30, %v1952_v57  ;;  %v1348_v34 = vpop.f32.mrb[80].mxu1  ;;  %v1541_v16 = vpop.f32.mrb[80].mxu0  ;;  %v13467_v28 = vpack.c.bf16 %v1962_v38, %v1954_v33 }
 0x1a5   : > { %17207 = vst [vmem:[#allocation47_spill] sm:$0xff] %v13457_v9  ;;  %v1349_v6 = vadd.f32 %v1348_v34, %v13175_v21  ;;  %v1350_v50 = vpop.f32.mrb[81].mxu1  ;;  %17209 = vst [vmem:[#allocation49_spill] sm:$0xff] %v13463_v31  ;;  %v1542_v55 = vadd.f32 %v1541_v16, %v13198_v51  ;;  %v1543_v57 = vpop.f32.mrb[81].mxu0 }
 0x1a6   : > { %17208 = vst [vmem:[#allocation48_spill] sm:$0xff] %v13459_v63  ;;  %v1351_v44 = vadd.f32 %v1350_v50, %v13183_v1  ;;  %v1352_v4 = vpop.f32.mrb[82].mxu1  ;;  %17210 = vst [vmem:[#allocation50_spill] sm:$0xff] %v13467_v28  ;;  %v1544_v54 = vadd.f32 %v1543_v57, %v13201_v23  ;;  %v1545_v25 = vpop.f32.mrb[82].mxu0 }
 0x1a7   : > { %v1353_v19 = vadd.f32 %v1352_v4, %v13175_v21  ;;  %v1354_v20 = vpop.f32.mrb[83].mxu1  ;;  %v1967_v24 = vmax.f32 %v1349_v6, 0.0  ;;  %v1969_v38 = vmax.f32 %v1542_v55, 0.0  ;;  %v1546_v33 = vadd.f32 %v1545_v25, %v13198_v51  ;;  %v1547_v58 = vpop.f32.mrb[83].mxu0 }
 0x1a8   : > { %v1355_v30 = vadd.f32 %v1354_v20, %v13183_v1  ;;  %v1968_v50 = vmax.f32 %v1351_v44, 0.0  ;;  %v1970_v16 = vmax.f32 %v1544_v54, 0.0  ;;  %v1548_v20 = vadd.f32 %v1547_v58, %v13201_v23  ;;  %v428_v58 = vld [vmem:[%s13327_s20 + $0x78] sm:$0xff] }
 0x1a9   : > { %v1975_v34 = vmax.f32 %v1353_v19, 0.0  ;;  %2521 = vmatmul.mubr.bf16.gmra.mrb[188].mxu1 %v13195_v18  ;;  %v1977_v57 = vmax.f32 %v1546_v33, 0.0  ;;  %v427_v18 = vld [vmem:[%s13327_s20 + $0x70] sm:$0xff]  ;;  %2911 = vrot.lane.b32.xlu1 %v428_v58, %s12505_s21 }
 0x1aa   : > { %v1976_v4 = vmax.f32 %v1355_v30, 0.0  ;;  %2528 = vmatprep.mubr.bf16.mxu1 %v13034_v14  ;;  %v1978_v31 = vmax.f32 %v1548_v20, 0.0  ;;  %2909 = vrot.lane.b32.xlu0 %v427_v18, %s12505_s21 }
 0x1ab   : > { %v13479_v2 = vpack.c.bf16 %v1975_v34, %v1967_v24  ;;  %v13485_v28 = vpack.c.bf16 %v1977_v57, %v1969_v38 }
 0x1ac   : > { %v13481_v6 = vpack.c.bf16 %v1976_v4, %v1968_v50  ;;  %v1358_v19 = vpop.f32.mrb[84].mxu1  ;;  %v1551_v30 = vpop.f32.mrb[84].mxu0  ;;  %v13489_v54 = vpack.c.bf16 %v1978_v31, %v1970_v16 }
 0x1ad   : > { %17211 = vst [vmem:[#allocation51_spill] sm:$0xff] %v13479_v2  ;;  %v1359_v55 = vadd.f32 %v1358_v19, %v13175_v21  ;;  %v1360_v25 = vpop.f32.mrb[85].mxu1  ;;  %17213 = vst [vmem:[#allocation53_spill] sm:$0xff] %v13485_v28  ;;  %v1552_v33 = vadd.f32 %v1551_v30, %v13198_v51  ;;  %v1553_v50 = vpop.f32.mrb[85].mxu0 }
 0x1ae   : > { %17212 = vst [vmem:[#allocation52_spill] sm:$0xff] %v13481_v6  ;;  %v1361_v14 = vadd.f32 %v1360_v25, %v13183_v1  ;;  %v1362_v44 = vpop.f32.mrb[86].mxu1  ;;  %17214 = vst [vmem:[#allocation54_spill] sm:$0xff] %v13489_v54  ;;  %v1554_v38 = vadd.f32 %v1553_v50, %v13201_v23  ;;  %v1555_v20 = vpop.f32.mrb[86].mxu0 }
 0x1af   : > { %v1363_v24 = vadd.f32 %v1362_v44, %v13175_v21  ;;  %v1364_v34 = vpop.f32.mrb[87].mxu1  ;;  %v1983_v57 = vmax.f32 %v1359_v55, 0.0  ;;  %v1985_v31 = vmax.f32 %v1552_v33, 0.0  ;;  %v1556_v16 = vadd.f32 %v1555_v20, %v13198_v51  ;;  %v1557_v18 = vpop.f32.mrb[87].mxu0 }
 0x1b0   : > { %v1365_v4 = vadd.f32 %v1364_v34, %v13183_v1  ;;  %v1984_v25 = vmax.f32 %v1361_v14, 0.0  ;;  %v1986_v30 = vmax.f32 %v1554_v38, 0.0  ;;  %v1558_v34 = vadd.f32 %v1557_v18, %v13201_v23  ;;  %v430_v18 = vld [vmem:[%s13327_s20 + $0x88] sm:$0xff] }
 0x1b1   : > { %v1991_v19 = vmax.f32 %v1363_v24, 0.0  ;;  %2529 = vmatmul.mubr.bf16.gmra.mrb[192].mxu1 %v13032_v37  ;;  %v1993_v50 = vmax.f32 %v1556_v16, 0.0  ;;  %v429_v37 = vld [vmem:[%s13327_s20 + $0x80] sm:$0xff]  ;;  %2915 = vrot.lane.b32.xlu1 %v430_v18, %s12505_s21 }
 0x1b2   : > { %v1992_v44 = vmax.f32 %v1365_v4, 0.0  ;;  %2536 = vmatprep.mubr.bf16.mxu1 %v13058_v12  ;;  %v1994_v28 = vmax.f32 %v1558_v34, 0.0  ;;  %2913 = vrot.lane.b32.xlu0 %v429_v37, %s12505_s21 }
 0x1b3   : > { %v13501_v58 = vpack.c.bf16 %v1991_v19, %v1983_v57  ;;  %v13507_v54 = vpack.c.bf16 %v1993_v50, %v1985_v31 }
 0x1b4   : > { %v13503_v55 = vpack.c.bf16 %v1992_v44, %v1984_v25  ;;  %v1368_v24 = vpop.f32.mrb[88].mxu1  ;;  %v1561_v4 = vpop.f32.mrb[88].mxu0  ;;  %v13511_v38 = vpack.c.bf16 %v1994_v28, %v1986_v30 }
 0x1b5   : > { %17215 = vst [vmem:[#allocation55_spill] sm:$0xff] %v13501_v58  ;;  %v1369_v33 = vadd.f32 %v1368_v24, %v13175_v21  ;;  %v1370_v20 = vpop.f32.mrb[89].mxu1  ;;  %17217 = vst [vmem:[#allocation57_spill] sm:$0xff] %v13507_v54  ;;  %v1562_v16 = vadd.f32 %v1561_v4, %v13198_v51  ;;  %v1563_v25 = vpop.f32.mrb[89].mxu0 }
 0x1b6   : > { %17216 = vst [vmem:[#allocation56_spill] sm:$0xff] %v13503_v55  ;;  %v1371_v12 = vadd.f32 %v1370_v20, %v13183_v1  ;;  %v1372_v14 = vpop.f32.mrb[90].mxu1  ;;  %17218 = vst [vmem:[#allocation58_spill] sm:$0xff] %v13511_v38  ;;  %v1564_v31 = vadd.f32 %v1563_v25, %v13201_v23  ;;  %v1565_v34 = vpop.f32.mrb[90].mxu0 }
 0x1b7   : > { %v1373_v57 = vadd.f32 %v1372_v14, %v13175_v21  ;;  %v1374_v19 = vpop.f32.mrb[91].mxu1  ;;  %v1999_v50 = vmax.f32 %v1369_v33, 0.0  ;;  %v2001_v28 = vmax.f32 %v1562_v16, 0.0  ;;  %v1566_v30 = vadd.f32 %v1565_v34, %v13198_v51  ;;  %v1567_v37 = vpop.f32.mrb[91].mxu0  ;;  %v431_v34 = vld [vmem:[%s13327_s20 + $0x90] sm:$0xff] }
 0x1b8   : > { %v1375_v44 = vadd.f32 %v1374_v19, %v13183_v1  ;;  %v2000_v20 = vmax.f32 %v1371_v12, 0.0  ;;  %v2002_v4 = vmax.f32 %v1564_v31, 0.0  ;;  %v1568_v19 = vadd.f32 %v1567_v37, %v13201_v23  ;;  %2917 = vrot.lane.b32.xlu0 %v431_v34, %s12505_s21 }
 0x1b9   : > { %v2007_v24 = vmax.f32 %v1373_v57, 0.0  ;;  %2537 = vmatmul.mubr.bf16.gmra.mrb[196].mxu1 %v13056_v10  ;;  %v2009_v25 = vmax.f32 %v1566_v30, 0.0  ;;  %v571_v10 = vsub.s32 6, %v12967_v42  ;;  %v575_v57 = vsub.s32 7, %v12967_v42 }
 0x1ba   : > { %v2008_v14 = vmax.f32 %v1375_v44, 0.0  ;;  %2544 = vmatprep.mubr.bf16.mxu1 %v13076_v45  ;;  %v2010_v16 = vmax.f32 %v1568_v19, 0.0  ;;  %v432_v19 = vld [vmem:[%s13327_s20 + $0x98] sm:$0xff] }
 0x1bb   : > { %v13523_v18 = vpack.c.bf16 %v2007_v24, %v1999_v50  ;;  %v13531_v45 = vpack.c.bf16 %v2009_v25, %v2001_v28  ;;  %v13542_v28 = vrot.slane %v12979_v47, %v571_v10  ;;  %v13545_v25 = vrot.slane %v12979_v47, %v575_v57  ;;  %2919 = vrot.lane.b32.xlu1 %v432_v19, %s12505_s21  ;;  %v435_v19 = vld [vmem:[%s13327_s20 + $0xb0] sm:$0xff] }
 0x1bc   : > { %v13525_v54 = vpack.c.bf16 %v2008_v14, %v2000_v20  ;;  %v1378_v33 = vpop.f32.mrb[92].mxu1  ;;  %v1571_v24 = vpop.f32.mrb[92].mxu0  ;;  %v13535_v30 = vpack.c.bf16 %v2010_v16, %v2002_v4 }
 0x1bd   : > { %17219 = vst [vmem:[#allocation59_spill] sm:$0xff] %v13523_v18  ;;  %v1379_v12 = vadd.f32 %v1378_v33, %v13175_v21  ;;  %v1380_v44 = vpop.f32.mrb[93].mxu1  ;;  %17221 = vst [vmem:[#allocation61_spill] sm:$0xff] %v13531_v45  ;;  %v1572_v14 = vadd.f32 %v1571_v24, %v13198_v51  ;;  %v1573_v42 = vpop.f32.mrb[93].mxu0 }
 0x1be   : > { %17220 = vst [vmem:[#allocation60_spill] sm:$0xff] %v13525_v54  ;;  %v1381_v31 = vadd.f32 %v1380_v44, %v13183_v1  ;;  %v1382_v50 = vpop.f32.mrb[94].mxu1  ;;  %17222 = vst [vmem:[#allocation62_spill] sm:$0xff] %v13535_v30  ;;  %v1574_v4 = vadd.f32 %v1573_v42, %v13201_v23  ;;  %v1575_v16 = vpop.f32.mrb[94].mxu0 }
 0x1bf   : > { %v1383_v37 = vadd.f32 %v1382_v50, %v13175_v21  ;;  %v1384_v20 = vpop.f32.mrb[95].mxu1  ;;  %v2015_v21 = vmax.f32 %v1379_v12, 0.0  ;;  %v2017_v44 = vmax.f32 %v1572_v14, 0.0  ;;  %v433_v50 = vld [vmem:[%s13327_s20 + $0xa0] sm:$0xff]  ;;  %v1577_v10 = vpop.f32.mrb[95].mxu0 }
 0x1c0   : > { %v1385_v33 = vadd.f32 %v1384_v20, %v13183_v1  ;;  %v1576_v1 = vadd.f32 %v1575_v16, %v13198_v51  ;;  %v2016_v24 = vmax.f32 %v1381_v31, 0.0  ;;  %v2018_v47 = vmax.f32 %v1574_v4, 0.0  ;;  %2921 = vrot.lane.b32.xlu0 %v433_v50, %s12505_s21  ;;  %v434_v51 = vld [vmem:[%s13327_s20 + $0xa8] sm:$0xff] }
 0x1c1   : > { %v2023_v34 = vmax.f32 %v1383_v37, 0.0  ;;  %2545 = vmatmul.mubr.bf16.gmra.mrb[200].mxu1 %v13074_v40  ;;  %v1578_v42 = vadd.f32 %v1577_v10, %v13201_v23  ;;  %2923 = vrot.lane.b32.xlu1 %v434_v51, %s12505_s21 }
 0x1c2   : > { %v2024_v20 = vmax.f32 %v1385_v33, 0.0  ;;  %2552 = vmatprep.mubr.bf16.mxu1 %v13100_v29  ;;  %v2025_v12 = vmax.f32 %v1576_v1, 0.0 }
 0x1c3   : > { %v13555_v57 = vpack.c.bf16 %v2023_v34, %v2015_v21  ;;  %v2026_v14 = vmax.f32 %v1578_v42, 0.0  ;;  %v437_v42 = vld [vmem:[%s13327_s20 + $0xc0] sm:$0xff] }
 0x1c4   : > { %v13557_v40 = vpack.c.bf16 %v2024_v20, %v2016_v24  ;;  %v1614_v37 = vpop.f32.mrb[96].mxu1  ;;  %v13562_v33 = vpack.c.bf16 %v2025_v12, %v2017_v44  ;;  %2925 = vrot.lane.b32.xlu0 %v435_v19, %s12505_s21  ;;  %v13567_v4 = vpop.f32.mrb[96].mxu0 }
 0x1c5   : > { %17223 = vst [vmem:[#allocation63_spill] sm:$0xff] %v13555_v57  ;;  %v1615_v16 = vadd.f32 %v1614_v37, %v13542_v28  ;;  %v1616_v31 = vpop.f32.mrb[97].mxu1  ;;  %v13569_v21 = vpack.c.bf16 %v2026_v14, %v2018_v47  ;;  %v13572_v50 = vpop.f32.mrb[97].mxu0 }
 0x1c6   : > { %17224 = vst [vmem:[#allocation64_spill] sm:$0xff] %v13557_v40  ;;  %17225 = vst [vmem:[#allocation65_spill] sm:$0xff] %v13562_v33  ;;  %v1617_v29 = vadd.f32 %v1616_v31, %v13545_v25  ;;  %v1618_v23 = vpop.f32.mrb[98].mxu1  ;;  %v13575_v44 = vpop.f32.mrb[98].mxu0 }
 0x1c7   : > { %17226 = vst [vmem:[#allocation66_spill] sm:$0xff] %v13569_v21  ;;  %v1619_v34 = vadd.f32 %v1618_v23, %v13542_v28  ;;  %v1620_v1 = vpop.f32.mrb[99].mxu1  ;;  %v1779_v24 = vmax.f32 %v1615_v16, 0.0  ;;  %v13579_v12 = vpop.f32.mrb[99].mxu0  ;;  %v439_v23 = vld [vmem:[%s13327_s20 + $0xd0] sm:$0xff] }
 0x1c8   : > { %v1621_v10 = vadd.f32 %v1620_v1, %v13545_v25  ;;  %v1780_v47 = vmax.f32 %v1617_v29, 0.0  ;;  %2929 = vrot.lane.b32.xlu0 %v437_v42, %s12505_s21  ;;  %v438_v42 = vld [vmem:[%s13327_s20 + $0xc8] sm:$0xff] }
 0x1c9   : > { %v1787_v20 = vmax.f32 %v1619_v34, 0.0  ;;  %2553 = vmatmul.mubr.bf16.gmra.mrb[204].mxu1 %v13098_v26  ;;  %v436_v26 = vld [vmem:[%s13327_s20 + $0xb8] sm:$0xff] }
 0x1ca   : > { %v1788_v37 = vmax.f32 %v1621_v10, 0.0  ;;  %2560 = vmatprep.mubr.bf16.mxu1 %v13118_v5  ;;  %2927 = vrot.lane.b32.xlu1 %v436_v26, %s12505_s21 }
 0x1cb   : > { %v13583_v14 = vpack.c.bf16 %v1787_v20, %v1779_v24 }
 0x1cc   : > { %v13585_v19 = vpack.c.bf16 %v1788_v37, %v1780_v47  ;;  %v1624_v51 = vpop.f32.mrb[100].mxu1  ;;  %2933 = vrot.lane.b32.xlu0 %v439_v23, %s12505_s21  ;;  %v441_v47 = vld [vmem:[%s13327_s20 + $0xe0] sm:$0xff] }
 0x1cd   : > { %17227 = vst [vmem:[#allocation67_spill] sm:$0xff] %v13583_v14  ;;  %v1625_v16 = vadd.f32 %v1624_v51, %v13542_v28  ;;  %v1626_v31 = vpop.f32.mrb[101].mxu1 }
 0x1ce   : > { %17228 = vst [vmem:[#allocation68_spill] sm:$0xff] %v13585_v19  ;;  %v1627_v34 = vadd.f32 %v1626_v31, %v13545_v25  ;;  %v1628_v29 = vpop.f32.mrb[102].mxu1  ;;  %2931 = vrot.lane.b32.xlu1 %v438_v42, %s12505_s21 }
 0x1cf   : > { %v1629_v5 = vadd.f32 %v1628_v29, %v13542_v28  ;;  %v1630_v1 = vpop.f32.mrb[103].mxu1  ;;  %v1795_v24 = vmax.f32 %v1625_v16, 0.0 }
 0x1d0   : > { %v1631_v10 = vadd.f32 %v1630_v1, %v13545_v25  ;;  %v1796_v37 = vmax.f32 %v1627_v34, 0.0  ;;  %2937 = vrot.lane.b32.xlu0 %v441_v47, %s12505_s21  ;;  %v13614_v47 = vpop.f32.mrb[100].mxu0 }
 0x1d1   : > { %v1803_v20 = vmax.f32 %v1629_v5, 0.0  ;;  %2561 = vmatmul.mubr.bf16.gmra.mrb[208].mxu1 %v13116_v3  ;;  %v440_v3 = vld [vmem:[%s13327_s20 + $0xd8] sm:$0xff]  ;;  %v443_v5 = vld [vmem:[%s13327_s20 + $0xf0] sm:$0xff] }
 0x1d2   : > { %v1804_v51 = vmax.f32 %v1631_v10, 0.0  ;;  %2568 = vmatprep.mubr.bf16.mxu1 %v13142_v8  ;;  %2935 = vrot.lane.b32.xlu1 %v440_v3, %s12505_s21 }
 0x1d3   : > { %v13600_v31 = vpack.c.bf16 %v1803_v20, %v1795_v24 }
 0x1d4   : > { %v13603_v26 = vpack.c.bf16 %v1804_v51, %v1796_v37  ;;  %v1634_v23 = vpop.f32.mrb[104].mxu1  ;;  %2941 = vrot.lane.b32.xlu0 %v443_v5, %s12505_s21  ;;  %v442_v37 = vld [vmem:[%s13327_s20 + $0xe8] sm:$0xff] }
 0x1d5   : > { %17229 = vst [vmem:[#allocation69_spill] sm:$0xff] %v13600_v31  ;;  %v1635_v16 = vadd.f32 %v1634_v23, %v13542_v28  ;;  %v1636_v29 = vpop.f32.mrb[105].mxu1 }
 0x1d6   : > { %17230 = vst [vmem:[#allocation70_spill] sm:$0xff] %v13603_v26  ;;  %v1637_v34 = vadd.f32 %v1636_v29, %v13545_v25  ;;  %v1638_v1 = vpop.f32.mrb[106].mxu1  ;;  %2939 = vrot.lane.b32.xlu1 %v442_v37, %s12505_s21  ;;  %v13619_v29 = vpop.f32.mrb[101].mxu0 }
 0x1d7   : > { %v1639_v8 = vadd.f32 %v1638_v1, %v13542_v28  ;;  %v1640_v10 = vpop.f32.mrb[107].mxu1  ;;  %v1811_v20 = vmax.f32 %v1635_v16, 0.0  ;;  %v13623_v5 = vpop.f32.mrb[102].mxu0 }
 0x1d8   : > { %v1641_v24 = vadd.f32 %v1640_v10, %v13545_v25  ;;  %v1812_v51 = vmax.f32 %v1637_v34, 0.0  ;;  %v444_v34 = vld [vmem:[%s13327_s20 + $0xf8] sm:$0xff] }
 0x1d9   : > { %v1819_v42 = vmax.f32 %v1639_v8, 0.0  ;;  %2569 = vmatmul.mubr.bf16.gmra.mrb[212].mxu1 %v13140_v59  ;;  %v13627_v8 = vpop.f32.mrb[103].mxu0 }
 0x1da   : > { %v1820_v23 = vmax.f32 %v1641_v24, 0.0  ;;  %2576 = vmatprep.mubr.bf16.mxu1 %v13161_v53  ;;  %2943 = vrot.lane.b32.xlu1 %v444_v34, %s12505_s21 }
 0x1db   : > { %v13621_v3 = vpack.c.bf16 %v1819_v42, %v1811_v20 }
 0x1dc   : > { %v13625_v16 = vpack.c.bf16 %v1820_v23, %v1812_v51  ;;  %v1644_v1 = vpop.f32.mrb[108].mxu1 }
 0x1dd   : > { %17231 = vst [vmem:[#allocation71_spill] sm:$0xff] %v13621_v3  ;;  %v1645_v59 = vadd.f32 %v1644_v1, %v13542_v28  ;;  %v1646_v10 = vpop.f32.mrb[109].mxu1 }
 0x1de   : > { %17232 = vst [vmem:[#allocation72_spill] sm:$0xff] %v13625_v16  ;;  %v1647_v24 = vadd.f32 %v1646_v10, %v13545_v25  ;;  %v1648_v53 = vpop.f32.mrb[110].mxu1 }
 0x1df   : > { %v1649_v37 = vadd.f32 %v1648_v53, %v13542_v28  ;;  %v1650_v20 = vpop.f32.mrb[111].mxu1  ;;  %v1827_v3 = vmax.f32 %v1645_v59, 0.0 }
 0x1e0   : > { %v1651_v42 = vadd.f32 %v1650_v20, %v13545_v25  ;;  %v1828_v23 = vmax.f32 %v1647_v24, 0.0 }
 0x1e1   : > { %v1835_v51 = vmax.f32 %v1649_v37, 0.0  ;;  %2577 = vmatmul.mubr.bf16.gmra.mrb[216].mxu1 %v13158_v41 }
 0x1e2   : > { %v1836_v16 = vmax.f32 %v1651_v42, 0.0  ;;  %2584 = vmatprep.mubr.bf16.mxu1 %v13192_v7  ;;  %v13646_v7 = vpop.f32.mrb[104].mxu0 }
 0x1e3   : > { %v13637_v1 = vpack.c.bf16 %v1835_v51, %v1827_v3  ;;  %v13648_v42 = vpop.f32.mrb[105].mxu0 }
 0x1e4   : > { %v13639_v31 = vpack.c.bf16 %v1836_v16, %v1828_v23  ;;  %v1654_v10 = vpop.f32.mrb[112].mxu1 }
 0x1e5   : > { %17233 = vst [vmem:[#allocation73_spill] sm:$0xff] %v13637_v1  ;;  %v1655_v34 = vadd.f32 %v1654_v10, %v13542_v28  ;;  %v1656_v26 = vpop.f32.mrb[113].mxu1 }
 0x1e6   : > { %17234 = vst [vmem:[#allocation74_spill] sm:$0xff] %v13639_v31  ;;  %v1657_v53 = vadd.f32 %v1656_v26, %v13545_v25  ;;  %v1658_v14 = vpop.f32.mrb[114].mxu1  ;;  %v13653_v26 = vpop.f32.mrb[106].mxu0 }
 0x1e7   : > { %v1659_v59 = vadd.f32 %v1658_v14, %v13542_v28  ;;  %v1660_v37 = vpop.f32.mrb[115].mxu1  ;;  %v1843_v24 = vmax.f32 %v1655_v34, 0.0  ;;  %v13657_v10 = vpop.f32.mrb[107].mxu0 }
 0x1e8   : > { %v1661_v41 = vadd.f32 %v1660_v37, %v13545_v25  ;;  %v1844_v3 = vmax.f32 %v1657_v53, 0.0 }
 0x1e9   : > { %v1851_v20 = vmax.f32 %v1659_v59, 0.0  ;;  %2585 = vmatmul.mubr.bf16.gmra.mrb[220].mxu1 %v13206_v61 }
 0x1ea   : > { %v1852_v16 = vmax.f32 %v1661_v41, 0.0  ;;  %5107 = vmatprep.mubr.bf16.mxu1 %v17166_v35 }
 0x1eb   : > { %v13651_v51 = vpack.c.bf16 %v1851_v20, %v1843_v24 }
 0x1ec   : > { %v13655_v14 = vpack.c.bf16 %v1852_v16, %v1844_v3  ;;  %v1664_v23 = vpop.f32.mrb[116].mxu1 }
 0x1ed   : > { %17235 = vst [vmem:[#allocation75_spill] sm:$0xff] %v13651_v51  ;;  %v1665_v34 = vadd.f32 %v1664_v23, %v13542_v28  ;;  %v1666_v61 = vpop.f32.mrb[117].mxu1 }
 0x1ee   : > { %17236 = vst [vmem:[#allocation76_spill] sm:$0xff] %v13655_v14  ;;  %v1667_v59 = vadd.f32 %v1666_v61, %v13545_v25  ;;  %v1668_v53 = vpop.f32.mrb[118].mxu1 }
 0x1ef   : > { %v1669_v37 = vadd.f32 %v1668_v53, %v13542_v28  ;;  %v1670_v41 = vpop.f32.mrb[119].mxu1  ;;  %v1859_v24 = vmax.f32 %v1665_v34, 0.0 }
 0x1f0   : > { %v1671_v1 = vadd.f32 %v1670_v41, %v13545_v25  ;;  %v1860_v51 = vmax.f32 %v1667_v59, 0.0  ;;  %v13671_v59 = vpop.f32.mrb[108].mxu0 }
 0x1f1   : > { %v1867_v20 = vmax.f32 %v1669_v37, 0.0 }
 0x1f2   : > { %v1868_v31 = vmax.f32 %v1671_v1, 0.0 }
 0x1f3   : > { %v13663_v3 = vpack.c.bf16 %v1867_v20, %v1859_v24 }
 0x1f4   : > { %v13665_v16 = vpack.c.bf16 %v1868_v31, %v1860_v51  ;;  %v1674_v14 = vpop.f32.mrb[120].mxu1  ;;  %v13673_v31 = vpop.f32.mrb[109].mxu0 }
 0x1f5   : > { %17237 = vst [vmem:[#allocation77_spill] sm:$0xff] %v13663_v3  ;;  %v1675_v23 = vadd.f32 %v1674_v14, %v13542_v28  ;;  %v1676_v19 = vpop.f32.mrb[121].mxu1  ;;  %v13677_v14 = vpop.f32.mrb[110].mxu0 }
 0x1f6   : > { %17238 = vst [vmem:[#allocation78_spill] sm:$0xff] %v13665_v16  ;;  %v1677_v61 = vadd.f32 %v1676_v19, %v13545_v25  ;;  %v1678_v33 = vpop.f32.mrb[122].mxu1  ;;  %v13681_v3 = vpop.f32.mrb[111].mxu0 }
 0x1f7   : > { %v1679_v53 = vadd.f32 %v1678_v33, %v13542_v28  ;;  %v1680_v21 = vpop.f32.mrb[123].mxu1  ;;  %v1875_v34 = vmax.f32 %v1675_v23, 0.0 }
 0x1f8   : > { %v1681_v41 = vadd.f32 %v1680_v21, %v13545_v25  ;;  %v1876_v1 = vmax.f32 %v1677_v61, 0.0 }
 0x1f9   : > { %v1883_v37 = vmax.f32 %v1679_v53, 0.0 }
 0x1fa   : > { %v1884_v24 = vmax.f32 %v1681_v41, 0.0 }
 0x1fb   : > { %v13675_v51 = vpack.c.bf16 %v1883_v37, %v1875_v34 }
 0x1fc   : > { %v13679_v20 = vpack.c.bf16 %v1884_v24, %v1876_v1  ;;  %v1684_v19 = vpop.f32.mrb[124].mxu1 }
 0x1fd   : > { %17239 = vst [vmem:[#allocation79_spill] sm:$0xff] %v13675_v51  ;;  %v1685_v33 = vadd.f32 %v1684_v19, %v13542_v28  ;;  %v1686_v21 = vpop.f32.mrb[125].mxu1 }
 0x1fe   : > { %17240 = vst [vmem:[#allocation80_spill] sm:$0xff] %v13679_v20  ;;  %v1687_v23 = vadd.f32 %v1686_v21, %v13545_v25  ;;  %v1688_v53 = vpop.f32.mrb[126].mxu1 }
 0x1ff   : > { %v1689_v61 = vadd.f32 %v1688_v53, %v13542_v28  ;;  %v1690_v41 = vpop.f32.mrb[127].mxu1  ;;  %v1891_v34 = vmax.f32 %v1685_v33, 0.0 }
 0x200   : > { %v1691_v16 = vadd.f32 %v1690_v41, %v13545_v25  ;;  %v1892_v51 = vmax.f32 %v1687_v23, 0.0  ;;  %v13695_v23 = vpop.f32.mrb[112].mxu0 }
 0x201   : > { %v1899_v37 = vmax.f32 %v1689_v61, 0.0 }
 0x202   : > { %v1900_v45 = vmax.f32 %v1691_v16, 0.0 }
 0x203   : > { %v13687_v1 = vpack.c.bf16 %v1899_v37, %v1891_v34 }
 0x204   : > { %v13689_v24 = vpack.c.bf16 %v1900_v45, %v1892_v51  ;;  %v1694_v20 = vpop.f32.mrb[128].mxu1  ;;  %v13697_v45 = vpop.f32.mrb[113].mxu0 }
 0x205   : > { %17241 = vst [vmem:[#allocation81_spill] sm:$0xff] %v13687_v1  ;;  %v1695_v19 = vadd.f32 %v1694_v20, %v13542_v28  ;;  %v1696_v30 = vpop.f32.mrb[129].mxu1  ;;  %v13701_v20 = vpop.f32.mrb[114].mxu0 }
 0x206   : > { %17242 = vst [vmem:[#allocation82_spill] sm:$0xff] %v13689_v24  ;;  %v1697_v21 = vadd.f32 %v1696_v30, %v13545_v25  ;;  %v1698_v38 = vpop.f32.mrb[130].mxu1  ;;  %v13705_v1 = vpop.f32.mrb[115].mxu0 }
 0x207   : > { %v1699_v53 = vadd.f32 %v1698_v38, %v13542_v28  ;;  %v1700_v35 = vpop.f32.mrb[131].mxu1  ;;  %v1907_v33 = vmax.f32 %v1695_v19, 0.0 }
 0x208   : > { %v1701_v41 = vadd.f32 %v1700_v35, %v13545_v25  ;;  %v1908_v16 = vmax.f32 %v1697_v21, 0.0 }
 0x209   : > { %v1915_v61 = vmax.f32 %v1699_v53, 0.0 }
 0x20a   : > { %v1916_v34 = vmax.f32 %v1701_v41, 0.0 }
 0x20b   : > { %v13699_v51 = vpack.c.bf16 %v1915_v61, %v1907_v33 }
 0x20c   : > { %v13703_v37 = vpack.c.bf16 %v1916_v34, %v1908_v16  ;;  %v1704_v30 = vpop.f32.mrb[132].mxu1 }
 0x20d   : > { %17243 = vst [vmem:[#allocation83_spill] sm:$0xff] %v13699_v51  ;;  %v1705_v38 = vadd.f32 %v1704_v30, %v13542_v28  ;;  %v1706_v35 = vpop.f32.mrb[133].mxu1 }
 0x20e   : > { %17244 = vst [vmem:[#allocation84_spill] sm:$0xff] %v13703_v37  ;;  %v1707_v19 = vadd.f32 %v1706_v35, %v13545_v25  ;;  %v1708_v53 = vpop.f32.mrb[134].mxu1 }
 0x20f   : > { %v1709_v21 = vadd.f32 %v1708_v53, %v13542_v28  ;;  %v1710_v41 = vpop.f32.mrb[135].mxu1  ;;  %v1923_v33 = vmax.f32 %v1705_v38, 0.0 }
 0x210   : > { %v1711_v24 = vadd.f32 %v1710_v41, %v13545_v25  ;;  %v1924_v51 = vmax.f32 %v1707_v19, 0.0 }
 0x211   : > { %v1931_v61 = vmax.f32 %v1709_v21, 0.0  ;;  %v13719_v19 = vpop.f32.mrb[116].mxu0 }
 0x212   : > { %v1932_v57 = vmax.f32 %v1711_v24, 0.0 }
 0x213   : > { %v13711_v16 = vpack.c.bf16 %v1931_v61, %v1923_v33 }
 0x214   : > { %v13713_v34 = vpack.c.bf16 %v1932_v57, %v1924_v51  ;;  %v1714_v37 = vpop.f32.mrb[136].mxu1  ;;  %v13721_v57 = vpop.f32.mrb[117].mxu0 }
 0x215   : > { %17245 = vst [vmem:[#allocation85_spill] sm:$0xff] %v13711_v16  ;;  %v1715_v30 = vadd.f32 %v1714_v37, %v13542_v28  ;;  %v1716_v40 = vpop.f32.mrb[137].mxu1  ;;  %v13725_v37 = vpop.f32.mrb[118].mxu0 }
 0x216   : > { %17246 = vst [vmem:[#allocation86_spill] sm:$0xff] %v13713_v34  ;;  %v1717_v35 = vadd.f32 %v1716_v40, %v13545_v25  ;;  %v1718_v18 = vpop.f32.mrb[138].mxu1  ;;  %v13729_v16 = vpop.f32.mrb[119].mxu0 }
 0x217   : > { %v1719_v53 = vadd.f32 %v1718_v18, %v13542_v28  ;;  %v1720_v54 = vpop.f32.mrb[139].mxu1  ;;  %v1939_v38 = vmax.f32 %v1715_v30, 0.0 }
 0x218   : > { %v1721_v41 = vadd.f32 %v1720_v54, %v13545_v25  ;;  %v1940_v24 = vmax.f32 %v1717_v35, 0.0 }
 0x219   : > { %v1947_v21 = vmax.f32 %v1719_v53, 0.0 }
 0x21a   : > { %v1948_v33 = vmax.f32 %v1721_v41, 0.0 }
 0x21b   : > { %v13723_v51 = vpack.c.bf16 %v1947_v21, %v1939_v38 }
 0x21c   : > { %v13727_v61 = vpack.c.bf16 %v1948_v33, %v1940_v24  ;;  %v1724_v40 = vpop.f32.mrb[140].mxu1 }
 0x21d   : > { %17247 = vst [vmem:[#allocation87_spill] sm:$0xff] %v13723_v51  ;;  %v1725_v18 = vadd.f32 %v1724_v40, %v13542_v28  ;;  %v1726_v54 = vpop.f32.mrb[141].mxu1 }
 0x21e   : > { %17248 = vst [vmem:[#allocation88_spill] sm:$0xff] %v13727_v61  ;;  %v1727_v30 = vadd.f32 %v1726_v54, %v13545_v25  ;;  %v1728_v53 = vpop.f32.mrb[142].mxu1 }
 0x21f   : > { %v1729_v35 = vadd.f32 %v1728_v53, %v13542_v28  ;;  %v1730_v41 = vpop.f32.mrb[143].mxu1  ;;  %v1955_v38 = vmax.f32 %v1725_v18, 0.0 }
 0x220   : > { %v1731_v34 = vadd.f32 %v1730_v41, %v13545_v25  ;;  %v1956_v51 = vmax.f32 %v1727_v30, 0.0 }
 0x221   : > { %v1963_v21 = vmax.f32 %v1729_v35, 0.0 }
 0x222   : > { %v1964_v58 = vmax.f32 %v1731_v34, 0.0 }
 0x223   : > { %v13735_v24 = vpack.c.bf16 %v1963_v21, %v1955_v38 }
 0x224   : > { %v13737_v33 = vpack.c.bf16 %v1964_v58, %v1956_v51  ;;  %v1734_v61 = vpop.f32.mrb[144].mxu1 }
 0x225   : > { %17249 = vst [vmem:[#allocation89_spill] sm:$0xff] %v13735_v24  ;;  %v1735_v40 = vadd.f32 %v1734_v61, %v13542_v28  ;;  %v1736_v55 = vpop.f32.mrb[145].mxu1  ;;  %v13743_v30 = vpop.f32.mrb[120].mxu0 }
 0x226   : > { %17250 = vst [vmem:[#allocation90_spill] sm:$0xff] %v13737_v33  ;;  %v1737_v54 = vadd.f32 %v1736_v55, %v13545_v25  ;;  %v1738_v2 = vpop.f32.mrb[146].mxu1  ;;  %v13745_v58 = vpop.f32.mrb[121].mxu0 }
 0x227   : > { %v1739_v53 = vadd.f32 %v1738_v2, %v13542_v28  ;;  %v1740_v6 = vpop.f32.mrb[147].mxu1  ;;  %v1971_v18 = vmax.f32 %v1735_v40, 0.0  ;;  %v13749_v61 = vpop.f32.mrb[122].mxu0 }
 0x228   : > { %v1741_v41 = vadd.f32 %v1740_v6, %v13545_v25  ;;  %v1972_v34 = vmax.f32 %v1737_v54, 0.0  ;;  %v13753_v24 = vpop.f32.mrb[123].mxu0 }
 0x229   : > { %v1979_v35 = vmax.f32 %v1739_v53, 0.0 }
 0x22a   : > { %v1980_v38 = vmax.f32 %v1741_v41, 0.0 }
 0x22b   : > { %v13747_v51 = vpack.c.bf16 %v1979_v35, %v1971_v18 }
 0x22c   : > { %v13751_v21 = vpack.c.bf16 %v1980_v38, %v1972_v34  ;;  %v1744_v55 = vpop.f32.mrb[148].mxu1 }
 0x22d   : > { %17251 = vst [vmem:[#allocation91_spill] sm:$0xff] %v13747_v51  ;;  %v1745_v2 = vadd.f32 %v1744_v55, %v13542_v28  ;;  %v1746_v6 = vpop.f32.mrb[149].mxu1 }
 0x22e   : > { %17252 = vst [vmem:[#allocation92_spill] sm:$0xff] %v13751_v21  ;;  %v1747_v40 = vadd.f32 %v1746_v6, %v13545_v25  ;;  %v1748_v53 = vpop.f32.mrb[150].mxu1 }
 0x22f   : > { %v1749_v54 = vadd.f32 %v1748_v53, %v13542_v28  ;;  %v1750_v41 = vpop.f32.mrb[151].mxu1  ;;  %v1987_v18 = vmax.f32 %v1745_v2, 0.0 }
 0x230   : > { %v1751_v33 = vadd.f32 %v1750_v41, %v13545_v25  ;;  %v1988_v51 = vmax.f32 %v1747_v40, 0.0 }
 0x231   : > { %v1995_v35 = vmax.f32 %v1749_v54, 0.0 }
 0x232   : > { %v1996_v9 = vmax.f32 %v1751_v33, 0.0 }
 0x233   : > { %v13759_v34 = vpack.c.bf16 %v1995_v35, %v1987_v18  ;;  %v13767_v40 = vpop.f32.mrb[124].mxu0 }
 0x234   : > { %v13761_v38 = vpack.c.bf16 %v1996_v9, %v1988_v51  ;;  %v1754_v21 = vpop.f32.mrb[152].mxu1  ;;  %v13769_v9 = vpop.f32.mrb[125].mxu0 }
 0x235   : > { %17253 = vst [vmem:[#allocation93_spill] sm:$0xff] %v13759_v34  ;;  %v1755_v55 = vadd.f32 %v1754_v21, %v13542_v28  ;;  %v1756_v63 = vpop.f32.mrb[153].mxu1  ;;  %v13773_v21 = vpop.f32.mrb[126].mxu0 }
 0x236   : > { %17254 = vst [vmem:[#allocation94_spill] sm:$0xff] %v13761_v38  ;;  %v1757_v6 = vadd.f32 %v1756_v63, %v13545_v25  ;;  %v1758_v22 = vpop.f32.mrb[154].mxu1  ;;  %v13778_v38 = vpop.f32.mrb[127].mxu0 }
 0x237   : > { %v1759_v53 = vadd.f32 %v1758_v22, %v13542_v28  ;;  %v1760_v52 = vpop.f32.mrb[155].mxu1  ;;  %v2003_v2 = vmax.f32 %v1755_v55, 0.0 }
 0x238   : > { %v1761_v41 = vadd.f32 %v1760_v52, %v13545_v25  ;;  %v2004_v33 = vmax.f32 %v1757_v6, 0.0 }
 0x239   : > { %v2011_v54 = vmax.f32 %v1759_v53, 0.0 }
 0x23a   : > { %v2012_v18 = vmax.f32 %v1761_v41, 0.0 }
 0x23b   : > { %v13771_v51 = vpack.c.bf16 %v2011_v54, %v2003_v2 }
 0x23c   : > { %v13775_v35 = vpack.c.bf16 %v2012_v18, %v2004_v33  ;;  %v1764_v63 = vpop.f32.mrb[156].mxu1 }
 0x23d   : > { %17255 = vst [vmem:[#allocation95_spill] sm:$0xff] %v13771_v51  ;;  %v1765_v22 = vadd.f32 %v1764_v63, %v13542_v28  ;;  %v1766_v34 = vpop.f32.mrb[157].mxu1 }
 0x23e   : > { %17256 = vst [vmem:[#allocation96_spill] sm:$0xff] %v13775_v35  ;;  %v1767_v52 = vadd.f32 %v1766_v34, %v13545_v25  ;;  %v1768_v55 = vpop.f32.mrb[158].mxu1  ;;  %v13790_v34 = vld [vmem:[%s17086_s8 + $0x1] ss:$0 sm:$0xff] }
 0x23f   : > { %v1769_v6 = vadd.f32 %v1768_v55, %v13542_v28  ;;  %v1770_v53 = vpop.f32.mrb[159].mxu1  ;;  %v2019_v2 = vmax.f32 %v1765_v22, 0.0 }
 0x240   : > { %v1771_v41 = vadd.f32 %v1770_v53, %v13545_v25  ;;  %v2020_v51 = vmax.f32 %v1767_v52, 0.0 }
 0x241   : > { %v2027_v54 = vmax.f32 %v1769_v6, 0.0 }
 0x242   : > { %v2028_v46 = vmax.f32 %v1771_v41, 0.0 }
 0x243   : > { %v13783_v33 = vpack.c.bf16 %v2027_v54, %v2019_v2 }
 0x244   : > { %v13785_v18 = vpack.c.bf16 %v2028_v46, %v2020_v51  ;;  %v10375_v63 = vpop.f32.mrb[160].mxu1 }
 0x245   : > { %17257 = vst [vmem:[#allocation97_spill] sm:$0xff] %v13783_v33  ;;  %v10376_v35 = vpop.f32.mrb[161].mxu1 }
 0x246   : > { %17258 = vst [vmem:[#allocation98_spill] sm:$0xff] %v13785_v18  ;;  %v10377_v62 = vadd.f32 %v10376_v35, %v10375_v63  ;;  %v10378_v15 = vpop.f32.mrb[162].mxu1 }
 0x247   : > { %v10379_v28 = vpop.f32.mrb[163].mxu1 }
 0x248   : > { %v2467_v25 = vadd.f32 %v10377_v62, %v13572_v50  ;;  %v10380_v22 = vadd.f32 %v10379_v28, %v10378_v15 }
 0x24a   : > { %v13794_v52 = vadd.f32 %v2467_v25, %v13790_v34  ;;  %v2470_v55 = vadd.f32 %v10380_v22, %v13579_v12 }
 0x24c   : > { %11464 = vtanh.f32 %v13794_v52  ;;  %v13799_v46 = vadd.f32 %v2470_v55, %v13790_v34  ;;  %v10381_v51 = vpop.f32.mrb[164].mxu1 }
 0x24d   : > { %v10382_v35 = vpop.f32.mrb[165].mxu1 }
 0x24e   : > { %v10383_v6 = vadd.f32 %v10382_v35, %v10381_v51  ;;  %v10384_v53 = vpop.f32.mrb[166].mxu1  ;;  %11466 = vtanh.f32 %v13799_v46 }
 0x24f   : > { %v10385_v41 = vpop.f32.mrb[167].mxu1 }
 0x250   : > { %v2475_v62 = vadd.f32 %v13567_v4, %v10383_v6  ;;  %v10386_v15 = vadd.f32 %v10385_v41, %v10384_v53 }
 0x252   : > { %v13804_v50 = vadd.f32 %v2475_v62, %v13790_v34  ;;  %v2478_v12 = vadd.f32 %v13575_v44, %v10386_v15 }
 0x254   : > { %11468 = vtanh.f32 %v13804_v50  ;;  %v13809_v2 = vadd.f32 %v2478_v12, %v13790_v34  ;;  %v10387_v54 = vpop.f32.mrb[168].mxu1 }
 0x255   : > { %v10388_v63 = vpop.f32.mrb[169].mxu1 }
 0x256   : > { %v11465_v28 = vpop.eup %11464  ;;  %v10389_v25 = vadd.f32 %v10388_v63, %v10387_v54  ;;  %v10390_v22 = vpop.f32.mrb[170].mxu1  ;;  %11470 = vtanh.f32 %v13809_v2 }
 0x257   : > { %v10391_v55 = vpop.f32.mrb[171].mxu1  ;;  %3041 = vrot.lane.b32.xlu0 %v11465_v28, %s12506_s23 }
 0x258   : > { %v2483_v4 = vadd.f32 %v10389_v25, %v13619_v29  ;;  %v10392_v51 = vadd.f32 %v10391_v55, %v10390_v22  ;;  %v11467_v44 = vpop.eup %11466 }
 0x25a   : > { %v13815_v35 = vadd.f32 %v2483_v4, %v13790_v34  ;;  %v2486_v6 = vadd.f32 %v10392_v51, %v13627_v8 }
 0x25b   : > { %3043 = vrot.lane.b32.xlu0 %v11467_v44, %s12506_s23 }
 0x25c   : > { %11472 = vtanh.f32 %v13815_v35  ;;  %v13821_v53 = vadd.f32 %v2486_v6, %v13790_v34  ;;  %v10393_v41 = vpop.f32.mrb[172].mxu1 }
 0x25d   : > { %v10394_v62 = vpop.f32.mrb[173].mxu1 }
 0x25e   : > { %v11469_v15 = vpop.eup %11468  ;;  %v10395_v12 = vadd.f32 %v10394_v62, %v10393_v41  ;;  %v10396_v54 = vpop.f32.mrb[174].mxu1  ;;  %11474 = vtanh.f32 %v13821_v53 }
 0x25f   : > { %v10397_v29 = vpop.f32.mrb[175].mxu1  ;;  %3045 = vrot.lane.b32.xlu1 %v11469_v15, %s12506_s23 }
 0x260   : > { %v2491_v63 = vadd.f32 %v13614_v47, %v10395_v12  ;;  %v10398_v8 = vadd.f32 %v10397_v29, %v10396_v54  ;;  %v11471_v28 = vpop.eup %11470 }
 0x262   : > { %v13827_v25 = vadd.f32 %v2491_v63, %v13790_v34  ;;  %v2494_v22 = vadd.f32 %v13623_v5, %v10398_v8 }
 0x263   : > { %3047 = vrot.lane.b32.xlu1 %v11471_v28, %s12506_s23 }
 0x264   : > { %11476 = vtanh.f32 %v13827_v25  ;;  %v13833_v55 = vadd.f32 %v2494_v22, %v13790_v34  ;;  %v10399_v4 = vpop.f32.mrb[176].mxu1 }
 0x265   : > { %v10400_v51 = vpop.f32.mrb[177].mxu1 }
 0x266   : > { %v11473_v44 = vpop.eup %11472  ;;  %v10401_v6 = vadd.f32 %v10400_v51, %v10399_v4  ;;  %v10402_v41 = vpop.f32.mrb[178].mxu1  ;;  %11478 = vtanh.f32 %v13833_v55 }
 0x267   : > { %v10403_v47 = vpop.f32.mrb[179].mxu1  ;;  %3049 = vrot.lane.b32.xlu0 %v11473_v44, %s12506_s23 }
 0x268   : > { %v2499_v62 = vadd.f32 %v10401_v6, %v13648_v42  ;;  %v10404_v5 = vadd.f32 %v10403_v47, %v10402_v41  ;;  %v11475_v15 = vpop.eup %11474 }
 0x269   : > { %3051 = vrot.lane.b32.xlu1 %v11475_v15, %s12506_s23 }
 0x26a   : > { %v13839_v12 = vadd.f32 %v2499_v62, %v13790_v34  ;;  %v2502_v54 = vadd.f32 %v10404_v5, %v13657_v10 }
 0x26c   : > { %11480 = vtanh.f32 %v13839_v12  ;;  %v13845_v29 = vadd.f32 %v2502_v54, %v13790_v34  ;;  %v10405_v63 = vpop.f32.mrb[180].mxu1 }
 0x26d   : > { %v10406_v8 = vpop.f32.mrb[181].mxu1 }
 0x26e   : > { %v11477_v28 = vpop.eup %11476  ;;  %v10407_v22 = vadd.f32 %v10406_v8, %v10405_v63  ;;  %v10408_v4 = vpop.f32.mrb[182].mxu1  ;;  %11482 = vtanh.f32 %v13845_v29 }
 0x26f   : > { %v10409_v42 = vpop.f32.mrb[183].mxu1  ;;  %3053 = vrot.lane.b32.xlu0 %v11477_v28, %s12506_s23 }
 0x270   : > { %v2507_v51 = vadd.f32 %v13646_v7, %v10407_v22  ;;  %v10410_v10 = vadd.f32 %v10409_v42, %v10408_v4  ;;  %v11479_v44 = vpop.eup %11478  ;;  %v13867_v42 = vpop.permute.xlu0 %2881 }
 0x271   : > { %3055 = vrot.lane.b32.xlu1 %v11479_v44, %s12506_s23 }
 0x272   : > { %v13851_v6 = vadd.f32 %v2507_v51, %v13790_v34  ;;  %v2510_v41 = vadd.f32 %v13653_v26, %v10410_v10 }
 0x274   : > { %11484 = vtanh.f32 %v13851_v6  ;;  %v13857_v47 = vadd.f32 %v2510_v41, %v13790_v34  ;;  %v10411_v62 = vpop.f32.mrb[184].mxu1 }
 0x275   : > { %v10412_v5 = vpop.f32.mrb[185].mxu1 }
 0x276   : > { %v11481_v15 = vpop.eup %11480  ;;  %v10413_v54 = vadd.f32 %v10412_v5, %v10411_v62  ;;  %v10414_v63 = vpop.f32.mrb[186].mxu1  ;;  %11486 = vtanh.f32 %v13857_v47 }
 0x277   : > { %v10415_v7 = vpop.f32.mrb[187].mxu1  ;;  %3057 = vrot.lane.b32.xlu0 %v11481_v15, %s12506_s23  ;;  %v13873_v5 = vpop.permute.xlu0 %2885 }
 0x278   : > { %v2515_v8 = vadd.f32 %v10413_v54, %v13673_v31  ;;  %v10416_v26 = vadd.f32 %v10415_v7, %v10414_v63  ;;  %v11483_v28 = vpop.eup %11482 }
 0x279   : > { %3059 = vrot.lane.b32.xlu1 %v11483_v28, %s12506_s23 }
 0x27a   : > { %v13863_v22 = vadd.f32 %v2515_v8, %v13790_v34  ;;  %v2518_v4 = vadd.f32 %v10416_v26, %v13681_v3 }
 0x27b   : > { %v13883_v26 = vpop.permute.xlu0 %2889 }
 0x27c   : > { %11488 = vtanh.f32 %v13863_v22  ;;  %v13871_v51 = vadd.f32 %v2518_v4, %v13790_v34  ;;  %v10417_v10 = vpop.f32.mrb[188].mxu1 }
 0x27d   : > { %v10418_v44 = vpop.f32.mrb[189].mxu1 }
 0x27e   : > { %v11485_v41 = vpop.eup %11484  ;;  %v10419_v31 = vadd.f32 %v10418_v44, %v10417_v10  ;;  %v10420_v62 = vpop.f32.mrb[190].mxu1  ;;  %11490 = vtanh.f32 %v13871_v51 }
 0x27f   : > { %v10421_v15 = vpop.f32.mrb[191].mxu1  ;;  %3061 = vrot.lane.b32.xlu0 %v11485_v41, %s12506_s23 }
 0x280   : > { %v2523_v3 = vadd.f32 %v13671_v59, %v10419_v31  ;;  %v10422_v54 = vadd.f32 %v10421_v15, %v10420_v62  ;;  %v11487_v63 = vpop.eup %11486  ;;  %v13889_v59 = vpop.permute.xlu1 %2883 }
 0x281   : > { %3063 = vrot.lane.b32.xlu1 %v11487_v63, %s12506_s23  ;;  %v13891_v62 = vpop.permute.xlu0 %2893 }
 0x282   : > { %v13879_v7 = vadd.f32 %v2523_v3, %v13790_v34  ;;  %v2526_v8 = vadd.f32 %v13677_v14, %v10422_v54 }
 0x284   : > { %11492 = vtanh.f32 %v13879_v7  ;;  %v13887_v28 = vadd.f32 %v2526_v8, %v13790_v34  ;;  %v10423_v4 = vpop.f32.mrb[192].mxu1  ;;  %v13896_v63 = vpop.permute.xlu1 %2887 }
 0x285   : > { %v10424_v10 = vpop.f32.mrb[193].mxu1 }
 0x286   : > { %v11489_v44 = vpop.eup %11488  ;;  %v10425_v41 = vadd.f32 %v10424_v10, %v10423_v4  ;;  %v10426_v31 = vpop.f32.mrb[194].mxu1  ;;  %11494 = vtanh.f32 %v13887_v28 }
 0x287   : > { %v10427_v14 = vpop.f32.mrb[195].mxu1  ;;  %3065 = vrot.lane.b32.xlu0 %v11489_v44, %s12506_s23  ;;  %v13903_v4 = vpop.permute.xlu0 %2897 }
 0x288   : > { %v2531_v15 = vadd.f32 %v10425_v41, %v13697_v45  ;;  %v10428_v3 = vadd.f32 %v10427_v14, %v10426_v31  ;;  %v11491_v54 = vpop.eup %11490  ;;  %v13909_v31 = vpop.permute.xlu1 %2891 }
 0x289   : > { %3067 = vrot.lane.b32.xlu1 %v11491_v54, %s12506_s23 }
 0x28a   : > { %v13899_v8 = vadd.f32 %v2531_v15, %v13790_v34  ;;  %v2534_v33 = vadd.f32 %v10428_v3, %v13705_v1 }
 0x28b   : > { %v13912_v15 = vpop.permute.xlu0 %2901 }
 0x28c   : > { %11496 = vtanh.f32 %v13899_v8  ;;  %v13907_v10 = vadd.f32 %v2534_v33, %v13790_v34  ;;  %v10429_v44 = vpop.f32.mrb[196].mxu1  ;;  %v13916_v33 = vpop.permute.xlu1 %2895 }
 0x28d   : > { %v10430_v45 = vpop.f32.mrb[197].mxu1 }
 0x28e   : > { %v11493_v41 = vpop.eup %11492  ;;  %v10431_v14 = vadd.f32 %v10430_v45, %v10429_v44  ;;  %v10432_v18 = vpop.f32.mrb[198].mxu1  ;;  %11498 = vtanh.f32 %v13907_v10 }
 0x28f   : > { %v10433_v1 = vpop.f32.mrb[199].mxu1  ;;  %3069 = vrot.lane.b32.xlu0 %v11493_v41, %s12506_s23  ;;  %v13923_v44 = vpop.permute.xlu0 %2905 }
 0x290   : > { %v2539_v3 = vadd.f32 %v13695_v23, %v10431_v14  ;;  %v10434_v54 = vadd.f32 %v10433_v1, %v10432_v18  ;;  %v11495_v48 = vpop.eup %11494  ;;  %v13929_v14 = vpop.permute.xlu1 %2899 }
 0x291   : > { %3071 = vrot.lane.b32.xlu1 %v11495_v48, %s12506_s23 }
 0x292   : > { %v13919_v49 = vadd.f32 %v2539_v3, %v13790_v34  ;;  %v2542_v43 = vadd.f32 %v13701_v20, %v10434_v54 }
 0x293   : > { %v13933_v48 = vpop.permute.xlu0 %2909 }
 0x294   : > { %11500 = vtanh.f32 %v13919_v49  ;;  %v13927_v45 = vadd.f32 %v2542_v43, %v13790_v34  ;;  %v10435_v41 = vpop.f32.mrb[200].mxu1  ;;  %v13936_v43 = vpop.permute.xlu1 %2903 }
 0x295   : > { %v10436_v23 = vpop.f32.mrb[201].mxu1 }
 0x296   : > { %v11497_v18 = vpop.eup %11496  ;;  %v10437_v1 = vadd.f32 %v10436_v23, %v10435_v41  ;;  %v10438_v11 = vpop.f32.mrb[202].mxu1  ;;  %11502 = vtanh.f32 %v13927_v45 }
 0x297   : > { %v10439_v3 = vpop.f32.mrb[203].mxu1  ;;  %3073 = vrot.lane.b32.xlu0 %v11497_v18, %s12506_s23  ;;  %v13943_v41 = vpop.permute.xlu0 %2913 }
 0x298   : > { %v2547_v20 = vadd.f32 %v10437_v1, %v13721_v57  ;;  %v10440_v54 = vadd.f32 %v10439_v3, %v10438_v11  ;;  %v11499_v32 = vpop.eup %11498  ;;  %v13949_v1 = vpop.permute.xlu1 %2907 }
 0x299   : > { %3075 = vrot.lane.b32.xlu1 %v11499_v32, %s12506_s23 }
 0x29a   : > { %v13939_v60 = vadd.f32 %v2547_v20, %v13790_v34  ;;  %v2550_v36 = vadd.f32 %v10440_v54, %v13729_v16 }
 0x29b   : > { %v13953_v32 = vpop.permute.xlu0 %2917 }
 0x29c   : > { %11504 = vtanh.f32 %v13939_v60  ;;  %v13947_v23 = vadd.f32 %v2550_v36, %v13790_v34  ;;  %v10441_v18 = vpop.f32.mrb[204].mxu1 }
 0x29d   : > { %v10442_v57 = vpop.f32.mrb[205].mxu1 }
 0x29e   : > { %v11501_v11 = vpop.eup %11500  ;;  %v10443_v3 = vadd.f32 %v10442_v57, %v10441_v18  ;;  %v10444_v0 = vpop.f32.mrb[206].mxu1  ;;  %11506 = vtanh.f32 %v13947_v23 }
 0x29f   : > { %v10445_v20 = vpop.f32.mrb[207].mxu1  ;;  %3077 = vrot.lane.b32.xlu0 %v11501_v11, %s12506_s23  ;;  %v13961_v18 = vpop.permute.xlu1 %2911 }
 0x2a0   : > { %v2555_v16 = vadd.f32 %v13719_v19, %v10443_v3  ;;  %v10446_v54 = vadd.f32 %v10445_v20, %v10444_v0  ;;  %v11503_v39 = vpop.eup %11502  ;;  %v13967_v13 = vpop.permute.xlu0 %2921  ;;  %v9733_v20 = vmul.f32 -1.442695, %v13794_v52 }
 0x2a1   : > { %3079 = vrot.lane.b32.xlu1 %v11503_v39, %s12506_s23  ;;  %17259 = vst [vmem:[#allocation99_spill] sm:$0xff] %v13967_v13 }
 0x2a2   : > { %v13957_v36 = vadd.f32 %v2555_v16, %v13790_v34  ;;  %v2558_v56 = vadd.f32 %v13725_v37, %v10446_v54 }
 0x2a3   : > { %v13971_v37 = vpop.permute.xlu1 %2915 }
 0x2a4   : > { %11508 = vtanh.f32 %v13957_v36  ;;  %v13965_v57 = vadd.f32 %v2558_v56, %v13790_v34  ;;  %v10447_v11 = vpop.f32.mrb[208].mxu1  ;;  %v13982_v52 = vpop.permute.xlu0 %2925 }
 0x2a5   : > { %v10448_v27 = vpop.f32.mrb[209].mxu1  ;;  %17261 = vst [vmem:[#allocation101_spill] sm:$0xff] %v13982_v52 }
 0x2a6   : > { %v11505_v0 = vpop.eup %11504  ;;  %v10449_v19 = vadd.f32 %v10448_v27, %v10447_v11  ;;  %v10450_v3 = vpop.f32.mrb[210].mxu1  ;;  %11510 = vtanh.f32 %v13965_v57 }
 0x2a7   : > { %v10451_v39 = vpop.f32.mrb[211].mxu1  ;;  %3081 = vrot.lane.b32.xlu0 %v11505_v0, %s12506_s23  ;;  %11512 = vpow2.f32 %v9733_v20  ;;  %v13980_v27 = vpop.permute.xlu1 %2919 }
 0x2a8   : > { %v2563_v16 = vadd.f32 %v10449_v19, %v13745_v58  ;;  %v10452_v56 = vadd.f32 %v10451_v39, %v10450_v3  ;;  %v11507_v54 = vpop.eup %11506  ;;  %17260 = vst [vmem:[#allocation100_spill] sm:$0xff] %v13980_v27  ;;  %v9734_v3 = vmul.f32 -1.442695, %v13799_v46  ;;  %v9735_v27 = vmul.f32 -1.442695, %v13804_v50 }
 0x2a9   : > { %3083 = vrot.lane.b32.xlu1 %v11507_v54, %s12506_s23  ;;  %v9736_v50 = vmul.f32 -1.442695, %v13809_v2 }
 0x2aa   : > { %v13976_v17 = vadd.f32 %v2563_v16, %v13790_v34  ;;  %v2566_v13 = vadd.f32 %v10452_v56, %v13753_v24 }
 0x2ab   : > { %v13991_v20 = vpop.permute.xlu1 %2923 }
 0x2ac   : > { %11514 = vtanh.f32 %v13976_v17  ;;  %v13986_v11 = vadd.f32 %v2566_v13, %v13790_v34  ;;  %v10453_v58 = vpop.f32.mrb[212].mxu1  ;;  %17262 = vst [vmem:[#allocation102_spill] sm:$0xff] %v13991_v20  ;;  %v13994_v13 = vpop.permute.xlu0 %2929 }
 0x2ad   : > { %v10454_v0 = vpop.f32.mrb[213].mxu1  ;;  %17263 = vst [vmem:[#allocation103_spill] sm:$0xff] %v13994_v13 }
 0x2ae   : > { %v11509_v19 = vpop.eup %11508  ;;  %v10455_v39 = vadd.f32 %v10454_v0, %v10453_v58  ;;  %v10456_v16 = vpop.f32.mrb[214].mxu1  ;;  %11516 = vtanh.f32 %v13986_v11 }
 0x2af   : > { %v10457_v24 = vpop.f32.mrb[215].mxu1  ;;  %3085 = vrot.lane.b32.xlu0 %v11509_v19, %s12506_s23  ;;  %11518 = vpow2.f32 %v9734_v3  ;;  %v14002_v0 = vpop.permute.xlu1 %2927 }
 0x2b0   : > { %v2571_v56 = vadd.f32 %v13743_v30, %v10455_v39  ;;  %v10458_v54 = vadd.f32 %v10457_v24, %v10456_v16  ;;  %v11511_v52 = vpop.eup %11510  ;;  %17264 = vst [vmem:[#allocation104_spill] sm:$0xff] %v14002_v0 }
 0x2b1   : > { %3087 = vrot.lane.b32.xlu1 %v11511_v52, %s12506_s23  ;;  %v11513_v39 = vpop.eup %11512  ;;  %v14011_v52 = vpop.permute.xlu0 %2933 }
 0x2b2   : > { %v13998_v46 = vadd.f32 %v2571_v56, %v13790_v34  ;;  %v2574_v58 = vadd.f32 %v13749_v61, %v10458_v54  ;;  %v2721_v0 = vadd.f32 1.0, %v11513_v39  ;;  %v9738_v39 = vmul.f32 -1.442695, %v13821_v53 }
 0x2b3   : > { %v14014_v20 = vpop.permute.xlu1 %2931 }
 0x2b4   : > { %11520 = vtanh.f32 %v13998_v46  ;;  %v14006_v30 = vadd.f32 %v2574_v58, %v13790_v34  ;;  %v10459_v19 = vpop.f32.mrb[216].mxu1 }
 0x2b5   : > { %v10460_v16 = vpop.f32.mrb[217].mxu1  ;;  %11522 = vpow2.f32 %v9735_v27  ;;  %v9737_v27 = vmul.f32 -1.442695, %v13815_v35 }
 0x2b6   : > { %v11515_v3 = vpop.eup %11514  ;;  %v10461_v24 = vadd.f32 %v10460_v16, %v10459_v19  ;;  %v10462_v56 = vpop.f32.mrb[218].mxu1  ;;  %11524 = vtanh.f32 %v14006_v30 }
 0x2b7   : > { %v10463_v61 = vpop.f32.mrb[219].mxu1  ;;  %3089 = vrot.lane.b32.xlu0 %v11515_v3, %s12506_s23  ;;  %11526 = vpow2.f32 %v9736_v50 }
 0x2b8   : > { %v2579_v54 = vadd.f32 %v10461_v24, %v13769_v9  ;;  %v10464_v58 = vadd.f32 %v10463_v61, %v10462_v56  ;;  %v11517_v13 = vpop.eup %11516  ;;  %v14027_v24 = vpop.permute.xlu0 %2937 }
 0x2b9   : > { %3091 = vrot.lane.b32.xlu1 %v11517_v13, %s12506_s23  ;;  %v11519_v16 = vpop.eup %11518  ;;  %17265 = vst [vmem:[#allocation105_spill] sm:$0xff] %v14027_v24  ;;  %v9739_v24 = vmul.f32 -1.442695, %v13827_v25 }
 0x2ba   : > { %v14018_v2 = vadd.f32 %v2579_v54, %v13790_v34  ;;  %v2582_v19 = vadd.f32 %v10464_v58, %v13778_v38  ;;  %v2722_v38 = vadd.f32 1.0, %v11519_v16  ;;  %v14031_v54 = vpop.permute.xlu1 %2935 }
 0x2bb   : > { %17266 = vst [vmem:[#allocation106_spill] sm:$0xff] %v14031_v54  ;;  %v9740_v54 = vmul.f32 -1.442695, %v13833_v55 }
 0x2bc   : > { %11528 = vtanh.f32 %v14018_v2  ;;  %v14024_v9 = vadd.f32 %v2582_v19, %v13790_v34  ;;  %v10465_v3 = vpop.f32.mrb[220].mxu1 }
 0x2bd   : > { %11530 = vrcp.f32 %v2721_v0  ;;  %v10466_v50 = vpop.f32.mrb[221].mxu1 }
 0x2be   : > { %v11521_v35 = vpop.eup %11520  ;;  %11532 = vpow2.f32 %v9737_v27  ;;  %v10467_v56 = vadd.f32 %v10466_v50, %v10465_v3  ;;  %v10468_v61 = vpop.f32.mrb[222].mxu1 }
 0x2bf   : > { %11534 = vtanh.f32 %v14024_v9  ;;  %v10469_v13 = vpop.f32.mrb[223].mxu1  ;;  %3093 = vrot.lane.b32.xlu0 %v11521_v35, %s12506_s23  ;;  %v11523_v58 = vpop.eup %11522 }
 0x2c0   : > { %v2587_v0 = vadd.f32 %v13767_v40, %v10467_v56  ;;  %v10470_v19 = vadd.f32 %v10469_v13, %v10468_v61  ;;  %v11525_v53 = vpop.eup %11524  ;;  %11536 = vpow2.f32 %v9738_v39  ;;  %v2723_v3 = vadd.f32 1.0, %v11523_v58  ;;  %v14040_v50 = vpop.permute.xlu0 %2941 }
 0x2c1   : > { %3095 = vrot.lane.b32.xlu1 %v11525_v53, %s12506_s23  ;;  %11538 = vrcp.f32 %v2722_v38  ;;  %v11527_v35 = vpop.eup %11526  ;;  %v14047_v25 = vpop.permute.xlu1 %2939  ;;  %v9741_v13 = vmul.f32 -1.442695, %v13839_v12 }
 0x2c2   : > { %v14036_v27 = vadd.f32 %v2587_v0, %v13790_v34  ;;  %v2590_v16 = vadd.f32 %v13773_v21, %v10470_v19  ;;  %v2724_v21 = vadd.f32 1.0, %v11527_v35 }
 0x2c4   : > { %11540 = vtanh.f32 %v14036_v27  ;;  %v14045_v40 = vadd.f32 %v2590_v16, %v13790_v34 }
 0x2c5   : > { %11542 = vpow2.f32 %v9739_v24  ;;  %v14056_v0 = vpop.permute.xlu1 %2943 }
 0x2c6   : > { %v11529_v39 = vpop.eup %11528  ;;  %11544 = vrcp.f32 %v2723_v3 }
 0x2c7   : > { %v14049_v56 = vpop.eup %11530  ;;  %3097 = vrot.lane.b32.xlu0 %v11529_v39, %s12506_s23  ;;  %11546 = vpow2.f32 %v9740_v54  ;;  %v9742_v54 = vmul.f32 -1.442695, %v13845_v29  ;;  %v9743_v29 = vmul.f32 -1.442695, %v13851_v6 }
 0x2c8   : > { %v11533_v61 = vpop.eup %11532  ;;  %11548 = vtanh.f32 %v14045_v40 }
 0x2c9   : > { %v11535_v38 = vpop.eup %11534  ;;  %v3042_v55 = vpop.permute.xlu0 %3041  ;;  %11550 = vrcp.f32 %v2724_v21  ;;  %v2725_v24 = vadd.f32 1.0, %v11533_v61 }
 0x2ca   : > { %3099 = vrot.lane.b32.xlu1 %v11535_v38, %s12506_s23  ;;  %v3137_v34 = vmul.f32 %v14049_v56, %v3042_v55  ;;  %v11537_v58 = vpop.eup %11536  ;;  %11552 = vpow2.f32 %v9741_v13 }
 0x2cb   : > { %v14059_v19 = vpop.eup %11538  ;;  %v2726_v3 = vadd.f32 1.0, %v11537_v58  ;;  %11554 = vrcp.f32 %v2725_v24  ;;  %v9744_v58 = vmul.f32 -1.442695, %v13857_v47 }
 0x2cc   : > { %3201 = vrot.lane.b32.xlu0 %v3137_v34, %s12505_s21  ;;  %11556 = vpow2.f32 %v9742_v54 }
 0x2cd   : > { %v3044_v53 = vpop.permute.xlu0 %3043  ;;  %11558 = vrcp.f32 %v2726_v3 }
 0x2ce   : > { %v11541_v16 = vpop.eup %11540  ;;  %v3138_v12 = vmul.f32 %v14059_v19, %v3044_v53  ;;  %11560 = vpow2.f32 %v9743_v29  ;;  %v9746_v29 = vmul.f32 -1.442695, %v13871_v51 }
 0x2cf   : > { %v11543_v35 = vpop.eup %11542 }
 0x2d0   : > { %3203 = vrot.lane.b32.xlu1 %v3138_v12, %s12505_s21  ;;  %3101 = vrot.lane.b32.xlu0 %v11541_v16, %s12506_s23  ;;  %v14065_v39 = vpop.eup %11544  ;;  %v2727_v13 = vadd.f32 1.0, %v11543_v35  ;;  %v9745_v12 = vmul.f32 -1.442695, %v13863_v22 }
 0x2d1   : > { %v3046_v21 = vpop.permute.xlu1 %3045  ;;  %v11547_v61 = vpop.eup %11546 }
 0x2d2   : > { %v3139_v38 = vmul.f32 %v14065_v39, %v3046_v21  ;;  %v11549_v55 = vpop.eup %11548  ;;  %v2728_v53 = vadd.f32 1.0, %v11547_v61  ;;  %11562 = vrcp.f32 %v2727_v13 }
 0x2d3   : > { %v14071_v34 = vpop.eup %11550  ;;  %11564 = vpow2.f32 %v9744_v58 }
 0x2d4   : > { %3103 = vrot.lane.b32.xlu1 %v11549_v55, %s12506_s23  ;;  %3205 = vrot.lane.b32.xlu0 %v3139_v38, %s12505_s21  ;;  %v11553_v16 = vpop.eup %11552  ;;  %11566 = vrcp.f32 %v2728_v53  ;;  %v9747_v53 = vmul.f32 -1.442695, %v13879_v7 }
 0x2d5   : > { %v3048_v24 = vpop.permute.xlu1 %3047  ;;  %v14076_v6 = vpop.eup %11554  ;;  %v2729_v47 = vadd.f32 1.0, %v11553_v16  ;;  %11568 = vpow2.f32 %v9745_v12  ;;  %v9748_v12 = vmul.f32 -1.442695, %v13887_v28 }
 0x2d6   : > { %v3140_v54 = vmul.f32 %v14071_v34, %v3048_v24  ;;  %v11557_v21 = vpop.eup %11556 }
 0x2d7   : > { %v14080_v38 = vpop.eup %11558  ;;  %v2730_v13 = vadd.f32 1.0, %v11557_v21  ;;  %11570 = vrcp.f32 %v2729_v47 }
 0x2d8   : > { %3207 = vrot.lane.b32.xlu1 %v3140_v54, %s12505_s21  ;;  %v11561_v58 = vpop.eup %11560  ;;  %11572 = vpow2.f32 %v9746_v29 }
 0x2d9   : > { %v3050_v3 = vpop.permute.xlu0 %3049  ;;  %11574 = vrcp.f32 %v2730_v13 }
 0x2da   : > { %v3141_v35 = vmul.f32 %v14076_v6, %v3050_v3  ;;  %v2731_v3 = vadd.f32 1.0, %v11561_v58  ;;  %11576 = vpow2.f32 %v9747_v53  ;;  %v9750_v53 = vmul.f32 -1.442695, %v13907_v10 }
 0x2db   : > { %v3052_v61 = vpop.permute.xlu1 %3051 }
 0x2dc   : > { %3209 = vrot.lane.b32.xlu0 %v3141_v35, %s12505_s21  ;;  %v3142_v55 = vmul.f32 %v14080_v38, %v3052_v61  ;;  %v14086_v22 = vpop.eup %11562  ;;  %11578 = vrcp.f32 %v2731_v3 }
 0x2dd   : > { %v11565_v16 = vpop.eup %11564  ;;  %11580 = vpow2.f32 %v9748_v12 }
 0x2de   : > { %3211 = vrot.lane.b32.xlu1 %v3142_v55, %s12505_s21  ;;  %v14090_v51 = vpop.eup %11566  ;;  %v2732_v47 = vadd.f32 1.0, %v11565_v16  ;;  %v9749_v55 = vmul.f32 -1.442695, %v13899_v8 }
 0x2df   : > { %v11569_v61 = vpop.eup %11568 }
 0x2e0   : > { %11582 = vrcp.f32 %v2732_v47 }
 0x2e1   : > { %v3054_v24 = vpop.permute.xlu0 %3053  ;;  %v14096_v7 = vpop.eup %11570  ;;  %11584 = vpow2.f32 %v9749_v55  ;;  %v9752_v55 = vmul.f32 -1.442695, %v13927_v45 }
 0x2e2   : > { %v3143_v54 = vmul.f32 %v14086_v22, %v3054_v24  ;;  %v11573_v58 = vpop.eup %11572  ;;  %v2733_v24 = vadd.f32 1.0, %v11569_v61 }
 0x2e3   : > { %v3056_v35 = vpop.permute.xlu1 %3055  ;;  %v14100_v28 = vpop.eup %11574  ;;  %v2734_v3 = vadd.f32 1.0, %v11573_v58 }
 0x2e4   : > { %3213 = vrot.lane.b32.xlu0 %v3143_v54, %s12505_s21  ;;  %v3144_v21 = vmul.f32 %v14090_v51, %v3056_v35  ;;  %11586 = vrcp.f32 %v2733_v24  ;;  %v11577_v35 = vpop.eup %11576 }
 0x2e5   : > { %11588 = vpow2.f32 %v9750_v53 }
 0x2e6   : > { %3215 = vrot.lane.b32.xlu1 %v3144_v21, %s12505_s21  ;;  %v14106_v8 = vpop.eup %11578  ;;  %11590 = vrcp.f32 %v2734_v3  ;;  %v9751_v21 = vmul.f32 -1.442695, %v13919_v49 }
 0x2e7   : > { %v11581_v61 = vpop.eup %11580 }
 0x2e8   : > { %v2736_v24 = vadd.f32 1.0, %v11581_v61  ;;  %11592 = vpow2.f32 %v9751_v21  ;;  %v9754_v21 = vmul.f32 -1.442695, %v13947_v23 }
 0x2e9   : > { %v3058_v29 = vpop.permute.xlu0 %3057 }
 0x2ea   : > { %v3145_v13 = vmul.f32 %v14096_v7, %v3058_v29  ;;  %v2735_v29 = vadd.f32 1.0, %v11577_v35  ;;  %v14110_v10 = vpop.eup %11582 }
 0x2eb   : > { %v3060_v54 = vpop.permute.xlu1 %3059 }
 0x2ec   : > { %3217 = vrot.lane.b32.xlu0 %v3145_v13, %s12505_s21  ;;  %v3146_v16 = vmul.f32 %v14100_v28, %v3060_v54  ;;  %11594 = vrcp.f32 %v2735_v29  ;;  %v11585_v54 = vpop.eup %11584 }
 0x2ed   : > { %11596 = vpow2.f32 %v9752_v55 }
 0x2ee   : > { %3219 = vrot.lane.b32.xlu1 %v3146_v16, %s12505_s21  ;;  %v14116_v49 = vpop.eup %11586  ;;  %11598 = vrcp.f32 %v2736_v24  ;;  %v9753_v16 = vmul.f32 -1.442695, %v13939_v60 }
 0x2ef   : > { %v11589_v35 = vpop.eup %11588 }
 0x2f0   : > { %v14120_v45 = vpop.eup %11590  ;;  %v2738_v29 = vadd.f32 1.0, %v11589_v35  ;;  %11600 = vpow2.f32 %v9753_v16  ;;  %v9756_v16 = vmul.f32 -1.442695, %v13965_v57 }
 0x2f1   : > { %v3062_v12 = vpop.permute.xlu0 %3061 }
 0x2f2   : > { %v3147_v47 = vmul.f32 %v14106_v8, %v3062_v12  ;;  %v2737_v12 = vadd.f32 1.0, %v11585_v54 }
 0x2f3   : > { %v3064_v13 = vpop.permute.xlu1 %3063 }
 0x2f4   : > { %3221 = vrot.lane.b32.xlu0 %v3147_v47, %s12505_s21  ;;  %v3148_v58 = vmul.f32 %v14110_v10, %v3064_v13  ;;  %11602 = vrcp.f32 %v2737_v12  ;;  %v11593_v13 = vpop.eup %11592 }
 0x2f5   : > { %11604 = vpow2.f32 %v9754_v21 }
 0x2f6   : > { %3223 = vrot.lane.b32.xlu1 %v3148_v58, %s12505_s21  ;;  %v14126_v60 = vpop.eup %11594  ;;  %11606 = vrcp.f32 %v2738_v29  ;;  %v9755_v58 = vmul.f32 -1.442695, %v13957_v36 }
 0x2f7   : > { %v11597_v54 = vpop.eup %11596 }
 0x2f8   : > { %v14130_v23 = vpop.eup %11598  ;;  %v2740_v12 = vadd.f32 1.0, %v11597_v54  ;;  %11608 = vpow2.f32 %v9755_v58  ;;  %v9758_v58 = vmul.f32 -1.442695, %v13986_v11 }
 0x2f9   : > { %v3066_v53 = vpop.permute.xlu0 %3065 }
 0x2fa   : > { %v3149_v3 = vmul.f32 %v14116_v49, %v3066_v53  ;;  %v2739_v53 = vadd.f32 1.0, %v11593_v13 }
 0x2fb   : > { %v3068_v47 = vpop.permute.xlu1 %3067 }
 0x2fc   : > { %3225 = vrot.lane.b32.xlu0 %v3149_v3, %s12505_s21  ;;  %v3150_v61 = vmul.f32 %v14120_v45, %v3068_v47  ;;  %11610 = vrcp.f32 %v2739_v53  ;;  %v11601_v47 = vpop.eup %11600 }
 0x2fd   : > { %11612 = vpow2.f32 %v9756_v16  ;;  %v9759_v16 = vmul.f32 -1.442695, %v13998_v46 }
 0x2fe   : > { %3227 = vrot.lane.b32.xlu1 %v3150_v61, %s12505_s21  ;;  %v14136_v36 = vpop.eup %11602  ;;  %11614 = vrcp.f32 %v2740_v12  ;;  %v9757_v61 = vmul.f32 -1.442695, %v13976_v17 }
 0x2ff   : > { %v11605_v13 = vpop.eup %11604 }
 0x300   : > { %v14140_v57 = vpop.eup %11606  ;;  %v2742_v53 = vadd.f32 1.0, %v11605_v13  ;;  %11616 = vpow2.f32 %v9757_v61  ;;  %v9760_v61 = vmul.f32 -1.442695, %v14006_v30 }
 0x301   : > { %v3070_v55 = vpop.permute.xlu0 %3069 }
 0x302   : > { %v3151_v24 = vmul.f32 %v14126_v60, %v3070_v55  ;;  %v2741_v55 = vadd.f32 1.0, %v11601_v47 }
 0x303   : > { %v3072_v3 = vpop.permute.xlu1 %3071 }
 0x304   : > { %3229 = vrot.lane.b32.xlu0 %v3151_v24, %s12505_s21  ;;  %v3152_v35 = vmul.f32 %v14130_v23, %v3072_v3  ;;  %11618 = vrcp.f32 %v2741_v55  ;;  %v11609_v3 = vpop.eup %11608 }
 0x305   : > { %11620 = vpow2.f32 %v9758_v58 }
 0x306   : > { %3231 = vrot.lane.b32.xlu1 %v3152_v35, %s12505_s21  ;;  %v14146_v17 = vpop.eup %11610  ;;  %11622 = vrcp.f32 %v2742_v53 }
 0x307   : > { %v11613_v47 = vpop.eup %11612  ;;  %11624 = vpow2.f32 %v9759_v16 }
 0x308   : > { %v14150_v11 = vpop.eup %11614  ;;  %v2744_v55 = vadd.f32 1.0, %v11613_v47 }
 0x309   : > { %v3074_v21 = vpop.permute.xlu0 %3073 }
 0x30a   : > { %v3153_v29 = vmul.f32 %v14136_v36, %v3074_v21  ;;  %v2743_v21 = vadd.f32 1.0, %v11609_v3  ;;  %v11617_v46 = vpop.eup %11616 }
 0x30b   : > { %v3076_v24 = vpop.permute.xlu1 %3075  ;;  %v2745_v16 = vadd.f32 1.0, %v11617_v46 }
 0x30c   : > { %3233 = vrot.lane.b32.xlu0 %v3153_v29, %s12505_s21  ;;  %v3154_v54 = vmul.f32 %v14140_v57, %v3076_v24  ;;  %11626 = vrcp.f32 %v2743_v21 }
 0x30d   : > { %11628 = vpow2.f32 %v9760_v61 }
 0x30e   : > { %3235 = vrot.lane.b32.xlu1 %v3154_v54, %s12505_s21  ;;  %v14156_v24 = vpop.eup %11618  ;;  %11630 = vrcp.f32 %v2744_v55  ;;  %v9761_v54 = vmul.f32 -1.442695, %v14018_v2 }
 0x30f   : > { %v11621_v3 = vpop.eup %11620 }
 0x310   : > { %v2746_v21 = vadd.f32 1.0, %v11621_v3  ;;  %11632 = vpow2.f32 %v9761_v54 }
 0x311   : > { %v3078_v35 = vpop.permute.xlu0 %3077  ;;  %11634 = vrcp.f32 %v2745_v16  ;;  %v9764_v16 = vmul.f32 -1.442695, %v14045_v40 }
 0x312   : > { %v3155_v12 = vmul.f32 %v14146_v17, %v3078_v35  ;;  %v14160_v35 = vpop.eup %11622 }
 0x313   : > { %v3080_v29 = vpop.permute.xlu1 %3079 }
 0x314   : > { %3237 = vrot.lane.b32.xlu0 %v3155_v12, %s12505_s21  ;;  %v3156_v13 = vmul.f32 %v14150_v11, %v3080_v29  ;;  %v9762_v12 = vmul.f32 -1.442695, %v14024_v9  ;;  %v11625_v29 = vpop.eup %11624 }
 0x316   : > { %3239 = vrot.lane.b32.xlu1 %v3156_v13, %s12505_s21  ;;  %v14166_v2 = vpop.eup %11626  ;;  %11636 = vpow2.f32 %v9762_v12  ;;  %v2747_v13 = vadd.f32 1.0, %v11625_v29 }
 0x317   : > { %11638 = vrcp.f32 %v2746_v21  ;;  %v11629_v46 = vpop.eup %11628 }
 0x318   : > { %v14170_v9 = vpop.eup %11630  ;;  %11640 = vrcp.f32 %v2747_v13  ;;  %v2748_v3 = vadd.f32 1.0, %v11629_v46 }
 0x319   : > { %v3082_v58 = vpop.permute.xlu0 %3081 }
 0x31a   : > { %v3157_v53 = vmul.f32 %v14156_v24, %v3082_v58  ;;  %v9763_v58 = vmul.f32 -1.442695, %v14036_v27 }
 0x31b   : > { %v3084_v30 = vpop.permute.xlu1 %3083 }
 0x31c   : > { %3241 = vrot.lane.b32.xlu0 %v3157_v53, %s12505_s21  ;;  %v3158_v47 = vmul.f32 %v14160_v35, %v3084_v30  ;;  %11642 = vpow2.f32 %v9763_v58  ;;  %v11633_v30 = vpop.eup %11632 }
 0x31d   : > { %v14176_v12 = vpop.eup %11634  ;;  %11644 = vrcp.f32 %v2748_v3  ;;  %v2749_v29 = vadd.f32 1.0, %v11633_v30 }
 0x31e   : > { %3243 = vrot.lane.b32.xlu1 %v3158_v47, %s12505_s21  ;;  %11646 = vpow2.f32 %v9764_v16 }
 0x31f   : > { %11648 = vrcp.f32 %v2749_v29 }
 0x320   : > { %v11637_v21 = vpop.eup %11636 }
 0x321   : > { %v3086_v61 = vpop.permute.xlu0 %3085  ;;  %v2750_v40 = vadd.f32 1.0, %v11637_v21 }
 0x322   : > { %v3159_v55 = vmul.f32 %v14166_v2, %v3086_v61  ;;  %v14179_v61 = vpop.eup %11638 }
 0x323   : > { %v3088_v53 = vpop.permute.xlu1 %3087  ;;  %v14184_v46 = vpop.eup %11640  ;;  %11650 = vrcp.f32 %v2750_v40 }
 0x324   : > { %3245 = vrot.lane.b32.xlu0 %v3159_v55, %s12505_s21  ;;  %v3160_v54 = vmul.f32 %v14170_v9, %v3088_v53 }
 0x326   : > { %3247 = vrot.lane.b32.xlu1 %v3160_v54, %s12505_s21  ;;  %v11643_v58 = vpop.eup %11642 }
 0x327   : > { %v14187_v3 = vpop.eup %11644  ;;  %v2751_v16 = vadd.f32 1.0, %v11643_v58  ;;  %v2977_v58 = vmul.f32 %v14049_v56, %v13867_v42 }
 0x329   : > { %v3090_v47 = vpop.permute.xlu0 %3089  ;;  %11652 = vrcp.f32 %v2751_v16 }
 0x32a   : > { %v3161_v27 = vmul.f32 %v14176_v12, %v3090_v47  ;;  %v11647_v47 = vpop.eup %11646 }
 0x32b   : > { %v3092_v55 = vpop.permute.xlu1 %3091  ;;  %v2752_v21 = vadd.f32 1.0, %v11647_v47  ;;  %v14192_v29 = vpop.eup %11648  ;;  %v2978_v47 = vmul.f32 %v14059_v19, %v13889_v59 }
 0x32c   : > { %3249 = vrot.lane.b32.xlu0 %v3161_v27, %s12505_s21  ;;  %v3162_v13 = vmul.f32 %v14179_v61, %v3092_v55 }
 0x32d   : > { %v14195_v40 = vpop.eup %11650  ;;  %11654 = vrcp.f32 %v2752_v21 }
 0x32e   : > { %3251 = vrot.lane.b32.xlu1 %v3162_v13, %s12505_s21 }
 0x331   : > { %v3094_v53 = vpop.permute.xlu0 %3093 }
 0x332   : > { %v3163_v54 = vmul.f32 %v14184_v46, %v3094_v53 }
 0x333   : > { %v3096_v30 = vpop.permute.xlu1 %3095 }
 0x334   : > { %3253 = vrot.lane.b32.xlu0 %v3163_v54, %s12505_s21  ;;  %v3164_v27 = vmul.f32 %v14187_v3, %v3096_v30 }
 0x336   : > { %3255 = vrot.lane.b32.xlu1 %v3164_v27, %s12505_s21  ;;  %v14207_v27 = vpop.eup %11652 }
 0x339   : > { %v3098_v55 = vpop.permute.xlu0 %3097 }
 0x33a   : > { %v3165_v13 = vmul.f32 %v14192_v29, %v3098_v55 }
 0x33c   : > { %v3100_v53 = vpop.permute.xlu1 %3099  ;;  %3257 = vrot.lane.b32.xlu0 %v3165_v13, %s12505_s21 }
 0x33d   : > { %v3166_v54 = vmul.f32 %v14195_v40, %v3100_v53  ;;  %v2979_v53 = vmul.f32 %v14065_v39, %v13873_v5 }
 0x33e   : > { %v3202_v30 = vpop.permute.xlu0 %3201 }
 0x33f   : > { %3259 = vrot.lane.b32.xlu1 %v3166_v54, %s12505_s21  ;;  %v14202_v16 = vadd.f32 %v3202_v30, %v2977_v58  ;;  %v14216_v58 = vpop.eup %11654 }
 0x341   : > { %17267 = vst [vmem:[#allocation107_spill] sm:$0xff] %v14202_v16  ;;  %11656 = vtanh.f32 %v14202_v16 }
 0x342   : > { %v3204_v21 = vpop.permute.xlu1 %3203  ;;  %v3102_v55 = vpop.permute.xlu0 %3101 }
 0x343   : > { %v14209_v13 = vadd.f32 %v3204_v21, %v2978_v47  ;;  %v3167_v42 = vmul.f32 %v14207_v27, %v3102_v55  ;;  %v2980_v47 = vmul.f32 %v14071_v34, %v13896_v63  ;;  %v2982_v63 = vmul.f32 %v14080_v38, %v13909_v31 }
 0x344   : > { %v2984_v31 = vmul.f32 %v14090_v51, %v13916_v33 }
 0x345   : > { %11658 = vtanh.f32 %v14209_v13  ;;  %3261 = vrot.lane.b32.xlu0 %v3167_v42, %s12505_s21  ;;  %v2981_v42 = vmul.f32 %v14076_v6, %v13883_v26  ;;  %v2983_v26 = vmul.f32 %v14086_v22, %v13891_v62  ;;  %v2985_v62 = vmul.f32 %v14096_v7, %v13903_v4 }
 0x346   : > { %v3104_v59 = vpop.permute.xlu1 %3103  ;;  %v3206_v54 = vpop.permute.xlu0 %3205  ;;  %v2987_v4 = vmul.f32 %v14106_v8, %v13912_v15  ;;  %v2989_v15 = vmul.f32 %v14116_v49, %v13923_v44  ;;  %v2991_v44 = vmul.f32 %v14126_v60, %v13933_v48  ;;  %v2993_v48 = vmul.f32 %v14136_v36, %v13943_v41 }
 0x347   : > { %v3168_v30 = vmul.f32 %v14216_v58, %v3104_v59  ;;  %v14219_v16 = vadd.f32 %v3206_v54, %v2979_v53  ;;  %v2995_v41 = vmul.f32 %v14146_v17, %v13953_v32  ;;  %v17273_v32 = vld [vmem:[#allocation99_spill] sm:$0xff] }
 0x349   : > { %11660 = vtanh.f32 %v14219_v16  ;;  %3263 = vrot.lane.b32.xlu1 %v3168_v30, %s12505_s21 }
 0x34a   : > { %v3208_v5 = vpop.permute.xlu1 %3207 }
 0x34b   : > { %v11657_v21 = vpop.eup %11656  ;;  %v14225_v55 = vadd.f32 %v3208_v5, %v2980_v47 }
 0x34c   : > { %3393 = vrot.lane.b32.xlu0 %v11657_v21, %s12506_s23 }
 0x34d   : > { %11662 = vtanh.f32 %v14225_v55 }
 0x34e   : > { %v3210_v53 = vpop.permute.xlu0 %3209 }
 0x34f   : > { %v11659_v59 = vpop.eup %11658  ;;  %v14231_v54 = vadd.f32 %v3210_v53, %v2981_v42 }
 0x350   : > { %3395 = vrot.lane.b32.xlu1 %v11659_v59, %s12506_s23  ;;  %v3212_v30 = vpop.permute.xlu1 %3211 }
 0x351   : > { %11664 = vtanh.f32 %v14231_v54  ;;  %v14237_v47 = vadd.f32 %v3212_v30, %v2982_v63 }
 0x353   : > { %v11661_v5 = vpop.eup %11660  ;;  %11666 = vtanh.f32 %v14237_v47 }
 0x354   : > { %3397 = vrot.lane.b32.xlu0 %v11661_v5, %s12506_s23 }
 0x356   : > { %v3214_v21 = vpop.permute.xlu0 %3213 }
 0x357   : > { %v11663_v42 = vpop.eup %11662  ;;  %v14243_v53 = vadd.f32 %v3214_v21, %v2983_v26  ;;  %v2986_v21 = vmul.f32 %v14100_v28, %v13929_v14  ;;  %v2988_v14 = vmul.f32 %v14110_v10, %v13936_v43  ;;  %v2990_v43 = vmul.f32 %v14120_v45, %v13949_v1 }
 0x358   : > { %3399 = vrot.lane.b32.xlu1 %v11663_v42, %s12506_s23  ;;  %v3216_v59 = vpop.permute.xlu1 %3215  ;;  %v2992_v1 = vmul.f32 %v14130_v23, %v13961_v18  ;;  %v2994_v18 = vmul.f32 %v14140_v57, %v13971_v37  ;;  %v17271_v37 = vld [vmem:[#allocation100_spill] sm:$0xff] }
 0x359   : > { %11668 = vtanh.f32 %v14243_v53  ;;  %v14249_v63 = vadd.f32 %v3216_v59, %v2984_v31 }
 0x35b   : > { %v11665_v30 = vpop.eup %11664  ;;  %11670 = vtanh.f32 %v14249_v63 }
 0x35c   : > { %3401 = vrot.lane.b32.xlu0 %v11665_v30, %s12506_s23 }
 0x35d   : > { %v11667_v5 = vpop.eup %11666 }
 0x35e   : > { %v3218_v26 = vpop.permute.xlu0 %3217  ;;  %3403 = vrot.lane.b32.xlu1 %v11667_v5, %s12506_s23 }
 0x35f   : > { %v14256_v33 = vadd.f32 %v3218_v26, %v2985_v62 }
 0x360   : > { %v3220_v42 = vpop.permute.xlu1 %3219 }
 0x361   : > { %11672 = vtanh.f32 %v14256_v33  ;;  %v14261_v31 = vadd.f32 %v3220_v42, %v2986_v21 }
 0x363   : > { %v11669_v59 = vpop.eup %11668  ;;  %11674 = vtanh.f32 %v14261_v31 }
 0x364   : > { %3405 = vrot.lane.b32.xlu0 %v11669_v59, %s12506_s23 }
 0x365   : > { %v11671_v30 = vpop.eup %11670 }
 0x366   : > { %v3222_v5 = vpop.permute.xlu0 %3221  ;;  %3407 = vrot.lane.b32.xlu1 %v11671_v30, %s12506_s23 }
 0x367   : > { %v14268_v62 = vadd.f32 %v3222_v5, %v2987_v4 }
 0x368   : > { %v3224_v26 = vpop.permute.xlu1 %3223 }
 0x369   : > { %11676 = vtanh.f32 %v14268_v62  ;;  %v14273_v21 = vadd.f32 %v3224_v26, %v2988_v14 }
 0x36b   : > { %v11673_v42 = vpop.eup %11672  ;;  %11678 = vtanh.f32 %v14273_v21 }
 0x36c   : > { %3409 = vrot.lane.b32.xlu0 %v11673_v42, %s12506_s23 }
 0x36d   : > { %v11675_v59 = vpop.eup %11674 }
 0x36e   : > { %v3226_v30 = vpop.permute.xlu0 %3225  ;;  %3411 = vrot.lane.b32.xlu1 %v11675_v59, %s12506_s23 }
 0x36f   : > { %v14280_v4 = vadd.f32 %v3226_v30, %v2989_v15 }
 0x370   : > { %v3228_v5 = vpop.permute.xlu1 %3227 }
 0x371   : > { %11680 = vtanh.f32 %v14280_v4  ;;  %v14285_v14 = vadd.f32 %v3228_v5, %v2990_v43 }
 0x373   : > { %v11677_v26 = vpop.eup %11676  ;;  %11682 = vtanh.f32 %v14285_v14 }
 0x374   : > { %3413 = vrot.lane.b32.xlu0 %v11677_v26, %s12506_s23 }
 0x375   : > { %v11679_v42 = vpop.eup %11678 }
 0x376   : > { %v3230_v59 = vpop.permute.xlu0 %3229  ;;  %3415 = vrot.lane.b32.xlu1 %v11679_v42, %s12506_s23 }
 0x377   : > { %v14292_v15 = vadd.f32 %v3230_v59, %v2991_v44 }
 0x378   : > { %v3232_v30 = vpop.permute.xlu1 %3231 }
 0x379   : > { %11684 = vtanh.f32 %v14292_v15  ;;  %v14297_v43 = vadd.f32 %v3232_v30, %v2992_v1 }
 0x37b   : > { %v11681_v5 = vpop.eup %11680  ;;  %11686 = vtanh.f32 %v14297_v43 }
 0x37c   : > { %3417 = vrot.lane.b32.xlu0 %v11681_v5, %s12506_s23 }
 0x37d   : > { %v11683_v26 = vpop.eup %11682 }
 0x37e   : > { %v3234_v42 = vpop.permute.xlu0 %3233  ;;  %3419 = vrot.lane.b32.xlu1 %v11683_v26, %s12506_s23 }
 0x37f   : > { %v14304_v44 = vadd.f32 %v3234_v42, %v2993_v48  ;;  %v2996_v42 = vmul.f32 %v14150_v11, %v17271_v37 }
 0x380   : > { %v3236_v59 = vpop.permute.xlu1 %3235 }
 0x381   : > { %17268 = vst [vmem:[#allocation108_spill] sm:$0xff] %v14304_v44  ;;  %11688 = vtanh.f32 %v14304_v44  ;;  %v14309_v1 = vadd.f32 %v3236_v59, %v2994_v18 }
 0x383   : > { %17269 = vst [vmem:[#allocation109_spill] sm:$0xff] %v14309_v1  ;;  %v11685_v30 = vpop.eup %11684  ;;  %11690 = vtanh.f32 %v14309_v1 }
 0x384   : > { %3421 = vrot.lane.b32.xlu0 %v11685_v30, %s12506_s23  ;;  %v2997_v30 = vmul.f32 %v14156_v24, %v17273_v32 }
 0x385   : > { %v11687_v5 = vpop.eup %11686 }
 0x386   : > { %v3238_v26 = vpop.permute.xlu0 %3237  ;;  %3423 = vrot.lane.b32.xlu1 %v11687_v5, %s12506_s23 }
 0x387   : > { %v14316_v48 = vadd.f32 %v3238_v26, %v2995_v41  ;;  %v17275_v26 = vld [vmem:[#allocation102_spill] sm:$0xff] }
 0x388   : > { %v3240_v18 = vpop.permute.xlu1 %3239  ;;  %v2998_v37 = vmul.f32 %v14160_v35, %v17275_v26 }
 0x389   : > { %17270 = vst [vmem:[#allocation110_spill] sm:$0xff] %v14316_v48  ;;  %11692 = vtanh.f32 %v14316_v48  ;;  %v14321_v59 = vadd.f32 %v3240_v18, %v2996_v42 }
 0x38b   : > { %17272 = vst [vmem:[#allocation100_spill] sm:$0xff] %v14321_v59  ;;  %v11689_v1 = vpop.eup %11688  ;;  %11694 = vtanh.f32 %v14321_v59 }
 0x38c   : > { %3425 = vrot.lane.b32.xlu0 %v11689_v1, %s12506_s23  ;;  %v17277_v1 = vld [vmem:[#allocation101_spill] sm:$0xff] }
 0x38d   : > { %v11691_v44 = vpop.eup %11690  ;;  %v2999_v32 = vmul.f32 %v14166_v2, %v17277_v1 }
 0x38e   : > { %v3242_v5 = vpop.permute.xlu0 %3241  ;;  %3427 = vrot.lane.b32.xlu1 %v11691_v44, %s12506_s23 }
 0x38f   : > { %v14328_v41 = vadd.f32 %v3242_v5, %v2997_v30  ;;  %v17278_v5 = vld [vmem:[#allocation104_spill] sm:$0xff] }
 0x390   : > { %v3244_v42 = vpop.permute.xlu1 %3243  ;;  %v3000_v26 = vmul.f32 %v14170_v9, %v17278_v5 }
 0x391   : > { %17274 = vst [vmem:[#allocation99_spill] sm:$0xff] %v14328_v41  ;;  %11696 = vtanh.f32 %v14328_v41  ;;  %v14333_v18 = vadd.f32 %v3244_v42, %v2998_v37 }
 0x393   : > { %17276 = vst [vmem:[#allocation102_spill] sm:$0xff] %v14333_v18  ;;  %v11693_v59 = vpop.eup %11692  ;;  %11698 = vtanh.f32 %v14333_v18 }
 0x394   : > { %3429 = vrot.lane.b32.xlu0 %v11693_v59, %s12506_s23  ;;  %v17280_v59 = vld [vmem:[#allocation103_spill] sm:$0xff] }
 0x395   : > { %v11695_v48 = vpop.eup %11694  ;;  %v3001_v1 = vmul.f32 %v14176_v12, %v17280_v59 }
 0x396   : > { %v3246_v44 = vpop.permute.xlu0 %3245  ;;  %3431 = vrot.lane.b32.xlu1 %v11695_v48, %s12506_s23 }
 0x397   : > { %v14340_v30 = vadd.f32 %v3246_v44, %v2999_v32  ;;  %v3002_v44 = vmul.f32 %v14179_v61, %v14014_v20  ;;  %v17284_v20 = vld [vmem:[#allocation106_spill] sm:$0xff] }
 0x398   : > { %v3248_v37 = vpop.permute.xlu1 %3247 }
 0x399   : > { %11700 = vtanh.f32 %v14340_v30  ;;  %v14345_v42 = vadd.f32 %v3248_v37, %v3000_v26 }
 0x39b   : > { %17279 = vst [vmem:[#allocation101_spill] sm:$0xff] %v14345_v42  ;;  %v11697_v18 = vpop.eup %11696  ;;  %11702 = vtanh.f32 %v14345_v42 }
 0x39c   : > { %3433 = vrot.lane.b32.xlu0 %v11697_v18, %s12506_s23  ;;  %v3003_v18 = vmul.f32 %v14184_v46, %v14011_v52  ;;  %v17286_v52 = vld [vmem:[#allocation105_spill] sm:$0xff] }
 0x39d   : > { %v11699_v41 = vpop.eup %11698 }
 0x39e   : > { %v3250_v48 = vpop.permute.xlu0 %3249  ;;  %3435 = vrot.lane.b32.xlu1 %v11699_v41, %s12506_s23 }
 0x39f   : > { %v14352_v32 = vadd.f32 %v3250_v48, %v3001_v1  ;;  %v3004_v48 = vmul.f32 %v14187_v3, %v17284_v20 }
 0x3a0   : > { %v3252_v5 = vpop.permute.xlu1 %3251 }
 0x3a1   : > { %17281 = vst [vmem:[#allocation104_spill] sm:$0xff] %v14352_v32  ;;  %11704 = vtanh.f32 %v14352_v32  ;;  %v14357_v26 = vadd.f32 %v3252_v5, %v3002_v44 }
 0x3a3   : > { %17282 = vst [vmem:[#allocation103_spill] sm:$0xff] %v14357_v26  ;;  %v11701_v37 = vpop.eup %11700  ;;  %11706 = vtanh.f32 %v14357_v26 }
 0x3a4   : > { %3437 = vrot.lane.b32.xlu0 %v11701_v37, %s12506_s23  ;;  %v3005_v37 = vmul.f32 %v14192_v29, %v17286_v52  ;;  %v3007_v52 = vmul.f32 %v14207_v27, %v14040_v50 }
 0x3a5   : > { %v11703_v59 = vpop.eup %11702 }
 0x3a6   : > { %v3254_v41 = vpop.permute.xlu0 %3253  ;;  %3439 = vrot.lane.b32.xlu1 %v11703_v59, %s12506_s23 }
 0x3a7   : > { %v14364_v1 = vadd.f32 %v3254_v41, %v3003_v18  ;;  %v3006_v41 = vmul.f32 %v14195_v40, %v14047_v25  ;;  %v11370_v25 = vld [vmem:[%s17083_s5 + $0x10] sm:$0xff]  }
 0x3a8   : > { %v3256_v44 = vpop.permute.xlu1 %3255  ;;  %11009 = vmatprep.subr.bf16.mxu0 %v11370_v25 }
 0x3a9   : > { %17283 = vst [vmem:[#allocation111_spill] sm:$0xff] %v14364_v1  ;;  %11708 = vtanh.f32 %v14364_v1  ;;  %v14369_v5 = vadd.f32 %v3256_v44, %v3004_v48  ;;  %11010 = vmatpush3.bf16.msra.mxu0 %v11370_v25 }
 0x3ab   : > { %17285 = vst [vmem:[#allocation106_spill] sm:$0xff] %v14369_v5  ;;  %v11705_v26 = vpop.eup %11704  ;;  %11710 = vtanh.f32 %v14369_v5 }
 0x3ac   : > { %3441 = vrot.lane.b32.xlu0 %v11705_v26, %s12506_s23 }
 0x3ad   : > { %v11707_v32 = vpop.eup %11706 }
 0x3ae   : > { %v3258_v59 = vpop.permute.xlu0 %3257  ;;  %3443 = vrot.lane.b32.xlu1 %v11707_v32, %s12506_s23 }
 0x3af   : > { %v14376_v18 = vadd.f32 %v3258_v59, %v3005_v37  ;;  %v3008_v59 = vmul.f32 %v14216_v58, %v14056_v0 }
 0x3b1   : > { %17287 = vst [vmem:[#allocation105_spill] sm:$0xff] %v14376_v18  ;;  %11712 = vtanh.f32 %v14376_v18  ;;  %v3260_v20 = vpop.permute.xlu1 %3259 }
 0x3b2   : > { %v14381_v48 = vadd.f32 %v3260_v20, %v3006_v41 }
 0x3b3   : > { %v11709_v44 = vpop.eup %11708 }
 0x3b4   : > { %17288 = vst [vmem:[#allocation112_spill] sm:$0xff] %v14381_v48  ;;  %11714 = vtanh.f32 %v14381_v48  ;;  %3445 = vrot.lane.b32.xlu0 %v11709_v44, %s12506_s23 }
 0x3b5   : > { %v11711_v26 = vpop.eup %11710 }
 0x3b6   : > { %3447 = vrot.lane.b32.xlu1 %v11711_v26, %s12506_s23  ;;  %v11371_v26 = vld [vmem:[%s17083_s5 + $0x18] sm:$0xff]  }
 0x3b7   : > { %v3262_v32 = vpop.permute.xlu0 %3261  ;;  %11011 = vmatprep.subr.bf16.mxu0 %v11371_v26 }
 0x3b8   : > { %v14388_v37 = vadd.f32 %v3262_v32, %v3007_v52  ;;  %11012 = vmatpush3.bf16.msra.mxu0 %v11371_v26 }
 0x3ba   : > { %17289 = vst [vmem:[#allocation113_spill] sm:$0xff] %v14388_v37  ;;  %11716 = vtanh.f32 %v14388_v37 }
 0x3bb   : > { %v11713_v41 = vpop.eup %11712  ;;  %v3264_v20 = vpop.permute.xlu1 %3263 }
 0x3bc   : > { %v14396_v44 = vadd.f32 %v3264_v20, %v3008_v59  ;;  %3449 = vrot.lane.b32.xlu0 %v11713_v41, %s12506_s23 }
 0x3be   : > { %17290 = vst [vmem:[#allocation114_spill] sm:$0xff] %v14396_v44  ;;  %v11715_v50 = vpop.eup %11714  ;;  %11718 = vtanh.f32 %v14396_v44  ;;  %v3394_v0 = vpop.permute.xlu0 %3393 }
 0x3bf   : > { %3451 = vrot.lane.b32.xlu1 %v11715_v50, %s12506_s23  ;;  %v3489_v59 = vmul.f32 %v14049_v56, %v3394_v0 }
 0x3c2   : > { %v3396_v52 = vpop.permute.xlu1 %3395 }
 0x3c3   : > { %v3490_v32 = vmul.f32 %v14059_v19, %v3396_v52 }
 0x3c4   : > { %v11717_v25 = vpop.eup %11716 }
 0x3c5   : > { %3453 = vrot.lane.b32.xlu0 %v11717_v25, %s12506_s23  ;;  %v3521_v41 = vpack.c.bf16 %v3490_v32, %v3489_v59 }
 0x3c6   : > { %v3398_v44 = vpop.permute.xlu0 %3397 }
 0x3c7   : > { %v3491_v50 = vmul.f32 %v14065_v39, %v3398_v44 }
 0x3c8   : > { %v11719_v20 = vpop.eup %11718 }
 0x3c9   : > { %3455 = vrot.lane.b32.xlu1 %v11719_v20, %s12506_s23  ;;  %3628 = vrot.lane.b32.xlu0 %v3521_v41, %s12505_s21 }
 0x3ca   : > { %v3400_v37 = vpop.permute.xlu1 %3399 }
 0x3cb   : > { %v3492_v26 = vmul.f32 %v14071_v34, %v3400_v37 }
 0x3cd   : > { %v3522_v48 = vpack.c.bf16 %v3492_v26, %v3491_v50 }
 0x3ce   : > { %v3402_v18 = vpop.permute.xlu0 %3401 }
 0x3cf   : > { %3630 = vrot.lane.b32.xlu1 %v3522_v48, %s12505_s21  ;;  %v3493_v56 = vmul.f32 %v14076_v6, %v3402_v18 }
 0x3d0   : > { %v3404_v19 = vpop.permute.xlu1 %3403 }
 0x3d1   : > { %v3494_v0 = vmul.f32 %v14080_v38, %v3404_v19 }
 0x3d3   : > { %v3523_v52 = vpack.c.bf16 %v3494_v0, %v3493_v56 }
 0x3d5   : > { %3632 = vrot.lane.b32.xlu0 %v3523_v52, %s12505_s21 }
 0x3d6   : > { %v3406_v32 = vpop.permute.xlu0 %3405 }
 0x3d7   : > { %v3495_v59 = vmul.f32 %v14086_v22, %v3406_v32 }
 0x3d8   : > { %v3408_v25 = vpop.permute.xlu1 %3407 }
 0x3d9   : > { %v3496_v39 = vmul.f32 %v14090_v51, %v3408_v25 }
 0x3db   : > { %v3524_v44 = vpack.c.bf16 %v3496_v39, %v3495_v59 }
 0x3dd   : > { %3634 = vrot.lane.b32.xlu1 %v3524_v44, %s12505_s21 }
 0x3de   : > { %v3410_v34 = vpop.permute.xlu0 %3409 }
 0x3df   : > { %v3497_v48 = vmul.f32 %v14096_v7, %v3410_v34 }
 0x3e0   : > { %v3412_v37 = vpop.permute.xlu1 %3411 }
 0x3e1   : > { %v3498_v6 = vmul.f32 %v14100_v28, %v3412_v37 }
 0x3e3   : > { %v3525_v18 = vpack.c.bf16 %v3498_v6, %v3497_v48 }
 0x3e5   : > { %3636 = vrot.lane.b32.xlu0 %v3525_v18, %s12505_s21 }
 0x3e6   : > { %v3414_v38 = vpop.permute.xlu0 %3413 }
 0x3e7   : > { %v3499_v20 = vmul.f32 %v14106_v8, %v3414_v38  ;;  %v11372_v8 = vld [vmem:[%s17082_s4 + $0xc0] sm:$0xff]  }
 0x3e8   : > { %v3416_v41 = vpop.permute.xlu1 %3415  ;;  %10489 = vmatprep.subr.bf16.mxu0 %v11372_v8 }
 0x3e9   : > { %v3500_v22 = vmul.f32 %v14110_v10, %v3416_v41 }
 0x3eb   : > { %v3526_v50 = vpack.c.bf16 %v3500_v22, %v3499_v20 }
 0x3ed   : > { %3638 = vrot.lane.b32.xlu1 %v3526_v50, %s12505_s21 }
 0x3ee   : > { %v3418_v51 = vpop.permute.xlu0 %3417 }
 0x3ef   : > { %v3501_v19 = vmul.f32 %v14116_v49, %v3418_v51 }
 0x3f0   : > { %v3420_v26 = vpop.permute.xlu1 %3419 }
 0x3f1   : > { %v3502_v7 = vmul.f32 %v14120_v45, %v3420_v26 }
 0x3f3   : > { %v3527_v56 = vpack.c.bf16 %v3502_v7, %v3501_v19 }
 0x3f5   : > { %3640 = vrot.lane.b32.xlu0 %v3527_v56, %s12505_s21 }
 0x3f6   : > { %v3422_v28 = vpop.permute.xlu0 %3421 }
 0x3f7   : > { %v3503_v10 = vmul.f32 %v14126_v60, %v3422_v28 }
 0x3f8   : > { %v3424_v0 = vpop.permute.xlu1 %3423 }
 0x3f9   : > { %v3504_v52 = vmul.f32 %v14130_v23, %v3424_v0 }
 0x3fb   : > { %v3528_v32 = vpack.c.bf16 %v3504_v52, %v3503_v10 }
 0x3fd   : > { %3642 = vrot.lane.b32.xlu1 %v3528_v32, %s12505_s21 }
 0x3fe   : > { %v3426_v49 = vpop.permute.xlu0 %3425 }
 0x3ff   : > { %v3505_v45 = vmul.f32 %v14136_v36, %v3426_v49 }
 0x400   : > { %v3428_v25 = vpop.permute.xlu1 %3427 }
 0x401   : > { %v3506_v59 = vmul.f32 %v14140_v57, %v3428_v25  ;;  %v11377_v25 = vld [vmem:[%s17082_s4 + $0x90] sm:$0xff]  }
 0x403   : > { %v3529_v39 = vpack.c.bf16 %v3506_v59, %v3505_v45  ;;  %v11378_v59 = vld [vmem:[%s17082_s4 + $0xd8] sm:$0xff]  }
 0x405   : > { %3644 = vrot.lane.b32.xlu0 %v3529_v39, %s12505_s21  ;;  %v11379_v39 = vld [vmem:[%s17082_s4 + $0x98] sm:$0xff]  }
 0x406   : > { %v3430_v44 = vpop.permute.xlu0 %3429 }
 0x407   : > { %v3507_v37 = vmul.f32 %v14146_v17, %v3430_v44  ;;  %v11380_v44 = vld [vmem:[%s17082_s4 + $0xe0] sm:$0xff]  }
 0x408   : > { %v3432_v34 = vpop.permute.xlu1 %3431 }
 0x409   : > { %v3508_v60 = vmul.f32 %v14150_v11, %v3432_v34  ;;  %v11381_v34 = vld [vmem:[%s17082_s4 + $0xa0] sm:$0xff]  }
 0x40b   : > { %v3530_v23 = vpack.c.bf16 %v3508_v60, %v3507_v37  ;;  %v11382_v60 = vld [vmem:[%s17082_s4 + $0xe8] sm:$0xff]  }
 0x40d   : > { %3646 = vrot.lane.b32.xlu1 %v3530_v23, %s12505_s21  ;;  %v11383_v23 = vld [vmem:[%s17082_s4 + $0xa8] sm:$0xff]  }
 0x40e   : > { %v3434_v48 = vpop.permute.xlu0 %3433 }
 0x40f   : > { %v3509_v18 = vmul.f32 %v14156_v24, %v3434_v48  ;;  %v11384_v48 = vld [vmem:[%s17082_s4 + $0xf0] sm:$0xff]  }
 0x410   : > { %v3436_v6 = vpop.permute.xlu1 %3435 }
 0x411   : > { %v3510_v36 = vmul.f32 %v14160_v35, %v3436_v6  ;;  %v11385_v6 = vld [vmem:[%s17082_s4 + $0xb0] sm:$0xff]  }
 0x413   : > { %v3531_v38 = vpack.c.bf16 %v3510_v36, %v3509_v18  ;;  %v11386_v36 = vld [vmem:[%s17082_s4 + $0xf8] sm:$0xff]  }
 0x415   : > { %3648 = vrot.lane.b32.xlu0 %v3531_v38, %s12505_s21  ;;  %v11387_v38 = vld [vmem:[%s17082_s4 + $0xb8] sm:$0xff]  }
 0x416   : > { %v3438_v57 = vpop.permute.xlu0 %3437 }
 0x417   : > { %v3511_v20 = vmul.f32 %v14166_v2, %v3438_v57 }
 0x418   : > { %v3440_v41 = vpop.permute.xlu1 %3439 }
 0x419   : > { %v3512_v17 = vmul.f32 %v14170_v9, %v3440_v41 }
 0x41b   : > { %v3532_v22 = vpack.c.bf16 %v3512_v17, %v3511_v20 }
 0x41d   : > { %3650 = vrot.lane.b32.xlu1 %v3532_v22, %s12505_s21 }
 0x41e   : > { %v3442_v11 = vpop.permute.xlu0 %3441 }
 0x41f   : > { %v3513_v51 = vmul.f32 %v14176_v12, %v3442_v11 }
 0x420   : > { %v3444_v50 = vpop.permute.xlu1 %3443 }
 0x421   : > { %v3514_v24 = vmul.f32 %v14179_v61, %v3444_v50 }
 0x423   : > { %v3533_v26 = vpack.c.bf16 %v3514_v24, %v3513_v51 }
 0x425   : > { %3652 = vrot.lane.b32.xlu0 %v3533_v26, %s12505_s21 }
 0x426   : > { %v3446_v35 = vpop.permute.xlu0 %3445 }
 0x427   : > { %v3515_v7 = vmul.f32 %v14184_v46, %v3446_v35 }
 0x428   : > { %v3448_v19 = vpop.permute.xlu1 %3447 }
 0x429   : > { %v3516_v2 = vmul.f32 %v14187_v3, %v3448_v19  ;;  %v17307_v19 = vld [vmem:[#allocation4_spill] sm:$0xff] }
 0x42b   : > { %v3534_v56 = vpack.c.bf16 %v3516_v2, %v3515_v7  ;;  %v17308_v7 = vld [vmem:[#allocation3_spill] sm:$0xff]  ;;  %v17309_v2 = vld [vmem:[#allocation8_spill] sm:$0xff] }
 0x42d   : > { %3654 = vrot.lane.b32.xlu1 %v3534_v56, %s12505_s21  ;;  %v17310_v56 = vld [vmem:[#allocation7_spill] sm:$0xff] }
 0x42e   : > { %v3450_v9 = vpop.permute.xlu0 %3449 }
 0x42f   : > { %v3517_v0 = vmul.f32 %v14192_v29, %v3450_v9  ;;  %v11373_v29 = vld [vmem:[%s17082_s4 + $0x80] sm:$0xff]   ;;  %v17311_v9 = vld [vmem:[#allocation12_spill] sm:$0xff] }
 0x431   : > { %v3452_v28 = vpop.permute.xlu1 %3451 }
 0x432   : > { %v3518_v12 = vmul.f32 %v14195_v40, %v3452_v28  ;;  %v11374_v40 = vld [vmem:[%s17082_s4 + $0xc8] sm:$0xff]  }
 0x433   : > { %v17312_v28 = vld [vmem:[#allocation11_spill] sm:$0xff] }
 0x434   : > { %v3535_v8 = vpack.c.bf16 %v3518_v12, %v3517_v0  ;;  %v17313_v0 = vld [vmem:[#allocation16_spill] sm:$0xff]  ;;  %v17314_v12 = vld [vmem:[#allocation15_spill] sm:$0xff] }
 0x436   : > { %3656 = vrot.lane.b32.xlu0 %v3535_v8, %s12505_s21  ;;  %v17315_v8 = vld [vmem:[#allocation20_spill] sm:$0xff] }
 0x437   : > { %v3454_v61 = vpop.permute.xlu0 %3453 }
 0x438   : > { %v3519_v46 = vmul.f32 %v14207_v27, %v3454_v61  ;;  %v11375_v27 = vld [vmem:[%s17082_s4 + $0x88] sm:$0xff]  }
 0x439   : > { %v17316_v61 = vld [vmem:[#allocation19_spill] sm:$0xff] }
 0x43b   : > { %v3456_v10 = vpop.permute.xlu1 %3455  ;;  %v14454_v52 = vpop.permute.xlu0 %3628 }
 0x43c   : > { %17291 = vst [vmem:[#allocation115_spill] sm:$0xff] %v14454_v52  ;;  %v3520_v3 = vmul.f32 %v14216_v58, %v3456_v10  ;;  %11013 = vmatprep.mubr.msk.bf16.mxu0 %vm2126_vm0, %v14454_v52  ;;  %v11376_v58 = vld [vmem:[%s17082_s4 + $0xd0] sm:$0xff]  }
 0x43d   : > { %v17317_v10 = vld [vmem:[#allocation24_spill] sm:$0xff] }
 0x43e   : > { %v3536_v32 = vpack.c.bf16 %v3520_v3, %v3519_v46  ;;  %v17318_v46 = vld [vmem:[#allocation23_spill] sm:$0xff]  ;;  %v17319_v3 = vld [vmem:[#allocation28_spill] sm:$0xff] }
 0x440   : > { %3658 = vrot.lane.b32.xlu1 %v3536_v32, %s12505_s21  ;;  %v17320_v32 = vld [vmem:[#allocation27_spill] sm:$0xff] }
 0x441   : > { %v14467_v49 = vpop.permute.xlu1 %3630 }
 0x442   : > { %17292 = vst [vmem:[#allocation116_spill] sm:$0xff] %v14467_v49  ;;  %11014 = vmatmul.mubr.msk.bf16.vlgmr.msra.gmra.mrb[128].mxu0 %vm2126_vm0, %v14467_v49 }
 0x443   : > { %10490 = vmatpush3.bf16.msra.mxu0 %v11373_v29  ;;  %v17321_v29 = vld [vmem:[#allocation32_spill] sm:$0xff] }
 0x444   : > { %10491 = vmatprep.subr.bf16.mxu0 %v11374_v40  ;;  %v17322_v40 = vld [vmem:[#allocation31_spill] sm:$0xff] }
 0x447   : > { %10492 = vmatpush3.bf16.msra.mxu0 %v11375_v27  ;;  %v14480_v45 = vpop.permute.xlu0 %3632  ;;  %v17323_v27 = vld [vmem:[#allocation36_spill] sm:$0xff] }
 0x448   : > { %17293 = vst [vmem:[#allocation117_spill] sm:$0xff] %v14480_v45  ;;  %10493 = vmatprep.subr.bf16.mxu0 %v11376_v58  ;;  %11017 = vmatprep.mubr.msk.bf16.mxu0 %vm2126_vm0, %v14480_v45  ;;  %v17324_v58 = vld [vmem:[#allocation35_spill] sm:$0xff] }
 0x44b   : > { %10494 = vmatpush3.bf16.msra.mxu0 %v11377_v25  ;;  %v17325_v25 = vld [vmem:[#allocation40_spill] sm:$0xff] }
 0x44c   : > { %10495 = vmatprep.subr.bf16.mxu0 %v11378_v59  ;;  %v17326_v59 = vld [vmem:[#allocation39_spill] sm:$0xff] }
 0x44f   : > { %10496 = vmatpush3.bf16.msra.mxu0 %v11379_v39  ;;  %v14496_v37 = vpop.permute.xlu1 %3634  ;;  %v17327_v39 = vld [vmem:[#allocation44_spill] sm:$0xff] }
 0x450   : > { %17294 = vst [vmem:[#allocation118_spill] sm:$0xff] %v14496_v37  ;;  %10497 = vmatprep.subr.bf16.mxu0 %v11380_v44  ;;  %11018 = vmatmul.mubr.msk.bf16.gmra.mrb[132].mxu0 %vm2126_vm0, %v14496_v37  ;;  %v17328_v44 = vld [vmem:[#allocation43_spill] sm:$0xff] }
 0x453   : > { %10498 = vmatpush3.bf16.msra.mxu0 %v11381_v34  ;;  %v17329_v34 = vld [vmem:[#allocation48_spill] sm:$0xff] }
 0x454   : > { %10499 = vmatprep.subr.bf16.mxu0 %v11382_v60  ;;  %v17330_v60 = vld [vmem:[#allocation47_spill] sm:$0xff] }
 0x457   : > { %10500 = vmatpush3.bf16.msra.mxu0 %v11383_v23  ;;  %v14512_v18 = vpop.permute.xlu0 %3636  ;;  %v17331_v23 = vld [vmem:[#allocation52_spill] sm:$0xff] }
 0x458   : > { %17295 = vst [vmem:[#allocation119_spill] sm:$0xff] %v14512_v18  ;;  %10501 = vmatprep.subr.bf16.mxu0 %v11384_v48  ;;  %11021 = vmatprep.mubr.msk.bf16.mxu0 %vm2126_vm0, %v14512_v18 }
 0x45b   : > { %10502 = vmatpush3.bf16.msra.mxu0 %v11385_v6 }
 0x45c   : > { %10503 = vmatprep.subr.bf16.mxu0 %v11386_v36 }
 0x45f   : > { %10504 = vmatpush3.bf16.msra.mxu0 %v11387_v38  ;;  %v14522_v57 = vpop.permute.xlu1 %3638 }
 0x460   : > { %17296 = vst [vmem:[#allocation120_spill] sm:$0xff] %v14522_v57  ;;  %11022 = vmatmul.mubr.msk.bf16.gmra.mrb[136].mxu0 %vm2126_vm0, %v14522_v57 }
 0x467   : > { %v14526_v41 = vpop.permute.xlu0 %3640 }
 0x468   : > { %17297 = vst [vmem:[#allocation121_spill] sm:$0xff] %v14526_v41  ;;  %11025 = vmatprep.mubr.msk.bf16.mxu0 %vm2126_vm0, %v14526_v41 }
 0x46f   : > { %v14530_v20 = vpop.permute.xlu1 %3642 }
 0x470   : > { %17298 = vst [vmem:[#allocation122_spill] sm:$0xff] %v14530_v20  ;;  %11026 = vmatmul.mubr.msk.bf16.gmra.mrb[140].mxu0 %vm2126_vm0, %v14530_v20 }
 0x477   : > { %v14534_v17 = vpop.permute.xlu0 %3644 }
 0x478   : > { %17299 = vst [vmem:[#allocation123_spill] sm:$0xff] %v14534_v17  ;;  %11029 = vmatprep.mubr.msk.bf16.mxu0 %vm2126_vm0, %v14534_v17  ;;  %v14655_v17 = vld [vmem:[%s17086_s8 + $0x2] ss:$0 sm:$0xff] }
 0x47f   : > { %v14538_v22 = vpop.permute.xlu1 %3646 }
 0x480   : > { %17300 = vst [vmem:[#allocation124_spill] sm:$0xff] %v14538_v22  ;;  %11030 = vmatmul.mubr.msk.bf16.gmra.mrb[144].mxu0 %vm2126_vm0, %v14538_v22 }
 0x487   : > { %v14542_v11 = vpop.permute.xlu0 %3648 }
 0x488   : > { %17301 = vst [vmem:[#allocation125_spill] sm:$0xff] %v14542_v11  ;;  %11033 = vmatprep.mubr.msk.bf16.mxu0 %vm2126_vm0, %v14542_v11 }
 0x48f   : > { %v14546_v50 = vpop.permute.xlu1 %3650 }
 0x490   : > { %17302 = vst [vmem:[#allocation126_spill] sm:$0xff] %v14546_v50  ;;  %11034 = vmatmul.mubr.msk.bf16.gmra.mrb[148].mxu0 %vm2126_vm0, %v14546_v50 }
 0x497   : > { %v14550_v51 = vpop.permute.xlu0 %3652 }
 0x498   : > { %17303 = vst [vmem:[#allocation127_spill] sm:$0xff] %v14550_v51  ;;  %11037 = vmatprep.mubr.msk.bf16.mxu0 %vm2126_vm0, %v14550_v51 }
 0x49f   : > { %v14554_v24 = vpop.permute.xlu1 %3654 }
 0x4a0   : > { %17304 = vst [vmem:[#allocation128_spill] sm:$0xff] %v14554_v24  ;;  %11038 = vmatmul.mubr.msk.bf16.gmra.mrb[152].mxu0 %vm2126_vm0, %v14554_v24 }
 0x4a8   : > { %v14558_v26 = vpop.permute.xlu0 %3656 }
 0x4a9   : > { %17305 = vst [vmem:[#allocation129_spill] sm:$0xff] %v14558_v26  ;;  %11041 = vmatprep.mubr.msk.bf16.mxu0 %vm2126_vm0, %v14558_v26 }
 0x4b2   : > { %v14562_v35 = vpop.permute.xlu1 %3658 }
 0x4b3   : > { %17306 = vst [vmem:[#allocation130_spill] sm:$0xff] %v14562_v35  ;;  %11042 = vmatmul.mubr.msk.bf16.gmra.mrb[156].mxu0 %vm2126_vm0, %v14562_v35 }
 0x4b4   : > { %4009 = vmatprep.mubr.bf16.mxu0 %v17307_v19  ;;  %v17332_v19 = vld [vmem:[#allocation51_spill] sm:$0xff] }
 0x4bb   : > { %4010 = vmatmul.mubr.bf16.vlgmr.msra.gmra.mrb[160].mxu0 %v17308_v7  ;;  %v17333_v7 = vld [vmem:[#allocation56_spill] sm:$0xff] }
 0x4bc   : > { %4017 = vmatprep.mubr.bf16.mxu0 %v17309_v2  ;;  %v17334_v2 = vld [vmem:[#allocation55_spill] sm:$0xff] }
 0x4c3   : > { %4018 = vmatmul.mubr.bf16.gmra.mrb[164].mxu0 %v17310_v56 }
 0x4c4   : > { %4025 = vmatprep.mubr.bf16.mxu0 %v17311_v9  ;;  %v17335_v9 = vld [vmem:[#allocation60_spill] sm:$0xff] }
 0x4cb   : > { %4026 = vmatmul.mubr.bf16.gmra.mrb[168].mxu0 %v17312_v28 }
 0x4cc   : > { %4033 = vmatprep.mubr.bf16.mxu0 %v17313_v0 }
 0x4d3   : > { %4034 = vmatmul.mubr.bf16.gmra.mrb[172].mxu0 %v17314_v12 }
 0x4d4   : > { %4041 = vmatprep.mubr.bf16.mxu0 %v17315_v8  ;;  %v17336_v8 = vld [vmem:[#allocation59_spill] sm:$0xff] }
 0x4db   : > { %4042 = vmatmul.mubr.bf16.gmra.mrb[176].mxu0 %v17316_v61  ;;  %v17337_v61 = vld [vmem:[#allocation64_spill] sm:$0xff] }
 0x4dc   : > { %4049 = vmatprep.mubr.bf16.mxu0 %v17317_v10  ;;  %v17338_v10 = vld [vmem:[#allocation63_spill] sm:$0xff] }
 0x4e3   : > { %4050 = vmatmul.mubr.bf16.gmra.mrb[180].mxu0 %v17318_v46 }
 0x4e4   : > { %4057 = vmatprep.mubr.bf16.mxu0 %v17319_v3 }
 0x4eb   : > { %4058 = vmatmul.mubr.bf16.gmra.mrb[184].mxu0 %v17320_v32 }
 0x4ec   : > { %4065 = vmatprep.mubr.bf16.mxu0 %v17321_v29 }
 0x4f3   : > { %4066 = vmatmul.mubr.bf16.gmra.mrb[188].mxu0 %v17322_v40 }
 0x4f4   : > { %4073 = vmatprep.mubr.bf16.mxu0 %v17323_v27 }
 0x4fb   : > { %4074 = vmatmul.mubr.bf16.gmra.mrb[192].mxu0 %v17324_v58 }
 0x4fc   : > { %4081 = vmatprep.mubr.bf16.mxu0 %v17325_v25 }
 0x503   : > { %4082 = vmatmul.mubr.bf16.gmra.mrb[196].mxu0 %v17326_v59 }
 0x504   : > { %4089 = vmatprep.mubr.bf16.mxu0 %v17327_v39 }
 0x50b   : > { %4090 = vmatmul.mubr.bf16.gmra.mrb[200].mxu0 %v17328_v44 }
 0x50c   : > { %4097 = vmatprep.mubr.bf16.mxu0 %v17329_v34 }
 0x513   : > { %4098 = vmatmul.mubr.bf16.gmra.mrb[204].mxu0 %v17330_v60 }
 0x514   : > { %4105 = vmatprep.mubr.bf16.mxu0 %v17331_v23 }
 0x515   : > { %v11015_v48 = vpop.f32.mrb[128].mxu0 }
 0x516   : > { %v3754_v6 = vpop.f32.mrb[129].mxu0 }
 0x517   : > { %v11016_v36 = vpop.f32.mrb[130].mxu0 }
 0x518   : > { %v3757_v38 = vpop.f32.mrb[131].mxu0 }
 0x51b   : > { %4106 = vmatmul.mubr.bf16.gmra.mrb[208].mxu0 %v17332_v19 }
 0x51c   : > { %4113 = vmatprep.mubr.bf16.mxu0 %v17333_v7 }
 0x523   : > { %4114 = vmatmul.mubr.bf16.gmra.mrb[212].mxu0 %v17334_v2  ;;  %v14594_v56 = vpop.f32.mrb[132].mxu0 }
 0x524   : > { %4121 = vmatprep.mubr.bf16.mxu0 %v17335_v9  ;;  %v3770_v28 = vpop.f32.mrb[133].mxu0 }
 0x525   : > { %v14597_v0 = vpop.f32.mrb[134].mxu0 }
 0x526   : > { %v14599_v12 = vpop.f32.mrb[135].mxu0 }
 0x52b   : > { %4122 = vmatmul.mubr.bf16.gmra.mrb[216].mxu0 %v17336_v8 }
 0x52c   : > { %4129 = vmatprep.mubr.bf16.mxu0 %v17337_v61 }
 0x533   : > { %4130 = vmatmul.mubr.bf16.gmra.mrb[220].mxu0 %v17338_v10  ;;  %v14604_v46 = vpop.f32.mrb[136].mxu0 }
 0x534   : > { %v14606_v3 = vpop.f32.mrb[137].mxu0 }
 0x535   : > { %v14608_v32 = vpop.f32.mrb[138].mxu0 }
 0x536   : > { %v14610_v29 = vpop.f32.mrb[139].mxu0 }
 0x543   : > { %v14612_v40 = vpop.f32.mrb[140].mxu0 }
 0x544   : > { %v14614_v27 = vpop.f32.mrb[141].mxu0 }
 0x545   : > { %v14616_v58 = vpop.f32.mrb[142].mxu0 }
 0x546   : > { %v14618_v25 = vpop.f32.mrb[143].mxu0 }
 0x553   : > { %v14620_v59 = vpop.f32.mrb[144].mxu0 }
 0x554   : > { %v14622_v39 = vpop.f32.mrb[145].mxu0 }
 0x555   : > { %v14624_v44 = vpop.f32.mrb[146].mxu0 }
 0x556   : > { %v14626_v34 = vpop.f32.mrb[147].mxu0 }
 0x563   : > { %v14628_v60 = vpop.f32.mrb[148].mxu0 }
 0x564   : > { %v14630_v23 = vpop.f32.mrb[149].mxu0 }
 0x565   : > { %v14632_v19 = vpop.f32.mrb[150].mxu0 }
 0x566   : > { %v14634_v7 = vpop.f32.mrb[151].mxu0 }
 0x573   : > { %v14636_v2 = vpop.f32.mrb[152].mxu0 }
 0x574   : > { %v14638_v9 = vpop.f32.mrb[153].mxu0 }
 0x575   : > { %v14640_v8 = vpop.f32.mrb[154].mxu0 }
 0x576   : > { %v14642_v61 = vpop.f32.mrb[155].mxu0 }
 0x586   : > { %v14644_v10 = vpop.f32.mrb[156].mxu0 }
 0x587   : > { %v14646_v35 = vpop.f32.mrb[157].mxu0 }
 0x588   : > { %v14648_v26 = vpop.f32.mrb[158].mxu0 }
 0x589   : > { %v14650_v24 = vpop.f32.mrb[159].mxu0 }
 0x58e   : > { %v10505_v51 = vpop.f32.mrb[160].mxu0 }
 0x58f   : > { %v10506_v50 = vpop.f32.mrb[161].mxu0 }
 0x590   : > { %v10507_v11 = vadd.f32 %v10506_v50, %v10505_v51  ;;  %v10508_v22 = vpop.f32.mrb[162].mxu0 }
 0x591   : > { %v10509_v20 = vpop.f32.mrb[163].mxu0 }
 0x592   : > { %v4012_v41 = vadd.f32 %v10507_v11, %v3754_v6  ;;  %v10510_v57 = vadd.f32 %v10509_v20, %v10508_v22 }
 0x594   : > { %v14658_v18 = vadd.f32 %v4012_v41, %v14655_v17  ;;  %v4015_v37 = vadd.f32 %v10510_v57, %v3757_v38 }
 0x596   : > { %11720 = vtanh.f32 %v14658_v18  ;;  %v14662_v45 = vadd.f32 %v4015_v37, %v14655_v17  ;;  %v10511_v49 = vpop.f32.mrb[164].mxu0 }
 0x597   : > { %v10512_v50 = vpop.f32.mrb[165].mxu0 }
 0x598   : > { %v10513_v51 = vadd.f32 %v10512_v50, %v10511_v49  ;;  %v10514_v52 = vpop.f32.mrb[166].mxu0  ;;  %11722 = vtanh.f32 %v14662_v45 }
 0x599   : > { %v10515_v5 = vpop.f32.mrb[167].mxu0 }
 0x59a   : > { %v4020_v1 = vadd.f32 %v11015_v48, %v10513_v51  ;;  %v10516_v42 = vadd.f32 %v10515_v5, %v10514_v52 }
 0x59c   : > { %v14666_v20 = vadd.f32 %v4020_v1, %v14655_v17  ;;  %v4023_v41 = vadd.f32 %v11016_v36, %v10516_v42 }
 0x59e   : > { %11724 = vtanh.f32 %v14666_v20  ;;  %v14670_v57 = vadd.f32 %v4023_v41, %v14655_v17  ;;  %v10517_v37 = vpop.f32.mrb[168].mxu0 }
 0x59f   : > { %v10518_v22 = vpop.f32.mrb[169].mxu0 }
 0x5a0   : > { %v11721_v11 = vpop.eup %11720  ;;  %v10519_v6 = vadd.f32 %v10518_v22, %v10517_v37  ;;  %v10520_v49 = vpop.f32.mrb[170].mxu0  ;;  %11726 = vtanh.f32 %v14670_v57 }
 0x5a1   : > { %v10521_v38 = vpop.f32.mrb[171].mxu0  ;;  %4458 = vrot.lane.b32.xlu0 %v11721_v11, %s12506_s23 }
 0x5a2   : > { %v4028_v5 = vadd.f32 %v10519_v6, %v3770_v28  ;;  %v10522_v52 = vadd.f32 %v10521_v38, %v10520_v49  ;;  %v11723_v1 = vpop.eup %11722 }
 0x5a3   : > { %4460 = vrot.lane.b32.xlu1 %v11723_v1, %s12506_s23 }
 0x5a4   : > { %v14675_v42 = vadd.f32 %v4028_v5, %v14655_v17  ;;  %v4031_v48 = vadd.f32 %v10522_v52, %v14599_v12 }
 0x5a6   : > { %11728 = vtanh.f32 %v14675_v42  ;;  %v14681_v36 = vadd.f32 %v4031_v48, %v14655_v17  ;;  %v10523_v50 = vpop.f32.mrb[172].mxu0 }
 0x5a7   : > { %v10524_v51 = vpop.f32.mrb[173].mxu0 }
 0x5a8   : > { %v11725_v41 = vpop.eup %11724  ;;  %v10525_v37 = vadd.f32 %v10524_v51, %v10523_v50  ;;  %v10526_v22 = vpop.f32.mrb[174].mxu0  ;;  %11730 = vtanh.f32 %v14681_v36 }
 0x5a9   : > { %v10527_v28 = vpop.f32.mrb[175].mxu0  ;;  %4462 = vrot.lane.b32.xlu0 %v11725_v41, %s12506_s23 }
 0x5aa   : > { %v4036_v11 = vadd.f32 %v14594_v56, %v10525_v37  ;;  %v10528_v12 = vadd.f32 %v10527_v28, %v10526_v22  ;;  %v11727_v6 = vpop.eup %11726 }
 0x5ab   : > { %4464 = vrot.lane.b32.xlu1 %v11727_v6, %s12506_s23 }
 0x5ac   : > { %v14687_v49 = vadd.f32 %v4036_v11, %v14655_v17  ;;  %v4039_v38 = vadd.f32 %v14597_v0, %v10528_v12 }
 0x5ae   : > { %11732 = vtanh.f32 %v14687_v49  ;;  %v14693_v5 = vadd.f32 %v4039_v38, %v14655_v17  ;;  %v10529_v52 = vpop.f32.mrb[176].mxu0 }
 0x5af   : > { %v10530_v1 = vpop.f32.mrb[177].mxu0 }
 0x5b0   : > { %v11729_v48 = vpop.eup %11728  ;;  %v10531_v50 = vadd.f32 %v10530_v1, %v10529_v52  ;;  %v10532_v51 = vpop.f32.mrb[178].mxu0  ;;  %11734 = vtanh.f32 %v14693_v5 }
 0x5b1   : > { %v10533_v56 = vpop.f32.mrb[179].mxu0  ;;  %4466 = vrot.lane.b32.xlu0 %v11729_v48, %s12506_s23 }
 0x5b2   : > { %v4044_v41 = vadd.f32 %v10531_v50, %v14606_v3  ;;  %v10534_v0 = vadd.f32 %v10533_v56, %v10532_v51  ;;  %v11731_v37 = vpop.eup %11730 }
 0x5b3   : > { %4468 = vrot.lane.b32.xlu1 %v11731_v37, %s12506_s23 }
 0x5b4   : > { %v14699_v22 = vadd.f32 %v4044_v41, %v14655_v17  ;;  %v4047_v28 = vadd.f32 %v10534_v0, %v14610_v29 }
 0x5b6   : > { %11736 = vtanh.f32 %v14699_v22  ;;  %v14705_v11 = vadd.f32 %v4047_v28, %v14655_v17  ;;  %v10535_v12 = vpop.f32.mrb[180].mxu0 }
 0x5b7   : > { %v10536_v6 = vpop.f32.mrb[181].mxu0 }
 0x5b8   : > { %v11733_v38 = vpop.eup %11732  ;;  %v10537_v52 = vadd.f32 %v10536_v6, %v10535_v12  ;;  %v10538_v1 = vpop.f32.mrb[182].mxu0  ;;  %11738 = vtanh.f32 %v14705_v11 }
 0x5b9   : > { %v10539_v3 = vpop.f32.mrb[183].mxu0  ;;  %4470 = vrot.lane.b32.xlu0 %v11733_v38, %s12506_s23 }
 0x5ba   : > { %v4052_v48 = vadd.f32 %v14604_v46, %v10537_v52  ;;  %v10540_v29 = vadd.f32 %v10539_v3, %v10538_v1  ;;  %v11735_v50 = vpop.eup %11734 }
 0x5bb   : > { %4472 = vrot.lane.b32.xlu1 %v11735_v50, %s12506_s23 }
 0x5bc   : > { %v14711_v51 = vadd.f32 %v4052_v48, %v14655_v17  ;;  %v4055_v56 = vadd.f32 %v14608_v32, %v10540_v29 }
 0x5be   : > { %11740 = vtanh.f32 %v14711_v51  ;;  %v14717_v41 = vadd.f32 %v4055_v56, %v14655_v17  ;;  %v10541_v0 = vpop.f32.mrb[184].mxu0 }
 0x5bf   : > { %v10542_v37 = vpop.f32.mrb[185].mxu0 }
 0x5c0   : > { %v11737_v28 = vpop.eup %11736  ;;  %v10543_v12 = vadd.f32 %v10542_v37, %v10541_v0  ;;  %v10544_v6 = vpop.f32.mrb[186].mxu0  ;;  %11742 = vtanh.f32 %v14717_v41 }
 0x5c1   : > { %v10545_v46 = vpop.f32.mrb[187].mxu0  ;;  %4474 = vrot.lane.b32.xlu0 %v11737_v28, %s12506_s23 }
 0x5c2   : > { %v4060_v38 = vadd.f32 %v10543_v12, %v14614_v27  ;;  %v10546_v32 = vadd.f32 %v10545_v46, %v10544_v6  ;;  %v11739_v52 = vpop.eup %11738 }
 0x5c3   : > { %4476 = vrot.lane.b32.xlu1 %v11739_v52, %s12506_s23 }
 0x5c4   : > { %v14723_v1 = vadd.f32 %v4060_v38, %v14655_v17  ;;  %v4063_v3 = vadd.f32 %v10546_v32, %v14618_v25 }
 0x5c6   : > { %11744 = vtanh.f32 %v14723_v1  ;;  %v14729_v48 = vadd.f32 %v4063_v3, %v14655_v17  ;;  %v10547_v29 = vpop.f32.mrb[188].mxu0 }
 0x5c7   : > { %v10548_v50 = vpop.f32.mrb[189].mxu0 }
 0x5c8   : > { %v11741_v56 = vpop.eup %11740  ;;  %v10549_v0 = vadd.f32 %v10548_v50, %v10547_v29  ;;  %v10550_v37 = vpop.f32.mrb[190].mxu0  ;;  %11746 = vtanh.f32 %v14729_v48 }
 0x5c9   : > { %v10551_v27 = vpop.f32.mrb[191].mxu0  ;;  %4478 = vrot.lane.b32.xlu0 %v11741_v56, %s12506_s23 }
 0x5ca   : > { %v4068_v28 = vadd.f32 %v14612_v40, %v10549_v0  ;;  %v10552_v25 = vadd.f32 %v10551_v27, %v10550_v37  ;;  %v11743_v12 = vpop.eup %11742 }
 0x5cb   : > { %4480 = vrot.lane.b32.xlu1 %v11743_v12, %s12506_s23 }
 0x5cc   : > { %v14735_v6 = vadd.f32 %v4068_v28, %v14655_v17  ;;  %v4071_v46 = vadd.f32 %v14616_v58, %v10552_v25 }
 0x5ce   : > { %11748 = vtanh.f32 %v14735_v6  ;;  %v14741_v38 = vadd.f32 %v4071_v46, %v14655_v17  ;;  %v10553_v32 = vpop.f32.mrb[192].mxu0 }
 0x5cf   : > { %v10554_v52 = vpop.f32.mrb[193].mxu0 }
 0x5d0   : > { %v11745_v3 = vpop.eup %11744  ;;  %v10555_v29 = vadd.f32 %v10554_v52, %v10553_v32  ;;  %v10556_v50 = vpop.f32.mrb[194].mxu0  ;;  %11750 = vtanh.f32 %v14741_v38 }
 0x5d1   : > { %v10557_v40 = vpop.f32.mrb[195].mxu0  ;;  %4482 = vrot.lane.b32.xlu0 %v11745_v3, %s12506_s23 }
 0x5d2   : > { %v4076_v56 = vadd.f32 %v10555_v29, %v14622_v39  ;;  %v10558_v58 = vadd.f32 %v10557_v40, %v10556_v50  ;;  %v11747_v0 = vpop.eup %11746 }
 0x5d3   : > { %4484 = vrot.lane.b32.xlu1 %v11747_v0, %s12506_s23 }
 0x5d4   : > { %v14747_v37 = vadd.f32 %v4076_v56, %v14655_v17  ;;  %v4079_v27 = vadd.f32 %v10558_v58, %v14626_v34 }
 0x5d6   : > { %11752 = vtanh.f32 %v14747_v37  ;;  %v14753_v28 = vadd.f32 %v4079_v27, %v14655_v17  ;;  %v10559_v25 = vpop.f32.mrb[196].mxu0 }
 0x5d7   : > { %v10560_v12 = vpop.f32.mrb[197].mxu0 }
 0x5d8   : > { %v11749_v46 = vpop.eup %11748  ;;  %v10561_v32 = vadd.f32 %v10560_v12, %v10559_v25  ;;  %v10562_v52 = vpop.f32.mrb[198].mxu0  ;;  %11754 = vtanh.f32 %v14753_v28 }
 0x5d9   : > { %v10563_v39 = vpop.f32.mrb[199].mxu0  ;;  %4486 = vrot.lane.b32.xlu0 %v11749_v46, %s12506_s23 }
 0x5da   : > { %v4084_v3 = vadd.f32 %v14620_v59, %v10561_v32  ;;  %v10564_v34 = vadd.f32 %v10563_v39, %v10562_v52  ;;  %v11751_v29 = vpop.eup %11750 }
 0x5db   : > { %4488 = vrot.lane.b32.xlu1 %v11751_v29, %s12506_s23 }
 0x5dc   : > { %v14759_v50 = vadd.f32 %v4084_v3, %v14655_v17  ;;  %v4087_v40 = vadd.f32 %v14624_v44, %v10564_v34 }
 0x5de   : > { %11756 = vtanh.f32 %v14759_v50  ;;  %v14765_v56 = vadd.f32 %v4087_v40, %v14655_v17  ;;  %v10565_v58 = vpop.f32.mrb[200].mxu0 }
 0x5df   : > { %v10566_v0 = vpop.f32.mrb[201].mxu0 }
 0x5e0   : > { %v11753_v27 = vpop.eup %11752  ;;  %v10567_v25 = vadd.f32 %v10566_v0, %v10565_v58  ;;  %v10568_v12 = vpop.f32.mrb[202].mxu0  ;;  %11758 = vtanh.f32 %v14765_v56 }
 0x5e1   : > { %v10569_v59 = vpop.f32.mrb[203].mxu0  ;;  %4490 = vrot.lane.b32.xlu0 %v11753_v27, %s12506_s23 }
 0x5e2   : > { %v4092_v46 = vadd.f32 %v10567_v25, %v14630_v23  ;;  %v10570_v44 = vadd.f32 %v10569_v59, %v10568_v12  ;;  %v11755_v32 = vpop.eup %11754 }
 0x5e3   : > { %4492 = vrot.lane.b32.xlu1 %v11755_v32, %s12506_s23 }
 0x5e4   : > { %v14771_v52 = vadd.f32 %v4092_v46, %v14655_v17  ;;  %v4095_v39 = vadd.f32 %v10570_v44, %v14634_v7 }
 0x5e6   : > { %11760 = vtanh.f32 %v14771_v52  ;;  %v14777_v3 = vadd.f32 %v4095_v39, %v14655_v17  ;;  %v10571_v34 = vpop.f32.mrb[204].mxu0 }
 0x5e7   : > { %v10572_v29 = vpop.f32.mrb[205].mxu0 }
 0x5e8   : > { %v11757_v40 = vpop.eup %11756  ;;  %v10573_v58 = vadd.f32 %v10572_v29, %v10571_v34  ;;  %v10574_v0 = vpop.f32.mrb[206].mxu0  ;;  %11762 = vtanh.f32 %v14777_v3 }
 0x5e9   : > { %v10575_v23 = vpop.f32.mrb[207].mxu0  ;;  %4494 = vrot.lane.b32.xlu0 %v11757_v40, %s12506_s23 }
 0x5ea   : > { %v4100_v27 = vadd.f32 %v14628_v60, %v10573_v58  ;;  %v10576_v7 = vadd.f32 %v10575_v23, %v10574_v0  ;;  %v11759_v25 = vpop.eup %11758  ;;  %v9835_v60 = vmul.f32 -1.442695, %v14658_v18 }
 0x5eb   : > { %4496 = vrot.lane.b32.xlu1 %v11759_v25, %s12506_s23  ;;  %v9836_v25 = vmul.f32 -1.442695, %v14662_v45 }
 0x5ec   : > { %v14783_v12 = vadd.f32 %v4100_v27, %v14655_v17  ;;  %v4103_v59 = vadd.f32 %v14632_v19, %v10576_v7 }
 0x5ee   : > { %11764 = vtanh.f32 %v14783_v12  ;;  %v14789_v46 = vadd.f32 %v4103_v59, %v14655_v17  ;;  %v10577_v44 = vpop.f32.mrb[208].mxu0 }
 0x5ef   : > { %v10578_v32 = vpop.f32.mrb[209].mxu0 }
 0x5f0   : > { %v11761_v39 = vpop.eup %11760  ;;  %v10579_v34 = vadd.f32 %v10578_v32, %v10577_v44  ;;  %v10580_v29 = vpop.f32.mrb[210].mxu0  ;;  %11766 = vtanh.f32 %v14789_v46 }
 0x5f1   : > { %v10581_v40 = vpop.f32.mrb[211].mxu0  ;;  %4498 = vrot.lane.b32.xlu0 %v11761_v39, %s12506_s23  ;;  %11768 = vpow2.f32 %v9835_v60  ;;  %v9837_v39 = vmul.f32 -1.442695, %v14666_v20 }
 0x5f2   : > { %v4108_v19 = vadd.f32 %v10579_v34, %v14638_v9  ;;  %v10582_v58 = vadd.f32 %v10581_v40, %v10580_v29  ;;  %v11763_v0 = vpop.eup %11762 }
 0x5f3   : > { %4500 = vrot.lane.b32.xlu1 %v11763_v0, %s12506_s23 }
 0x5f4   : > { %v14796_v23 = vadd.f32 %v4108_v19, %v14655_v17  ;;  %v4111_v27 = vadd.f32 %v10582_v58, %v14642_v61 }
 0x5f6   : > { %11770 = vtanh.f32 %v14796_v23  ;;  %v14802_v18 = vadd.f32 %v4111_v27, %v14655_v17  ;;  %v10583_v7 = vpop.f32.mrb[212].mxu0 }
 0x5f7   : > { %v10584_v59 = vpop.f32.mrb[213].mxu0 }
 0x5f8   : > { %v11765_v9 = vpop.eup %11764  ;;  %v10585_v44 = vadd.f32 %v10584_v59, %v10583_v7  ;;  %v10586_v32 = vpop.f32.mrb[214].mxu0  ;;  %11772 = vtanh.f32 %v14802_v18 }
 0x5f9   : > { %v10587_v61 = vpop.f32.mrb[215].mxu0  ;;  %4502 = vrot.lane.b32.xlu0 %v11765_v9, %s12506_s23  ;;  %11774 = vpow2.f32 %v9836_v25 }
 0x5fa   : > { %v4116_v34 = vadd.f32 %v14636_v2, %v10585_v44  ;;  %v10588_v29 = vadd.f32 %v10587_v61, %v10586_v32  ;;  %v11767_v60 = vpop.eup %11766  ;;  %11776 = vpow2.f32 %v9837_v39  ;;  %v9838_v2 = vmul.f32 -1.442695, %v14670_v57 }
 0x5fb   : > { %4504 = vrot.lane.b32.xlu1 %v11767_v60, %s12506_s23  ;;  %v11769_v58 = vpop.eup %11768  ;;  %v9839_v39 = vmul.f32 -1.442695, %v14675_v42 }
 0x5fc   : > { %v14810_v40 = vadd.f32 %v4116_v34, %v14655_v17  ;;  %v4119_v45 = vadd.f32 %v14640_v8, %v10588_v29  ;;  %v4266_v32 = vadd.f32 1.0, %v11769_v58 }
 0x5fe   : > { %11778 = vtanh.f32 %v14810_v40  ;;  %v14816_v20 = vadd.f32 %v4119_v45, %v14655_v17  ;;  %v10589_v19 = vpop.f32.mrb[216].mxu0  ;;  %v9840_v45 = vmul.f32 -1.442695, %v14681_v36  ;;  %v9841_v36 = vmul.f32 -1.442695, %v14687_v49 }
 0x5ff   : > { %v10590_v0 = vpop.f32.mrb[217].mxu0 }
 0x600   : > { %v11771_v27 = vpop.eup %11770  ;;  %v10591_v7 = vadd.f32 %v10590_v0, %v10589_v19  ;;  %v10592_v25 = vpop.f32.mrb[218].mxu0  ;;  %11780 = vtanh.f32 %v14816_v20 }
 0x601   : > { %v10593_v59 = vpop.f32.mrb[219].mxu0  ;;  %4506 = vrot.lane.b32.xlu0 %v11771_v27, %s12506_s23  ;;  %11782 = vpow2.f32 %v9838_v2 }
 0x602   : > { %v4124_v8 = vadd.f32 %v10591_v7, %v14646_v35  ;;  %v10594_v9 = vadd.f32 %v10593_v59, %v10592_v25  ;;  %v11773_v44 = vpop.eup %11772 }
 0x603   : > { %4508 = vrot.lane.b32.xlu1 %v11773_v44, %s12506_s23  ;;  %v11775_v34 = vpop.eup %11774 }
 0x604   : > { %v14824_v61 = vadd.f32 %v4124_v8, %v14655_v17  ;;  %v4127_v57 = vadd.f32 %v10594_v9, %v14650_v24  ;;  %v11777_v60 = vpop.eup %11776  ;;  %v4267_v58 = vadd.f32 1.0, %v11775_v34 }
 0x605   : > { %v4268_v59 = vadd.f32 1.0, %v11777_v60 }
 0x606   : > { %11784 = vtanh.f32 %v14824_v61  ;;  %v14830_v29 = vadd.f32 %v4127_v57, %v14655_v17  ;;  %v10595_v35 = vpop.f32.mrb[220].mxu0 }
 0x607   : > { %11786 = vrcp.f32 %v4266_v32  ;;  %v10596_v19 = vpop.f32.mrb[221].mxu0 }
 0x608   : > { %v11779_v42 = vpop.eup %11778  ;;  %11788 = vpow2.f32 %v9839_v39  ;;  %v10597_v2 = vadd.f32 %v10596_v19, %v10595_v35  ;;  %v10598_v0 = vpop.f32.mrb[222].mxu0 }
 0x609   : > { %11790 = vtanh.f32 %v14830_v29  ;;  %v10599_v24 = vpop.f32.mrb[223].mxu0  ;;  %4510 = vrot.lane.b32.xlu0 %v11779_v42, %s12506_s23 }
 0x60a   : > { %v4132_v27 = vadd.f32 %v14644_v10, %v10597_v2  ;;  %v10600_v7 = vadd.f32 %v10599_v24, %v10598_v0  ;;  %v11781_v25 = vpop.eup %11780  ;;  %11792 = vpow2.f32 %v9840_v45  ;;  %v9842_v10 = vmul.f32 -1.442695, %v14693_v5 }
 0x60b   : > { %11794 = vrcp.f32 %v4267_v58  ;;  %4512 = vrot.lane.b32.xlu1 %v11781_v25, %s12506_s23  ;;  %v11783_v44 = vpop.eup %11782  ;;  %v9844_v58 = vmul.f32 -1.442695, %v14705_v11 }
 0x60c   : > { %v14838_v8 = vadd.f32 %v4132_v27, %v14655_v17  ;;  %v4135_v9 = vadd.f32 %v14648_v26, %v10600_v7  ;;  %v4269_v57 = vadd.f32 1.0, %v11783_v44 }
 0x60e   : > { %11796 = vtanh.f32 %v14838_v8  ;;  %v14844_v32 = vadd.f32 %v4135_v9, %v14655_v17  ;;  %v9843_v17 = vmul.f32 -1.442695, %v14699_v22 }
 0x60f   : > { %11798 = vrcp.f32 %v4268_v59  ;;  %v9845_v59 = vmul.f32 -1.442695, %v14711_v51 }
 0x610   : > { %v11785_v39 = vpop.eup %11784  ;;  %11800 = vpow2.f32 %v9841_v36 }
 0x611   : > { %v14847_v49 = vpop.eup %11786  ;;  %11802 = vtanh.f32 %v14844_v32  ;;  %4514 = vrot.lane.b32.xlu0 %v11785_v39, %s12506_s23  ;;  %v9846_v39 = vmul.f32 -1.442695, %v14717_v41 }
 0x612   : > { %v11789_v26 = vpop.eup %11788  ;;  %11804 = vpow2.f32 %v9842_v10 }
 0x613   : > { %v11791_v34 = vpop.eup %11790  ;;  %v4459_v35 = vpop.permute.xlu0 %4458  ;;  %11806 = vrcp.f32 %v4269_v57  ;;  %v4270_v45 = vadd.f32 1.0, %v11789_v26 }
 0x614   : > { %4516 = vrot.lane.b32.xlu1 %v11791_v34, %s12506_s23  ;;  %v4554_v5 = vmul.f32 %v14847_v49, %v4459_v35  ;;  %v11793_v60 = vpop.eup %11792  ;;  %11808 = vpow2.f32 %v9843_v17  ;;  %v9847_v17 = vmul.f32 -1.442695, %v14723_v1 }
 0x615   : > { %v14854_v19 = vpop.eup %11794  ;;  %v4461_v42 = vpop.permute.xlu1 %4460  ;;  %v4271_v24 = vadd.f32 1.0, %v11793_v60  ;;  %11810 = vrcp.f32 %v4270_v45 }
 0x616   : > { %4618 = vrot.lane.b32.xlu0 %v4554_v5, %s12505_s21  ;;  %v4555_v2 = vmul.f32 %v14854_v19, %v4461_v42  ;;  %11812 = vpow2.f32 %v9844_v58  ;;  %v9848_v58 = vmul.f32 -1.442695, %v14729_v48 }
 0x617   : > { %11814 = vrcp.f32 %v4271_v24 }
 0x618   : > { %v11797_v0 = vpop.eup %11796  ;;  %4620 = vrot.lane.b32.xlu1 %v4555_v2, %s12505_s21  ;;  %11816 = vpow2.f32 %v9845_v59 }
 0x619   : > { %v14859_v27 = vpop.eup %11798 }
 0x61a   : > { %v11801_v22 = vpop.eup %11800  ;;  %4518 = vrot.lane.b32.xlu0 %v11797_v0, %s12506_s23 }
 0x61b   : > { %v11803_v7 = vpop.eup %11802  ;;  %v4463_v25 = vpop.permute.xlu0 %4462  ;;  %v4272_v9 = vadd.f32 1.0, %v11801_v22 }
 0x61c   : > { %v4556_v11 = vmul.f32 %v14859_v27, %v4463_v25  ;;  %v11805_v36 = vpop.eup %11804  ;;  %4520 = vrot.lane.b32.xlu1 %v11803_v7, %s12506_s23  ;;  %v9849_v7 = vmul.f32 -1.442695, %v14735_v6 }
 0x61d   : > { %v14866_v44 = vpop.eup %11806  ;;  %v4465_v10 = vpop.permute.xlu1 %4464  ;;  %v4273_v26 = vadd.f32 1.0, %v11805_v36  ;;  %11818 = vrcp.f32 %v4272_v9  ;;  %v9850_v9 = vmul.f32 -1.442695, %v14741_v38 }
 0x61e   : > { %4622 = vrot.lane.b32.xlu0 %v4556_v11, %s12505_s21  ;;  %v4557_v57 = vmul.f32 %v14866_v44, %v4465_v10  ;;  %v11809_v51 = vpop.eup %11808  ;;  %11820 = vpow2.f32 %v9846_v39 }
 0x61f   : > { %v14872_v34 = vpop.eup %11810  ;;  %11822 = vrcp.f32 %v4273_v26  ;;  %v4274_v45 = vadd.f32 1.0, %v11809_v51  ;;  %v9851_v51 = vmul.f32 -1.442695, %v14747_v37 }
 0x620   : > { %4624 = vrot.lane.b32.xlu1 %v4557_v57, %s12505_s21  ;;  %v11813_v60 = vpop.eup %11812  ;;  %11824 = vpow2.f32 %v9847_v17 }
 0x621   : > { %v14876_v41 = vpop.eup %11814  ;;  %v4275_v0 = vadd.f32 1.0, %v11813_v60  ;;  %11826 = vrcp.f32 %v4274_v45  ;;  %v9852_v45 = vmul.f32 -1.442695, %v14753_v28 }
 0x622   : > { %v11817_v24 = vpop.eup %11816  ;;  %11828 = vpow2.f32 %v9848_v58 }
 0x623   : > { %v4467_v35 = vpop.permute.xlu0 %4466  ;;  %11830 = vrcp.f32 %v4275_v0  ;;  %v4276_v11 = vadd.f32 1.0, %v11817_v24  ;;  %v9853_v24 = vmul.f32 -1.442695, %v14759_v50 }
 0x624   : > { %v4558_v5 = vmul.f32 %v14872_v34, %v4467_v35  ;;  %11832 = vpow2.f32 %v9849_v7 }
 0x625   : > { %v4469_v42 = vpop.permute.xlu1 %4468  ;;  %11834 = vrcp.f32 %v4276_v11  ;;  %v9854_v11 = vmul.f32 -1.442695, %v14765_v56 }
 0x626   : > { %4626 = vrot.lane.b32.xlu0 %v4558_v5, %s12505_s21  ;;  %v4559_v2 = vmul.f32 %v14876_v41, %v4469_v42  ;;  %11836 = vpow2.f32 %v9850_v9 }
 0x627   : > { %v14882_v1 = vpop.eup %11818 }
 0x628   : > { %4628 = vrot.lane.b32.xlu1 %v4559_v2, %s12505_s21  ;;  %v11821_v59 = vpop.eup %11820 }
 0x629   : > { %v14886_v48 = vpop.eup %11822  ;;  %v4277_v39 = vadd.f32 1.0, %v11821_v59 }
 0x62a   : > { %v11825_v57 = vpop.eup %11824 }
 0x62b   : > { %v4471_v22 = vpop.permute.xlu0 %4470  ;;  %v14892_v6 = vpop.eup %11826  ;;  %11838 = vrcp.f32 %v4277_v39  ;;  %v4278_v5 = vadd.f32 1.0, %v11825_v57  ;;  %v9855_v57 = vmul.f32 -1.442695, %v14771_v52 }
 0x62c   : > { %v4560_v25 = vmul.f32 %v14882_v1, %v4471_v22  ;;  %v11829_v17 = vpop.eup %11828  ;;  %11840 = vpow2.f32 %v9851_v51 }
 0x62d   : > { %v4473_v36 = vpop.permute.xlu1 %4472  ;;  %v14896_v38 = vpop.eup %11830  ;;  %v4279_v58 = vadd.f32 1.0, %v11829_v17  ;;  %11842 = vrcp.f32 %v4278_v5  ;;  %v9856_v5 = vmul.f32 -1.442695, %v14777_v3 }
 0x62e   : > { %4630 = vrot.lane.b32.xlu0 %v4560_v25, %s12505_s21  ;;  %v4561_v10 = vmul.f32 %v14886_v48, %v4473_v36  ;;  %v11833_v2 = vpop.eup %11832  ;;  %11844 = vpow2.f32 %v9852_v45 }
 0x62f   : > { %v14902_v37 = vpop.eup %11834  ;;  %11846 = vrcp.f32 %v4279_v58  ;;  %v4280_v25 = vadd.f32 1.0, %v11833_v2  ;;  %v9857_v2 = vmul.f32 -1.442695, %v14783_v12 }
 0x630   : > { %4632 = vrot.lane.b32.xlu1 %v4561_v10, %s12505_s21  ;;  %v11837_v7 = vpop.eup %11836  ;;  %11848 = vpow2.f32 %v9853_v24 }
 0x631   : > { %v4281_v9 = vadd.f32 1.0, %v11837_v7  ;;  %11850 = vrcp.f32 %v4280_v25  ;;  %v9858_v25 = vmul.f32 -1.442695, %v14789_v46 }
 0x632   : > { %11852 = vpow2.f32 %v9854_v11 }
 0x633   : > { %v4475_v26 = vpop.permute.xlu0 %4474  ;;  %11854 = vrcp.f32 %v4281_v9 }
 0x634   : > { %v4562_v35 = vmul.f32 %v14892_v6, %v4475_v26  ;;  %11856 = vpow2.f32 %v9855_v57 }
 0x635   : > { %v4477_v60 = vpop.permute.xlu1 %4476  ;;  %v14906_v28 = vpop.eup %11838 }
 0x636   : > { %4634 = vrot.lane.b32.xlu0 %v4562_v35, %s12505_s21  ;;  %v4563_v42 = vmul.f32 %v14896_v38, %v4477_v60  ;;  %v11841_v10 = vpop.eup %11840 }
 0x637   : > { %v14912_v50 = vpop.eup %11842  ;;  %v4282_v35 = vadd.f32 1.0, %v11841_v10  ;;  %v9859_v10 = vmul.f32 -1.442695, %v14796_v23 }
 0x638   : > { %4636 = vrot.lane.b32.xlu1 %v4563_v42, %s12505_s21  ;;  %v11845_v51 = vpop.eup %11844 }
 0x639   : > { %v14916_v56 = vpop.eup %11846  ;;  %v4283_v45 = vadd.f32 1.0, %v11845_v51  ;;  %11858 = vrcp.f32 %v4282_v35  ;;  %v9860_v35 = vmul.f32 -1.442695, %v14802_v18 }
 0x63a   : > { %v11849_v42 = vpop.eup %11848  ;;  %11860 = vpow2.f32 %v9856_v5 }
 0x63b   : > { %v4479_v0 = vpop.permute.xlu0 %4478  ;;  %v14922_v52 = vpop.eup %11850  ;;  %11862 = vrcp.f32 %v4283_v45  ;;  %v9861_v45 = vmul.f32 -1.442695, %v14810_v40 }
 0x63c   : > { %v4564_v22 = vmul.f32 %v14902_v37, %v4479_v0  ;;  %v11853_v24 = vpop.eup %11852  ;;  %11864 = vpow2.f32 %v9857_v2 }
 0x63d   : > { %v4481_v59 = vpop.permute.xlu1 %4480  ;;  %v14926_v3 = vpop.eup %11854  ;;  %v4285_v11 = vadd.f32 1.0, %v11853_v24  ;;  %v9862_v24 = vmul.f32 -1.442695, %v14816_v20 }
 0x63e   : > { %4638 = vrot.lane.b32.xlu0 %v4564_v22, %s12505_s21  ;;  %v4565_v36 = vmul.f32 %v14906_v28, %v4481_v59  ;;  %v4284_v22 = vadd.f32 1.0, %v11849_v42 }
 0x640   : > { %4640 = vrot.lane.b32.xlu1 %v4565_v36, %s12505_s21  ;;  %11866 = vrcp.f32 %v4284_v22  ;;  %v11857_v36 = vpop.eup %11856 }
 0x641   : > { %11868 = vpow2.f32 %v9858_v25 }
 0x642   : > { %11870 = vrcp.f32 %v4285_v11 }
 0x643   : > { %v4483_v39 = vpop.permute.xlu0 %4482  ;;  %v14932_v12 = vpop.eup %11858  ;;  %11872 = vpow2.f32 %v9859_v10 }
 0x644   : > { %v4566_v26 = vmul.f32 %v14912_v50, %v4483_v39  ;;  %v11861_v57 = vpop.eup %11860 }
 0x645   : > { %v4485_v17 = vpop.permute.xlu1 %4484  ;;  %v14936_v46 = vpop.eup %11862  ;;  %v4287_v5 = vadd.f32 1.0, %v11861_v57 }
 0x646   : > { %4642 = vrot.lane.b32.xlu0 %v4566_v26, %s12505_s21  ;;  %v4567_v60 = vmul.f32 %v14916_v56, %v4485_v17  ;;  %v4286_v26 = vadd.f32 1.0, %v11857_v36  ;;  %v9863_v36 = vmul.f32 -1.442695, %v14824_v61 }
 0x648   : > { %4644 = vrot.lane.b32.xlu1 %v4567_v60, %s12505_s21  ;;  %11874 = vrcp.f32 %v4286_v26  ;;  %v11865_v60 = vpop.eup %11864  ;;  %v9864_v26 = vmul.f32 -1.442695, %v14830_v29 }
 0x649   : > { %11876 = vpow2.f32 %v9860_v35 }
 0x64a   : > { %v14942_v23 = vpop.eup %11866  ;;  %11878 = vrcp.f32 %v4287_v5 }
 0x64b   : > { %v4487_v58 = vpop.permute.xlu0 %4486  ;;  %v11869_v2 = vpop.eup %11868  ;;  %11880 = vpow2.f32 %v9861_v45 }
 0x64c   : > { %v4568_v0 = vmul.f32 %v14922_v52, %v4487_v58  ;;  %v14946_v18 = vpop.eup %11870  ;;  %v4289_v25 = vadd.f32 1.0, %v11869_v2 }
 0x64d   : > { %v4489_v7 = vpop.permute.xlu1 %4488  ;;  %v11873_v40 = vpop.eup %11872 }
 0x64e   : > { %4646 = vrot.lane.b32.xlu0 %v4568_v0, %s12505_s21  ;;  %v4569_v59 = vmul.f32 %v14926_v3, %v4489_v7  ;;  %v4288_v0 = vadd.f32 1.0, %v11865_v60  ;;  %v4290_v10 = vadd.f32 1.0, %v11873_v40 }
 0x650   : > { %4648 = vrot.lane.b32.xlu1 %v4569_v59, %s12505_s21  ;;  %11882 = vrcp.f32 %v4288_v0 }
 0x651   : > { %11884 = vpow2.f32 %v9862_v24 }
 0x652   : > { %v14952_v59 = vpop.eup %11874  ;;  %11886 = vrcp.f32 %v4289_v25 }
 0x653   : > { %v4491_v9 = vpop.permute.xlu0 %4490  ;;  %11888 = vpow2.f32 %v9863_v36 }
 0x654   : > { %v4570_v39 = vmul.f32 %v14932_v12, %v4491_v9  ;;  %v11877_v9 = vpop.eup %11876  ;;  %11890 = vrcp.f32 %v4290_v10 }
 0x655   : > { %v4493_v51 = vpop.permute.xlu1 %4492  ;;  %v4291_v35 = vadd.f32 1.0, %v11877_v9  ;;  %11892 = vpow2.f32 %v9864_v26 }
 0x656   : > { %4650 = vrot.lane.b32.xlu0 %v4570_v39, %s12505_s21  ;;  %v4571_v17 = vmul.f32 %v14936_v46, %v4493_v51  ;;  %v14956_v39 = vpop.eup %11878 }
 0x657   : > { %11894 = vrcp.f32 %v4291_v35 }
 0x658   : > { %4652 = vrot.lane.b32.xlu1 %v4571_v17, %s12505_s21  ;;  %v11881_v17 = vpop.eup %11880 }
 0x659   : > { %v4292_v45 = vadd.f32 1.0, %v11881_v17 }
 0x65a   : > { %v14962_v61 = vpop.eup %11882 }
 0x65b   : > { %v4495_v42 = vpop.permute.xlu0 %4494  ;;  %v11885_v60 = vpop.eup %11884  ;;  %11896 = vrcp.f32 %v4292_v45 }
 0x65c   : > { %v4572_v58 = vmul.f32 %v14942_v23, %v4495_v42  ;;  %v14966_v29 = vpop.eup %11886  ;;  %v4293_v0 = vadd.f32 1.0, %v11885_v60 }
 0x65d   : > { %v4497_v22 = vpop.permute.xlu1 %4496 }
 0x65e   : > { %4654 = vrot.lane.b32.xlu0 %v4572_v58, %s12505_s21  ;;  %v4573_v7 = vmul.f32 %v14946_v18, %v4497_v22  ;;  %v9865_v58 = vmul.f32 -1.442695, %v14838_v8  ;;  %v9866_v22 = vmul.f32 -1.442695, %v14844_v32 }
 0x660   : > { %4656 = vrot.lane.b32.xlu1 %v4573_v7, %s12505_s21  ;;  %11898 = vpow2.f32 %v9865_v58  ;;  %v11889_v7 = vpop.eup %11888 }
 0x661   : > { %v14972_v25 = vpop.eup %11890  ;;  %11900 = vrcp.f32 %v4293_v0  ;;  %v4294_v36 = vadd.f32 1.0, %v11889_v7 }
 0x662   : > { %11902 = vpow2.f32 %v9866_v22 }
 0x663   : > { %v4499_v11 = vpop.permute.xlu0 %4498  ;;  %11904 = vrcp.f32 %v4294_v36 }
 0x664   : > { %v4574_v20 = vmul.f32 %v14952_v59, %v4499_v11  ;;  %v11893_v11 = vpop.eup %11892 }
 0x665   : > { %v4501_v57 = vpop.permute.xlu1 %4500  ;;  %v4295_v10 = vadd.f32 1.0, %v11893_v11 }
 0x666   : > { %4658 = vrot.lane.b32.xlu0 %v4574_v20, %s12505_s21  ;;  %v4575_v51 = vmul.f32 %v14956_v39, %v4501_v57  ;;  %v14975_v20 = vpop.eup %11894 }
 0x667   : > { %v14980_v57 = vpop.eup %11896  ;;  %11906 = vrcp.f32 %v4295_v10 }
 0x668   : > { %4660 = vrot.lane.b32.xlu1 %v4575_v51, %s12505_s21 }
 0x66a   : > { %v11899_v26 = vpop.eup %11898 }
 0x66b   : > { %v4503_v5 = vpop.permute.xlu0 %4502  ;;  %v14983_v17 = vpop.eup %11900  ;;  %v4296_v60 = vadd.f32 1.0, %v11899_v26 }
 0x66c   : > { %v4576_v42 = vmul.f32 %v14962_v61, %v4503_v5  ;;  %v11903_v5 = vpop.eup %11902 }
 0x66d   : > { %v4505_v2 = vpop.permute.xlu1 %4504  ;;  %v4297_v58 = vadd.f32 1.0, %v11903_v5  ;;  %11908 = vrcp.f32 %v4296_v60 }
 0x66e   : > { %4662 = vrot.lane.b32.xlu0 %v4576_v42, %s12505_s21  ;;  %v4577_v24 = vmul.f32 %v14966_v29, %v4505_v2  ;;  %v14988_v2 = vpop.eup %11904 }
 0x66f   : > { %11910 = vrcp.f32 %v4297_v58 }
 0x670   : > { %4664 = vrot.lane.b32.xlu1 %v4577_v24, %s12505_s21 }
 0x671   : > { %v14991_v22 = vpop.eup %11906 }
 0x673   : > { %v4507_v40 = vpop.permute.xlu0 %4506 }
 0x674   : > { %v4578_v8 = vmul.f32 %v14972_v25, %v4507_v40 }
 0x675   : > { %v4509_v9 = vpop.permute.xlu1 %4508 }
 0x676   : > { %4666 = vrot.lane.b32.xlu0 %v4578_v8, %s12505_s21  ;;  %v4579_v32 = vmul.f32 %v14975_v20, %v4509_v9  ;;  %v17339_v8 = vld [vmem:[#allocation107_spill] sm:$0xff] }
 0x677   : > { %v4394_v11 = vmul.f32 %v14847_v49, %v17339_v8  ;;  %v15003_v26 = vpop.eup %11908 }
 0x678   : > { %4668 = vrot.lane.b32.xlu1 %v4579_v32, %s12505_s21  ;;  %v4395_v32 = vmul.f32 %v14854_v19, %v14209_v13  ;;  %v4396_v13 = vmul.f32 %v14859_v27, %v14219_v16  ;;  %v4398_v16 = vmul.f32 %v14872_v34, %v14231_v54  ;;  %v4400_v54 = vmul.f32 %v14882_v1, %v14243_v53 }
 0x679   : > { %v15009_v60 = vpop.eup %11910  ;;  %v4402_v53 = vmul.f32 %v14892_v6, %v14256_v33  ;;  %v4404_v33 = vmul.f32 %v14902_v37, %v14268_v62  ;;  %v4406_v62 = vmul.f32 %v14912_v50, %v14280_v4  ;;  %v4408_v4 = vmul.f32 %v14922_v52, %v14292_v15  ;;  %v11388_v15 = vld [vmem:[%s17083_s5 + $0x20] sm:$0xff]  }
 0x67a   : > { %11045 = vmatprep.subr.bf16.mxu0 %v11388_v15 }
 0x67b   : > { %v4511_v51 = vpop.permute.xlu0 %4510  ;;  %11046 = vmatpush3.bf16.msra.mxu0 %v11388_v15 }
 0x67c   : > { %v4580_v35 = vmul.f32 %v14980_v57, %v4511_v51 }
 0x67d   : > { %v4513_v45 = vpop.permute.xlu1 %4512 }
 0x67e   : > { %4670 = vrot.lane.b32.xlu0 %v4580_v35, %s12505_s21  ;;  %v4581_v42 = vmul.f32 %v14983_v17, %v4513_v45 }
 0x680   : > { %4672 = vrot.lane.b32.xlu1 %v4581_v42, %s12505_s21 }
 0x683   : > { %v4515_v0 = vpop.permute.xlu0 %4514 }
 0x684   : > { %v4582_v24 = vmul.f32 %v14988_v2, %v4515_v0 }
 0x686   : > { %v4517_v7 = vpop.permute.xlu1 %4516  ;;  %4674 = vrot.lane.b32.xlu0 %v4582_v24, %s12505_s21  ;;  %v4397_v24 = vmul.f32 %v14866_v44, %v14225_v55  ;;  %v4399_v55 = vmul.f32 %v14876_v41, %v14237_v47  ;;  %v4401_v47 = vmul.f32 %v14886_v48, %v14249_v63  ;;  %v4403_v63 = vmul.f32 %v14896_v38, %v14261_v31 }
 0x687   : > { %v4583_v40 = vmul.f32 %v14991_v22, %v4517_v7  ;;  %v4405_v31 = vmul.f32 %v14906_v28, %v14273_v21  ;;  %v4407_v21 = vmul.f32 %v14916_v56, %v14285_v14  ;;  %v4409_v14 = vmul.f32 %v14926_v3, %v14297_v43 }
 0x688   : > { %v4619_v36 = vpop.permute.xlu0 %4618 }
 0x689   : > { %4676 = vrot.lane.b32.xlu1 %v4583_v40, %s12505_s21  ;;  %v14998_v9 = vadd.f32 %v4619_v36, %v4394_v11 }
 0x68a   : > { %v4621_v10 = vpop.permute.xlu1 %4620 }
 0x68b   : > { %11912 = vtanh.f32 %v14998_v9  ;;  %v15005_v51 = vadd.f32 %v4621_v10, %v4395_v32 }
 0x68c   : > { %v4519_v35 = vpop.permute.xlu0 %4518 }
 0x68d   : > { %v4584_v5 = vmul.f32 %v15003_v26, %v4519_v35  ;;  %11914 = vtanh.f32 %v15005_v51 }
 0x68e   : > { %v4521_v45 = vpop.permute.xlu1 %4520 }
 0x68f   : > { %4678 = vrot.lane.b32.xlu0 %v4584_v5, %s12505_s21  ;;  %v4585_v42 = vmul.f32 %v15009_v60, %v4521_v45 }
 0x690   : > { %v4623_v58 = vpop.permute.xlu0 %4622 }
 0x691   : > { %v15015_v0 = vadd.f32 %v4623_v58, %v4396_v13  ;;  %4680 = vrot.lane.b32.xlu1 %v4585_v42, %s12505_s21 }
 0x692   : > { %v4625_v7 = vpop.permute.xlu1 %4624 }
 0x693   : > { %11916 = vtanh.f32 %v15015_v0  ;;  %v15021_v40 = vadd.f32 %v4625_v7, %v4397_v24 }
 0x695   : > { %v11913_v8 = vpop.eup %11912  ;;  %11918 = vtanh.f32 %v15021_v40 }
 0x696   : > { %4810 = vrot.lane.b32.xlu0 %v11913_v8, %s12506_s23 }
 0x697   : > { %v11915_v11 = vpop.eup %11914 }
 0x698   : > { %v4627_v36 = vpop.permute.xlu0 %4626  ;;  %4812 = vrot.lane.b32.xlu1 %v11915_v11, %s12506_s23 }
 0x699   : > { %v15028_v32 = vadd.f32 %v4627_v36, %v4398_v16 }
 0x69a   : > { %v4629_v10 = vpop.permute.xlu1 %4628 }
 0x69b   : > { %11920 = vtanh.f32 %v15028_v32  ;;  %v15033_v35 = vadd.f32 %v4629_v10, %v4399_v55 }
 0x69d   : > { %v11917_v5 = vpop.eup %11916  ;;  %11922 = vtanh.f32 %v15033_v35 }
 0x69e   : > { %4814 = vrot.lane.b32.xlu0 %v11917_v5, %s12506_s23 }
 0x69f   : > { %v11919_v45 = vpop.eup %11918 }
 0x6a0   : > { %v4631_v13 = vpop.permute.xlu0 %4630  ;;  %4816 = vrot.lane.b32.xlu1 %v11919_v45, %s12506_s23 }
 0x6a1   : > { %v15040_v42 = vadd.f32 %v4631_v13, %v4400_v54 }
 0x6a2   : > { %v4633_v58 = vpop.permute.xlu1 %4632 }
 0x6a3   : > { %11924 = vtanh.f32 %v15040_v42  ;;  %v15045_v24 = vadd.f32 %v4633_v58, %v4401_v47 }
 0x6a5   : > { %v11921_v7 = vpop.eup %11920  ;;  %11926 = vtanh.f32 %v15045_v24 }
 0x6a6   : > { %4818 = vrot.lane.b32.xlu0 %v11921_v7, %s12506_s23 }
 0x6a7   : > { %v11923_v8 = vpop.eup %11922 }
 0x6a8   : > { %v4635_v16 = vpop.permute.xlu0 %4634  ;;  %4820 = vrot.lane.b32.xlu1 %v11923_v8, %s12506_s23 }
 0x6a9   : > { %v15052_v11 = vadd.f32 %v4635_v16, %v4402_v53 }
 0x6aa   : > { %v4637_v36 = vpop.permute.xlu1 %4636 }
 0x6ab   : > { %11928 = vtanh.f32 %v15052_v11  ;;  %v15057_v55 = vadd.f32 %v4637_v36, %v4403_v63 }
 0x6ad   : > { %v11925_v10 = vpop.eup %11924  ;;  %11930 = vtanh.f32 %v15057_v55 }
 0x6ae   : > { %4822 = vrot.lane.b32.xlu0 %v11925_v10, %s12506_s23 }
 0x6af   : > { %v11927_v5 = vpop.eup %11926 }
 0x6b0   : > { %v4639_v54 = vpop.permute.xlu0 %4638  ;;  %4824 = vrot.lane.b32.xlu1 %v11927_v5, %s12506_s23 }
 0x6b1   : > { %v15064_v45 = vadd.f32 %v4639_v54, %v4404_v33 }
 0x6b2   : > { %v4641_v13 = vpop.permute.xlu1 %4640 }
 0x6b3   : > { %11932 = vtanh.f32 %v15064_v45  ;;  %v15069_v47 = vadd.f32 %v4641_v13, %v4405_v31 }
 0x6b5   : > { %v11929_v58 = vpop.eup %11928  ;;  %11934 = vtanh.f32 %v15069_v47 }
 0x6b6   : > { %4826 = vrot.lane.b32.xlu0 %v11929_v58, %s12506_s23  ;;  %v17340_v58 = vld [vmem:[#allocation108_spill] sm:$0xff] }
 0x6b7   : > { %v11931_v7 = vpop.eup %11930 }
 0x6b8   : > { %v4643_v53 = vpop.permute.xlu0 %4642  ;;  %4828 = vrot.lane.b32.xlu1 %v11931_v7, %s12506_s23 }
 0x6b9   : > { %v15076_v8 = vadd.f32 %v4643_v53, %v4406_v62  ;;  %v4410_v62 = vmul.f32 %v14932_v12, %v17340_v58  ;;  %v17345_v58 = vld [vmem:[#allocation100_spill] sm:$0xff] }
 0x6ba   : > { %v4645_v16 = vpop.permute.xlu1 %4644 }
 0x6bb   : > { %11936 = vtanh.f32 %v15076_v8  ;;  %v15081_v63 = vadd.f32 %v4645_v16, %v4407_v21  ;;  %v17341_v21 = vld [vmem:[#allocation109_spill] sm:$0xff] }
 0x6bc   : > { %v4411_v16 = vmul.f32 %v14936_v46, %v17341_v21 }
 0x6bd   : > { %v11933_v36 = vpop.eup %11932  ;;  %11938 = vtanh.f32 %v15081_v63 }
 0x6be   : > { %4830 = vrot.lane.b32.xlu0 %v11933_v36, %s12506_s23 }
 0x6bf   : > { %v11935_v10 = vpop.eup %11934 }
 0x6c0   : > { %v4647_v33 = vpop.permute.xlu0 %4646  ;;  %4832 = vrot.lane.b32.xlu1 %v11935_v10, %s12506_s23 }
 0x6c1   : > { %v15088_v5 = vadd.f32 %v4647_v33, %v4408_v4  ;;  %v17343_v33 = vld [vmem:[#allocation110_spill] sm:$0xff] }
 0x6c2   : > { %v4649_v54 = vpop.permute.xlu1 %4648 }
 0x6c3   : > { %11940 = vtanh.f32 %v15088_v5  ;;  %v15093_v31 = vadd.f32 %v4649_v54, %v4409_v14  ;;  %v4412_v14 = vmul.f32 %v14942_v23, %v17343_v33 }
 0x6c5   : > { %v11937_v13 = vpop.eup %11936  ;;  %11942 = vtanh.f32 %v15093_v31 }
 0x6c6   : > { %4834 = vrot.lane.b32.xlu0 %v11937_v13, %s12506_s23 }
 0x6c7   : > { %v11939_v7 = vpop.eup %11938 }
 0x6c8   : > { %v4651_v53 = vpop.permute.xlu0 %4650  ;;  %4836 = vrot.lane.b32.xlu1 %v11939_v7, %s12506_s23 }
 0x6c9   : > { %v15103_v43 = vadd.f32 %v4651_v53, %v4410_v62  ;;  %v4413_v62 = vmul.f32 %v14946_v18, %v17345_v58 }
 0x6ca   : > { %v4653_v36 = vpop.permute.xlu1 %4652 }
 0x6cb   : > { %11944 = vtanh.f32 %v15103_v43  ;;  %v15108_v4 = vadd.f32 %v4653_v36, %v4411_v16  ;;  %v17347_v16 = vld [vmem:[#allocation99_spill] sm:$0xff] }
 0x6cc   : > { %v4414_v36 = vmul.f32 %v14952_v59, %v17347_v16 }
 0x6cd   : > { %17342 = vst [vmem:[#allocation4_spill] sm:$0xff] %v15108_v4  ;;  %v11941_v10 = vpop.eup %11940  ;;  %11946 = vtanh.f32 %v15108_v4 }
 0x6ce   : > { %4838 = vrot.lane.b32.xlu0 %v11941_v10, %s12506_s23 }
 0x6cf   : > { %v11943_v54 = vpop.eup %11942 }
 0x6d0   : > { %v4655_v13 = vpop.permute.xlu0 %4654  ;;  %4840 = vrot.lane.b32.xlu1 %v11943_v54, %s12506_s23  ;;  %v17349_v54 = vld [vmem:[#allocation102_spill] sm:$0xff] }
 0x6d1   : > { %v15115_v15 = vadd.f32 %v4655_v13, %v4412_v14  ;;  %v4415_v13 = vmul.f32 %v14956_v39, %v17349_v54 }
 0x6d2   : > { %v4657_v7 = vpop.permute.xlu1 %4656 }
 0x6d3   : > { %17344 = vst [vmem:[#allocation3_spill] sm:$0xff] %v15115_v15  ;;  %11948 = vtanh.f32 %v15115_v15  ;;  %v15120_v53 = vadd.f32 %v4657_v7, %v4413_v62 }
 0x6d5   : > { %17346 = vst [vmem:[#allocation8_spill] sm:$0xff] %v15120_v53  ;;  %v11945_v21 = vpop.eup %11944  ;;  %11950 = vtanh.f32 %v15120_v53 }
 0x6d6   : > { %4842 = vrot.lane.b32.xlu0 %v11945_v21, %s12506_s23  ;;  %v4416_v21 = vmul.f32 %v14962_v61, %v14340_v30  ;;  %v17354_v30 = vld [vmem:[#allocation104_spill] sm:$0xff] }
 0x6d7   : > { %v11947_v10 = vpop.eup %11946 }
 0x6d8   : > { %v4659_v33 = vpop.permute.xlu0 %4658  ;;  %4844 = vrot.lane.b32.xlu1 %v11947_v10, %s12506_s23 }
 0x6d9   : > { %v15127_v14 = vadd.f32 %v4659_v33, %v4414_v36  ;;  %v17352_v33 = vld [vmem:[#allocation101_spill] sm:$0xff] }
 0x6da   : > { %v4661_v58 = vpop.permute.xlu1 %4660  ;;  %v4417_v54 = vmul.f32 %v14966_v29, %v17352_v33 }
 0x6db   : > { %17348 = vst [vmem:[#allocation7_spill] sm:$0xff] %v15127_v14  ;;  %11952 = vtanh.f32 %v15127_v14  ;;  %v15132_v62 = vadd.f32 %v4661_v58, %v4415_v13 }
 0x6dd   : > { %17350 = vst [vmem:[#allocation12_spill] sm:$0xff] %v15132_v62  ;;  %v11949_v7 = vpop.eup %11948  ;;  %11954 = vtanh.f32 %v15132_v62 }
 0x6de   : > { %4846 = vrot.lane.b32.xlu0 %v11949_v7, %s12506_s23  ;;  %v4418_v7 = vmul.f32 %v14972_v25, %v17354_v30 }
 0x6df   : > { %v11951_v16 = vpop.eup %11950 }
 0x6e0   : > { %v4663_v10 = vpop.permute.xlu0 %4662  ;;  %4848 = vrot.lane.b32.xlu1 %v11951_v16, %s12506_s23 }
 0x6e1   : > { %v15139_v36 = vadd.f32 %v4663_v10, %v4416_v21  ;;  %v17356_v10 = vld [vmem:[#allocation103_spill] sm:$0xff] }
 0x6e2   : > { %v4665_v13 = vpop.permute.xlu1 %4664  ;;  %v4419_v33 = vmul.f32 %v14975_v20, %v17356_v10 }
 0x6e3   : > { %17351 = vst [vmem:[#allocation11_spill] sm:$0xff] %v15139_v36  ;;  %11956 = vtanh.f32 %v15139_v36  ;;  %v15144_v58 = vadd.f32 %v4665_v13, %v4417_v54 }
 0x6e5   : > { %17353 = vst [vmem:[#allocation16_spill] sm:$0xff] %v15144_v58  ;;  %v11953_v62 = vpop.eup %11952  ;;  %11958 = vtanh.f32 %v15144_v58 }
 0x6e6   : > { %4850 = vrot.lane.b32.xlu0 %v11953_v62, %s12506_s23  ;;  %v17358_v62 = vld [vmem:[#allocation111_spill] sm:$0xff] }
 0x6e7   : > { %v11955_v14 = vpop.eup %11954  ;;  %v4420_v30 = vmul.f32 %v14980_v57, %v17358_v62 }
 0x6e8   : > { %v4667_v16 = vpop.permute.xlu0 %4666  ;;  %4852 = vrot.lane.b32.xlu1 %v11955_v14, %s12506_s23 }
 0x6e9   : > { %v15151_v21 = vadd.f32 %v4667_v16, %v4418_v7  ;;  %v17360_v16 = vld [vmem:[#allocation106_spill] sm:$0xff] }
 0x6ea   : > { %v4669_v54 = vpop.permute.xlu1 %4668  ;;  %v4421_v10 = vmul.f32 %v14983_v17, %v17360_v16 }
 0x6eb   : > { %17355 = vst [vmem:[#allocation15_spill] sm:$0xff] %v15151_v21  ;;  %11960 = vtanh.f32 %v15151_v21  ;;  %v15156_v13 = vadd.f32 %v4669_v54, %v4419_v33 }
 0x6ed   : > { %17357 = vst [vmem:[#allocation20_spill] sm:$0xff] %v15156_v13  ;;  %v11957_v58 = vpop.eup %11956  ;;  %11962 = vtanh.f32 %v15156_v13 }
 0x6ee   : > { %4854 = vrot.lane.b32.xlu0 %v11957_v58, %s12506_s23  ;;  %v17362_v58 = vld [vmem:[#allocation105_spill] sm:$0xff] }
 0x6ef   : > { %v11959_v36 = vpop.eup %11958  ;;  %v4422_v62 = vmul.f32 %v14988_v2, %v17362_v58 }
 0x6f0   : > { %v4671_v14 = vpop.permute.xlu0 %4670  ;;  %4856 = vrot.lane.b32.xlu1 %v11959_v36, %s12506_s23 }
 0x6f1   : > { %v15163_v7 = vadd.f32 %v4671_v14, %v4420_v30  ;;  %v17364_v14 = vld [vmem:[#allocation112_spill] sm:$0xff] }
 0x6f2   : > { %v4673_v33 = vpop.permute.xlu1 %4672  ;;  %v4423_v16 = vmul.f32 %v14991_v22, %v17364_v14 }
 0x6f3   : > { %17359 = vst [vmem:[#allocation19_spill] sm:$0xff] %v15163_v7  ;;  %11964 = vtanh.f32 %v15163_v7  ;;  %v15168_v54 = vadd.f32 %v4673_v33, %v4421_v10 }
 0x6f5   : > { %17361 = vst [vmem:[#allocation24_spill] sm:$0xff] %v15168_v54  ;;  %v11961_v13 = vpop.eup %11960  ;;  %11966 = vtanh.f32 %v15168_v54 }
 0x6f6   : > { %4858 = vrot.lane.b32.xlu0 %v11961_v13, %s12506_s23  ;;  %v11389_v13 = vld [vmem:[%s17084_s6 + $0x20] ss:$8 sps:$4 sm:$0xff]  }
 0x6f7   : > { %v11963_v21 = vpop.eup %11962 }
 0x6f8   : > { %v4675_v36 = vpop.permute.xlu0 %4674  ;;  %4860 = vrot.lane.b32.xlu1 %v11963_v21, %s12506_s23  ;;  %v11391_v21 = vld [vmem:[%s17084_s6 + $0x24] ss:$8 sps:$4 sm:$0xff]  }
 0x6f9   : > { %v15175_v30 = vadd.f32 %v4675_v36, %v4422_v62  ;;  %v17366_v62 = vld [vmem:[#allocation113_spill] sm:$0xff]  ;;  %5075 = vmatprep.subr.bf16.mxu1 %v11391_v21 }
 0x6fa   : > { %v4424_v36 = vmul.f32 %v15003_v26, %v17366_v62  ;;  %5076 = vmatpush1.bf16.msra.mxu1 %v11389_v13  ;;  %v17368_v62 = vld [vmem:[#allocation114_spill] sm:$0xff] }
 0x6fb   : > { %17363 = vst [vmem:[#allocation23_spill] sm:$0xff] %v15175_v30  ;;  %11968 = vtanh.f32 %v15175_v30  ;;  %v4677_v10 = vpop.permute.xlu1 %4676  ;;  %v4425_v21 = vmul.f32 %v15009_v60, %v17368_v62 }
 0x6fc   : > { %v15180_v33 = vadd.f32 %v4677_v10, %v4423_v16  ;;  %v11394_v10 = vld [vmem:[%s17084_s6 + $0x34] ss:$8 sps:$4 sm:$0xff]  }
 0x6fd   : > { %v11965_v54 = vpop.eup %11964  ;;  %5077 = vmatprep.subr.bf16.mxu1 %v11394_v10 }
 0x6fe   : > { %17365 = vst [vmem:[#allocation28_spill] sm:$0xff] %v15180_v33  ;;  %11970 = vtanh.f32 %v15180_v33  ;;  %4862 = vrot.lane.b32.xlu0 %v11965_v54, %s12506_s23  ;;  %v11392_v54 = vld [vmem:[%s17084_s6 + $0x30] ss:$8 sps:$4 sm:$0xff]   ;;  %v11395_v33 = vld [vmem:[%s17083_s5 + $0x28] sm:$0xff]  }
 0x6ff   : > { %v11967_v58 = vpop.eup %11966  ;;  %11047 = vmatprep.subr.bf16.mxu0 %v11395_v33  ;;  %5078 = vmatpush1.bf16.msra.mxu1 %v11392_v54 }
 0x700   : > { %4864 = vrot.lane.b32.xlu1 %v11967_v58, %s12506_s23  ;;  %11048 = vmatpush3.bf16.msra.mxu0 %v11395_v33 }
 0x701   : > { %v4679_v14 = vpop.permute.xlu0 %4678 }
 0x702   : > { %v15193_v16 = vadd.f32 %v4679_v14, %v4424_v36 }
 0x703   : > { %v4681_v13 = vpop.permute.xlu1 %4680 }
 0x704   : > { %17367 = vst [vmem:[#allocation27_spill] sm:$0xff] %v15193_v16  ;;  %11972 = vtanh.f32 %v15193_v16  ;;  %v15207_v36 = vadd.f32 %v4681_v13, %v4425_v21 }
 0x705   : > { %v11969_v58 = vpop.eup %11968 }
 0x706   : > { %17369 = vst [vmem:[#allocation32_spill] sm:$0xff] %v15207_v36  ;;  %4866 = vrot.lane.b32.xlu0 %v11969_v58, %s12506_s23  ;;  %11974 = vtanh.f32 %v15207_v36 }
 0x708   : > { %v11971_v14 = vpop.eup %11970  ;;  %v4811_v7 = vpop.permute.xlu0 %4810 }
 0x709   : > { %4868 = vrot.lane.b32.xlu1 %v11971_v14, %s12506_s23  ;;  %v4906_v10 = vmul.f32 %v14847_v49, %v4811_v7 }
 0x70a   : > { %v4813_v30 = vpop.permute.xlu1 %4812 }
 0x70b   : > { %v4907_v62 = vmul.f32 %v14854_v19, %v4813_v30 }
 0x70d   : > { %v4938_v13 = vpack.c.bf16 %v4907_v62, %v4906_v10 }
 0x70e   : > { %v11973_v16 = vpop.eup %11972 }
 0x70f   : > { %4870 = vrot.lane.b32.xlu0 %v11973_v16, %s12506_s23 }
 0x710   : > { %v11975_v21 = vpop.eup %11974  ;;  %v4815_v54 = vpop.permute.xlu0 %4814 }
 0x711   : > { %4872 = vrot.lane.b32.xlu1 %v11975_v21, %s12506_s23  ;;  %v4908_v58 = vmul.f32 %v14859_v27, %v4815_v54 }
 0x712   : > { %v4817_v33 = vpop.permute.xlu1 %4816 }
 0x713   : > { %4975 = vrot.lane.b32.xlu0 %v4938_v13, %s12505_s21  ;;  %v4909_v14 = vmul.f32 %v14866_v44, %v4817_v33 }
 0x715   : > { %v4939_v36 = vpack.c.bf16 %v4909_v14, %v4908_v58 }
 0x717   : > { %4977 = vrot.lane.b32.xlu1 %v4939_v36, %s12505_s21 }
 0x718   : > { %v4819_v19 = vpop.permute.xlu0 %4818 }
 0x719   : > { %v4910_v49 = vmul.f32 %v14872_v34, %v4819_v19 }
 0x71a   : > { %v4821_v30 = vpop.permute.xlu1 %4820 }
 0x71b   : > { %v4911_v7 = vmul.f32 %v14876_v41, %v4821_v30 }
 0x71d   : > { %v4940_v16 = vpack.c.bf16 %v4911_v7, %v4910_v49 }
 0x71f   : > { %4979 = vrot.lane.b32.xlu0 %v4940_v16, %s12505_s21 }
 0x720   : > { %v4823_v62 = vpop.permute.xlu0 %4822 }
 0x721   : > { %v4912_v21 = vmul.f32 %v14882_v1, %v4823_v62 }
 0x722   : > { %v4825_v10 = vpop.permute.xlu1 %4824 }
 0x723   : > { %v4913_v27 = vmul.f32 %v14886_v48, %v4825_v10 }
 0x725   : > { %v4941_v13 = vpack.c.bf16 %v4913_v27, %v4912_v21 }
 0x727   : > { %4981 = vrot.lane.b32.xlu1 %v4941_v13, %s12505_s21 }
 0x728   : > { %v4827_v44 = vpop.permute.xlu0 %4826 }
 0x729   : > { %v4914_v54 = vmul.f32 %v14892_v6, %v4827_v44 }
 0x72a   : > { %v4829_v36 = vpop.permute.xlu1 %4828 }
 0x72b   : > { %v4915_v34 = vmul.f32 %v14896_v38, %v4829_v36 }
 0x72d   : > { %v4942_v33 = vpack.c.bf16 %v4915_v34, %v4914_v54 }
 0x72f   : > { %4983 = vrot.lane.b32.xlu0 %v4942_v33, %s12505_s21 }
 0x730   : > { %v4831_v41 = vpop.permute.xlu0 %4830 }
 0x731   : > { %v4916_v14 = vmul.f32 %v14902_v37, %v4831_v41  ;;  %v11396_v37 = vld [vmem:[%s17082_s4 + $0x140] sm:$0xff]  }
 0x732   : > { %v4833_v58 = vpop.permute.xlu1 %4832  ;;  %10619 = vmatprep.subr.bf16.mxu0 %v11396_v37 }
 0x733   : > { %v4917_v1 = vmul.f32 %v14906_v28, %v4833_v58 }
 0x735   : > { %v4943_v19 = vpack.c.bf16 %v4917_v1, %v4916_v14 }
 0x737   : > { %4985 = vrot.lane.b32.xlu1 %v4943_v19, %s12505_s21 }
 0x738   : > { %v4835_v48 = vpop.permute.xlu0 %4834 }
 0x739   : > { %v4918_v49 = vmul.f32 %v14912_v50, %v4835_v48 }
 0x73a   : > { %v4837_v30 = vpop.permute.xlu1 %4836 }
 0x73b   : > { %v4919_v6 = vmul.f32 %v14916_v56, %v4837_v30 }
 0x73d   : > { %v4944_v7 = vpack.c.bf16 %v4919_v6, %v4918_v49 }
 0x73f   : > { %4987 = vrot.lane.b32.xlu0 %v4944_v7, %s12505_s21 }
 0x740   : > { %v4839_v38 = vpop.permute.xlu0 %4838 }
 0x741   : > { %v4920_v28 = vmul.f32 %v14922_v52, %v4839_v38 }
 0x742   : > { %v4841_v16 = vpop.permute.xlu1 %4840 }
 0x743   : > { %v4921_v62 = vmul.f32 %v14926_v3, %v4841_v16 }
 0x745   : > { %v4945_v10 = vpack.c.bf16 %v4921_v62, %v4920_v28 }
 0x747   : > { %4989 = vrot.lane.b32.xlu1 %v4945_v10, %s12505_s21 }
 0x748   : > { %v4843_v50 = vpop.permute.xlu0 %4842 }
 0x749   : > { %v4922_v56 = vmul.f32 %v14932_v12, %v4843_v50 }
 0x74a   : > { %v4845_v21 = vpop.permute.xlu1 %4844 }
 0x74b   : > { %v4923_v27 = vmul.f32 %v14936_v46, %v4845_v21 }
 0x74d   : > { %v4946_v13 = vpack.c.bf16 %v4923_v27, %v4922_v56  ;;  %v17370_v56 = vmov 0   ;;  %v11415_v27 = vld [vmem:[%s17084_s6 + $0x10] ss:$8 sps:$4 sm:$0xff]  }
 0x74f   : > { %4991 = vrot.lane.b32.xlu0 %v4946_v13, %s12505_s21  ;;  %v11397_v13 = vld [vmem:[%s17082_s4 + $0x100] sm:$0xff]  }
 0x750   : > { %v4847_v44 = vpop.permute.xlu0 %4846 }
 0x751   : > { %v4924_v54 = vmul.f32 %v14942_v23, %v4847_v44  ;;  %v11399_v44 = vld [vmem:[%s17082_s4 + $0x108] sm:$0xff]  }
 0x752   : > { %v4849_v36 = vpop.permute.xlu1 %4848 }
 0x753   : > { %v4925_v52 = vmul.f32 %v14946_v18, %v4849_v36  ;;  %v11400_v36 = vld [vmem:[%s17082_s4 + $0x150] sm:$0xff]  }
 0x755   : > { %v4947_v3 = vpack.c.bf16 %v4925_v52, %v4924_v54  ;;  %v11401_v54 = vld [vmem:[%s17082_s4 + $0x110] sm:$0xff]   ;;  %v11402_v52 = vld [vmem:[%s17082_s4 + $0x158] sm:$0xff]  }
 0x757   : > { %4993 = vrot.lane.b32.xlu1 %v4947_v3, %s12505_s21 }
 0x758   : > { %v4851_v34 = vpop.permute.xlu0 %4850 }
 0x759   : > { %v4926_v41 = vmul.f32 %v14952_v59, %v4851_v34  ;;  %v11403_v34 = vld [vmem:[%s17082_s4 + $0x118] sm:$0xff]  }
 0x75a   : > { %v4853_v33 = vpop.permute.xlu1 %4852 }
 0x75b   : > { %v4927_v12 = vmul.f32 %v14956_v39, %v4853_v33  ;;  %v11404_v33 = vld [vmem:[%s17082_s4 + $0x160] sm:$0xff]  }
 0x75d   : > { %v4948_v58 = vpack.c.bf16 %v4927_v12, %v4926_v41  ;;  %v11405_v41 = vld [vmem:[%s17082_s4 + $0x120] sm:$0xff]   ;;  %v11406_v12 = vld [vmem:[%s17082_s4 + $0x168] sm:$0xff]  }
 0x75f   : > { %4995 = vrot.lane.b32.xlu0 %v4948_v58, %s12505_s21 }
 0x760   : > { %v4855_v46 = vpop.permute.xlu0 %4854 }
 0x761   : > { %v4928_v1 = vmul.f32 %v14962_v61, %v4855_v46  ;;  %v11407_v46 = vld [vmem:[%s17082_s4 + $0x128] sm:$0xff]  }
 0x762   : > { %v4857_v14 = vpop.permute.xlu1 %4856 }
 0x763   : > { %v4929_v23 = vmul.f32 %v14966_v29, %v4857_v14  ;;  %v11408_v14 = vld [vmem:[%s17082_s4 + $0x170] sm:$0xff]  }
 0x765   : > { %v4949_v19 = vpack.c.bf16 %v4929_v23, %v4928_v1  ;;  %v11409_v1 = vld [vmem:[%s17082_s4 + $0x130] sm:$0xff]   ;;  %v11410_v23 = vld [vmem:[%s17082_s4 + $0x178] sm:$0xff]  }
 0x767   : > { %4997 = vrot.lane.b32.xlu1 %v4949_v19, %s12505_s21 }
 0x768   : > { %v4859_v18 = vpop.permute.xlu0 %4858 }
 0x769   : > { %v4930_v30 = vmul.f32 %v14972_v25, %v4859_v18  ;;  %v11411_v18 = vld [vmem:[%s17082_s4 + $0x138] sm:$0xff]  }
 0x76a   : > { %v4861_v48 = vpop.permute.xlu1 %4860 }
 0x76b   : > { %v4931_v59 = vmul.f32 %v14975_v20, %v4861_v48  ;;  %v11414_v20 = vld [vmem:[%s17084_s6 + $0x4] ss:$8 sps:$4 sm:$0xff]  }
 0x76c   : > { %5288 = vmatprep.subr.bf16.mxu1 %v11414_v20  ;;  %v17374_v20 = vld [vmem:[#allocation115_spill] sm:$0xff] }
 0x76d   : > { %v4950_v49 = vpack.c.bf16 %v4931_v59, %v4930_v30 }
 0x76f   : > { %4999 = vrot.lane.b32.xlu0 %v4950_v49, %s12505_s21 }
 0x770   : > { %v4863_v39 = vpop.permute.xlu0 %4862 }
 0x771   : > { %v4932_v7 = vmul.f32 %v14980_v57, %v4863_v39 }
 0x772   : > { %v4865_v6 = vpop.permute.xlu1 %4864 }
 0x773   : > { %v4933_v61 = vmul.f32 %v14983_v17, %v4865_v6  ;;  %v11412_v17 = vld [vmem:[%s17084_s6] ss:$8 sps:$4 sm:$0xff]  }
 0x775   : > { %v4951_v38 = vpack.c.bf16 %v4933_v61, %v4932_v7 }
 0x777   : > { %5001 = vrot.lane.b32.xlu1 %v4951_v38, %s12505_s21 }
 0x778   : > { %v4867_v29 = vpop.permute.xlu0 %4866 }
 0x779   : > { %v4934_v37 = vmul.f32 %v14988_v2, %v4867_v29  ;;  %v11417_v2 = vld [vmem:[%s17084_s6 + $0x14] ss:$8 sps:$4 sm:$0xff]  }
 0x77b   : > { %v4869_v16 = vpop.permute.xlu1 %4868 }
 0x77c   : > { %v4935_v25 = vmul.f32 %v14991_v22, %v4869_v16 }
 0x77e   : > { %v4952_v28 = vpack.c.bf16 %v4935_v25, %v4934_v37  ;;  %v17371_v37 = vld [vmem:[#allocation6_spill] sm:$0xff]  ;;  %v17372_v25 = vld [vmem:[#allocation5_spill] sm:$0xff] }
 0x780   : > { %5003 = vrot.lane.b32.xlu0 %v4952_v28, %s12505_s21  ;;  %v17373_v28 = vld [vmem:[#allocation10_spill] sm:$0xff] }
 0x781   : > { %v4871_v57 = vpop.permute.xlu0 %4870 }
 0x782   : > { %v4936_v22 = vmul.f32 %v15003_v26, %v4871_v57  ;;  %v11398_v26 = vld [vmem:[%s17082_s4 + $0x148] sm:$0xff]   ;;  %v17375_v57 = vld [vmem:[#allocation9_spill] sm:$0xff] }
 0x783   : > { %v4873_v62 = vpop.permute.xlu1 %4872 }
 0x784   : > { %v4937_v10 = vmul.f32 %v15009_v60, %v4873_v62  ;;  %v17377_v62 = vld [vmem:[#allocation116_spill] sm:$0xff] }
 0x785   : > { %v4976_v50 = vpop.permute.xlu0 %4975 }
 0x786   : > { %9875 = vmatmul.mubr.msk.bf16.vlgmr.msra.gmra.mrb[224].mxu1 %vm2126_vm0, %v4976_v50  ;;  %11049 = vmatprep.mubr.msk.bf16.mxu0 %vm2126_vm0, %v4976_v50  ;;  %v4953_v21 = vpack.c.bf16 %v4937_v10, %v4936_v22  ;;  %v17379_v22 = vld [vmem:[#allocation18_spill] sm:$0xff]  ;;  %v17380_v10 = vld [vmem:[#allocation117_spill] sm:$0xff] }
 0x787   : > { %5117 = vmatprep.mubr.bf16.mxu1 %v17370_v56  ;;  %5289 = vmatpush1.bf16.msra.mxu1 %v11412_v17  ;;  %v17376_v17 = vld [vmem:[#allocation14_spill] sm:$0xff]  ;;  %v17381_v50 = vld [vmem:[#allocation17_spill] sm:$0xff] }
 0x788   : > { %5290 = vmatprep.subr.bf16.mxu1 %v11417_v2  ;;  %5005 = vrot.lane.b32.xlu1 %v4953_v21, %s12505_s21  ;;  %v17378_v2 = vld [vmem:[#allocation13_spill] sm:$0xff]  ;;  %v17382_v21 = vld [vmem:[#allocation22_spill] sm:$0xff] }
 0x789   : > { %v4978_v60 = vpop.permute.xlu1 %4977 }
 0x78a   : > { %11050 = vmatmul.mubr.msk.bf16.vlgmr.msra.gmra.mrb[224].mxu0 %vm2126_vm0, %v4978_v60 }
 0x78b   : > { %5291 = vmatpush1.bf16.msra.mxu1 %v11415_v27  ;;  %10620 = vmatpush3.bf16.msra.mxu0 %v11397_v13  ;;  %v17383_v27 = vld [vmem:[#allocation118_spill] sm:$0xff]  ;;  %v17384_v13 = vld [vmem:[#allocation21_spill] sm:$0xff] }
 0x78c   : > { %10621 = vmatprep.subr.bf16.mxu0 %v11398_v26  ;;  %v17385_v26 = vld [vmem:[#allocation26_spill] sm:$0xff] }
 0x78e   : > { %9876 = vmatmul.mubr.msk.bf16.gmra.mrb[228].mxu1 %vm2126_vm0, %v4978_v60  ;;  %v17386_v60 = vld [vmem:[#allocation119_spill] sm:$0xff] }
 0x78f   : > { %5127 = vmatprep.mubr.bf16.mxu1 %v17370_v56  ;;  %10622 = vmatpush3.bf16.msra.mxu0 %v11399_v44  ;;  %v17387_v44 = vld [vmem:[#allocation25_spill] sm:$0xff] }
 0x790   : > { %10623 = vmatprep.subr.bf16.mxu0 %v11400_v36  ;;  %v17388_v36 = vld [vmem:[#allocation30_spill] sm:$0xff] }
 0x791   : > { %v4980_v3 = vpop.permute.xlu0 %4979 }
 0x792   : > { %11053 = vmatprep.mubr.msk.bf16.mxu0 %vm2126_vm0, %v4980_v3 }
 0x793   : > { %10624 = vmatpush3.bf16.msra.mxu0 %v11401_v54  ;;  %v17389_v54 = vld [vmem:[#allocation120_spill] sm:$0xff] }
 0x794   : > { %10625 = vmatprep.subr.bf16.mxu0 %v11402_v52  ;;  %v17390_v52 = vld [vmem:[#allocation29_spill] sm:$0xff] }
 0x796   : > { %9877 = vmatmul.mubr.msk.bf16.gmra.mrb[232].mxu1 %vm2126_vm0, %v4980_v3  ;;  %v17391_v3 = vld [vmem:[#allocation34_spill] sm:$0xff] }
 0x797   : > { %5137 = vmatprep.mubr.bf16.mxu1 %v17370_v56  ;;  %10626 = vmatpush3.bf16.msra.mxu0 %v11403_v34  ;;  %v17392_v34 = vld [vmem:[#allocation121_spill] sm:$0xff] }
 0x798   : > { %10627 = vmatprep.subr.bf16.mxu0 %v11404_v33  ;;  %v17393_v33 = vld [vmem:[#allocation33_spill] sm:$0xff] }
 0x799   : > { %v4982_v58 = vpop.permute.xlu1 %4981 }
 0x79a   : > { %11054 = vmatmul.mubr.msk.bf16.gmra.mrb[228].mxu0 %vm2126_vm0, %v4982_v58 }
 0x79b   : > { %10628 = vmatpush3.bf16.msra.mxu0 %v11405_v41  ;;  %v17394_v41 = vld [vmem:[#allocation38_spill] sm:$0xff] }
 0x79c   : > { %10629 = vmatprep.subr.bf16.mxu0 %v11406_v12  ;;  %v17395_v12 = vld [vmem:[#allocation122_spill] sm:$0xff] }
 0x79e   : > { %9878 = vmatmul.mubr.msk.bf16.gmra.mrb[236].mxu1 %vm2126_vm0, %v4982_v58  ;;  %v17396_v58 = vld [vmem:[#allocation37_spill] sm:$0xff] }
 0x79f   : > { %5147 = vmatprep.mubr.bf16.mxu1 %v17370_v56  ;;  %10630 = vmatpush3.bf16.msra.mxu0 %v11407_v46  ;;  %v17397_v46 = vld [vmem:[#allocation42_spill] sm:$0xff] }
 0x7a0   : > { %10631 = vmatprep.subr.bf16.mxu0 %v11408_v14  ;;  %v17398_v14 = vld [vmem:[#allocation123_spill] sm:$0xff] }
 0x7a1   : > { %v4984_v19 = vpop.permute.xlu0 %4983 }
 0x7a2   : > { %11057 = vmatprep.mubr.msk.bf16.mxu0 %vm2126_vm0, %v4984_v19 }
 0x7a3   : > { %10632 = vmatpush3.bf16.msra.mxu0 %v11409_v1  ;;  %v17399_v1 = vld [vmem:[#allocation41_spill] sm:$0xff] }
 0x7a4   : > { %10633 = vmatprep.subr.bf16.mxu0 %v11410_v23  ;;  %v17400_v23 = vld [vmem:[#allocation46_spill] sm:$0xff] }
 0x7a6   : > { %9879 = vmatmul.mubr.msk.bf16.gmra.mrb[240].mxu1 %vm2126_vm0, %v4984_v19  ;;  %v17401_v19 = vld [vmem:[#allocation124_spill] sm:$0xff] }
 0x7a7   : > { %5157 = vmatprep.mubr.bf16.mxu1 %v17370_v56  ;;  %10634 = vmatpush3.bf16.msra.mxu0 %v11411_v18  ;;  %v17402_v18 = vld [vmem:[#allocation45_spill] sm:$0xff] }
 0x7a9   : > { %v4986_v48 = vpop.permute.xlu1 %4985 }
 0x7aa   : > { %11058 = vmatmul.mubr.msk.bf16.gmra.mrb[232].mxu0 %vm2126_vm0, %v4986_v48 }
 0x7ae   : > { %9880 = vmatmul.mubr.msk.bf16.gmra.mrb[244].mxu1 %vm2126_vm0, %v4986_v48  ;;  %v17403_v48 = vld [vmem:[#allocation50_spill] sm:$0xff] }
 0x7af   : > { %5167 = vmatprep.mubr.bf16.mxu1 %v17370_v56 }
 0x7b1   : > { %v4988_v30 = vpop.permute.xlu0 %4987 }
 0x7b2   : > { %11061 = vmatprep.mubr.msk.bf16.mxu0 %vm2126_vm0, %v4988_v30 }
 0x7b6   : > { %9881 = vmatmul.mubr.msk.bf16.gmra.mrb[248].mxu1 %vm2126_vm0, %v4988_v30  ;;  %v17404_v30 = vld [vmem:[#allocation125_spill] sm:$0xff] }
 0x7b7   : > { %5177 = vmatprep.mubr.bf16.mxu1 %v17370_v56 }
 0x7b9   : > { %v4990_v59 = vpop.permute.xlu1 %4989 }
 0x7ba   : > { %11062 = vmatmul.mubr.msk.bf16.gmra.mrb[236].mxu0 %vm2126_vm0, %v4990_v59 }
 0x7be   : > { %9882 = vmatmul.mubr.msk.bf16.gmra.mrb[252].mxu1 %vm2126_vm0, %v4990_v59  ;;  %v17405_v59 = vld [vmem:[#allocation49_spill] sm:$0xff] }
 0x7bf   : > { %5187 = vmatprep.mubr.bf16.mxu1 %v17370_v56 }
 0x7c1   : > { %v4992_v49 = vpop.permute.xlu0 %4991 }
 0x7c2   : > { %11065 = vmatprep.mubr.msk.bf16.mxu0 %vm2126_vm0, %v4992_v49 }
 0x7c6   : > { %9883 = vmatmul.mubr.msk.bf16.gmra.mrb[0].mxu1 %vm2126_vm0, %v4992_v49  ;;  %v17406_v49 = vld [vmem:[#allocation54_spill] sm:$0xff] }
 0x7c7   : > { %5197 = vmatprep.mubr.bf16.mxu1 %v17370_v56 }
 0x7c9   : > { %v4994_v39 = vpop.permute.xlu1 %4993 }
 0x7ca   : > { %11066 = vmatmul.mubr.msk.bf16.gmra.mrb[240].mxu0 %vm2126_vm0, %v4994_v39 }
 0x7ce   : > { %9884 = vmatmul.mubr.msk.bf16.gmra.mrb[4].mxu1 %vm2126_vm0, %v4994_v39 }
 0x7cf   : > { %5207 = vmatprep.mubr.bf16.mxu1 %v17370_v56 }
 0x7d1   : > { %v4996_v6 = vpop.permute.xlu0 %4995 }
 0x7d2   : > { %11069 = vmatprep.mubr.msk.bf16.mxu0 %vm2126_vm0, %v4996_v6 }
 0x7d6   : > { %9885 = vmatmul.mubr.msk.bf16.gmra.mrb[8].mxu1 %vm2126_vm0, %v4996_v6  ;;  %v17407_v6 = vld [vmem:[#allocation126_spill] sm:$0xff] }
 0x7d7   : > { %5217 = vmatprep.mubr.bf16.mxu1 %v17370_v56 }
 0x7d9   : > { %v4998_v7 = vpop.permute.xlu1 %4997 }
 0x7da   : > { %11070 = vmatmul.mubr.msk.bf16.gmra.mrb[244].mxu0 %vm2126_vm0, %v4998_v7 }
 0x7de   : > { %9886 = vmatmul.mubr.msk.bf16.gmra.mrb[12].mxu1 %vm2126_vm0, %v4998_v7 }
 0x7df   : > { %5227 = vmatprep.mubr.bf16.mxu1 %v17370_v56 }
 0x7e1   : > { %v5000_v61 = vpop.permute.xlu0 %4999 }
 0x7e2   : > { %11073 = vmatprep.mubr.msk.bf16.mxu0 %vm2126_vm0, %v5000_v61 }
 0x7e6   : > { %9887 = vmatmul.mubr.msk.bf16.gmra.mrb[16].mxu1 %vm2126_vm0, %v5000_v61 }
 0x7e7   : > { %5237 = vmatprep.mubr.bf16.mxu1 %v17370_v56 }
 0x7e9   : > { %v5002_v38 = vpop.permute.xlu1 %5001 }
 0x7ea   : > { %11074 = vmatmul.mubr.msk.bf16.gmra.mrb[248].mxu0 %vm2126_vm0, %v5002_v38 }
 0x7ee   : > { %9888 = vmatmul.mubr.msk.bf16.gmra.mrb[20].mxu1 %vm2126_vm0, %v5002_v38 }
 0x7ef   : > { %5247 = vmatprep.mubr.bf16.mxu1 %v17370_v56 }
 0x7f2   : > { %v5004_v29 = vpop.permute.xlu0 %5003 }
 0x7f3   : > { %11077 = vmatprep.mubr.msk.bf16.mxu0 %vm2126_vm0, %v5004_v29 }
 0x7f6   : > { %9889 = vmatmul.mubr.msk.bf16.gmra.mrb[24].mxu1 %vm2126_vm0, %v5004_v29  ;;  %v17408_v29 = vld [vmem:[#allocation53_spill] sm:$0xff] }
 0x7f7   : > { %5257 = vmatprep.mubr.bf16.mxu1 %v17370_v56 }
 0x7fa   : > { %v5006_v16 = vpop.permute.xlu1 %5005 }
 0x7fb   : > { %11078 = vmatmul.mubr.msk.bf16.gmra.mrb[252].mxu0 %vm2126_vm0, %v5006_v16 }
 0x7fc   : > { %5853 = vmatprep.mubr.bf16.mxu0 %v17371_v37  ;;  %v17410_v37 = vld [vmem:[#allocation127_spill] sm:$0xff] }
 0x7fe   : > { %9890 = vmatmul.mubr.msk.bf16.gmra.mrb[28].mxu1 %vm2126_vm0, %v5006_v16  ;;  %v17409_v16 = vld [vmem:[#allocation58_spill] sm:$0xff] }
 0x7ff   : > { %5320 = vmatprep.mubr.bf16.mxu1 %v17370_v56 }
 0x803   : > { %5854 = vmatmul.mubr.bf16.vlgmr.msra.gmra.mrb[0].mxu0 %v17372_v25  ;;  %v17411_v25 = vld [vmem:[#allocation57_spill] sm:$0xff] }
 0x804   : > { %5861 = vmatprep.mubr.bf16.mxu0 %v17373_v28  ;;  %v17412_v28 = vld [vmem:[#allocation62_spill] sm:$0xff] }
 0x806   : > { %9895 = vmatmul.mubr.msk.bf16.vlgmr.msra.gmra.mrb[224].mxu1 %vm2126_vm0, %v17374_v20 }
 0x807   : > { %5330 = vmatprep.mubr.bf16.mxu1 %v17370_v56 }
 0x80b   : > { %5862 = vmatmul.mubr.bf16.gmra.mrb[4].mxu0 %v17375_v57  ;;  %v17413_v57 = vld [vmem:[#allocation128_spill] sm:$0xff] }
 0x80c   : > { %5869 = vmatprep.mubr.bf16.mxu0 %v17376_v17 }
 0x80e   : > { %9896 = vmatmul.mubr.msk.bf16.gmra.mrb[228].mxu1 %vm2126_vm0, %v17377_v62 }
 0x80f   : > { %5340 = vmatprep.mubr.bf16.mxu1 %v17370_v56 }
 0x813   : > { %5870 = vmatmul.mubr.bf16.gmra.mrb[8].mxu0 %v17378_v2 }
 0x814   : > { %5877 = vmatprep.mubr.bf16.mxu0 %v17379_v22  ;;  %v17414_v22 = vld [vmem:[#allocation61_spill] sm:$0xff] }
 0x816   : > { %9897 = vmatmul.mubr.msk.bf16.gmra.mrb[232].mxu1 %vm2126_vm0, %v17380_v10  ;;  %v17415_v10 = vld [vmem:[#allocation66_spill] sm:$0xff] }
 0x817   : > { %5350 = vmatprep.mubr.bf16.mxu1 %v17370_v56 }
 0x81b   : > { %5878 = vmatmul.mubr.bf16.gmra.mrb[12].mxu0 %v17381_v50  ;;  %v17416_v50 = vld [vmem:[#allocation129_spill] sm:$0xff] }
 0x81c   : > { %5885 = vmatprep.mubr.bf16.mxu0 %v17382_v21  ;;  %v17417_v21 = vld [vmem:[#allocation65_spill] sm:$0xff] }
 0x81e   : > { %9898 = vmatmul.mubr.msk.bf16.gmra.mrb[236].mxu1 %vm2126_vm0, %v17383_v27 }
 0x81f   : > { %5360 = vmatprep.mubr.bf16.mxu1 %v17370_v56 }
 0x823   : > { %5886 = vmatmul.mubr.bf16.gmra.mrb[16].mxu0 %v17384_v13  ;;  %v17418_v13 = vld [vmem:[#allocation130_spill] sm:$0xff] }
 0x824   : > { %5893 = vmatprep.mubr.bf16.mxu0 %v17385_v26 }
 0x826   : > { %9899 = vmatmul.mubr.msk.bf16.gmra.mrb[240].mxu1 %vm2126_vm0, %v17386_v60 }
 0x827   : > { %5370 = vmatprep.mubr.bf16.mxu1 %v17370_v56 }
 0x82b   : > { %5894 = vmatmul.mubr.bf16.gmra.mrb[20].mxu0 %v17387_v44 }
 0x82c   : > { %5901 = vmatprep.mubr.bf16.mxu0 %v17388_v36 }
 0x82e   : > { %9900 = vmatmul.mubr.msk.bf16.gmra.mrb[244].mxu1 %vm2126_vm0, %v17389_v54 }
 0x82f   : > { %5380 = vmatprep.mubr.bf16.mxu1 %v17370_v56 }
 0x833   : > { %5902 = vmatmul.mubr.bf16.gmra.mrb[24].mxu0 %v17390_v52 }
 0x834   : > { %5909 = vmatprep.mubr.bf16.mxu0 %v17391_v3 }
 0x836   : > { %9901 = vmatmul.mubr.msk.bf16.gmra.mrb[248].mxu1 %vm2126_vm0, %v17392_v34 }
 0x837   : > { %5390 = vmatprep.mubr.bf16.mxu1 %v17370_v56 }
 0x83b   : > { %5910 = vmatmul.mubr.bf16.gmra.mrb[28].mxu0 %v17393_v33 }
 0x83c   : > { %5917 = vmatprep.mubr.bf16.mxu0 %v17394_v41 }
 0x83e   : > { %9902 = vmatmul.mubr.msk.bf16.gmra.mrb[252].mxu1 %vm2126_vm0, %v17395_v12 }
 0x83f   : > { %5400 = vmatprep.mubr.bf16.mxu1 %v17370_v56 }
 0x843   : > { %5918 = vmatmul.mubr.bf16.gmra.mrb[32].mxu0 %v17396_v58 }
 0x844   : > { %5925 = vmatprep.mubr.bf16.mxu0 %v17397_v46 }
 0x846   : > { %9903 = vmatmul.mubr.msk.bf16.gmra.mrb[0].mxu1 %vm2126_vm0, %v17398_v14 }
 0x847   : > { %5410 = vmatprep.mubr.bf16.mxu1 %v17370_v56 }
 0x84b   : > { %5926 = vmatmul.mubr.bf16.gmra.mrb[36].mxu0 %v17399_v1 }
 0x84c   : > { %5933 = vmatprep.mubr.bf16.mxu0 %v17400_v23 }
 0x84e   : > { %9904 = vmatmul.mubr.msk.bf16.gmra.mrb[4].mxu1 %vm2126_vm0, %v17401_v19 }
 0x84f   : > { %5420 = vmatprep.mubr.bf16.mxu1 %v17370_v56 }
 0x853   : > { %5934 = vmatmul.mubr.bf16.gmra.mrb[40].mxu0 %v17402_v18 }
 0x854   : > { %5941 = vmatprep.mubr.bf16.mxu0 %v17403_v48 }
 0x856   : > { %9905 = vmatmul.mubr.msk.bf16.gmra.mrb[8].mxu1 %vm2126_vm0, %v17404_v30 }
 0x857   : > { %5430 = vmatprep.mubr.bf16.mxu1 %v17370_v56 }
 0x85b   : > { %5942 = vmatmul.mubr.bf16.gmra.mrb[44].mxu0 %v17405_v59 }
 0x85c   : > { %5949 = vmatprep.mubr.bf16.mxu0 %v17406_v49 }
 0x85d   : > { %v15428_v39 = vpop.f32.mrb[224].mxu0 }
 0x85e   : > { %9906 = vmatmul.mubr.msk.bf16.gmra.mrb[12].mxu1 %vm2126_vm0, %v17407_v6  ;;  %v5598_v7 = vpop.f32.mrb[225].mxu0 }
 0x85f   : > { %5440 = vmatprep.mubr.bf16.mxu1 %v17370_v56  ;;  %v15433_v61 = vpop.f32.mrb[226].mxu0 }
 0x860   : > { %v5601_v38 = vpop.f32.mrb[227].mxu0 }
 0x863   : > { %5950 = vmatmul.mubr.bf16.gmra.mrb[48].mxu0 %v17408_v29 }
 0x864   : > { %5957 = vmatprep.mubr.bf16.mxu0 %v17409_v16 }
 0x866   : > { %9907 = vmatmul.mubr.msk.bf16.gmra.mrb[16].mxu1 %vm2126_vm0, %v17410_v37 }
 0x867   : > { %5450 = vmatprep.mubr.bf16.mxu1 %v17370_v56 }
 0x86b   : > { %5958 = vmatmul.mubr.bf16.gmra.mrb[52].mxu0 %v17411_v25 }
 0x86c   : > { %5965 = vmatprep.mubr.bf16.mxu0 %v17412_v28  ;;  %v15513_v28 = vld [vmem:[%s17086_s8 + $0x3] ss:$0 sm:$0xff] }
 0x86d   : > { %v15442_v20 = vpop.f32.mrb[228].mxu0 }
 0x86e   : > { %9908 = vmatmul.mubr.msk.bf16.gmra.mrb[20].mxu1 %vm2126_vm0, %v17413_v57  ;;  %v15446_v17 = vpop.f32.mrb[229].mxu0 }
 0x86f   : > { %5460 = vmatprep.mubr.bf16.mxu1 %v17370_v56  ;;  %v15449_v62 = vpop.f32.mrb[230].mxu0 }
 0x870   : > { %v15451_v2 = vpop.f32.mrb[231].mxu0 }
 0x873   : > { %5966 = vmatmul.mubr.bf16.gmra.mrb[56].mxu0 %v17414_v22 }
 0x874   : > { %5973 = vmatprep.mubr.bf16.mxu0 %v17415_v10 }
 0x876   : > { %9909 = vmatmul.mubr.msk.bf16.gmra.mrb[24].mxu1 %vm2126_vm0, %v17416_v50 }
 0x877   : > { %5470 = vmatprep.mubr.bf16.mxu1 %v17370_v56 }
 0x87b   : > { %5974 = vmatmul.mubr.bf16.gmra.mrb[60].mxu0 %v17417_v21 }
 0x87d   : > { %v15459_v27 = vpop.f32.mrb[232].mxu0 }
 0x87e   : > { %9910 = vmatmul.mubr.msk.bf16.gmra.mrb[28].mxu1 %vm2126_vm0, %v17418_v13  ;;  %v15463_v26 = vpop.f32.mrb[233].mxu0 }
 0x87f   : > { %6951 = vmatprep.mubr.bf16.mxu1 %v17370_v56  ;;  %v15466_v60 = vpop.f32.mrb[234].mxu0 }
 0x880   : > { %v15468_v44 = vpop.f32.mrb[235].mxu0 }
 0x88d   : > { %v15470_v36 = vpop.f32.mrb[236].mxu0 }
 0x88e   : > { %v15472_v54 = vpop.f32.mrb[237].mxu0 }
 0x88f   : > { %v15474_v52 = vpop.f32.mrb[238].mxu0 }
 0x890   : > { %v15476_v3 = vpop.f32.mrb[239].mxu0 }
 0x89d   : > { %v15478_v34 = vpop.f32.mrb[240].mxu0 }
 0x89e   : > { %v15480_v33 = vpop.f32.mrb[241].mxu0 }
 0x89f   : > { %v15482_v41 = vpop.f32.mrb[242].mxu0 }
 0x8a0   : > { %v15484_v12 = vpop.f32.mrb[243].mxu0 }
 0x8ad   : > { %v15486_v58 = vpop.f32.mrb[244].mxu0 }
 0x8ae   : > { %v15488_v46 = vpop.f32.mrb[245].mxu0 }
 0x8af   : > { %v15490_v14 = vpop.f32.mrb[246].mxu0 }
 0x8b0   : > { %v15492_v1 = vpop.f32.mrb[247].mxu0 }
 0x8bd   : > { %v15494_v23 = vpop.f32.mrb[248].mxu0 }
 0x8be   : > { %v15496_v19 = vpop.f32.mrb[249].mxu0 }
 0x8bf   : > { %v15498_v18 = vpop.f32.mrb[250].mxu0 }
 0x8c0   : > { %v15500_v48 = vpop.f32.mrb[251].mxu0 }
 0x8ce   : > { %v15502_v30 = vpop.f32.mrb[252].mxu0 }
 0x8cf   : > { %v15504_v59 = vpop.f32.mrb[253].mxu0 }
 0x8d0   : > { %v15506_v49 = vpop.f32.mrb[254].mxu0 }
 0x8d1   : > { %v15508_v6 = vpop.f32.mrb[255].mxu0 }
 0x8d6   : > { %v10635_v29 = vpop.f32.mrb[0].mxu0 }
 0x8d7   : > { %v10636_v16 = vpop.f32.mrb[1].mxu0 }
 0x8d8   : > { %v10637_v37 = vadd.f32 %v10636_v16, %v10635_v29  ;;  %v10638_v25 = vpop.f32.mrb[2].mxu0 }
 0x8d9   : > { %v10639_v57 = vpop.f32.mrb[3].mxu0 }
 0x8da   : > { %v5856_v22 = vadd.f32 %v10637_v37, %v5598_v7  ;;  %v10640_v10 = vadd.f32 %v10639_v57, %v10638_v25 }
 0x8dc   : > { %v15516_v50 = vadd.f32 %v5856_v22, %v15513_v28  ;;  %v5859_v21 = vadd.f32 %v10640_v10, %v5601_v38 }
 0x8de   : > { %11976 = vtanh.f32 %v15516_v50  ;;  %v15520_v13 = vadd.f32 %v5859_v21, %v15513_v28  ;;  %v10641_v56 = vpop.f32.mrb[4].mxu0 }
 0x8df   : > { %v10642_v29 = vpop.f32.mrb[5].mxu0 }
 0x8e0   : > { %v10643_v16 = vadd.f32 %v10642_v29, %v10641_v56  ;;  %v10644_v53 = vpop.f32.mrb[6].mxu0  ;;  %11978 = vtanh.f32 %v15520_v13 }
 0x8e1   : > { %v10645_v15 = vpop.f32.mrb[7].mxu0 }
 0x8e2   : > { %v5864_v4 = vadd.f32 %v15428_v39, %v10643_v16  ;;  %v10646_v7 = vadd.f32 %v10645_v15, %v10644_v53 }
 0x8e4   : > { %v15525_v37 = vadd.f32 %v5864_v4, %v15513_v28  ;;  %v5867_v38 = vadd.f32 %v15433_v61, %v10646_v7 }
 0x8e6   : > { %11980 = vtanh.f32 %v15525_v37  ;;  %v15530_v25 = vadd.f32 %v5867_v38, %v15513_v28  ;;  %v10647_v57 = vpop.f32.mrb[8].mxu0 }
 0x8e7   : > { %v10648_v22 = vpop.f32.mrb[9].mxu0 }
 0x8e8   : > { %v11977_v56 = vpop.eup %11976  ;;  %v10649_v10 = vadd.f32 %v10648_v22, %v10647_v57  ;;  %v10650_v21 = vpop.f32.mrb[10].mxu0  ;;  %11982 = vtanh.f32 %v15530_v25 }
 0x8e9   : > { %v10651_v29 = vpop.f32.mrb[11].mxu0  ;;  %6302 = vrot.lane.b32.xlu0 %v11977_v56, %s12506_s23 }
 0x8ea   : > { %v5872_v4 = vadd.f32 %v10649_v10, %v15446_v17  ;;  %v10652_v15 = vadd.f32 %v10651_v29, %v10650_v21  ;;  %v11979_v53 = vpop.eup %11978 }
 0x8eb   : > { %6304 = vrot.lane.b32.xlu1 %v11979_v53, %s12506_s23 }
 0x8ec   : > { %v15536_v39 = vadd.f32 %v5872_v4, %v15513_v28  ;;  %v5875_v61 = vadd.f32 %v10652_v15, %v15451_v2 }
 0x8ee   : > { %11984 = vtanh.f32 %v15536_v39  ;;  %v15542_v16 = vadd.f32 %v5875_v61, %v15513_v28  ;;  %v10653_v7 = vpop.f32.mrb[12].mxu0 }
 0x8ef   : > { %v10654_v38 = vpop.f32.mrb[13].mxu0 }
 0x8f0   : > { %v11981_v57 = vpop.eup %11980  ;;  %v10655_v22 = vadd.f32 %v10654_v38, %v10653_v7  ;;  %v10656_v56 = vpop.f32.mrb[14].mxu0  ;;  %11986 = vtanh.f32 %v15542_v16 }
 0x8f1   : > { %v10657_v17 = vpop.f32.mrb[15].mxu0  ;;  %6306 = vrot.lane.b32.xlu0 %v11981_v57, %s12506_s23 }
 0x8f2   : > { %v5880_v10 = vadd.f32 %v15442_v20, %v10655_v22  ;;  %v10658_v2 = vadd.f32 %v10657_v17, %v10656_v56  ;;  %v11983_v21 = vpop.eup %11982 }
 0x8f3   : > { %6308 = vrot.lane.b32.xlu1 %v11983_v21, %s12506_s23 }
 0x8f4   : > { %v15548_v29 = vadd.f32 %v5880_v10, %v15513_v28  ;;  %v5883_v4 = vadd.f32 %v15449_v62, %v10658_v2 }
 0x8f6   : > { %11988 = vtanh.f32 %v15548_v29  ;;  %v15554_v15 = vadd.f32 %v5883_v4, %v15513_v28  ;;  %v10659_v53 = vpop.f32.mrb[16].mxu0 }
 0x8f7   : > { %v10660_v61 = vpop.f32.mrb[17].mxu0 }
 0x8f8   : > { %v11985_v7 = vpop.eup %11984  ;;  %v10661_v38 = vadd.f32 %v10660_v61, %v10659_v53  ;;  %v10662_v57 = vpop.f32.mrb[18].mxu0  ;;  %11990 = vtanh.f32 %v15554_v15 }
 0x8f9   : > { %v10663_v20 = vpop.f32.mrb[19].mxu0  ;;  %6310 = vrot.lane.b32.xlu0 %v11985_v7, %s12506_s23 }
 0x8fa   : > { %v5888_v22 = vadd.f32 %v10661_v38, %v15463_v26  ;;  %v10664_v62 = vadd.f32 %v10663_v20, %v10662_v57  ;;  %v11987_v56 = vpop.eup %11986 }
 0x8fb   : > { %6312 = vrot.lane.b32.xlu1 %v11987_v56, %s12506_s23 }
 0x8fc   : > { %v15560_v17 = vadd.f32 %v5888_v22, %v15513_v28  ;;  %v5891_v10 = vadd.f32 %v10664_v62, %v15468_v44 }
 0x8fe   : > { %11992 = vtanh.f32 %v15560_v17  ;;  %v15566_v2 = vadd.f32 %v5891_v10, %v15513_v28  ;;  %v10665_v21 = vpop.f32.mrb[20].mxu0 }
 0x8ff   : > { %v10666_v4 = vpop.f32.mrb[21].mxu0 }
 0x900   : > { %v11989_v53 = vpop.eup %11988  ;;  %v10667_v61 = vadd.f32 %v10666_v4, %v10665_v21  ;;  %v10668_v7 = vpop.f32.mrb[22].mxu0  ;;  %11994 = vtanh.f32 %v15566_v2 }
 0x901   : > { %v10669_v26 = vpop.f32.mrb[23].mxu0  ;;  %6314 = vrot.lane.b32.xlu0 %v11989_v53, %s12506_s23 }
 0x902   : > { %v5896_v38 = vadd.f32 %v15459_v27, %v10667_v61  ;;  %v10670_v44 = vadd.f32 %v10669_v26, %v10668_v7  ;;  %v11991_v57 = vpop.eup %11990 }
 0x903   : > { %6316 = vrot.lane.b32.xlu1 %v11991_v57, %s12506_s23 }
 0x904   : > { %v15572_v20 = vadd.f32 %v5896_v38, %v15513_v28  ;;  %v5899_v22 = vadd.f32 %v15466_v60, %v10670_v44 }
 0x906   : > { %11996 = vtanh.f32 %v15572_v20  ;;  %v15578_v62 = vadd.f32 %v5899_v22, %v15513_v28  ;;  %v10671_v56 = vpop.f32.mrb[24].mxu0 }
 0x907   : > { %v10672_v10 = vpop.f32.mrb[25].mxu0 }
 0x908   : > { %v11993_v21 = vpop.eup %11992  ;;  %v10673_v4 = vadd.f32 %v10672_v10, %v10671_v56  ;;  %v10674_v53 = vpop.f32.mrb[26].mxu0  ;;  %11998 = vtanh.f32 %v15578_v62 }
 0x909   : > { %v10675_v27 = vpop.f32.mrb[27].mxu0  ;;  %6318 = vrot.lane.b32.xlu0 %v11993_v21, %s12506_s23 }
 0x90a   : > { %v5904_v61 = vadd.f32 %v10673_v4, %v15472_v54  ;;  %v10676_v60 = vadd.f32 %v10675_v27, %v10674_v53  ;;  %v11995_v7 = vpop.eup %11994 }
 0x90b   : > { %6320 = vrot.lane.b32.xlu1 %v11995_v7, %s12506_s23 }
 0x90c   : > { %v15584_v26 = vadd.f32 %v5904_v61, %v15513_v28  ;;  %v5907_v38 = vadd.f32 %v10676_v60, %v15476_v3 }
 0x90e   : > { %12000 = vtanh.f32 %v15584_v26  ;;  %v15590_v44 = vadd.f32 %v5907_v38, %v15513_v28  ;;  %v10677_v57 = vpop.f32.mrb[28].mxu0 }
 0x90f   : > { %v10678_v22 = vpop.f32.mrb[29].mxu0 }
 0x910   : > { %v11997_v56 = vpop.eup %11996  ;;  %v10679_v10 = vadd.f32 %v10678_v22, %v10677_v57  ;;  %v10680_v21 = vpop.f32.mrb[30].mxu0  ;;  %12002 = vtanh.f32 %v15590_v44 }
 0x911   : > { %v10681_v54 = vpop.f32.mrb[31].mxu0  ;;  %6322 = vrot.lane.b32.xlu0 %v11997_v56, %s12506_s23 }
 0x912   : > { %v5912_v4 = vadd.f32 %v15470_v36, %v10679_v10  ;;  %v10682_v3 = vadd.f32 %v10681_v54, %v10680_v21  ;;  %v11999_v53 = vpop.eup %11998 }
 0x913   : > { %6324 = vrot.lane.b32.xlu1 %v11999_v53, %s12506_s23 }
 0x914   : > { %v15596_v27 = vadd.f32 %v5912_v4, %v15513_v28  ;;  %v5915_v61 = vadd.f32 %v15474_v52, %v10682_v3 }
 0x916   : > { %12004 = vtanh.f32 %v15596_v27  ;;  %v15602_v60 = vadd.f32 %v5915_v61, %v15513_v28  ;;  %v10683_v7 = vpop.f32.mrb[32].mxu0 }
 0x917   : > { %v10684_v38 = vpop.f32.mrb[33].mxu0 }
 0x918   : > { %v12001_v57 = vpop.eup %12000  ;;  %v10685_v22 = vadd.f32 %v10684_v38, %v10683_v7  ;;  %v10686_v56 = vpop.f32.mrb[34].mxu0  ;;  %12006 = vtanh.f32 %v15602_v60 }
 0x919   : > { %v10687_v36 = vpop.f32.mrb[35].mxu0  ;;  %6326 = vrot.lane.b32.xlu0 %v12001_v57, %s12506_s23 }
 0x91a   : > { %v5920_v10 = vadd.f32 %v10685_v22, %v15480_v33  ;;  %v10688_v52 = vadd.f32 %v10687_v36, %v10686_v56  ;;  %v12003_v21 = vpop.eup %12002 }
 0x91b   : > { %6328 = vrot.lane.b32.xlu1 %v12003_v21, %s12506_s23 }
 0x91c   : > { %v15608_v54 = vadd.f32 %v5920_v10, %v15513_v28  ;;  %v5923_v4 = vadd.f32 %v10688_v52, %v15484_v12 }
 0x91e   : > { %12008 = vtanh.f32 %v15608_v54  ;;  %v15614_v3 = vadd.f32 %v5923_v4, %v15513_v28  ;;  %v10689_v53 = vpop.f32.mrb[36].mxu0 }
 0x91f   : > { %v10690_v61 = vpop.f32.mrb[37].mxu0 }
 0x920   : > { %v12005_v7 = vpop.eup %12004  ;;  %v10691_v38 = vadd.f32 %v10690_v61, %v10689_v53  ;;  %v10692_v57 = vpop.f32.mrb[38].mxu0  ;;  %12010 = vtanh.f32 %v15614_v3 }
 0x921   : > { %v10693_v33 = vpop.f32.mrb[39].mxu0  ;;  %6330 = vrot.lane.b32.xlu0 %v12005_v7, %s12506_s23 }
 0x922   : > { %v5928_v22 = vadd.f32 %v15478_v34, %v10691_v38  ;;  %v10694_v12 = vadd.f32 %v10693_v33, %v10692_v57  ;;  %v12007_v56 = vpop.eup %12006 }
 0x923   : > { %6332 = vrot.lane.b32.xlu1 %v12007_v56, %s12506_s23 }
 0x924   : > { %v15620_v36 = vadd.f32 %v5928_v22, %v15513_v28  ;;  %v5931_v10 = vadd.f32 %v15482_v41, %v10694_v12 }
 0x926   : > { %12012 = vtanh.f32 %v15620_v36  ;;  %v15626_v52 = vadd.f32 %v5931_v10, %v15513_v28  ;;  %v10695_v21 = vpop.f32.mrb[40].mxu0 }
 0x927   : > { %v10696_v4 = vpop.f32.mrb[41].mxu0 }
 0x928   : > { %v12009_v53 = vpop.eup %12008  ;;  %v10697_v61 = vadd.f32 %v10696_v4, %v10695_v21  ;;  %v10698_v7 = vpop.f32.mrb[42].mxu0  ;;  %12014 = vtanh.f32 %v15626_v52 }
 0x929   : > { %v10699_v34 = vpop.f32.mrb[43].mxu0  ;;  %6334 = vrot.lane.b32.xlu0 %v12009_v53, %s12506_s23 }
 0x92a   : > { %v5936_v38 = vadd.f32 %v10697_v61, %v15488_v46  ;;  %v10700_v41 = vadd.f32 %v10699_v34, %v10698_v7  ;;  %v12011_v57 = vpop.eup %12010 }
 0x92b   : > { %6336 = vrot.lane.b32.xlu1 %v12011_v57, %s12506_s23 }
 0x92c   : > { %v15632_v33 = vadd.f32 %v5936_v38, %v15513_v28  ;;  %v5939_v22 = vadd.f32 %v10700_v41, %v15492_v1 }
 0x92e   : > { %12016 = vtanh.f32 %v15632_v33  ;;  %v15638_v12 = vadd.f32 %v5939_v22, %v15513_v28  ;;  %v10701_v56 = vpop.f32.mrb[44].mxu0 }
 0x92f   : > { %v10702_v10 = vpop.f32.mrb[45].mxu0 }
 0x930   : > { %v12013_v21 = vpop.eup %12012  ;;  %v10703_v4 = vadd.f32 %v10702_v10, %v10701_v56  ;;  %v10704_v53 = vpop.f32.mrb[46].mxu0  ;;  %12018 = vtanh.f32 %v15638_v12 }
 0x931   : > { %v10705_v46 = vpop.f32.mrb[47].mxu0  ;;  %6338 = vrot.lane.b32.xlu0 %v12013_v21, %s12506_s23 }
 0x932   : > { %v5944_v61 = vadd.f32 %v15486_v58, %v10703_v4  ;;  %v10706_v1 = vadd.f32 %v10705_v46, %v10704_v53  ;;  %v12015_v7 = vpop.eup %12014  ;;  %v9981_v58 = vmul.f32 -1.442695, %v15516_v50 }
 0x933   : > { %6340 = vrot.lane.b32.xlu1 %v12015_v7, %s12506_s23 }
 0x934   : > { %v15644_v34 = vadd.f32 %v5944_v61, %v15513_v28  ;;  %v5947_v38 = vadd.f32 %v15490_v14, %v10706_v1 }
 0x936   : > { %12020 = vtanh.f32 %v15644_v34  ;;  %v15650_v41 = vadd.f32 %v5947_v38, %v15513_v28  ;;  %v10707_v57 = vpop.f32.mrb[48].mxu0  ;;  %v9982_v38 = vmul.f32 -1.442695, %v15520_v13 }
 0x937   : > { %v10708_v22 = vpop.f32.mrb[49].mxu0 }
 0x938   : > { %v12017_v56 = vpop.eup %12016  ;;  %v10709_v10 = vadd.f32 %v10708_v22, %v10707_v57  ;;  %v10710_v21 = vpop.f32.mrb[50].mxu0  ;;  %12022 = vtanh.f32 %v15650_v41 }
 0x939   : > { %v10711_v4 = vpop.f32.mrb[51].mxu0  ;;  %6342 = vrot.lane.b32.xlu0 %v12017_v56, %s12506_s23  ;;  %12024 = vpow2.f32 %v9981_v58 }
 0x93a   : > { %v5952_v14 = vadd.f32 %v10709_v10, %v15496_v19  ;;  %v10712_v53 = vadd.f32 %v10711_v4, %v10710_v21  ;;  %v12019_v46 = vpop.eup %12018  ;;  %v9983_v10 = vmul.f32 -1.442695, %v15525_v37 }
 0x93b   : > { %6344 = vrot.lane.b32.xlu1 %v12019_v46, %s12506_s23 }
 0x93c   : > { %v15657_v61 = vadd.f32 %v5952_v14, %v15513_v28  ;;  %v5955_v1 = vadd.f32 %v10712_v53, %v15500_v48 }
 0x93e   : > { %12026 = vtanh.f32 %v15657_v61  ;;  %v15663_v50 = vadd.f32 %v5955_v1, %v15513_v28  ;;  %v10713_v7 = vpop.f32.mrb[52].mxu0 }
 0x93f   : > { %v10714_v57 = vpop.f32.mrb[53].mxu0 }
 0x940   : > { %v12021_v19 = vpop.eup %12020  ;;  %v10715_v22 = vadd.f32 %v10714_v57, %v10713_v7  ;;  %v10716_v56 = vpop.f32.mrb[54].mxu0  ;;  %12028 = vtanh.f32 %v15663_v50 }
 0x941   : > { %v10717_v48 = vpop.f32.mrb[55].mxu0  ;;  %6346 = vrot.lane.b32.xlu0 %v12021_v19, %s12506_s23  ;;  %12030 = vpow2.f32 %v9982_v38 }
 0x942   : > { %v5960_v21 = vadd.f32 %v15494_v23, %v10715_v22  ;;  %v10718_v58 = vadd.f32 %v10717_v48, %v10716_v56  ;;  %v12023_v4 = vpop.eup %12022  ;;  %12032 = vpow2.f32 %v9983_v10  ;;  %v9984_v23 = vmul.f32 -1.442695, %v15530_v25 }
 0x943   : > { %6348 = vrot.lane.b32.xlu1 %v12023_v4, %s12506_s23  ;;  %v12025_v46 = vpop.eup %12024  ;;  %v9985_v48 = vmul.f32 -1.442695, %v15536_v39 }
 0x944   : > { %v15671_v14 = vadd.f32 %v5960_v21, %v15513_v28  ;;  %v5963_v13 = vadd.f32 %v15498_v18, %v10718_v58  ;;  %v6110_v10 = vadd.f32 1.0, %v12025_v46 }
 0x946   : > { %12034 = vtanh.f32 %v15671_v14  ;;  %v15677_v37 = vadd.f32 %v5963_v13, %v15513_v28  ;;  %v10719_v53 = vpop.f32.mrb[56].mxu0 }
 0x947   : > { %v10720_v1 = vpop.f32.mrb[57].mxu0 }
 0x948   : > { %v12027_v7 = vpop.eup %12026  ;;  %v10721_v38 = vadd.f32 %v10720_v1, %v10719_v53  ;;  %v10722_v57 = vpop.f32.mrb[58].mxu0  ;;  %12036 = vtanh.f32 %v15677_v37  ;;  %v9986_v53 = vmul.f32 -1.442695, %v15542_v16  ;;  %v9987_v16 = vmul.f32 -1.442695, %v15548_v29 }
 0x949   : > { %v10723_v19 = vpop.f32.mrb[59].mxu0  ;;  %6350 = vrot.lane.b32.xlu0 %v12027_v7, %s12506_s23  ;;  %12038 = vpow2.f32 %v9984_v23 }
 0x94a   : > { %v5968_v18 = vadd.f32 %v10721_v38, %v15504_v59  ;;  %v10724_v22 = vadd.f32 %v10723_v19, %v10722_v57  ;;  %v12029_v56 = vpop.eup %12028 }
 0x94b   : > { %6352 = vrot.lane.b32.xlu1 %v12029_v56, %s12506_s23  ;;  %v12031_v58 = vpop.eup %12030 }
 0x94c   : > { %v15685_v21 = vadd.f32 %v5968_v18, %v15513_v28  ;;  %v5971_v25 = vadd.f32 %v10724_v22, %v15508_v6  ;;  %v12033_v13 = vpop.eup %12032  ;;  %v6111_v23 = vadd.f32 1.0, %v12031_v58 }
 0x94d   : > { %v6112_v18 = vadd.f32 1.0, %v12033_v13 }
 0x94e   : > { %12040 = vtanh.f32 %v15685_v21  ;;  %v15691_v4 = vadd.f32 %v5971_v25, %v15513_v28  ;;  %v10725_v59 = vpop.f32.mrb[60].mxu0 }
 0x94f   : > { %12042 = vrcp.f32 %v6110_v10  ;;  %v10726_v46 = vpop.f32.mrb[61].mxu0 }
 0x950   : > { %v12035_v39 = vpop.eup %12034  ;;  %12044 = vpow2.f32 %v9985_v48  ;;  %v10727_v1 = vadd.f32 %v10726_v46, %v10725_v59  ;;  %v10728_v7 = vpop.f32.mrb[62].mxu0 }
 0x951   : > { %12046 = vtanh.f32 %v15691_v4  ;;  %v10729_v6 = vpop.f32.mrb[63].mxu0  ;;  %6354 = vrot.lane.b32.xlu0 %v12035_v39, %s12506_s23 }
 0x952   : > { %v5976_v38 = vadd.f32 %v15502_v30, %v10727_v1  ;;  %v10730_v57 = vadd.f32 %v10729_v6, %v10728_v7  ;;  %v12037_v19 = vpop.eup %12036  ;;  %12048 = vpow2.f32 %v9986_v53  ;;  %v9988_v30 = vmul.f32 -1.442695, %v15554_v15 }
 0x953   : > { %12050 = vrcp.f32 %v6111_v23  ;;  %6356 = vrot.lane.b32.xlu1 %v12037_v19, %s12506_s23  ;;  %v12039_v10 = vpop.eup %12038  ;;  %v9990_v1 = vmul.f32 -1.442695, %v15566_v2 }
 0x954   : > { %v15699_v22 = vadd.f32 %v5976_v38, %v15513_v28  ;;  %v5979_v56 = vadd.f32 %v15506_v49, %v10730_v57  ;;  %v6113_v58 = vadd.f32 1.0, %v12039_v10 }
 0x956   : > { %12052 = vtanh.f32 %v15699_v22  ;;  %v15705_v48 = vadd.f32 %v5979_v56, %v15513_v28  ;;  %v9989_v28 = vmul.f32 -1.442695, %v15560_v17 }
 0x957   : > { %12054 = vrcp.f32 %v6112_v18 }
 0x958   : > { %v12041_v25 = vpop.eup %12040  ;;  %12056 = vpow2.f32 %v9987_v16  ;;  %v9991_v16 = vmul.f32 -1.442695, %v15572_v20 }
 0x959   : > { %v15708_v29 = vpop.eup %12042  ;;  %12058 = vtanh.f32 %v15705_v48  ;;  %6358 = vrot.lane.b32.xlu0 %v12041_v25, %s12506_s23 }
 0x95a   : > { %v12045_v49 = vpop.eup %12044  ;;  %12060 = vpow2.f32 %v9988_v30 }
 0x95b   : > { %v12047_v59 = vpop.eup %12046  ;;  %v6303_v13 = vpop.permute.xlu0 %6302  ;;  %12062 = vrcp.f32 %v6113_v58  ;;  %v6114_v46 = vadd.f32 1.0, %v12045_v49  ;;  %v9992_v58 = vmul.f32 -1.442695, %v15578_v62 }
 0x95c   : > { %6360 = vrot.lane.b32.xlu1 %v12047_v59, %s12506_s23  ;;  %v6398_v15 = vmul.f32 %v15708_v29, %v6303_v13  ;;  %v12049_v53 = vpop.eup %12048  ;;  %12064 = vpow2.f32 %v9989_v28 }
 0x95d   : > { %v15715_v39 = vpop.eup %12050  ;;  %v6305_v23 = vpop.permute.xlu1 %6304  ;;  %v6115_v38 = vadd.f32 1.0, %v12049_v53  ;;  %12066 = vrcp.f32 %v6114_v46 }
 0x95e   : > { %6462 = vrot.lane.b32.xlu0 %v6398_v15, %s12505_s21  ;;  %v6399_v7 = vmul.f32 %v15715_v39, %v6305_v23  ;;  %12068 = vpow2.f32 %v9990_v1  ;;  %v9993_v15 = vmul.f32 -1.442695, %v15584_v26 }
 0x95f   : > { %12070 = vrcp.f32 %v6115_v38 }
 0x960   : > { %v12053_v6 = vpop.eup %12052  ;;  %6464 = vrot.lane.b32.xlu1 %v6399_v7, %s12505_s21  ;;  %12072 = vpow2.f32 %v9991_v16  ;;  %v9994_v7 = vmul.f32 -1.442695, %v15590_v44 }
 0x961   : > { %v15720_v57 = vpop.eup %12054 }
 0x962   : > { %v12057_v17 = vpop.eup %12056  ;;  %6362 = vrot.lane.b32.xlu0 %v12053_v6, %s12506_s23 }
 0x963   : > { %v12059_v19 = vpop.eup %12058  ;;  %v6307_v18 = vpop.permute.xlu0 %6306  ;;  %v6116_v10 = vadd.f32 1.0, %v12057_v17 }
 0x964   : > { %v6400_v2 = vmul.f32 %v15720_v57, %v6307_v18  ;;  %v12061_v56 = vpop.eup %12060  ;;  %6364 = vrot.lane.b32.xlu1 %v12059_v19, %s12506_s23  ;;  %v9995_v18 = vmul.f32 -1.442695, %v15596_v27 }
 0x965   : > { %v15727_v30 = vpop.eup %12062  ;;  %v6309_v25 = vpop.permute.xlu1 %6308  ;;  %v6117_v59 = vadd.f32 1.0, %v12061_v56  ;;  %12074 = vrcp.f32 %v6116_v10 }
 0x966   : > { %6466 = vrot.lane.b32.xlu0 %v6400_v2, %s12505_s21  ;;  %v6401_v49 = vmul.f32 %v15727_v30, %v6309_v25  ;;  %v12065_v20 = vpop.eup %12064  ;;  %12076 = vpow2.f32 %v9992_v58  ;;  %v9996_v25 = vmul.f32 -1.442695, %v15602_v60 }
 0x967   : > { %v15733_v13 = vpop.eup %12066  ;;  %12078 = vrcp.f32 %v6117_v59  ;;  %v6118_v23 = vadd.f32 1.0, %v12065_v20 }
 0x968   : > { %6468 = vrot.lane.b32.xlu1 %v6401_v49, %s12505_s21  ;;  %v12069_v46 = vpop.eup %12068  ;;  %12080 = vpow2.f32 %v9993_v15 }
 0x969   : > { %v15737_v62 = vpop.eup %12070  ;;  %v6119_v38 = vadd.f32 1.0, %v12069_v46  ;;  %12082 = vrcp.f32 %v6118_v23 }
 0x96a   : > { %v12073_v17 = vpop.eup %12072  ;;  %12084 = vpow2.f32 %v9994_v7 }
 0x96b   : > { %v6311_v28 = vpop.permute.xlu0 %6310  ;;  %12086 = vrcp.f32 %v6119_v38  ;;  %v6120_v56 = vadd.f32 1.0, %v12073_v17 }
 0x96c   : > { %v6402_v53 = vmul.f32 %v15733_v13, %v6311_v28  ;;  %12088 = vpow2.f32 %v9995_v18  ;;  %v9997_v28 = vmul.f32 -1.442695, %v15608_v54 }
 0x96d   : > { %v6313_v1 = vpop.permute.xlu1 %6312  ;;  %12090 = vrcp.f32 %v6120_v56 }
 0x96e   : > { %6470 = vrot.lane.b32.xlu0 %v6402_v53, %s12505_s21  ;;  %v6403_v6 = vmul.f32 %v15737_v62, %v6313_v1  ;;  %12092 = vpow2.f32 %v9996_v25  ;;  %v9998_v1 = vmul.f32 -1.442695, %v15614_v3 }
 0x96f   : > { %v15743_v26 = vpop.eup %12074 }
 0x970   : > { %6472 = vrot.lane.b32.xlu1 %v6403_v6, %s12505_s21  ;;  %v12077_v2 = vpop.eup %12076 }
 0x971   : > { %v15747_v44 = vpop.eup %12078  ;;  %v6121_v49 = vadd.f32 1.0, %v12077_v2 }
 0x972   : > { %v12081_v59 = vpop.eup %12080 }
 0x973   : > { %v6315_v19 = vpop.permute.xlu0 %6314  ;;  %v15753_v27 = vpop.eup %12082  ;;  %12094 = vrcp.f32 %v6121_v49  ;;  %v6122_v46 = vadd.f32 1.0, %v12081_v59 }
 0x974   : > { %v6404_v16 = vmul.f32 %v15743_v26, %v6315_v19  ;;  %v12085_v53 = vpop.eup %12084  ;;  %12096 = vpow2.f32 %v9997_v28  ;;  %v9999_v19 = vmul.f32 -1.442695, %v15620_v36 }
 0x975   : > { %v6317_v10 = vpop.permute.xlu1 %6316  ;;  %v15757_v60 = vpop.eup %12086  ;;  %v6123_v6 = vadd.f32 1.0, %v12085_v53  ;;  %12098 = vrcp.f32 %v6122_v46 }
 0x976   : > { %6474 = vrot.lane.b32.xlu0 %v6404_v16, %s12505_s21  ;;  %v6405_v58 = vmul.f32 %v15747_v44, %v6317_v10  ;;  %v12089_v38 = vpop.eup %12088  ;;  %12100 = vpow2.f32 %v9998_v1  ;;  %v10000_v10 = vmul.f32 -1.442695, %v15626_v52 }
 0x977   : > { %v15763_v54 = vpop.eup %12090  ;;  %12102 = vrcp.f32 %v6123_v6  ;;  %v6124_v2 = vadd.f32 1.0, %v12089_v38 }
 0x978   : > { %6476 = vrot.lane.b32.xlu1 %v6405_v58, %s12505_s21  ;;  %v12093_v16 = vpop.eup %12092  ;;  %12104 = vpow2.f32 %v9999_v19 }
 0x979   : > { %v6125_v58 = vadd.f32 1.0, %v12093_v16  ;;  %12106 = vrcp.f32 %v6124_v2 }
 0x97a   : > { %12108 = vpow2.f32 %v10000_v10 }
 0x97b   : > { %v6319_v20 = vpop.permute.xlu0 %6318  ;;  %12110 = vrcp.f32 %v6125_v58 }
 0x97c   : > { %v6406_v15 = vmul.f32 %v15753_v27, %v6319_v20  ;;  %v10001_v20 = vmul.f32 -1.442695, %v15632_v33 }
 0x97d   : > { %v6321_v23 = vpop.permute.xlu1 %6320  ;;  %v15767_v3 = vpop.eup %12094 }
 0x97e   : > { %6478 = vrot.lane.b32.xlu0 %v6406_v15, %s12505_s21  ;;  %v6407_v7 = vmul.f32 %v15757_v60, %v6321_v23  ;;  %v12097_v49 = vpop.eup %12096  ;;  %v10002_v23 = vmul.f32 -1.442695, %v15638_v12  ;;  %12112 = vpow2.f32 %v10001_v20 }
 0x97f   : > { %v15773_v36 = vpop.eup %12098  ;;  %v6126_v53 = vadd.f32 1.0, %v12097_v49 }
 0x980   : > { %6480 = vrot.lane.b32.xlu1 %v6407_v7, %s12505_s21  ;;  %v12101_v15 = vpop.eup %12100 }
 0x981   : > { %v15777_v52 = vpop.eup %12102  ;;  %v6127_v7 = vadd.f32 1.0, %v12101_v15  ;;  %12114 = vrcp.f32 %v6126_v53 }
 0x982   : > { %v12105_v6 = vpop.eup %12104  ;;  %12116 = vpow2.f32 %v10002_v23 }
 0x983   : > { %v6323_v17 = vpop.permute.xlu0 %6322  ;;  %v15783_v33 = vpop.eup %12106  ;;  %12118 = vrcp.f32 %v6127_v7  ;;  %v6128_v16 = vadd.f32 1.0, %v12105_v6  ;;  %v10007_v6 = vmul.f32 -1.442695, %v15671_v14 }
 0x984   : > { %v6408_v18 = vmul.f32 %v15763_v54, %v6323_v17  ;;  %v10003_v17 = vmul.f32 -1.442695, %v15644_v34 }
 0x985   : > { %v6325_v56 = vpop.permute.xlu1 %6324 }
 0x986   : > { %6482 = vrot.lane.b32.xlu0 %v6408_v18, %s12505_s21  ;;  %v6409_v25 = vmul.f32 %v15767_v3, %v6325_v56  ;;  %v12109_v18 = vpop.eup %12108  ;;  %v10004_v56 = vmul.f32 -1.442695, %v15650_v41  ;;  %12120 = vpow2.f32 %v10003_v17 }
 0x987   : > { %v15787_v12 = vpop.eup %12110  ;;  %12122 = vrcp.f32 %v6128_v16  ;;  %v10008_v16 = vmul.f32 -1.442695, %v15677_v37 }
 0x988   : > { %6484 = vrot.lane.b32.xlu1 %v6409_v25, %s12505_s21  ;;  %v6129_v25 = vadd.f32 1.0, %v12109_v18  ;;  %v12113_v58 = vpop.eup %12112  ;;  %12124 = vpow2.f32 %v10004_v56 }
 0x989   : > { %v6130_v15 = vadd.f32 1.0, %v12113_v58 }
 0x98a   : > { %12126 = vrcp.f32 %v6129_v25 }
 0x98b   : > { %v6327_v59 = vpop.permute.xlu0 %6326  ;;  %v15793_v34 = vpop.eup %12114 }
 0x98c   : > { %v6410_v28 = vmul.f32 %v15773_v36, %v6327_v59  ;;  %v10005_v59 = vmul.f32 -1.442695, %v15657_v61 }
 0x98d   : > { %v6329_v46 = vpop.permute.xlu1 %6328 }
 0x98e   : > { %6486 = vrot.lane.b32.xlu0 %v6410_v28, %s12505_s21  ;;  %v6411_v1 = vmul.f32 %v15777_v52, %v6329_v46  ;;  %v12117_v28 = vpop.eup %12116  ;;  %v10006_v46 = vmul.f32 -1.442695, %v15663_v50  ;;  %12128 = vpow2.f32 %v10005_v59 }
 0x98f   : > { %v15797_v41 = vpop.eup %12118  ;;  %12130 = vrcp.f32 %v6130_v15 }
 0x990   : > { %6488 = vrot.lane.b32.xlu1 %v6411_v1, %s12505_s21  ;;  %v6131_v1 = vadd.f32 1.0, %v12117_v28  ;;  %v12121_v7 = vpop.eup %12120  ;;  %12132 = vpow2.f32 %v10006_v46 }
 0x991   : > { %v15803_v61 = vpop.eup %12122  ;;  %v6132_v18 = vadd.f32 1.0, %v12121_v7 }
 0x992   : > { %12134 = vrcp.f32 %v6131_v1 }
 0x993   : > { %v6331_v38 = vpop.permute.xlu0 %6330  ;;  %12136 = vpow2.f32 %v10007_v6 }
 0x994   : > { %v6412_v19 = vmul.f32 %v15783_v33, %v6331_v38  ;;  %12138 = vrcp.f32 %v6132_v18 }
 0x995   : > { %v6333_v2 = vpop.permute.xlu1 %6332  ;;  %12140 = vpow2.f32 %v10008_v16 }
 0x996   : > { %6490 = vrot.lane.b32.xlu0 %v6412_v19, %s12505_s21  ;;  %v6413_v10 = vmul.f32 %v15787_v12, %v6333_v2  ;;  %v12125_v19 = vpop.eup %12124 }
 0x997   : > { %v15807_v50 = vpop.eup %12126 }
 0x998   : > { %6492 = vrot.lane.b32.xlu1 %v6413_v10, %s12505_s21  ;;  %v6133_v10 = vadd.f32 1.0, %v12125_v19  ;;  %v12129_v14 = vpop.eup %12128  ;;  %v10011_v19 = vmul.f32 -1.442695, %v15699_v22 }
 0x999   : > { %v15813_v25 = vpop.eup %12130 }
 0x99a   : > { %12142 = vrcp.f32 %v6133_v10  ;;  %v12133_v59 = vpop.eup %12132 }
 0x99b   : > { %v6335_v49 = vpop.permute.xlu0 %6334 }
 0x99c   : > { %v6414_v20 = vmul.f32 %v15793_v34, %v6335_v49  ;;  %v10009_v49 = vmul.f32 -1.442695, %v15685_v21  ;;  %v15817_v28 = vpop.eup %12134 }
 0x99d   : > { %v6337_v53 = vpop.permute.xlu1 %6336  ;;  %v12137_v1 = vpop.eup %12136 }
 0x99e   : > { %6494 = vrot.lane.b32.xlu0 %v6414_v20, %s12505_s21  ;;  %v6415_v23 = vmul.f32 %v15797_v41, %v6337_v53  ;;  %v6134_v20 = vadd.f32 1.0, %v12129_v14  ;;  %v10010_v53 = vmul.f32 -1.442695, %v15691_v4  ;;  %12144 = vpow2.f32 %v10009_v49  ;;  %v15823_v21 = vpop.eup %12138 }
 0x99f   : > { %v12141_v6 = vpop.eup %12140 }
 0x9a0   : > { %6496 = vrot.lane.b32.xlu1 %v6415_v23, %s12505_s21  ;;  %v6135_v23 = vadd.f32 1.0, %v12133_v59  ;;  %12146 = vrcp.f32 %v6134_v20  ;;  %v6137_v16 = vadd.f32 1.0, %v12141_v6 }
 0x9a1   : > { %12148 = vpow2.f32 %v10010_v53 }
 0x9a2   : > { %12150 = vrcp.f32 %v6135_v23 }
 0x9a3   : > { %v6339_v38 = vpop.permute.xlu0 %6338 }
 0x9a4   : > { %v6416_v17 = vmul.f32 %v15803_v61, %v6339_v38  ;;  %v6136_v38 = vadd.f32 1.0, %v12137_v1  ;;  %v15827_v4 = vpop.eup %12142 }
 0x9a5   : > { %v6341_v2 = vpop.permute.xlu1 %6340 }
 0x9a6   : > { %6498 = vrot.lane.b32.xlu0 %v6416_v17, %s12505_s21  ;;  %v6417_v56 = vmul.f32 %v15807_v50, %v6341_v2  ;;  %12152 = vrcp.f32 %v6136_v38 }
 0x9a7   : > { %12154 = vpow2.f32 %v10011_v19 }
 0x9a8   : > { %6500 = vrot.lane.b32.xlu1 %v6417_v56, %s12505_s21  ;;  %v10012_v56 = vmul.f32 -1.442695, %v15705_v48  ;;  %v12145_v10 = vpop.eup %12144  ;;  %12156 = vrcp.f32 %v6137_v16 }
 0x9aa   : > { %v15833_v14 = vpop.eup %12146  ;;  %12158 = vpow2.f32 %v10012_v56 }
 0x9ab   : > { %v6343_v58 = vpop.permute.xlu0 %6342  ;;  %v12149_v49 = vpop.eup %12148 }
 0x9ac   : > { %v6418_v37 = vmul.f32 %v15813_v25, %v6343_v58  ;;  %v15836_v59 = vpop.eup %12150 }
 0x9ad   : > { %v6345_v15 = vpop.permute.xlu1 %6344 }
 0x9ae   : > { %6502 = vrot.lane.b32.xlu0 %v6418_v37, %s12505_s21  ;;  %v6419_v46 = vmul.f32 %v15817_v28, %v6345_v15  ;;  %v6138_v37 = vadd.f32 1.0, %v12145_v10  ;;  %v6139_v15 = vadd.f32 1.0, %v12149_v49  ;;  %v6238_v49 = vmul.f32 %v15708_v29, %v14998_v9 }
 0x9b0   : > { %6504 = vrot.lane.b32.xlu1 %v6419_v46, %s12505_s21  ;;  %12160 = vrcp.f32 %v6138_v37  ;;  %v15841_v53 = vpop.eup %12152 }
 0x9b1   : > { %v12155_v46 = vpop.eup %12154  ;;  %12162 = vrcp.f32 %v6139_v15 }
 0x9b2   : > { %v6140_v38 = vadd.f32 1.0, %v12155_v46 }
 0x9b3   : > { %v6347_v7 = vpop.permute.xlu0 %6346 }
 0x9b4   : > { %v6420_v17 = vmul.f32 %v15823_v21, %v6347_v7  ;;  %v15844_v7 = vpop.eup %12156  ;;  %12164 = vrcp.f32 %v6140_v38 }
 0x9b5   : > { %v6349_v18 = vpop.permute.xlu1 %6348  ;;  %v12159_v6 = vpop.eup %12158 }
 0x9b6   : > { %6506 = vrot.lane.b32.xlu0 %v6420_v17, %s12505_s21  ;;  %v6421_v2 = vmul.f32 %v15827_v4, %v6349_v18  ;;  %v6141_v18 = vadd.f32 1.0, %v12159_v6 }
 0x9b8   : > { %6508 = vrot.lane.b32.xlu1 %v6421_v2, %s12505_s21  ;;  %12166 = vrcp.f32 %v6141_v18 }
 0x9ba   : > { %v15849_v16 = vpop.eup %12160 }
 0x9bb   : > { %v6351_v58 = vpop.permute.xlu0 %6350  ;;  %v15852_v10 = vpop.eup %12162 }
 0x9bc   : > { %v6422_v22 = vmul.f32 %v15833_v14, %v6351_v58 }
 0x9bd   : > { %v6353_v20 = vpop.permute.xlu1 %6352 }
 0x9be   : > { %6510 = vrot.lane.b32.xlu0 %v6422_v22, %s12505_s21  ;;  %v6423_v48 = vmul.f32 %v15836_v59, %v6353_v20  ;;  %v15864_v46 = vpop.eup %12164 }
 0x9c0   : > { %6512 = vrot.lane.b32.xlu1 %v6423_v48, %s12505_s21  ;;  %v6239_v48 = vmul.f32 %v15715_v39, %v15005_v51  ;;  %v6240_v51 = vmul.f32 %v15720_v57, %v15015_v0  ;;  %v6242_v0 = vmul.f32 %v15733_v13, %v15028_v32  ;;  %v6244_v32 = vmul.f32 %v15743_v26, %v15040_v42 }
 0x9c1   : > { %v6246_v42 = vmul.f32 %v15753_v27, %v15052_v11  ;;  %v6248_v11 = vmul.f32 %v15763_v54, %v15064_v45  ;;  %v6250_v45 = vmul.f32 %v15773_v36, %v15076_v8  ;;  %v6252_v8 = vmul.f32 %v15783_v33, %v15088_v5  ;;  %v11418_v5 = vld [vmem:[%s17083_s5 + $0x30] sm:$0xff]  }
 0x9c2   : > { %v15870_v9 = vpop.eup %12166  ;;  %11081 = vmatprep.subr.bf16.mxu0 %v11418_v5 }
 0x9c3   : > { %v6355_v23 = vpop.permute.xlu0 %6354  ;;  %11082 = vmatpush3.bf16.msra.mxu0 %v11418_v5 }
 0x9c4   : > { %v6424_v1 = vmul.f32 %v15841_v53, %v6355_v23 }
 0x9c5   : > { %v6357_v17 = vpop.permute.xlu1 %6356 }
 0x9c6   : > { %6514 = vrot.lane.b32.xlu0 %v6424_v1, %s12505_s21  ;;  %v6425_v19 = vmul.f32 %v15844_v7, %v6357_v17 }
 0x9c8   : > { %6516 = vrot.lane.b32.xlu1 %v6425_v19, %s12505_s21 }
 0x9cb   : > { %v6359_v2 = vpop.permute.xlu0 %6358 }
 0x9cc   : > { %v6426_v56 = vmul.f32 %v15849_v16, %v6359_v2  ;;  %v6241_v2 = vmul.f32 %v15727_v30, %v15021_v40  ;;  %v6243_v40 = vmul.f32 %v15737_v62, %v15033_v35  ;;  %v6245_v35 = vmul.f32 %v15747_v44, %v15045_v24 }
 0x9cd   : > { %v6247_v24 = vmul.f32 %v15757_v60, %v15057_v55  ;;  %v6249_v55 = vmul.f32 %v15767_v3, %v15069_v47  ;;  %v6251_v47 = vmul.f32 %v15777_v52, %v15081_v63  ;;  %v6253_v63 = vmul.f32 %v15787_v12, %v15093_v31 }
 0x9ce   : > { %v6361_v58 = vpop.permute.xlu1 %6360  ;;  %6518 = vrot.lane.b32.xlu0 %v6426_v56, %s12505_s21 }
 0x9cf   : > { %v6427_v22 = vmul.f32 %v15852_v10, %v6361_v58 }
 0x9d0   : > { %v6463_v37 = vpop.permute.xlu0 %6462 }
 0x9d1   : > { %6520 = vrot.lane.b32.xlu1 %v6427_v22, %s12505_s21  ;;  %v15859_v20 = vadd.f32 %v6463_v37, %v6238_v49 }
 0x9d2   : > { %v6465_v15 = vpop.permute.xlu1 %6464 }
 0x9d3   : > { %12168 = vtanh.f32 %v15859_v20  ;;  %v15866_v23 = vadd.f32 %v6465_v15, %v6239_v48 }
 0x9d4   : > { %v6363_v1 = vpop.permute.xlu0 %6362 }
 0x9d5   : > { %v6428_v6 = vmul.f32 %v15864_v46, %v6363_v1  ;;  %12170 = vtanh.f32 %v15866_v23 }
 0x9d6   : > { %v6365_v38 = vpop.permute.xlu1 %6364 }
 0x9d7   : > { %6522 = vrot.lane.b32.xlu0 %v6428_v6, %s12505_s21  ;;  %v6429_v17 = vmul.f32 %v15870_v9, %v6365_v38 }
 0x9d8   : > { %v6467_v19 = vpop.permute.xlu0 %6466 }
 0x9d9   : > { %v15876_v18 = vadd.f32 %v6467_v19, %v6240_v51  ;;  %6524 = vrot.lane.b32.xlu1 %v6429_v17, %s12505_s21 }
 0x9da   : > { %v6469_v56 = vpop.permute.xlu1 %6468 }
 0x9db   : > { %12172 = vtanh.f32 %v15876_v18  ;;  %v15882_v58 = vadd.f32 %v6469_v56, %v6241_v2 }
 0x9dd   : > { %v12169_v22 = vpop.eup %12168  ;;  %12174 = vtanh.f32 %v15882_v58 }
 0x9de   : > { %6654 = vrot.lane.b32.xlu0 %v12169_v22, %s12506_s23 }
 0x9df   : > { %v12171_v49 = vpop.eup %12170 }
 0x9e0   : > { %v6471_v37 = vpop.permute.xlu0 %6470  ;;  %6656 = vrot.lane.b32.xlu1 %v12171_v49, %s12506_s23 }
 0x9e1   : > { %v15889_v48 = vadd.f32 %v6471_v37, %v6242_v0 }
 0x9e2   : > { %v6473_v15 = vpop.permute.xlu1 %6472 }
 0x9e3   : > { %12176 = vtanh.f32 %v15889_v48  ;;  %v15894_v1 = vadd.f32 %v6473_v15, %v6243_v40 }
 0x9e5   : > { %v12173_v6 = vpop.eup %12172  ;;  %12178 = vtanh.f32 %v15894_v1 }
 0x9e6   : > { %6658 = vrot.lane.b32.xlu0 %v12173_v6, %s12506_s23 }
 0x9e7   : > { %v12175_v38 = vpop.eup %12174 }
 0x9e8   : > { %v6475_v51 = vpop.permute.xlu0 %6474  ;;  %6660 = vrot.lane.b32.xlu1 %v12175_v38, %s12506_s23 }
 0x9e9   : > { %v15901_v17 = vadd.f32 %v6475_v51, %v6244_v32 }
 0x9ea   : > { %v6477_v19 = vpop.permute.xlu1 %6476 }
 0x9eb   : > { %12180 = vtanh.f32 %v15901_v17  ;;  %v15906_v2 = vadd.f32 %v6477_v19, %v6245_v35 }
 0x9ed   : > { %v12177_v56 = vpop.eup %12176  ;;  %12182 = vtanh.f32 %v15906_v2 }
 0x9ee   : > { %6662 = vrot.lane.b32.xlu0 %v12177_v56, %s12506_s23 }
 0x9ef   : > { %v12179_v22 = vpop.eup %12178 }
 0x9f0   : > { %v6479_v0 = vpop.permute.xlu0 %6478  ;;  %6664 = vrot.lane.b32.xlu1 %v12179_v22, %s12506_s23 }
 0x9f1   : > { %v15913_v49 = vadd.f32 %v6479_v0, %v6246_v42 }
 0x9f2   : > { %v6481_v37 = vpop.permute.xlu1 %6480 }
 0x9f3   : > { %12184 = vtanh.f32 %v15913_v49  ;;  %v15918_v40 = vadd.f32 %v6481_v37, %v6247_v24 }
 0x9f5   : > { %v12181_v15 = vpop.eup %12180  ;;  %12186 = vtanh.f32 %v15918_v40 }
 0x9f6   : > { %6666 = vrot.lane.b32.xlu0 %v12181_v15, %s12506_s23 }
 0x9f7   : > { %v12183_v6 = vpop.eup %12182 }
 0x9f8   : > { %v6483_v32 = vpop.permute.xlu0 %6482  ;;  %6668 = vrot.lane.b32.xlu1 %v12183_v6, %s12506_s23 }
 0x9f9   : > { %v15925_v38 = vadd.f32 %v6483_v32, %v6248_v11 }
 0x9fa   : > { %v6485_v51 = vpop.permute.xlu1 %6484 }
 0x9fb   : > { %12188 = vtanh.f32 %v15925_v38  ;;  %v15930_v35 = vadd.f32 %v6485_v51, %v6249_v55 }
 0x9fd   : > { %v12185_v19 = vpop.eup %12184  ;;  %12190 = vtanh.f32 %v15930_v35 }
 0x9fe   : > { %6670 = vrot.lane.b32.xlu0 %v12185_v19, %s12506_s23  ;;  %v6254_v19 = vmul.f32 %v15793_v34, %v15103_v43  ;;  %v17423_v43 = vld [vmem:[#allocation3_spill] sm:$0xff] }
 0x9ff   : > { %v12187_v56 = vpop.eup %12186 }
 0xa00   : > { %v6487_v42 = vpop.permute.xlu0 %6486  ;;  %6672 = vrot.lane.b32.xlu1 %v12187_v56, %s12506_s23 }
 0xa01   : > { %v15937_v22 = vadd.f32 %v6487_v42, %v6250_v45  ;;  %v17421_v42 = vld [vmem:[#allocation4_spill] sm:$0xff] }
 0xa02   : > { %v6489_v0 = vpop.permute.xlu1 %6488 }
 0xa03   : > { %12192 = vtanh.f32 %v15937_v22  ;;  %v15942_v24 = vadd.f32 %v6489_v0, %v6251_v47  ;;  %v6255_v47 = vmul.f32 %v15797_v41, %v17421_v42  ;;  %v17427_v42 = vld [vmem:[#allocation7_spill] sm:$0xff] }
 0xa05   : > { %v12189_v37 = vpop.eup %12188  ;;  %12194 = vtanh.f32 %v15942_v24 }
 0xa06   : > { %6674 = vrot.lane.b32.xlu0 %v12189_v37, %s12506_s23 }
 0xa07   : > { %v12191_v15 = vpop.eup %12190 }
 0xa08   : > { %v6491_v11 = vpop.permute.xlu0 %6490  ;;  %6676 = vrot.lane.b32.xlu1 %v12191_v15, %s12506_s23  ;;  %v6256_v15 = vmul.f32 %v15803_v61, %v17423_v43 }
 0xa09   : > { %v15949_v6 = vadd.f32 %v6491_v11, %v6252_v8 }
 0xa0a   : > { %v6493_v32 = vpop.permute.xlu1 %6492 }
 0xa0b   : > { %12196 = vtanh.f32 %v15949_v6  ;;  %v15954_v55 = vadd.f32 %v6493_v32, %v6253_v63 }
 0xa0d   : > { %17419 = vst [vmem:[#allocation31_spill] sm:$0xff] %v15954_v55  ;;  %v12193_v51 = vpop.eup %12192  ;;  %12198 = vtanh.f32 %v15954_v55 }
 0xa0e   : > { %6678 = vrot.lane.b32.xlu0 %v12193_v51, %s12506_s23  ;;  %v17425_v51 = vld [vmem:[#allocation8_spill] sm:$0xff] }
 0xa0f   : > { %v12195_v45 = vpop.eup %12194  ;;  %v6257_v5 = vmul.f32 %v15807_v50, %v17425_v51 }
 0xa10   : > { %v6495_v56 = vpop.permute.xlu0 %6494  ;;  %6680 = vrot.lane.b32.xlu1 %v12195_v45, %s12506_s23 }
 0xa11   : > { %v15964_v31 = vadd.f32 %v6495_v56, %v6254_v19 }
 0xa12   : > { %v6497_v0 = vpop.permute.xlu1 %6496 }
 0xa13   : > { %17420 = vst [vmem:[#allocation36_spill] sm:$0xff] %v15964_v31  ;;  %12200 = vtanh.f32 %v15964_v31  ;;  %v15969_v37 = vadd.f32 %v6497_v0, %v6255_v47  ;;  %v6258_v47 = vmul.f32 %v15813_v25, %v17427_v42 }
 0xa15   : > { %17422 = vst [vmem:[#allocation35_spill] sm:$0xff] %v15969_v37  ;;  %v12197_v8 = vpop.eup %12196  ;;  %12202 = vtanh.f32 %v15969_v37 }
 0xa16   : > { %6682 = vrot.lane.b32.xlu0 %v12197_v8, %s12506_s23 }
 0xa17   : > { %v12199_v11 = vpop.eup %12198 }
 0xa18   : > { %v6499_v63 = vpop.permute.xlu0 %6498  ;;  %6684 = vrot.lane.b32.xlu1 %v12199_v11, %s12506_s23 }
 0xa19   : > { %v15976_v32 = vadd.f32 %v6499_v63, %v6256_v15  ;;  %v17429_v15 = vld [vmem:[#allocation12_spill] sm:$0xff] }
 0xa1a   : > { %v6501_v19 = vpop.permute.xlu1 %6500  ;;  %v6259_v11 = vmul.f32 %v15817_v28, %v17429_v15 }
 0xa1b   : > { %17424 = vst [vmem:[#allocation40_spill] sm:$0xff] %v15976_v32  ;;  %12204 = vtanh.f32 %v15976_v32  ;;  %v15981_v45 = vadd.f32 %v6501_v19, %v6257_v5  ;;  %v17431_v19 = vld [vmem:[#allocation11_spill] sm:$0xff] }
 0xa1d   : > { %17426 = vst [vmem:[#allocation39_spill] sm:$0xff] %v15981_v45  ;;  %v12201_v56 = vpop.eup %12200  ;;  %12206 = vtanh.f32 %v15981_v45 }
 0xa1e   : > { %6686 = vrot.lane.b32.xlu0 %v12201_v56, %s12506_s23  ;;  %v6260_v56 = vmul.f32 %v15823_v21, %v17431_v19 }
 0xa1f   : > { %v12203_v0 = vpop.eup %12202 }
 0xa20   : > { %v6503_v8 = vpop.permute.xlu0 %6502  ;;  %6688 = vrot.lane.b32.xlu1 %v12203_v0, %s12506_s23 }
 0xa21   : > { %v15988_v43 = vadd.f32 %v6503_v8, %v6258_v47  ;;  %v17433_v8 = vld [vmem:[#allocation16_spill] sm:$0xff] }
 0xa22   : > { %v6505_v63 = vpop.permute.xlu1 %6504  ;;  %v6261_v15 = vmul.f32 %v15827_v4, %v17433_v8 }
 0xa23   : > { %17428 = vst [vmem:[#allocation44_spill] sm:$0xff] %v15988_v43  ;;  %12208 = vtanh.f32 %v15988_v43  ;;  %v15993_v51 = vadd.f32 %v6505_v63, %v6259_v11 }
 0xa25   : > { %17430 = vst [vmem:[#allocation43_spill] sm:$0xff] %v15993_v51  ;;  %v12205_v5 = vpop.eup %12204  ;;  %12210 = vtanh.f32 %v15993_v51 }
 0xa26   : > { %6690 = vrot.lane.b32.xlu0 %v12205_v5, %s12506_s23  ;;  %v17435_v5 = vld [vmem:[#allocation15_spill] sm:$0xff] }
 0xa27   : > { %v12207_v42 = vpop.eup %12206  ;;  %v6262_v19 = vmul.f32 %v15833_v14, %v17435_v5 }
 0xa28   : > { %v6507_v0 = vpop.permute.xlu0 %6506  ;;  %6692 = vrot.lane.b32.xlu1 %v12207_v42, %s12506_s23 }
 0xa29   : > { %v16000_v47 = vadd.f32 %v6507_v0, %v6260_v56  ;;  %v17437_v0 = vld [vmem:[#allocation20_spill] sm:$0xff] }
 0xa2a   : > { %v6509_v11 = vpop.permute.xlu1 %6508  ;;  %v6263_v8 = vmul.f32 %v15836_v59, %v17437_v0 }
 0xa2b   : > { %17432 = vst [vmem:[#allocation48_spill] sm:$0xff] %v16000_v47  ;;  %12212 = vtanh.f32 %v16000_v47  ;;  %v16005_v63 = vadd.f32 %v6509_v11, %v6261_v15 }
 0xa2d   : > { %17434 = vst [vmem:[#allocation47_spill] sm:$0xff] %v16005_v63  ;;  %v12209_v51 = vpop.eup %12208  ;;  %12214 = vtanh.f32 %v16005_v63 }
 0xa2e   : > { %6694 = vrot.lane.b32.xlu0 %v12209_v51, %s12506_s23  ;;  %v17439_v51 = vld [vmem:[#allocation19_spill] sm:$0xff] }
 0xa2f   : > { %v12211_v43 = vpop.eup %12210  ;;  %v6264_v5 = vmul.f32 %v15841_v53, %v17439_v51 }
 0xa30   : > { %v6511_v42 = vpop.permute.xlu0 %6510  ;;  %6696 = vrot.lane.b32.xlu1 %v12211_v43, %s12506_s23 }
 0xa31   : > { %v16012_v56 = vadd.f32 %v6511_v42, %v6262_v19  ;;  %v17441_v42 = vld [vmem:[#allocation24_spill] sm:$0xff] }
 0xa32   : > { %v6513_v15 = vpop.permute.xlu1 %6512  ;;  %v6265_v0 = vmul.f32 %v15844_v7, %v17441_v42 }
 0xa33   : > { %17436 = vst [vmem:[#allocation52_spill] sm:$0xff] %v16012_v56  ;;  %12216 = vtanh.f32 %v16012_v56  ;;  %v16017_v11 = vadd.f32 %v6513_v15, %v6263_v8 }
 0xa35   : > { %17438 = vst [vmem:[#allocation51_spill] sm:$0xff] %v16017_v11  ;;  %v12213_v63 = vpop.eup %12212  ;;  %12218 = vtanh.f32 %v16017_v11 }
 0xa36   : > { %6698 = vrot.lane.b32.xlu0 %v12213_v63, %s12506_s23  ;;  %v17443_v63 = vld [vmem:[#allocation23_spill] sm:$0xff] }
 0xa37   : > { %v12215_v47 = vpop.eup %12214  ;;  %v6266_v51 = vmul.f32 %v15849_v16, %v17443_v63 }
 0xa38   : > { %v6515_v43 = vpop.permute.xlu0 %6514  ;;  %6700 = vrot.lane.b32.xlu1 %v12215_v47, %s12506_s23 }
 0xa39   : > { %v16024_v19 = vadd.f32 %v6515_v43, %v6264_v5  ;;  %v17445_v43 = vld [vmem:[#allocation28_spill] sm:$0xff] }
 0xa3a   : > { %v6517_v8 = vpop.permute.xlu1 %6516  ;;  %v6267_v42 = vmul.f32 %v15852_v10, %v17445_v43 }
 0xa3b   : > { %17440 = vst [vmem:[#allocation56_spill] sm:$0xff] %v16024_v19  ;;  %12220 = vtanh.f32 %v16024_v19  ;;  %v16029_v15 = vadd.f32 %v6517_v8, %v6265_v0 }
 0xa3d   : > { %17442 = vst [vmem:[#allocation55_spill] sm:$0xff] %v16029_v15  ;;  %v12217_v11 = vpop.eup %12216  ;;  %12222 = vtanh.f32 %v16029_v15 }
 0xa3e   : > { %6702 = vrot.lane.b32.xlu0 %v12217_v11, %s12506_s23  ;;  %v11419_v11 = vld [vmem:[%s17084_s6 + $0x40] ss:$8 sps:$4 sm:$0xff]  }
 0xa3f   : > { %v12219_v56 = vpop.eup %12218 }
 0xa40   : > { %v6519_v47 = vpop.permute.xlu0 %6518  ;;  %6704 = vrot.lane.b32.xlu1 %v12219_v56, %s12506_s23  ;;  %v11421_v56 = vld [vmem:[%s17084_s6 + $0x44] ss:$8 sps:$4 sm:$0xff]  }
 0xa41   : > { %v16036_v5 = vadd.f32 %v6519_v47, %v6266_v51  ;;  %v17447_v51 = vld [vmem:[#allocation27_spill] sm:$0xff]  ;;  %6919 = vmatprep.subr.bf16.mxu1 %v11421_v56 }
 0xa42   : > { %v6268_v47 = vmul.f32 %v15864_v46, %v17447_v51  ;;  %6920 = vmatpush1.bf16.msra.mxu1 %v11419_v11  ;;  %v17449_v51 = vld [vmem:[#allocation32_spill] sm:$0xff] }
 0xa43   : > { %17444 = vst [vmem:[#allocation60_spill] sm:$0xff] %v16036_v5  ;;  %12224 = vtanh.f32 %v16036_v5  ;;  %v6521_v0 = vpop.permute.xlu1 %6520  ;;  %v6269_v56 = vmul.f32 %v15870_v9, %v17449_v51 }
 0xa44   : > { %v16041_v8 = vadd.f32 %v6521_v0, %v6267_v42  ;;  %v11424_v0 = vld [vmem:[%s17084_s6 + $0x54] ss:$8 sps:$4 sm:$0xff]  }
 0xa45   : > { %v12221_v15 = vpop.eup %12220  ;;  %6921 = vmatprep.subr.bf16.mxu1 %v11424_v0 }
 0xa46   : > { %17446 = vst [vmem:[#allocation59_spill] sm:$0xff] %v16041_v8  ;;  %12226 = vtanh.f32 %v16041_v8  ;;  %6706 = vrot.lane.b32.xlu0 %v12221_v15, %s12506_s23  ;;  %v11422_v15 = vld [vmem:[%s17084_s6 + $0x50] ss:$8 sps:$4 sm:$0xff]  }
 0xa47   : > { %v12223_v63 = vpop.eup %12222  ;;  %v11425_v8 = vld [vmem:[%s17083_s5 + $0x38] sm:$0xff]   ;;  %6922 = vmatpush1.bf16.msra.mxu1 %v11422_v15 }
 0xa48   : > { %6708 = vrot.lane.b32.xlu1 %v12223_v63, %s12506_s23  ;;  %11083 = vmatprep.subr.bf16.mxu0 %v11425_v8 }
 0xa49   : > { %v6523_v43 = vpop.permute.xlu0 %6522  ;;  %11084 = vmatpush3.bf16.msra.mxu0 %v11425_v8 }
 0xa4a   : > { %v16054_v42 = vadd.f32 %v6523_v43, %v6268_v47 }
 0xa4b   : > { %v6525_v11 = vpop.permute.xlu1 %6524 }
 0xa4c   : > { %17448 = vst [vmem:[#allocation64_spill] sm:$0xff] %v16054_v42  ;;  %12228 = vtanh.f32 %v16054_v42  ;;  %v16068_v47 = vadd.f32 %v6525_v11, %v6269_v56 }
 0xa4d   : > { %v12225_v63 = vpop.eup %12224 }
 0xa4e   : > { %17450 = vst [vmem:[#allocation63_spill] sm:$0xff] %v16068_v47  ;;  %6710 = vrot.lane.b32.xlu0 %v12225_v63, %s12506_s23  ;;  %12230 = vtanh.f32 %v16068_v47 }
 0xa50   : > { %v12227_v43 = vpop.eup %12226  ;;  %v6655_v19 = vpop.permute.xlu0 %6654 }
 0xa51   : > { %6712 = vrot.lane.b32.xlu1 %v12227_v43, %s12506_s23  ;;  %v6750_v0 = vmul.f32 %v15708_v29, %v6655_v19 }
 0xa52   : > { %v6657_v5 = vpop.permute.xlu1 %6656 }
 0xa53   : > { %v6751_v51 = vmul.f32 %v15715_v39, %v6657_v5 }
 0xa55   : > { %v6782_v11 = vpack.c.bf16 %v6751_v51, %v6750_v0 }
 0xa56   : > { %v12229_v42 = vpop.eup %12228 }
 0xa57   : > { %6714 = vrot.lane.b32.xlu0 %v12229_v42, %s12506_s23 }
 0xa58   : > { %v12231_v56 = vpop.eup %12230  ;;  %v6659_v15 = vpop.permute.xlu0 %6658 }
 0xa59   : > { %6716 = vrot.lane.b32.xlu1 %v12231_v56, %s12506_s23  ;;  %v6752_v63 = vmul.f32 %v15720_v57, %v6659_v15 }
 0xa5a   : > { %v6661_v8 = vpop.permute.xlu1 %6660 }
 0xa5b   : > { %6819 = vrot.lane.b32.xlu0 %v6782_v11, %s12505_s21  ;;  %v6753_v43 = vmul.f32 %v15727_v30, %v6661_v8 }
 0xa5d   : > { %v6783_v47 = vpack.c.bf16 %v6753_v43, %v6752_v63 }
 0xa5f   : > { %6821 = vrot.lane.b32.xlu1 %v6783_v47, %s12505_s21 }
 0xa60   : > { %v6663_v39 = vpop.permute.xlu0 %6662 }
 0xa61   : > { %v6754_v29 = vmul.f32 %v15733_v13, %v6663_v39 }
 0xa62   : > { %v6665_v5 = vpop.permute.xlu1 %6664 }
 0xa63   : > { %v6755_v19 = vmul.f32 %v15737_v62, %v6665_v5 }
 0xa65   : > { %v6784_v42 = vpack.c.bf16 %v6755_v19, %v6754_v29 }
 0xa67   : > { %6823 = vrot.lane.b32.xlu0 %v6784_v42, %s12505_s21 }
 0xa68   : > { %v6667_v51 = vpop.permute.xlu0 %6666 }
 0xa69   : > { %v6756_v56 = vmul.f32 %v15743_v26, %v6667_v51 }
 0xa6a   : > { %v6669_v0 = vpop.permute.xlu1 %6668 }
 0xa6b   : > { %v6757_v57 = vmul.f32 %v15747_v44, %v6669_v0 }
 0xa6d   : > { %v6785_v11 = vpack.c.bf16 %v6757_v57, %v6756_v56 }
 0xa6f   : > { %6825 = vrot.lane.b32.xlu1 %v6785_v11, %s12505_s21 }
 0xa70   : > { %v6671_v30 = vpop.permute.xlu0 %6670 }
 0xa71   : > { %v6758_v15 = vmul.f32 %v15753_v27, %v6671_v30 }
 0xa72   : > { %v6673_v47 = vpop.permute.xlu1 %6672 }
 0xa73   : > { %v6759_v13 = vmul.f32 %v15757_v60, %v6673_v47 }
 0xa75   : > { %v6786_v8 = vpack.c.bf16 %v6759_v13, %v6758_v15 }
 0xa77   : > { %6827 = vrot.lane.b32.xlu0 %v6786_v8, %s12505_s21 }
 0xa78   : > { %v6675_v62 = vpop.permute.xlu0 %6674 }
 0xa79   : > { %v6760_v43 = vmul.f32 %v15763_v54, %v6675_v62  ;;  %v11426_v54 = vld [vmem:[%s17082_s4 + $0x1c0] sm:$0xff]  }
 0xa7a   : > { %v6677_v63 = vpop.permute.xlu1 %6676  ;;  %10749 = vmatprep.subr.bf16.mxu0 %v11426_v54 }
 0xa7b   : > { %v6761_v26 = vmul.f32 %v15767_v3, %v6677_v63 }
 0xa7d   : > { %v6787_v39 = vpack.c.bf16 %v6761_v26, %v6760_v43 }
 0xa7f   : > { %6829 = vrot.lane.b32.xlu1 %v6787_v39, %s12505_s21 }
 0xa80   : > { %v6679_v44 = vpop.permute.xlu0 %6678 }
 0xa81   : > { %v6762_v29 = vmul.f32 %v15773_v36, %v6679_v44 }
 0xa82   : > { %v6681_v5 = vpop.permute.xlu1 %6680 }
 0xa83   : > { %v6763_v27 = vmul.f32 %v15777_v52, %v6681_v5 }
 0xa85   : > { %v6788_v19 = vpack.c.bf16 %v6763_v27, %v6762_v29 }
 0xa87   : > { %6831 = vrot.lane.b32.xlu0 %v6788_v19, %s12505_s21 }
 0xa88   : > { %v6683_v60 = vpop.permute.xlu0 %6682 }
 0xa89   : > { %v6764_v3 = vmul.f32 %v15783_v33, %v6683_v60 }
 0xa8a   : > { %v6685_v42 = vpop.permute.xlu1 %6684 }
 0xa8b   : > { %v6765_v51 = vmul.f32 %v15787_v12, %v6685_v42 }
 0xa8d   : > { %v6789_v0 = vpack.c.bf16 %v6765_v51, %v6764_v3 }
 0xa8f   : > { %6833 = vrot.lane.b32.xlu1 %v6789_v0, %s12505_s21 }
 0xa90   : > { %v6687_v36 = vpop.permute.xlu0 %6686 }
 0xa91   : > { %v6766_v52 = vmul.f32 %v15793_v34, %v6687_v36 }
 0xa92   : > { %v6689_v56 = vpop.permute.xlu1 %6688 }
 0xa93   : > { %v6767_v57 = vmul.f32 %v15797_v41, %v6689_v56  ;;  %v17451_v56 = vmov 0  }
 0xa95   : > { %v6790_v11 = vpack.c.bf16 %v6767_v57, %v6766_v52  ;;  %v11430_v52 = vld [vmem:[%s17082_s4 + $0x1d0] sm:$0xff]  }
 0xa96   : > { %v11431_v57 = vld [vmem:[%s17082_s4 + $0x190] sm:$0xff]  }
 0xa97   : > { %6835 = vrot.lane.b32.xlu0 %v6790_v11, %s12505_s21  ;;  %v11432_v11 = vld [vmem:[%s17082_s4 + $0x1d8] sm:$0xff]  }
 0xa98   : > { %v6691_v30 = vpop.permute.xlu0 %6690 }
 0xa99   : > { %v6768_v15 = vmul.f32 %v15803_v61, %v6691_v30 }
 0xa9a   : > { %v6693_v47 = vpop.permute.xlu1 %6692 }
 0xa9b   : > { %v6769_v33 = vmul.f32 %v15807_v50, %v6693_v47  ;;  %v11433_v47 = vld [vmem:[%s17082_s4 + $0x198] sm:$0xff]  }
 0xa9d   : > { %v6791_v12 = vpack.c.bf16 %v6769_v33, %v6768_v15  ;;  %v11434_v15 = vld [vmem:[%s17082_s4 + $0x1e0] sm:$0xff]  }
 0xa9e   : > { %v11435_v33 = vld [vmem:[%s17082_s4 + $0x1a0] sm:$0xff]  }
 0xa9f   : > { %6837 = vrot.lane.b32.xlu1 %v6791_v12, %s12505_s21  ;;  %v11436_v12 = vld [vmem:[%s17082_s4 + $0x1e8] sm:$0xff]  }
 0xaa0   : > { %v6695_v13 = vpop.permute.xlu0 %6694 }
 0xaa1   : > { %v6770_v62 = vmul.f32 %v15813_v25, %v6695_v13 }
 0xaa2   : > { %v6697_v8 = vpop.permute.xlu1 %6696 }
 0xaa3   : > { %v6771_v34 = vmul.f32 %v15817_v28, %v6697_v8  ;;  %v11437_v8 = vld [vmem:[%s17082_s4 + $0x1a8] sm:$0xff]  }
 0xaa5   : > { %v6792_v63 = vpack.c.bf16 %v6771_v34, %v6770_v62  ;;  %v11438_v62 = vld [vmem:[%s17082_s4 + $0x1f0] sm:$0xff]  }
 0xaa6   : > { %v11439_v34 = vld [vmem:[%s17082_s4 + $0x1b0] sm:$0xff]  }
 0xaa7   : > { %6839 = vrot.lane.b32.xlu0 %v6792_v63, %s12505_s21  ;;  %v11440_v63 = vld [vmem:[%s17082_s4 + $0x1f8] sm:$0xff]  }
 0xaa8   : > { %v6699_v41 = vpop.permute.xlu0 %6698 }
 0xaa9   : > { %v6772_v26 = vmul.f32 %v15823_v21, %v6699_v41 }
 0xaaa   : > { %v6701_v43 = vpop.permute.xlu1 %6700 }
 0xaab   : > { %v6773_v61 = vmul.f32 %v15827_v4, %v6701_v43  ;;  %v11441_v43 = vld [vmem:[%s17082_s4 + $0x1b8] sm:$0xff]  }
 0xaad   : > { %v6793_v39 = vpack.c.bf16 %v6773_v61, %v6772_v26 }
 0xaaf   : > { %6841 = vrot.lane.b32.xlu1 %v6793_v39, %s12505_s21 }
 0xab0   : > { %v6703_v50 = vpop.permute.xlu0 %6702 }
 0xab1   : > { %v6774_v5 = vmul.f32 %v15833_v14, %v6703_v50 }
 0xab2   : > { %v6705_v44 = vpop.permute.xlu1 %6704 }
 0xab3   : > { %v6775_v25 = vmul.f32 %v15836_v59, %v6705_v44 }
 0xab5   : > { %v6794_v29 = vpack.c.bf16 %v6775_v25, %v6774_v5 }
 0xab7   : > { %6843 = vrot.lane.b32.xlu0 %v6794_v29, %s12505_s21 }
 0xab8   : > { %v6707_v28 = vpop.permute.xlu0 %6706 }
 0xab9   : > { %v6776_v19 = vmul.f32 %v15841_v53, %v6707_v28 }
 0xaba   : > { %v6709_v27 = vpop.permute.xlu1 %6708 }
 0xabb   : > { %v6777_v21 = vmul.f32 %v15844_v7, %v6709_v27 }
 0xabd   : > { %v6795_v60 = vpack.c.bf16 %v6777_v21, %v6776_v19  ;;  %v17452_v21 = vld [vmem:[#allocation68_spill] sm:$0xff] }
 0xabf   : > { %6845 = vrot.lane.b32.xlu1 %v6795_v60, %s12505_s21  ;;  %v17453_v60 = vld [vmem:[#allocation67_spill] sm:$0xff] }
 0xac0   : > { %v6711_v4 = vpop.permute.xlu0 %6710 }
 0xac1   : > { %v6778_v54 = vmul.f32 %v15849_v16, %v6711_v4  ;;  %v11427_v16 = vld [vmem:[%s17082_s4 + $0x180] sm:$0xff]  }
 0xac2   : > { %v17454_v4 = vld [vmem:[#allocation70_spill] sm:$0xff] }
 0xac3   : > { %v6713_v42 = vpop.permute.xlu1 %6712 }
 0xac4   : > { %v6779_v14 = vmul.f32 %v15852_v10, %v6713_v42  ;;  %v11428_v10 = vld [vmem:[%s17082_s4 + $0x1c8] sm:$0xff]   ;;  %v17455_v42 = vld [vmem:[#allocation69_spill] sm:$0xff] }
 0xac6   : > { %v6796_v3 = vpack.c.bf16 %v6779_v14, %v6778_v54  ;;  %v17456_v54 = vld [vmem:[#allocation72_spill] sm:$0xff]  ;;  %v17457_v14 = vld [vmem:[#allocation71_spill] sm:$0xff] }
 0xac8   : > { %6847 = vrot.lane.b32.xlu0 %v6796_v3, %s12505_s21  ;;  %v17458_v3 = vld [vmem:[#allocation74_spill] sm:$0xff] }
 0xac9   : > { %v6715_v59 = vpop.permute.xlu0 %6714 }
 0xaca   : > { %v6780_v0 = vmul.f32 %v15864_v46, %v6715_v59  ;;  %v17459_v59 = vld [vmem:[#allocation73_spill] sm:$0xff] }
 0xacb   : > { %v6717_v51 = vpop.permute.xlu1 %6716 }
 0xacc   : > { %v6781_v53 = vmul.f32 %v15870_v9, %v6717_v51  ;;  %v11429_v9 = vld [vmem:[%s17082_s4 + $0x188] sm:$0xff]   ;;  %v17460_v51 = vld [vmem:[#allocation76_spill] sm:$0xff] }
 0xacd   : > { %v6820_v36 = vpop.permute.xlu0 %6819 }
 0xace   : > { %10021 = vmatmul.mubr.msk.bf16.vlgmr.msra.gmra.mrb[224].mxu1 %vm2126_vm0, %v6820_v36  ;;  %11085 = vmatprep.mubr.msk.bf16.mxu0 %vm2126_vm0, %v6820_v36  ;;  %v6797_v7 = vpack.c.bf16 %v6781_v53, %v6780_v0  ;;  %v17461_v0 = vld [vmem:[#allocation75_spill] sm:$0xff]  ;;  %v17462_v53 = vld [vmem:[#allocation78_spill] sm:$0xff]  ;;  %v17463_v36 = vld [vmem:[#allocation77_spill] sm:$0xff] }
 0xacf   : > { %6961 = vmatprep.mubr.bf16.mxu1 %v17451_v56 }
 0xad0   : > { %6849 = vrot.lane.b32.xlu1 %v6797_v7, %s12505_s21  ;;  %v17464_v7 = vld [vmem:[#allocation80_spill] sm:$0xff] }
 0xad1   : > { %v6822_v46 = vpop.permute.xlu1 %6821 }
 0xad2   : > { %11086 = vmatmul.mubr.msk.bf16.vlgmr.msra.gmra.mrb[64].mxu0 %vm2126_vm0, %v6822_v46 }
 0xad3   : > { %10750 = vmatpush3.bf16.msra.mxu0 %v11427_v16  ;;  %v17465_v16 = vld [vmem:[#allocation79_spill] sm:$0xff] }
 0xad4   : > { %10751 = vmatprep.subr.bf16.mxu0 %v11428_v10  ;;  %v17466_v10 = vld [vmem:[#allocation82_spill] sm:$0xff] }
 0xad6   : > { %10022 = vmatmul.mubr.msk.bf16.gmra.mrb[228].mxu1 %vm2126_vm0, %v6822_v46  ;;  %v17467_v46 = vld [vmem:[#allocation81_spill] sm:$0xff] }
 0xad7   : > { %6971 = vmatprep.mubr.bf16.mxu1 %v17451_v56  ;;  %10752 = vmatpush3.bf16.msra.mxu0 %v11429_v9  ;;  %v17468_v9 = vld [vmem:[#allocation84_spill] sm:$0xff] }
 0xad8   : > { %10753 = vmatprep.subr.bf16.mxu0 %v11430_v52  ;;  %v17469_v52 = vld [vmem:[#allocation83_spill] sm:$0xff] }
 0xad9   : > { %v6824_v30 = vpop.permute.xlu0 %6823 }
 0xada   : > { %11089 = vmatprep.mubr.msk.bf16.mxu0 %vm2126_vm0, %v6824_v30 }
 0xadb   : > { %10754 = vmatpush3.bf16.msra.mxu0 %v11431_v57  ;;  %v17470_v57 = vld [vmem:[#allocation86_spill] sm:$0xff] }
 0xadc   : > { %10755 = vmatprep.subr.bf16.mxu0 %v11432_v11  ;;  %v17471_v11 = vld [vmem:[#allocation85_spill] sm:$0xff] }
 0xade   : > { %10023 = vmatmul.mubr.msk.bf16.gmra.mrb[232].mxu1 %vm2126_vm0, %v6824_v30  ;;  %v17472_v30 = vld [vmem:[#allocation88_spill] sm:$0xff] }
 0xadf   : > { %6981 = vmatprep.mubr.bf16.mxu1 %v17451_v56  ;;  %10756 = vmatpush3.bf16.msra.mxu0 %v11433_v47  ;;  %v17473_v47 = vld [vmem:[#allocation87_spill] sm:$0xff] }
 0xae0   : > { %10757 = vmatprep.subr.bf16.mxu0 %v11434_v15  ;;  %v17474_v15 = vld [vmem:[#allocation90_spill] sm:$0xff] }
 0xae1   : > { %v6826_v13 = vpop.permute.xlu1 %6825 }
 0xae2   : > { %11090 = vmatmul.mubr.msk.bf16.gmra.mrb[68].mxu0 %vm2126_vm0, %v6826_v13 }
 0xae3   : > { %10758 = vmatpush3.bf16.msra.mxu0 %v11435_v33  ;;  %v17475_v33 = vld [vmem:[#allocation89_spill] sm:$0xff] }
 0xae4   : > { %10759 = vmatprep.subr.bf16.mxu0 %v11436_v12  ;;  %v17476_v12 = vld [vmem:[#allocation92_spill] sm:$0xff] }
 0xae6   : > { %10024 = vmatmul.mubr.msk.bf16.gmra.mrb[236].mxu1 %vm2126_vm0, %v6826_v13 }
 0xae7   : > { %6991 = vmatprep.mubr.bf16.mxu1 %v17451_v56  ;;  %10760 = vmatpush3.bf16.msra.mxu0 %v11437_v8 }
 0xae8   : > { %10761 = vmatprep.subr.bf16.mxu0 %v11438_v62 }
 0xae9   : > { %v6828_v41 = vpop.permute.xlu0 %6827 }
 0xaea   : > { %11093 = vmatprep.mubr.msk.bf16.mxu0 %vm2126_vm0, %v6828_v41 }
 0xaeb   : > { %10762 = vmatpush3.bf16.msra.mxu0 %v11439_v34 }
 0xaec   : > { %10763 = vmatprep.subr.bf16.mxu0 %v11440_v63  ;;  %v17477_v63 = vld [vmem:[#allocation91_spill] sm:$0xff] }
 0xaee   : > { %10025 = vmatmul.mubr.msk.bf16.gmra.mrb[240].mxu1 %vm2126_vm0, %v6828_v41  ;;  %v17478_v41 = vld [vmem:[#allocation94_spill] sm:$0xff] }
 0xaef   : > { %7001 = vmatprep.mubr.bf16.mxu1 %v17451_v56  ;;  %10764 = vmatpush3.bf16.msra.mxu0 %v11441_v43  ;;  %v17479_v43 = vld [vmem:[#allocation93_spill] sm:$0xff] }
 0xaf1   : > { %v6830_v26 = vpop.permute.xlu1 %6829 }
 0xaf2   : > { %11094 = vmatmul.mubr.msk.bf16.gmra.mrb[72].mxu0 %vm2126_vm0, %v6830_v26 }
 0xaf6   : > { %10026 = vmatmul.mubr.msk.bf16.gmra.mrb[244].mxu1 %vm2126_vm0, %v6830_v26  ;;  %v17480_v26 = vld [vmem:[#allocation96_spill] sm:$0xff] }
 0xaf7   : > { %7011 = vmatprep.mubr.bf16.mxu1 %v17451_v56 }
 0xaf9   : > { %v6832_v61 = vpop.permute.xlu0 %6831 }
 0xafa   : > { %11097 = vmatprep.mubr.msk.bf16.mxu0 %vm2126_vm0, %v6832_v61 }
 0xafe   : > { %10027 = vmatmul.mubr.msk.bf16.gmra.mrb[248].mxu1 %vm2126_vm0, %v6832_v61 }
 0xaff   : > { %7021 = vmatprep.mubr.bf16.mxu1 %v17451_v56 }
 0xb01   : > { %v6834_v39 = vpop.permute.xlu1 %6833 }
 0xb02   : > { %11098 = vmatmul.mubr.msk.bf16.gmra.mrb[76].mxu0 %vm2126_vm0, %v6834_v39 }
 0xb06   : > { %10028 = vmatmul.mubr.msk.bf16.gmra.mrb[252].mxu1 %vm2126_vm0, %v6834_v39 }
 0xb07   : > { %7031 = vmatprep.mubr.bf16.mxu1 %v17451_v56 }
 0xb09   : > { %v6836_v50 = vpop.permute.xlu0 %6835 }
 0xb0a   : > { %11101 = vmatprep.mubr.msk.bf16.mxu0 %vm2126_vm0, %v6836_v50 }
 0xb0e   : > { %10029 = vmatmul.mubr.msk.bf16.gmra.mrb[0].mxu1 %vm2126_vm0, %v6836_v50 }
 0xb0f   : > { %7041 = vmatprep.mubr.bf16.mxu1 %v17451_v56 }
 0xb11   : > { %v6838_v44 = vpop.permute.xlu1 %6837 }
 0xb12   : > { %11102 = vmatmul.mubr.msk.bf16.gmra.mrb[80].mxu0 %vm2126_vm0, %v6838_v44 }
 0xb16   : > { %10030 = vmatmul.mubr.msk.bf16.gmra.mrb[4].mxu1 %vm2126_vm0, %v6838_v44 }
 0xb17   : > { %7051 = vmatprep.mubr.bf16.mxu1 %v17451_v56 }
 0xb19   : > { %v6840_v5 = vpop.permute.xlu0 %6839 }
 0xb1a   : > { %11105 = vmatprep.mubr.msk.bf16.mxu0 %vm2126_vm0, %v6840_v5 }
 0xb1e   : > { %10031 = vmatmul.mubr.msk.bf16.gmra.mrb[8].mxu1 %vm2126_vm0, %v6840_v5  ;;  %v17481_v5 = vld [vmem:[#allocation95_spill] sm:$0xff] }
 0xb1f   : > { %7061 = vmatprep.mubr.bf16.mxu1 %v17451_v56 }
 0xb21   : > { %v6842_v25 = vpop.permute.xlu1 %6841 }
 0xb22   : > { %11106 = vmatmul.mubr.msk.bf16.gmra.mrb[84].mxu0 %vm2126_vm0, %v6842_v25 }
 0xb26   : > { %10032 = vmatmul.mubr.msk.bf16.gmra.mrb[12].mxu1 %vm2126_vm0, %v6842_v25  ;;  %v17482_v25 = vld [vmem:[#allocation98_spill] sm:$0xff] }
 0xb27   : > { %7071 = vmatprep.mubr.bf16.mxu1 %v17451_v56 }
 0xb29   : > { %v6844_v29 = vpop.permute.xlu0 %6843 }
 0xb2a   : > { %11109 = vmatprep.mubr.msk.bf16.mxu0 %vm2126_vm0, %v6844_v29 }
 0xb2e   : > { %10033 = vmatmul.mubr.msk.bf16.gmra.mrb[16].mxu1 %vm2126_vm0, %v6844_v29  ;;  %v17483_v29 = vld [vmem:[#allocation97_spill] sm:$0xff] }
 0xb2f   : > { %7081 = vmatprep.mubr.bf16.mxu1 %v17451_v56 }
 0xb31   : > { %v6846_v28 = vpop.permute.xlu1 %6845 }
 0xb32   : > { %11110 = vmatmul.mubr.msk.bf16.gmra.mrb[88].mxu0 %vm2126_vm0, %v6846_v28 }
 0xb36   : > { %10034 = vmatmul.mubr.msk.bf16.gmra.mrb[20].mxu1 %vm2126_vm0, %v6846_v28 }
 0xb37   : > { %7091 = vmatprep.mubr.bf16.mxu1 %v17451_v56 }
 0xb3a   : > { %v6848_v27 = vpop.permute.xlu0 %6847 }
 0xb3b   : > { %11113 = vmatprep.mubr.msk.bf16.mxu0 %vm2126_vm0, %v6848_v27 }
 0xb3e   : > { %10035 = vmatmul.mubr.msk.bf16.gmra.mrb[24].mxu1 %vm2126_vm0, %v6848_v27 }
 0xb3f   : > { %7101 = vmatprep.mubr.bf16.mxu1 %v17451_v56 }
 0xb42   : > { %v6850_v19 = vpop.permute.xlu1 %6849 }
 0xb43   : > { %11114 = vmatmul.mubr.msk.bf16.gmra.mrb[92].mxu0 %vm2126_vm0, %v6850_v19 }
 0xb44   : > { %7548 = vmatprep.mubr.bf16.mxu0 %v17452_v21 }
 0xb46   : > { %10036 = vmatmul.mubr.msk.bf16.gmra.mrb[28].mxu1 %vm2126_vm0, %v6850_v19 }
 0xb47   : > { %8646 = vmatprep.mubr.bf16.mxu1 %v17451_v56 }
 0xb4b   : > { %7549 = vmatmul.mubr.bf16.vlgmr.msra.gmra.mrb[96].mxu0 %v17453_v60 }
 0xb4c   : > { %7556 = vmatprep.mubr.bf16.mxu0 %v17454_v4 }
 0xb53   : > { %7557 = vmatmul.mubr.bf16.gmra.mrb[100].mxu0 %v17455_v42 }
 0xb54   : > { %7564 = vmatprep.mubr.bf16.mxu0 %v17456_v54 }
 0xb5b   : > { %7565 = vmatmul.mubr.bf16.gmra.mrb[104].mxu0 %v17457_v14 }
 0xb5c   : > { %7572 = vmatprep.mubr.bf16.mxu0 %v17458_v3 }
 0xb63   : > { %7573 = vmatmul.mubr.bf16.gmra.mrb[108].mxu0 %v17459_v59 }
 0xb64   : > { %7580 = vmatprep.mubr.bf16.mxu0 %v17460_v51 }
 0xb6b   : > { %7581 = vmatmul.mubr.bf16.gmra.mrb[112].mxu0 %v17461_v0 }
 0xb6c   : > { %7588 = vmatprep.mubr.bf16.mxu0 %v17462_v53 }
 0xb73   : > { %7589 = vmatmul.mubr.bf16.gmra.mrb[116].mxu0 %v17463_v36 }
 0xb74   : > { %7596 = vmatprep.mubr.bf16.mxu0 %v17464_v7 }
 0xb7b   : > { %7597 = vmatmul.mubr.bf16.gmra.mrb[120].mxu0 %v17465_v16 }
 0xb7c   : > { %7604 = vmatprep.mubr.bf16.mxu0 %v17466_v10 }
 0xb83   : > { %7605 = vmatmul.mubr.bf16.gmra.mrb[124].mxu0 %v17467_v46 }
 0xb84   : > { %7612 = vmatprep.mubr.bf16.mxu0 %v17468_v9 }
 0xb8b   : > { %7613 = vmatmul.mubr.bf16.gmra.mrb[128].mxu0 %v17469_v52 }
 0xb8c   : > { %7620 = vmatprep.mubr.bf16.mxu0 %v17470_v57 }
 0xb93   : > { %7621 = vmatmul.mubr.bf16.gmra.mrb[132].mxu0 %v17471_v11 }
 0xb94   : > { %7628 = vmatprep.mubr.bf16.mxu0 %v17472_v30 }
 0xb9b   : > { %7629 = vmatmul.mubr.bf16.gmra.mrb[136].mxu0 %v17473_v47 }
 0xb9c   : > { %7636 = vmatprep.mubr.bf16.mxu0 %v17474_v15 }
 0xba3   : > { %7637 = vmatmul.mubr.bf16.gmra.mrb[140].mxu0 %v17475_v33 }
 0xba4   : > { %7644 = vmatprep.mubr.bf16.mxu0 %v17476_v12 }
 0xba5   : > { %v11087_v13 = vpop.f32.mrb[64].mxu0 }
 0xba6   : > { %v7293_v8 = vpop.f32.mrb[65].mxu0 }
 0xba7   : > { %v11088_v62 = vpop.f32.mrb[66].mxu0 }
 0xba8   : > { %v7296_v34 = vpop.f32.mrb[67].mxu0 }
 0xbab   : > { %7645 = vmatmul.mubr.bf16.gmra.mrb[144].mxu0 %v17477_v63  ;;  %v16308_v63 = vld [vmem:[%s17086_s8 + $0x4] ss:$0 sm:$0xff] }
 0xbac   : > { %7652 = vmatprep.mubr.bf16.mxu0 %v17478_v41 }
 0xbb3   : > { %7653 = vmatmul.mubr.bf16.gmra.mrb[148].mxu0 %v17479_v43 }
 0xbb4   : > { %7660 = vmatprep.mubr.bf16.mxu0 %v17480_v26 }
 0xbb5   : > { %v16248_v61 = vpop.f32.mrb[68].mxu0 }
 0xbb6   : > { %v7309_v39 = vpop.f32.mrb[69].mxu0 }
 0xbb7   : > { %v16250_v50 = vpop.f32.mrb[70].mxu0 }
 0xbb8   : > { %v16252_v44 = vpop.f32.mrb[71].mxu0 }
 0xbbb   : > { %7661 = vmatmul.mubr.bf16.gmra.mrb[152].mxu0 %v17481_v5 }
 0xbbc   : > { %7668 = vmatprep.mubr.bf16.mxu0 %v17482_v25 }
 0xbc3   : > { %7669 = vmatmul.mubr.bf16.gmra.mrb[156].mxu0 %v17483_v29 }
 0xbc5   : > { %v16257_v28 = vpop.f32.mrb[72].mxu0 }
 0xbc6   : > { %v16259_v27 = vpop.f32.mrb[73].mxu0 }
 0xbc7   : > { %v16261_v19 = vpop.f32.mrb[74].mxu0 }
 0xbc8   : > { %v16263_v21 = vpop.f32.mrb[75].mxu0 }
 0xbd5   : > { %v16265_v60 = vpop.f32.mrb[76].mxu0 }
 0xbd6   : > { %v16267_v4 = vpop.f32.mrb[77].mxu0 }
 0xbd7   : > { %v16269_v42 = vpop.f32.mrb[78].mxu0 }
 0xbd8   : > { %v16271_v54 = vpop.f32.mrb[79].mxu0 }
 0xbe5   : > { %v16273_v14 = vpop.f32.mrb[80].mxu0 }
 0xbe6   : > { %v16275_v3 = vpop.f32.mrb[81].mxu0 }
 0xbe7   : > { %v16277_v59 = vpop.f32.mrb[82].mxu0 }
 0xbe8   : > { %v16279_v51 = vpop.f32.mrb[83].mxu0 }
 0xbf5   : > { %v16281_v0 = vpop.f32.mrb[84].mxu0 }
 0xbf6   : > { %v16283_v53 = vpop.f32.mrb[85].mxu0 }
 0xbf7   : > { %v16285_v36 = vpop.f32.mrb[86].mxu0 }
 0xbf8   : > { %v16287_v7 = vpop.f32.mrb[87].mxu0 }
 0xc05   : > { %v16289_v16 = vpop.f32.mrb[88].mxu0 }
 0xc06   : > { %v16291_v10 = vpop.f32.mrb[89].mxu0 }
 0xc07   : > { %v16293_v46 = vpop.f32.mrb[90].mxu0 }
 0xc08   : > { %v16295_v9 = vpop.f32.mrb[91].mxu0 }
 0xc16   : > { %v16297_v52 = vpop.f32.mrb[92].mxu0 }
 0xc17   : > { %v16299_v57 = vpop.f32.mrb[93].mxu0 }
 0xc18   : > { %v16301_v11 = vpop.f32.mrb[94].mxu0 }
 0xc19   : > { %v16303_v30 = vpop.f32.mrb[95].mxu0 }
 0xc1e   : > { %v10765_v47 = vpop.f32.mrb[96].mxu0 }
 0xc1f   : > { %v10766_v15 = vpop.f32.mrb[97].mxu0 }
 0xc20   : > { %v10767_v33 = vadd.f32 %v10766_v15, %v10765_v47  ;;  %v10768_v12 = vpop.f32.mrb[98].mxu0 }
 0xc21   : > { %v10769_v41 = vpop.f32.mrb[99].mxu0 }
 0xc22   : > { %v7551_v43 = vadd.f32 %v10767_v33, %v7293_v8  ;;  %v10770_v26 = vadd.f32 %v10769_v41, %v10768_v12 }
 0xc24   : > { %v16311_v5 = vadd.f32 %v7551_v43, %v16308_v63  ;;  %v7554_v25 = vadd.f32 %v10770_v26, %v7296_v34 }
 0xc26   : > { %12232 = vtanh.f32 %v16311_v5  ;;  %v16315_v29 = vadd.f32 %v7554_v25, %v16308_v63  ;;  %v10771_v56 = vpop.f32.mrb[100].mxu0 }
 0xc27   : > { %v10772_v47 = vpop.f32.mrb[101].mxu0 }
 0xc28   : > { %v10773_v15 = vadd.f32 %v10772_v47, %v10771_v56  ;;  %v10774_v45 = vpop.f32.mrb[102].mxu0  ;;  %12234 = vtanh.f32 %v16315_v29 }
 0xc29   : > { %v10775_v32 = vpop.f32.mrb[103].mxu0 }
 0xc2a   : > { %v7559_v37 = vadd.f32 %v11087_v13, %v10773_v15  ;;  %v10776_v31 = vadd.f32 %v10775_v32, %v10774_v45 }
 0xc2c   : > { %v16319_v8 = vadd.f32 %v7559_v37, %v16308_v63  ;;  %v7562_v33 = vadd.f32 %v11088_v62, %v10776_v31 }
 0xc2e   : > { %12236 = vtanh.f32 %v16319_v8  ;;  %v16323_v34 = vadd.f32 %v7562_v33, %v16308_v63  ;;  %v10777_v12 = vpop.f32.mrb[104].mxu0 }
 0xc2f   : > { %v10778_v41 = vpop.f32.mrb[105].mxu0 }
 0xc30   : > { %v12233_v43 = vpop.eup %12232  ;;  %v10779_v26 = vadd.f32 %v10778_v41, %v10777_v12  ;;  %v10780_v56 = vpop.f32.mrb[106].mxu0  ;;  %12238 = vtanh.f32 %v16323_v34 }
 0xc31   : > { %v10781_v25 = vpop.f32.mrb[107].mxu0  ;;  %7997 = vrot.lane.b32.xlu0 %v12233_v43, %s12506_s23 }
 0xc32   : > { %v7567_v32 = vadd.f32 %v10779_v26, %v7309_v39  ;;  %v10782_v45 = vadd.f32 %v10781_v25, %v10780_v56  ;;  %v12235_v37 = vpop.eup %12234 }
 0xc33   : > { %7999 = vrot.lane.b32.xlu1 %v12235_v37, %s12506_s23 }
 0xc34   : > { %v16328_v31 = vadd.f32 %v7567_v32, %v16308_v63  ;;  %v7570_v13 = vadd.f32 %v10782_v45, %v16252_v44 }
 0xc36   : > { %12240 = vtanh.f32 %v16328_v31  ;;  %v16334_v62 = vadd.f32 %v7570_v13, %v16308_v63  ;;  %v10783_v47 = vpop.f32.mrb[108].mxu0 }
 0xc37   : > { %v10784_v15 = vpop.f32.mrb[109].mxu0 }
 0xc38   : > { %v12237_v33 = vpop.eup %12236  ;;  %v10785_v12 = vadd.f32 %v10784_v15, %v10783_v47  ;;  %v10786_v41 = vpop.f32.mrb[110].mxu0  ;;  %12242 = vtanh.f32 %v16334_v62 }
 0xc39   : > { %v10787_v39 = vpop.f32.mrb[111].mxu0  ;;  %8001 = vrot.lane.b32.xlu0 %v12237_v33, %s12506_s23 }
 0xc3a   : > { %v7575_v43 = vadd.f32 %v16248_v61, %v10785_v12  ;;  %v10788_v44 = vadd.f32 %v10787_v39, %v10786_v41  ;;  %v12239_v26 = vpop.eup %12238 }
 0xc3b   : > { %8003 = vrot.lane.b32.xlu1 %v12239_v26, %s12506_s23 }
 0xc3c   : > { %v16340_v56 = vadd.f32 %v7575_v43, %v16308_v63  ;;  %v7578_v25 = vadd.f32 %v16250_v50, %v10788_v44 }
 0xc3e   : > { %12244 = vtanh.f32 %v16340_v56  ;;  %v16346_v32 = vadd.f32 %v7578_v25, %v16308_v63  ;;  %v10789_v45 = vpop.f32.mrb[112].mxu0 }
 0xc3f   : > { %v10790_v37 = vpop.f32.mrb[113].mxu0 }
 0xc40   : > { %v12241_v13 = vpop.eup %12240  ;;  %v10791_v47 = vadd.f32 %v10790_v37, %v10789_v45  ;;  %v10792_v15 = vpop.f32.mrb[114].mxu0  ;;  %12246 = vtanh.f32 %v16346_v32 }
 0xc41   : > { %v10793_v61 = vpop.f32.mrb[115].mxu0  ;;  %8005 = vrot.lane.b32.xlu0 %v12241_v13, %s12506_s23 }
 0xc42   : > { %v7583_v33 = vadd.f32 %v10791_v47, %v16259_v27  ;;  %v10794_v50 = vadd.f32 %v10793_v61, %v10792_v15  ;;  %v12243_v12 = vpop.eup %12242 }
 0xc43   : > { %8007 = vrot.lane.b32.xlu1 %v12243_v12, %s12506_s23 }
 0xc44   : > { %v16352_v41 = vadd.f32 %v7583_v33, %v16308_v63  ;;  %v7586_v39 = vadd.f32 %v10794_v50, %v16263_v21 }
 0xc46   : > { %12248 = vtanh.f32 %v16352_v41  ;;  %v16358_v43 = vadd.f32 %v7586_v39, %v16308_v63  ;;  %v10795_v44 = vpop.f32.mrb[116].mxu0 }
 0xc47   : > { %v10796_v26 = vpop.f32.mrb[117].mxu0 }
 0xc48   : > { %v12245_v25 = vpop.eup %12244  ;;  %v10797_v45 = vadd.f32 %v10796_v26, %v10795_v44  ;;  %v10798_v37 = vpop.f32.mrb[118].mxu0  ;;  %12250 = vtanh.f32 %v16358_v43 }
 0xc49   : > { %v10799_v27 = vpop.f32.mrb[119].mxu0  ;;  %8009 = vrot.lane.b32.xlu0 %v12245_v25, %s12506_s23 }
 0xc4a   : > { %v7591_v13 = vadd.f32 %v16257_v28, %v10797_v45  ;;  %v10800_v21 = vadd.f32 %v10799_v27, %v10798_v37  ;;  %v12247_v47 = vpop.eup %12246 }
 0xc4b   : > { %8011 = vrot.lane.b32.xlu1 %v12247_v47, %s12506_s23 }
 0xc4c   : > { %v16364_v15 = vadd.f32 %v7591_v13, %v16308_v63  ;;  %v7594_v61 = vadd.f32 %v16261_v19, %v10800_v21 }
 0xc4e   : > { %12252 = vtanh.f32 %v16364_v15  ;;  %v16370_v33 = vadd.f32 %v7594_v61, %v16308_v63  ;;  %v10801_v50 = vpop.f32.mrb[120].mxu0 }
 0xc4f   : > { %v10802_v12 = vpop.f32.mrb[121].mxu0 }
 0xc50   : > { %v12249_v39 = vpop.eup %12248  ;;  %v10803_v44 = vadd.f32 %v10802_v12, %v10801_v50  ;;  %v10804_v26 = vpop.f32.mrb[122].mxu0  ;;  %12254 = vtanh.f32 %v16370_v33 }
 0xc51   : > { %v10805_v28 = vpop.f32.mrb[123].mxu0  ;;  %8013 = vrot.lane.b32.xlu0 %v12249_v39, %s12506_s23 }
 0xc52   : > { %v7599_v25 = vadd.f32 %v10803_v44, %v16267_v4  ;;  %v10806_v19 = vadd.f32 %v10805_v28, %v10804_v26  ;;  %v12251_v45 = vpop.eup %12250 }
 0xc53   : > { %8015 = vrot.lane.b32.xlu1 %v12251_v45, %s12506_s23 }
 0xc54   : > { %v16376_v37 = vadd.f32 %v7599_v25, %v16308_v63  ;;  %v7602_v27 = vadd.f32 %v10806_v19, %v16271_v54 }
 0xc56   : > { %12256 = vtanh.f32 %v16376_v37  ;;  %v16382_v13 = vadd.f32 %v7602_v27, %v16308_v63  ;;  %v10807_v21 = vpop.f32.mrb[124].mxu0 }
 0xc57   : > { %v10808_v47 = vpop.f32.mrb[125].mxu0 }
 0xc58   : > { %v12253_v61 = vpop.eup %12252  ;;  %v10809_v50 = vadd.f32 %v10808_v47, %v10807_v21  ;;  %v10810_v12 = vpop.f32.mrb[126].mxu0  ;;  %12258 = vtanh.f32 %v16382_v13 }
 0xc59   : > { %v10811_v4 = vpop.f32.mrb[127].mxu0  ;;  %8017 = vrot.lane.b32.xlu0 %v12253_v61, %s12506_s23 }
 0xc5a   : > { %v7607_v39 = vadd.f32 %v16265_v60, %v10809_v50  ;;  %v10812_v54 = vadd.f32 %v10811_v4, %v10810_v12  ;;  %v12255_v44 = vpop.eup %12254 }
 0xc5b   : > { %8019 = vrot.lane.b32.xlu1 %v12255_v44, %s12506_s23 }
 0xc5c   : > { %v16388_v26 = vadd.f32 %v7607_v39, %v16308_v63  ;;  %v7610_v28 = vadd.f32 %v16269_v42, %v10812_v54 }
 0xc5e   : > { %12260 = vtanh.f32 %v16388_v26  ;;  %v16394_v25 = vadd.f32 %v7610_v28, %v16308_v63  ;;  %v10813_v19 = vpop.f32.mrb[128].mxu0 }
 0xc5f   : > { %v10814_v45 = vpop.f32.mrb[129].mxu0 }
 0xc60   : > { %v12257_v27 = vpop.eup %12256  ;;  %v10815_v21 = vadd.f32 %v10814_v45, %v10813_v19  ;;  %v10816_v47 = vpop.f32.mrb[130].mxu0  ;;  %12262 = vtanh.f32 %v16394_v25 }
 0xc61   : > { %v10817_v60 = vpop.f32.mrb[131].mxu0  ;;  %8021 = vrot.lane.b32.xlu0 %v12257_v27, %s12506_s23 }
 0xc62   : > { %v16399_v61 = vadd.f32 %v10815_v21, %v16275_v3  ;;  %v10818_v42 = vadd.f32 %v10817_v60, %v10816_v47  ;;  %v12259_v50 = vpop.eup %12258 }
 0xc63   : > { %8023 = vrot.lane.b32.xlu1 %v12259_v50, %s12506_s23 }
 0xc64   : > { %v16402_v12 = vadd.f32 %v10818_v42, %v16279_v51 }
 0xc66   : > { %v10819_v4 = vpop.f32.mrb[132].mxu0 }
 0xc67   : > { %v10820_v39 = vpop.f32.mrb[133].mxu0 }
 0xc68   : > { %v12261_v54 = vpop.eup %12260  ;;  %v10821_v44 = vadd.f32 %v10820_v39, %v10819_v4  ;;  %v10822_v28 = vpop.f32.mrb[134].mxu0 }
 0xc69   : > { %v10823_v19 = vpop.f32.mrb[135].mxu0  ;;  %8025 = vrot.lane.b32.xlu0 %v12261_v54, %s12506_s23 }
 0xc6a   : > { %v16407_v45 = vadd.f32 %v16273_v14, %v10821_v44  ;;  %v10824_v3 = vadd.f32 %v10823_v19, %v10822_v28  ;;  %v12263_v27 = vpop.eup %12262 }
 0xc6b   : > { %8027 = vrot.lane.b32.xlu1 %v12263_v27, %s12506_s23 }
 0xc6c   : > { %v16410_v21 = vadd.f32 %v16277_v59, %v10824_v3 }
 0xc6e   : > { %v10825_v51 = vpop.f32.mrb[136].mxu0 }
 0xc6f   : > { %v10826_v47 = vpop.f32.mrb[137].mxu0 }
 0xc70   : > { %v10827_v60 = vadd.f32 %v10826_v47, %v10825_v51  ;;  %v10828_v42 = vpop.f32.mrb[138].mxu0 }
 0xc71   : > { %v10829_v50 = vpop.f32.mrb[139].mxu0 }
 0xc72   : > { %v16414_v4 = vadd.f32 %v10827_v60, %v16283_v53  ;;  %v10830_v39 = vadd.f32 %v10829_v50, %v10828_v42 }
 0xc74   : > { %v16417_v54 = vadd.f32 %v10830_v39, %v16287_v7  ;;  %v10107_v39 = vmul.f32 -1.442695, %v16311_v5 }
 0xc76   : > { %v10831_v14 = vpop.f32.mrb[140].mxu0  ;;  %12264 = vpow2.f32 %v10107_v39 }
 0xc77   : > { %v10832_v44 = vpop.f32.mrb[141].mxu0 }
 0xc78   : > { %v10833_v28 = vadd.f32 %v10832_v44, %v10831_v14  ;;  %v10834_v19 = vpop.f32.mrb[142].mxu0  ;;  %v10108_v44 = vmul.f32 -1.442695, %v16315_v29 }
 0xc79   : > { %v10835_v59 = vpop.f32.mrb[143].mxu0 }
 0xc7a   : > { %v16420_v3 = vadd.f32 %v16281_v0, %v10833_v28  ;;  %v10836_v27 = vadd.f32 %v10835_v59, %v10834_v19  ;;  %12266 = vpow2.f32 %v10108_v44 }
 0xc7c   : > { %v16423_v51 = vadd.f32 %v16285_v36, %v10836_v27 }
 0xc7e   : > { %v10837_v47 = vpop.f32.mrb[144].mxu0 }
 0xc7f   : > { %v10838_v55 = vpop.f32.mrb[145].mxu0 }
 0xc80   : > { %v10839_v53 = vadd.f32 %v10838_v55, %v10837_v47  ;;  %v10840_v60 = vpop.f32.mrb[146].mxu0  ;;  %v10110_v47 = vmul.f32 -1.442695, %v16323_v34  ;;  %v10112_v34 = vmul.f32 -1.442695, %v16334_v62 }
 0xc81   : > { %v10841_v42 = vpop.f32.mrb[147].mxu0  ;;  %v10113_v62 = vmul.f32 -1.442695, %v16340_v56 }
 0xc82   : > { %v16426_v7 = vadd.f32 %v10839_v53, %v16291_v10  ;;  %v10842_v50 = vadd.f32 %v10841_v42, %v10840_v60  ;;  %v10109_v10 = vmul.f32 -1.442695, %v16319_v8 }
 0xc84   : > { %v16430_v14 = vadd.f32 %v10842_v50, %v16295_v9  ;;  %12268 = vpow2.f32 %v10109_v10  ;;  %v12265_v50 = vpop.eup %12264 }
 0xc85   : > { %12270 = vpow2.f32 %v10110_v47  ;;  %v7805_v44 = vadd.f32 1.0, %v12265_v50 }
 0xc86   : > { %v10843_v0 = vpop.f32.mrb[148].mxu0 }
 0xc87   : > { %v10844_v28 = vpop.f32.mrb[149].mxu0 }
 0xc88   : > { %v10845_v36 = vadd.f32 %v10844_v28, %v10843_v0  ;;  %v10846_v19 = vpop.f32.mrb[150].mxu0  ;;  %v10111_v0 = vmul.f32 -1.442695, %v16328_v31 }
 0xc89   : > { %v10847_v59 = vpop.f32.mrb[151].mxu0 }
 0xc8a   : > { %v16434_v55 = vadd.f32 %v16289_v16, %v10845_v36  ;;  %v10848_v27 = vadd.f32 %v10847_v59, %v10846_v19  ;;  %12272 = vpow2.f32 %v10111_v0 }
 0xc8b   : > { %12274 = vrcp.f32 %v7805_v44  ;;  %v16479_v44 = vadd.f32 %v16410_v21, %v16308_v63 }
 0xc8c   : > { %v16438_v5 = vadd.f32 %v16293_v46, %v10848_v27  ;;  %v12267_v46 = vpop.eup %12266  ;;  %12276 = vpow2.f32 %v10112_v34 }
 0xc8d   : > { %v7806_v19 = vadd.f32 1.0, %v12267_v46 }
 0xc8e   : > { %v10849_v9 = vpop.f32.mrb[152].mxu0  ;;  %v12269_v10 = vpop.eup %12268 }
 0xc8f   : > { %v10850_v53 = vpop.f32.mrb[153].mxu0  ;;  %12278 = vrcp.f32 %v7806_v19 }
 0xc90   : > { %v10851_v29 = vadd.f32 %v10850_v53, %v10849_v9  ;;  %v10852_v60 = vpop.f32.mrb[154].mxu0  ;;  %v12271_v53 = vpop.eup %12270 }
 0xc91   : > { %v10853_v42 = vpop.f32.mrb[155].mxu0 }
 0xc92   : > { %v16442_v39 = vadd.f32 %v10851_v29, %v16299_v57  ;;  %v10854_v16 = vadd.f32 %v10853_v42, %v10852_v60  ;;  %v7807_v29 = vadd.f32 1.0, %v12269_v10  ;;  %v16462_v60 = vadd.f32 %v16402_v12, %v16308_v63 }
 0xc93   : > { %v7808_v42 = vadd.f32 1.0, %v12271_v53  ;;  %v10115_v12 = vmul.f32 -1.442695, %v16352_v41 }
 0xc94   : > { %v16446_v8 = vadd.f32 %v10854_v16, %v16303_v30  ;;  %v16454_v30 = vadd.f32 %v16399_v61, %v16308_v63  ;;  %v12273_v61 = vpop.eup %12272 }
 0xc95   : > { %v16467_v56 = vpop.eup %12274  ;;  %v7809_v0 = vadd.f32 1.0, %v12273_v61 }
 0xc96   : > { %v10855_v28 = vpop.f32.mrb[156].mxu0  ;;  %12280 = vtanh.f32 %v16454_v30  ;;  %v12277_v16 = vpop.eup %12276 }
 0xc97   : > { %v10856_v36 = vpop.f32.mrb[157].mxu0  ;;  %12282 = vpow2.f32 %v10113_v62  ;;  %v7810_v41 = vadd.f32 1.0, %v12277_v16  ;;  %v10119_v16 = vmul.f32 -1.442695, %v16376_v37 }
 0xc98   : > { %v10857_v59 = vadd.f32 %v10856_v36, %v10855_v28  ;;  %v10858_v27 = vpop.f32.mrb[158].mxu0  ;;  %12284 = vrcp.f32 %v7807_v29  ;;  %v16501_v29 = vadd.f32 %v16417_v54, %v16308_v63 }
 0xc99   : > { %v10859_v57 = vpop.f32.mrb[159].mxu0  ;;  %12286 = vtanh.f32 %v16462_v60  ;;  %v16475_v46 = vpop.eup %12278 }
 0xc9a   : > { %v16450_v9 = vadd.f32 %v16297_v52, %v10857_v59  ;;  %v10860_v31 = vadd.f32 %v10859_v57, %v10858_v27  ;;  %v10114_v52 = vmul.f32 -1.442695, %v16346_v32  ;;  %v10117_v57 = vmul.f32 -1.442695, %v16364_v15 }
 0xc9c   : > { %v16458_v47 = vadd.f32 %v16301_v11, %v10860_v31  ;;  %12288 = vpow2.f32 %v10114_v52  ;;  %v16471_v11 = vadd.f32 %v16407_v45, %v16308_v63  ;;  %v10116_v45 = vmul.f32 -1.442695, %v16358_v43 }
 0xc9d   : > { %12290 = vrcp.f32 %v7808_v42  ;;  %v16492_v43 = vadd.f32 %v16414_v4, %v16308_v63  ;;  %v10118_v4 = vmul.f32 -1.442695, %v16370_v33  ;;  %v16514_v33 = vadd.f32 %v16420_v3, %v16308_v63 }
 0xc9e   : > { %12292 = vtanh.f32 %v16471_v11  ;;  %v10120_v3 = vmul.f32 -1.442695, %v16382_v13  ;;  %v16536_v13 = vadd.f32 %v16426_v7, %v16308_v63  ;;  %v10122_v7 = vmul.f32 -1.442695, %v16394_v25 }
 0xc9f   : > { %12294 = vpow2.f32 %v10115_v12  ;;  %v16558_v25 = vadd.f32 %v16434_v55, %v16308_v63 }
 0xca0   : > { %v12281_v36 = vpop.eup %12280  ;;  %12296 = vrcp.f32 %v7809_v0 }
 0xca1   : > { %v12283_v19 = vpop.eup %12282  ;;  %12298 = vtanh.f32 %v16479_v44 }
 0xca2   : > { %v16488_v21 = vpop.eup %12284  ;;  %12300 = vpow2.f32 %v10116_v45  ;;  %v7811_v62 = vadd.f32 1.0, %v12283_v19 }
 0xca3   : > { %v7998_v50 = vpop.permute.xlu0 %7997  ;;  %v12287_v27 = vpop.eup %12286  ;;  %12302 = vrcp.f32 %v7810_v41  ;;  %v16523_v41 = vadd.f32 %v16423_v51, %v16308_v63 }
 0xca4   : > { %v8093_v32 = vmul.f32 %v16467_v56, %v7998_v50  ;;  %12304 = vtanh.f32 %v16492_v43 }
 0xca5   : > { %v8000_v28 = vpop.permute.xlu1 %7999  ;;  %12306 = vpow2.f32 %v10117_v57 }
 0xca6   : > { %8157 = vrot.lane.b32.xlu0 %v8093_v32, %s12505_s21  ;;  %v8094_v34 = vmul.f32 %v16475_v46, %v8000_v28  ;;  %v12289_v31 = vpop.eup %12288  ;;  %12308 = vrcp.f32 %v7811_v62 }
 0xca7   : > { %v16497_v53 = vpop.eup %12290  ;;  %v7812_v42 = vadd.f32 1.0, %v12289_v31  ;;  %12310 = vtanh.f32 %v16501_v29  ;;  %v10121_v31 = vmul.f32 -1.442695, %v16388_v26 }
 0xca8   : > { %8159 = vrot.lane.b32.xlu1 %v8094_v34, %s12505_s21  ;;  %v12293_v61 = vpop.eup %12292  ;;  %12312 = vpow2.f32 %v10118_v4 }
 0xca9   : > { %v12295_v50 = vpop.eup %12294  ;;  %12314 = vrcp.f32 %v7812_v42  ;;  %v16545_v42 = vadd.f32 %v16430_v14, %v16308_v63 }
 0xcaa   : > { %8029 = vrot.lane.b32.xlu0 %v12281_v36, %s12506_s23  ;;  %v16510_v54 = vpop.eup %12296  ;;  %v7813_v45 = vadd.f32 1.0, %v12295_v50  ;;  %12316 = vtanh.f32 %v16514_v33 }
 0xcab   : > { %v8002_v59 = vpop.permute.xlu0 %8001  ;;  %v12299_v32 = vpop.eup %12298  ;;  %12318 = vpow2.f32 %v10119_v16 }
 0xcac   : > { %v8095_v10 = vmul.f32 %v16488_v21, %v8002_v59  ;;  %8031 = vrot.lane.b32.xlu1 %v12287_v27, %s12506_s23  ;;  %v12301_v28 = vpop.eup %12300  ;;  %12320 = vrcp.f32 %v7813_v45 }
 0xcad   : > { %v8004_v52 = vpop.permute.xlu1 %8003  ;;  %v16519_v34 = vpop.eup %12302  ;;  %v7814_v19 = vadd.f32 1.0, %v12301_v28  ;;  %12322 = vtanh.f32 %v16523_v41 }
 0xcae   : > { %8161 = vrot.lane.b32.xlu0 %v8095_v10, %s12505_s21  ;;  %v8096_v15 = vmul.f32 %v16497_v53, %v8004_v52  ;;  %v12305_v59 = vpop.eup %12304  ;;  %12324 = vpow2.f32 %v10120_v3 }
 0xcaf   : > { %v12307_v27 = vpop.eup %12306  ;;  %12326 = vrcp.f32 %v7814_v19 }
 0xcb0   : > { %8163 = vrot.lane.b32.xlu1 %v8096_v15, %s12505_s21  ;;  %v16532_v51 = vpop.eup %12308  ;;  %v7815_v4 = vadd.f32 1.0, %v12307_v27  ;;  %12328 = vtanh.f32 %v16536_v13 }
 0xcb1   : > { %v12311_v10 = vpop.eup %12310  ;;  %12330 = vpow2.f32 %v10121_v31 }
 0xcb2   : > { %8033 = vrot.lane.b32.xlu0 %v12293_v61, %s12506_s23  ;;  %v12313_v52 = vpop.eup %12312  ;;  %12332 = vrcp.f32 %v7815_v4 }
 0xcb3   : > { %v8006_v12 = vpop.permute.xlu0 %8005  ;;  %v16541_v15 = vpop.eup %12314  ;;  %v7816_v50 = vadd.f32 1.0, %v12313_v52  ;;  %12334 = vtanh.f32 %v16545_v42 }
 0xcb4   : > { %v8097_v0 = vmul.f32 %v16510_v54, %v8006_v12  ;;  %8035 = vrot.lane.b32.xlu1 %v12299_v32, %s12506_s23  ;;  %v12317_v12 = vpop.eup %12316  ;;  %12336 = vpow2.f32 %v10122_v7 }
 0xcb5   : > { %v8008_v36 = vpop.permute.xlu1 %8007  ;;  %v12319_v32 = vpop.eup %12318  ;;  %12338 = vrcp.f32 %v7816_v50 }
 0xcb6   : > { %8165 = vrot.lane.b32.xlu0 %v8097_v0, %s12505_s21  ;;  %v8098_v37 = vmul.f32 %v16519_v34, %v8008_v36  ;;  %v16554_v14 = vpop.eup %12320  ;;  %v7817_v36 = vadd.f32 1.0, %v12319_v32  ;;  %12340 = vtanh.f32 %v16558_v25 }
 0xcb7   : > { %v12323_v0 = vpop.eup %12322 }
 0xcb8   : > { %8167 = vrot.lane.b32.xlu1 %v8098_v37, %s12505_s21  ;;  %v12325_v45 = vpop.eup %12324  ;;  %v16566_v37 = vadd.f32 %v16438_v5, %v16308_v63  ;;  %12342 = vrcp.f32 %v7817_v36  ;;  %v16578_v5 = vadd.f32 %v16442_v39, %v16308_v63 }
 0xcb9   : > { %v16562_v3 = vpop.eup %12326 }
 0xcba   : > { %8037 = vrot.lane.b32.xlu0 %v12305_v59, %s12506_s23  ;;  %v7818_v59 = vadd.f32 1.0, %v12325_v45  ;;  %v12329_v27 = vpop.eup %12328  ;;  %12344 = vtanh.f32 %v16566_v37 }
 0xcbb   : > { %v8010_v57 = vpop.permute.xlu0 %8009 }
 0xcbc   : > { %v8099_v62 = vmul.f32 %v16532_v51, %v8010_v57  ;;  %8039 = vrot.lane.b32.xlu1 %v12311_v10, %s12506_s23  ;;  %v12331_v57 = vpop.eup %12330  ;;  %12346 = vrcp.f32 %v7818_v59 }
 0xcbd   : > { %v8012_v61 = vpop.permute.xlu1 %8011  ;;  %v16574_v10 = vpop.eup %12332  ;;  %12348 = vtanh.f32 %v16578_v5 }
 0xcbe   : > { %8169 = vrot.lane.b32.xlu0 %v8099_v62, %s12505_s21  ;;  %v8100_v26 = vmul.f32 %v16541_v15, %v8012_v61  ;;  %v12335_v62 = vpop.eup %12334  ;;  %v7819_v61 = vadd.f32 1.0, %v12331_v57 }
 0xcbf   : > { %v12337_v4 = vpop.eup %12336 }
 0xcc0   : > { %8171 = vrot.lane.b32.xlu1 %v8100_v26, %s12505_s21  ;;  %v16582_v7 = vpop.eup %12338  ;;  %v16586_v26 = vadd.f32 %v16446_v8, %v16308_v63  ;;  %12350 = vrcp.f32 %v7819_v61  ;;  %v16598_v8 = vadd.f32 %v16450_v9, %v16308_v63 }
 0xcc1   : > { %v12341_v32 = vpop.eup %12340 }
 0xcc2   : > { %8041 = vrot.lane.b32.xlu0 %v12317_v12, %s12506_s23  ;;  %v7820_v12 = vadd.f32 1.0, %v12337_v4  ;;  %12352 = vtanh.f32 %v16586_v26 }
 0xcc3   : > { %v8014_v16 = vpop.permute.xlu0 %8013 }
 0xcc4   : > { %v8101_v28 = vmul.f32 %v16554_v14, %v8014_v16  ;;  %8043 = vrot.lane.b32.xlu1 %v12323_v0, %s12506_s23  ;;  %v16594_v16 = vpop.eup %12342  ;;  %12354 = vrcp.f32 %v7820_v12  ;;  %v10125_v12 = vmul.f32 -1.442695, %v16471_v11  ;;  %v10129_v11 = vmul.f32 -1.442695, %v16514_v33 }
 0xcc5   : > { %v8016_v19 = vpop.permute.xlu1 %8015  ;;  %12356 = vtanh.f32 %v16598_v8 }
 0xcc6   : > { %8173 = vrot.lane.b32.xlu0 %v8101_v28, %s12505_s21  ;;  %v8102_v55 = vmul.f32 %v16562_v3, %v8016_v19  ;;  %v12345_v28 = vpop.eup %12344  ;;  %v16606_v19 = vadd.f32 %v16458_v47, %v16308_v63 }
 0xcc7   : > { %v16602_v36 = vpop.eup %12346 }
 0xcc8   : > { %8175 = vrot.lane.b32.xlu1 %v8102_v55, %s12505_s21  ;;  %v12349_v59 = vpop.eup %12348  ;;  %12358 = vtanh.f32 %v16606_v19 }
 0xcca   : > { %8045 = vrot.lane.b32.xlu0 %v12329_v27, %s12506_s23  ;;  %v16614_v27 = vpop.eup %12350 }
 0xccb   : > { %v8018_v31 = vpop.permute.xlu0 %8017 }
 0xccc   : > { %v8103_v52 = vmul.f32 %v16574_v10, %v8018_v31  ;;  %8047 = vrot.lane.b32.xlu1 %v12335_v62, %s12506_s23  ;;  %v12353_v31 = vpop.eup %12352 }
 0xccd   : > { %v8020_v50 = vpop.permute.xlu1 %8019 }
 0xcce   : > { %8177 = vrot.lane.b32.xlu0 %v8103_v52, %s12505_s21  ;;  %v8104_v39 = vmul.f32 %v16582_v7, %v8020_v50  ;;  %v16618_v47 = vpop.eup %12354  ;;  %v10123_v50 = vmul.f32 -1.442695, %v16454_v30 }
 0xccf   : > { %v12357_v4 = vpop.eup %12356 }
 0xcd0   : > { %8179 = vrot.lane.b32.xlu1 %v8104_v39, %s12505_s21  ;;  %v10124_v39 = vmul.f32 -1.442695, %v16462_v60  ;;  %12360 = vpow2.f32 %v10123_v50  ;;  %v7933_v60 = vmul.f32 %v16467_v56, %v15859_v20 }
 0xcd2   : > { %8049 = vrot.lane.b32.xlu0 %v12341_v32, %s12506_s23  ;;  %v12359_v61 = vpop.eup %12358  ;;  %12362 = vpow2.f32 %v10124_v39 }
 0xcd3   : > { %v8022_v0 = vpop.permute.xlu0 %8021  ;;  %12364 = vpow2.f32 %v10125_v12 }
 0xcd4   : > { %v8105_v45 = vmul.f32 %v16594_v16, %v8022_v0  ;;  %8051 = vrot.lane.b32.xlu1 %v12345_v28, %s12506_s23  ;;  %v10126_v0 = vmul.f32 -1.442695, %v16479_v44 }
 0xcd5   : > { %v8024_v55 = vpop.permute.xlu1 %8023 }
 0xcd6   : > { %8181 = vrot.lane.b32.xlu0 %v8105_v45, %s12505_s21  ;;  %v8106_v9 = vmul.f32 %v16602_v36, %v8024_v55  ;;  %12366 = vpow2.f32 %v10126_v0  ;;  %v10127_v55 = vmul.f32 -1.442695, %v16492_v43  ;;  %v7934_v43 = vmul.f32 %v16475_v46, %v15866_v23 }
 0xcd7   : > { %v7935_v23 = vmul.f32 %v16488_v21, %v15876_v18 }
 0xcd8   : > { %8183 = vrot.lane.b32.xlu1 %v8106_v9, %s12505_s21 }
 0xcda   : > { %8053 = vrot.lane.b32.xlu0 %v12349_v59, %s12506_s23  ;;  %v12361_v32 = vpop.eup %12360  ;;  %v10128_v59 = vmul.f32 -1.442695, %v16501_v29 }
 0xcdb   : > { %v8026_v57 = vpop.permute.xlu0 %8025  ;;  %v7821_v45 = vadd.f32 1.0, %v12361_v32 }
 0xcdc   : > { %v8107_v63 = vmul.f32 %v16614_v27, %v8026_v57  ;;  %8055 = vrot.lane.b32.xlu1 %v12353_v31, %s12506_s23  ;;  %v12363_v28 = vpop.eup %12362 }
 0xcdd   : > { %v8028_v62 = vpop.permute.xlu1 %8027  ;;  %v7822_v9 = vadd.f32 1.0, %v12363_v28  ;;  %12368 = vrcp.f32 %v7821_v45  ;;  %v12365_v30 = vpop.eup %12364 }
 0xcde   : > { %8185 = vrot.lane.b32.xlu0 %v8107_v63, %s12505_s21  ;;  %v8108_v52 = vmul.f32 %v16618_v47, %v8028_v62  ;;  %12370 = vpow2.f32 %v10127_v55  ;;  %v7823_v31 = vadd.f32 1.0, %v12365_v30  ;;  %v10130_v62 = vmul.f32 -1.442695, %v16523_v41 }
 0xcdf   : > { %12372 = vrcp.f32 %v7822_v9  ;;  %v10131_v41 = vmul.f32 -1.442695, %v16536_v13  ;;  %v7936_v9 = vmul.f32 %v16497_v53, %v15882_v58  ;;  %v7937_v58 = vmul.f32 %v16510_v54, %v15889_v48 }
 0xce0   : > { %8187 = vrot.lane.b32.xlu1 %v8108_v52, %s12505_s21  ;;  %12374 = vpow2.f32 %v10128_v59  ;;  %v12367_v57 = vpop.eup %12366  ;;  %v10132_v59 = vmul.f32 -1.442695, %v16545_v42  ;;  %v10134_v48 = vmul.f32 -1.442695, %v16566_v37 }
 0xce2   : > { %8057 = vrot.lane.b32.xlu0 %v12357_v4, %s12506_s23  ;;  %v7824_v4 = vadd.f32 1.0, %v12367_v57 }
 0xce4   : > { %8059 = vrot.lane.b32.xlu1 %v12359_v61, %s12506_s23 }
 0xce7   : > { %v16637_v52 = vpop.eup %12368 }
 0xce8   : > { %v12371_v33 = vpop.eup %12370 }
 0xce9   : > { %v16640_v39 = vpop.eup %12372  ;;  %v7825_v45 = vadd.f32 1.0, %v12371_v33 }
 0xcea   : > { %v12375_v28 = vpop.eup %12374 }
 0xd18   : > { %v8158_v44 = vpop.permute.xlu0 %8157 }
 0xd19   : > { %v8253_v63 = vadd.f32 %v8158_v44, %v7933_v60  ;;  %v7826_v60 = vadd.f32 1.0, %v12375_v28  ;;  %v7939_v28 = vmul.f32 %v16532_v51, %v15901_v17  ;;  %v10136_v17 = vmul.f32 -1.442695, %v16586_v26 }
 0xd1a   : > { %v8160_v29 = vpop.permute.xlu1 %8159 }
 0xd1b   : > { %12376 = vtanh.f32 %v8253_v63  ;;  %v8254_v61 = vadd.f32 %v8160_v29, %v7934_v43  ;;  %v10133_v63 = vmul.f32 -1.442695, %v16558_v25 }
 0xd1c   : > { %12378 = vpow2.f32 %v10129_v11  ;;  %v8030_v50 = vpop.permute.xlu0 %8029 }
 0xd1d   : > { %12380 = vrcp.f32 %v7823_v31  ;;  %v8109_v20 = vmul.f32 %v16637_v52, %v8030_v50 }
 0xd1e   : > { %12382 = vtanh.f32 %v8254_v61  ;;  %v8032_v12 = vpop.permute.xlu1 %8031 }
 0xd1f   : > { %12384 = vpow2.f32 %v10130_v62  ;;  %8189 = vrot.lane.b32.xlu0 %v8109_v20, %s12505_s21  ;;  %v8110_v32 = vmul.f32 %v16640_v39, %v8032_v12  ;;  %v7938_v20 = vmul.f32 %v16519_v34, %v15894_v1 }
 0xd20   : > { %12386 = vrcp.f32 %v7824_v4  ;;  %v8162_v0 = vpop.permute.xlu0 %8161 }
 0xd21   : > { %v8255_v55 = vadd.f32 %v8162_v0, %v7935_v23  ;;  %8191 = vrot.lane.b32.xlu1 %v8110_v32, %s12505_s21 }
 0xd22   : > { %v8164_v30 = vpop.permute.xlu1 %8163 }
 0xd23   : > { %12388 = vtanh.f32 %v8255_v55  ;;  %v8256_v18 = vadd.f32 %v8164_v30, %v7936_v9  ;;  %v10135_v55 = vmul.f32 -1.442695, %v16578_v5 }
 0xd24   : > { %12390 = vpow2.f32 %v10131_v41  ;;  %v8034_v11 = vpop.permute.xlu0 %8033 }
 0xd25   : > { %v12377_v13 = vpop.eup %12376  ;;  %12392 = vrcp.f32 %v7825_v45 }
 0xd26   : > { %v12379_v44 = vpop.eup %12378  ;;  %12394 = vtanh.f32 %v8256_v18  ;;  %8349 = vrot.lane.b32.xlu0 %v12377_v13, %s12506_s23  ;;  %v8036_v31 = vpop.permute.xlu1 %8035  ;;  %v7940_v13 = vmul.f32 %v16541_v15, %v15906_v2 }
 0xd27   : > { %v16652_v57 = vpop.eup %12380  ;;  %12396 = vpow2.f32 %v10132_v59  ;;  %v7827_v4 = vadd.f32 1.0, %v12379_v44 }
 0xd28   : > { %v12383_v42 = vpop.eup %12382  ;;  %12398 = vrcp.f32 %v7826_v60  ;;  %v8111_v43 = vmul.f32 %v16652_v57, %v8034_v11  ;;  %v8166_v62 = vpop.permute.xlu0 %8165 }
 0xd29   : > { %v12385_v29 = vpop.eup %12384  ;;  %8351 = vrot.lane.b32.xlu1 %v12383_v42, %s12506_s23  ;;  %v8257_v61 = vadd.f32 %v8166_v62, %v7937_v58  ;;  %v7941_v62 = vmul.f32 %v16554_v14, %v15913_v49  ;;  %v10138_v49 = vmul.f32 -1.442695, %v16606_v19 }
 0xd2a   : > { %v16659_v50 = vpop.eup %12386  ;;  %8193 = vrot.lane.b32.xlu0 %v8111_v43, %s12505_s21  ;;  %v8168_v25 = vpop.permute.xlu1 %8167  ;;  %v7828_v12 = vadd.f32 1.0, %v12385_v29 }
 0xd2b   : > { %v8112_v33 = vmul.f32 %v16659_v50, %v8036_v31  ;;  %12400 = vtanh.f32 %v8257_v61  ;;  %v8258_v23 = vadd.f32 %v8168_v25, %v7938_v20 }
 0xd2c   : > { %12402 = vpow2.f32 %v10133_v63  ;;  %v8038_v41 = vpop.permute.xlu0 %8037 }
 0xd2d   : > { %v12389_v32 = vpop.eup %12388  ;;  %12404 = vrcp.f32 %v7827_v4  ;;  %8195 = vrot.lane.b32.xlu1 %v8112_v33, %s12505_s21  ;;  %v10137_v4 = vmul.f32 -1.442695, %v16598_v8 }
 0xd2e   : > { %v12391_v0 = vpop.eup %12390  ;;  %12406 = vtanh.f32 %v8258_v23  ;;  %8353 = vrot.lane.b32.xlu0 %v12389_v32, %s12506_s23  ;;  %v8040_v37 = vpop.permute.xlu1 %8039  ;;  %v7942_v23 = vmul.f32 %v16562_v3, %v15918_v40 }
 0xd2f   : > { %v16668_v1 = vpop.eup %12392  ;;  %12408 = vpow2.f32 %v10134_v48  ;;  %v7829_v60 = vadd.f32 1.0, %v12391_v0 }
 0xd30   : > { %v12395_v45 = vpop.eup %12394  ;;  %12410 = vrcp.f32 %v7828_v12  ;;  %v8113_v9 = vmul.f32 %v16668_v1, %v8038_v41  ;;  %v8170_v59 = vpop.permute.xlu0 %8169 }
 0xd31   : > { %v12397_v30 = vpop.eup %12396  ;;  %8355 = vrot.lane.b32.xlu1 %v12395_v45, %s12506_s23  ;;  %v8259_v18 = vadd.f32 %v8170_v59, %v7939_v28 }
 0xd32   : > { %v16675_v11 = vpop.eup %12398  ;;  %8197 = vrot.lane.b32.xlu0 %v8113_v9, %s12505_s21  ;;  %v8172_v5 = vpop.permute.xlu1 %8171  ;;  %v7830_v31 = vadd.f32 1.0, %v12397_v30 }
 0xd33   : > { %v8114_v44 = vmul.f32 %v16675_v11, %v8040_v37  ;;  %12412 = vtanh.f32 %v8259_v18  ;;  %v8260_v58 = vadd.f32 %v8172_v5, %v7940_v13 }
 0xd34   : > { %12414 = vpow2.f32 %v10135_v55  ;;  %v8042_v42 = vpop.permute.xlu0 %8041  ;;  %v7943_v55 = vmul.f32 %v16574_v10, %v15925_v38 }
 0xd35   : > { %v12401_v63 = vpop.eup %12400  ;;  %12416 = vrcp.f32 %v7829_v60  ;;  %8199 = vrot.lane.b32.xlu1 %v8114_v44, %s12505_s21  ;;  %v7944_v44 = vmul.f32 %v16582_v7, %v15930_v35 }
 0xd36   : > { %v12403_v43 = vpop.eup %12402  ;;  %12418 = vtanh.f32 %v8260_v58  ;;  %8357 = vrot.lane.b32.xlu0 %v12401_v63, %s12506_s23  ;;  %v8044_v26 = vpop.permute.xlu1 %8043 }
 0xd37   : > { %v16684_v2 = vpop.eup %12404  ;;  %12420 = vpow2.f32 %v10136_v17  ;;  %v7831_v33 = vadd.f32 1.0, %v12403_v43 }
 0xd38   : > { %v12407_v29 = vpop.eup %12406  ;;  %12422 = vrcp.f32 %v7830_v31  ;;  %v8115_v61 = vmul.f32 %v16684_v2, %v8042_v42  ;;  %v8174_v20 = vpop.permute.xlu0 %8173 }
 0xd39   : > { %v12409_v48 = vpop.eup %12408  ;;  %8359 = vrot.lane.b32.xlu1 %v12407_v29, %s12506_s23  ;;  %v8261_v25 = vadd.f32 %v8174_v20, %v7941_v62  ;;  %v7945_v62 = vmul.f32 %v16594_v16, %v15937_v22 }
 0xd3a   : > { %v16691_v12 = vpop.eup %12410  ;;  %8201 = vrot.lane.b32.xlu0 %v8115_v61, %s12505_s21  ;;  %v8176_v8 = vpop.permute.xlu1 %8175  ;;  %v7832_v32 = vadd.f32 1.0, %v12409_v48 }
 0xd3b   : > { %v8116_v41 = vmul.f32 %v16691_v12, %v8044_v26  ;;  %12424 = vtanh.f32 %v8261_v25  ;;  %v8262_v0 = vadd.f32 %v8176_v8, %v7942_v23  ;;  %v7946_v23 = vmul.f32 %v16602_v36, %v15942_v24 }
 0xd3c   : > { %12426 = vpow2.f32 %v10137_v4  ;;  %v8046_v37 = vpop.permute.xlu0 %8045  ;;  %v7947_v24 = vmul.f32 %v16614_v27, %v15949_v6  ;;  %v11444_v6 = vld [vmem:[%s17084_s6 + $0x64] ss:$8 sps:$4 sm:$0xff]  }
 0xd3d   : > { %v12413_v28 = vpop.eup %12412  ;;  %12428 = vrcp.f32 %v7831_v33  ;;  %8203 = vrot.lane.b32.xlu1 %v8116_v41, %s12505_s21  ;;  %8614 = vmatprep.subr.bf16.mxu1 %v11444_v6  ;;  %v17488_v6 = vld [vmem:[#allocation39_spill] sm:$0xff] }
 0xd3e   : > { %v12415_v45 = vpop.eup %12414  ;;  %12430 = vtanh.f32 %v8262_v0  ;;  %8361 = vrot.lane.b32.xlu0 %v12413_v28, %s12506_s23  ;;  %v8048_v19 = vpop.permute.xlu1 %8047 }
 0xd3f   : > { %v16700_v40 = vpop.eup %12416  ;;  %12432 = vpow2.f32 %v10138_v49  ;;  %v7833_v18 = vadd.f32 1.0, %v12415_v45 }
 0xd40   : > { %v12419_v9 = vpop.eup %12418  ;;  %12434 = vrcp.f32 %v7832_v32  ;;  %v8117_v59 = vmul.f32 %v16700_v40, %v8046_v37  ;;  %v8178_v30 = vpop.permute.xlu0 %8177 }
 0xd41   : > { %v12421_v60 = vpop.eup %12420  ;;  %8363 = vrot.lane.b32.xlu1 %v12419_v9, %s12506_s23  ;;  %v8263_v13 = vadd.f32 %v8178_v30, %v7943_v55  ;;  %v17484_v30 = vld [vmem:[#allocation31_spill] sm:$0xff] }
 0xd42   : > { %v16706_v17 = vpop.eup %12422  ;;  %8205 = vrot.lane.b32.xlu0 %v8117_v59, %s12505_s21  ;;  %v8180_v38 = vpop.permute.xlu1 %8179  ;;  %v7834_v31 = vadd.f32 1.0, %v12421_v60  ;;  %v7948_v60 = vmul.f32 %v16618_v47, %v17484_v30 }
 0xd43   : > { %v8118_v5 = vmul.f32 %v16706_v17, %v8048_v19  ;;  %12436 = vtanh.f32 %v8263_v13  ;;  %v8264_v58 = vadd.f32 %v8180_v38, %v7944_v44 }
 0xd44   : > { %v8050_v42 = vpop.permute.xlu0 %8049  ;;  %12438 = vrcp.f32 %v7833_v18  ;;  %v11442_v18 = vld [vmem:[%s17084_s6 + $0x60] ss:$8 sps:$4 sm:$0xff]  }
 0xd45   : > { %v12425_v63 = vpop.eup %12424  ;;  %8207 = vrot.lane.b32.xlu1 %v8118_v5, %s12505_s21  ;;  %12440 = vtanh.f32 %v8264_v58  ;;  %8615 = vmatpush1.bf16.msra.mxu1 %v11442_v18 }
 0xd46   : > { %v12427_v43 = vpop.eup %12426  ;;  %8365 = vrot.lane.b32.xlu0 %v12425_v63, %s12506_s23  ;;  %v8052_v35 = vpop.permute.xlu1 %8051  ;;  %12442 = vrcp.f32 %v7834_v31 }
 0xd47   : > { %v16714_v26 = vpop.eup %12428  ;;  %v7835_v48 = vadd.f32 1.0, %v12427_v43 }
 0xd48   : > { %v12431_v29 = vpop.eup %12430  ;;  %v8119_v4 = vmul.f32 %v16714_v26, %v8050_v42  ;;  %v8182_v61 = vpop.permute.xlu0 %8181 }
 0xd49   : > { %v12433_v20 = vpop.eup %12432  ;;  %8367 = vrot.lane.b32.xlu1 %v12431_v29, %s12506_s23  ;;  %v8265_v33 = vadd.f32 %v8182_v61, %v7945_v62  ;;  %v11447_v61 = vld [vmem:[%s17084_s6 + $0x74] ss:$8 sps:$4 sm:$0xff]  }
 0xd4a   : > { %v16720_v25 = vpop.eup %12434  ;;  %8209 = vrot.lane.b32.xlu0 %v8119_v4, %s12505_s21  ;;  %v8184_v22 = vpop.permute.xlu1 %8183  ;;  %v7836_v41 = vadd.f32 1.0, %v12433_v20  ;;  %v11445_v4 = vld [vmem:[%s17084_s6 + $0x70] ss:$8 sps:$4 sm:$0xff]   ;;  %8616 = vmatprep.subr.bf16.mxu1 %v11447_v61  ;;  %v17490_v61 = vld [vmem:[#allocation43_spill] sm:$0xff] }
 0xd4b   : > { %v8120_v49 = vmul.f32 %v16720_v25, %v8052_v35  ;;  %12444 = vtanh.f32 %v8265_v33  ;;  %v8266_v8 = vadd.f32 %v8184_v22, %v7946_v23  ;;  %8617 = vmatpush1.bf16.msra.mxu1 %v11445_v4  ;;  %v17486_v22 = vld [vmem:[#allocation35_spill] sm:$0xff] }
 0xd4c   : > { %v8054_v32 = vpop.permute.xlu0 %8053  ;;  %12446 = vrcp.f32 %v7835_v48  ;;  %v17485_v48 = vld [vmem:[#allocation36_spill] sm:$0xff] }
 0xd4d   : > { %v12437_v0 = vpop.eup %12436  ;;  %8211 = vrot.lane.b32.xlu1 %v8120_v49, %s12505_s21  ;;  %12448 = vtanh.f32 %v8266_v8  ;;  %v7949_v33 = vmul.f32 %v16637_v52, %v17485_v48 }
 0xd4e   : > { %8369 = vrot.lane.b32.xlu0 %v12437_v0, %s12506_s23  ;;  %v16728_v37 = vpop.eup %12438  ;;  %v8056_v28 = vpop.permute.xlu1 %8055  ;;  %12450 = vrcp.f32 %v7836_v41  ;;  %v7950_v41 = vmul.f32 %v16640_v39, %v17486_v22 }
 0xd4f   : > { %v12441_v45 = vpop.eup %12440  ;;  %v8121_v19 = vmul.f32 %v16728_v37, %v8054_v32 }
 0xd50   : > { %v8186_v55 = vpop.permute.xlu0 %8185  ;;  %v16734_v59 = vpop.eup %12442 }
 0xd51   : > { %8371 = vrot.lane.b32.xlu1 %v12441_v45, %s12506_s23  ;;  %v8267_v9 = vadd.f32 %v8186_v55, %v7947_v24  ;;  %v8122_v13 = vmul.f32 %v16734_v59, %v8056_v28  ;;  %v17487_v24 = vld [vmem:[#allocation40_spill] sm:$0xff] }
 0xd52   : > { %8213 = vrot.lane.b32.xlu0 %v8121_v19, %s12505_s21  ;;  %v8188_v44 = vpop.permute.xlu1 %8187  ;;  %v7951_v45 = vmul.f32 %v16652_v57, %v17487_v24 }
 0xd53   : > { %12452 = vtanh.f32 %v8267_v9  ;;  %v8268_v5 = vadd.f32 %v8188_v44, %v7948_v60 }
 0xd54   : > { %v8058_v31 = vpop.permute.xlu0 %8057 }
 0xd55   : > { %v12445_v38 = vpop.eup %12444  ;;  %8215 = vrot.lane.b32.xlu1 %v8122_v13, %s12505_s21  ;;  %12454 = vtanh.f32 %v8268_v5  ;;  %v7952_v13 = vmul.f32 %v16659_v50, %v17488_v6 }
 0xd56   : > { %8373 = vrot.lane.b32.xlu0 %v12445_v38, %s12506_s23  ;;  %v16748_v58 = vpop.eup %12446  ;;  %v8060_v43 = vpop.permute.xlu1 %8059 }
 0xd57   : > { %v12449_v42 = vpop.eup %12448  ;;  %v8123_v63 = vmul.f32 %v16748_v58, %v8058_v31 }
 0xd58   : > { %v16752_v35 = vpop.eup %12450 }
 0xd59   : > { %8375 = vrot.lane.b32.xlu1 %v12449_v42, %s12506_s23  ;;  %v8124_v62 = vmul.f32 %v16752_v35, %v8060_v43  ;;  %v17489_v42 = vld [vmem:[#allocation44_spill] sm:$0xff] }
 0xd5a   : > { %8217 = vrot.lane.b32.xlu0 %v8123_v63, %s12505_s21 }
 0xd5d   : > { %v12453_v29 = vpop.eup %12452  ;;  %8219 = vrot.lane.b32.xlu1 %v8124_v62, %s12505_s21 }
 0xd5e   : > { %8377 = vrot.lane.b32.xlu0 %v12453_v29, %s12506_s23 }
 0xd5f   : > { %v12455_v20 = vpop.eup %12454 }
 0xd61   : > { %8379 = vrot.lane.b32.xlu1 %v12455_v20, %s12506_s23  ;;  %v7954_v20 = vmul.f32 %v16675_v11, %v17490_v61 }
 0xd91   : > { %v8190_v23 = vpop.permute.xlu0 %8189 }
 0xd92   : > { %v8269_v49 = vadd.f32 %v8190_v23, %v7949_v33 }
 0xd93   : > { %v8192_v8 = vpop.permute.xlu1 %8191 }
 0xd94   : > { %12456 = vtanh.f32 %v8269_v49  ;;  %v8270_v32 = vadd.f32 %v8192_v8, %v7950_v41 }
 0xd96   : > { %12458 = vtanh.f32 %v8270_v32 }
 0xd98   : > { %v8350_v0 = vpop.permute.xlu0 %8349 }
 0xd99   : > { %v8445_v19 = vmul.f32 %v16467_v56, %v8350_v0 }
 0xd9b   : > { %v8352_v28 = vpop.permute.xlu1 %8351 }
 0xd9c   : > { %v8446_v55 = vmul.f32 %v16475_v46, %v8352_v28  ;;  %v8194_v9 = vpop.permute.xlu0 %8193  ;;  %v7953_v46 = vmul.f32 %v16668_v1, %v17489_v42 }
 0xd9d   : > { %v8271_v30 = vadd.f32 %v8194_v9, %v7951_v45  ;;  %v17492_v45 = vld [vmem:[#allocation47_spill] sm:$0xff] }
 0xd9e   : > { %v12457_v60 = vpop.eup %12456  ;;  %v8477_v18 = vpack.c.bf16 %v8446_v55, %v8445_v19  ;;  %v7956_v19 = vmul.f32 %v16691_v12, %v17492_v45 }
 0xd9f   : > { %12460 = vtanh.f32 %v8271_v30  ;;  %v8196_v44 = vpop.permute.xlu1 %8195  ;;  %8381 = vrot.lane.b32.xlu1 %v12457_v60, %s12506_s23 }
 0xda0   : > { %v8272_v5 = vadd.f32 %v8196_v44, %v7952_v13  ;;  %8514 = vrot.lane.b32.xlu0 %v8477_v18, %s12505_s21  ;;  %v8354_v38 = vpop.permute.xlu0 %8353  ;;  %v12459_v31 = vpop.eup %12458 }
 0xda1   : > { %v8447_v63 = vmul.f32 %v16488_v21, %v8354_v38 }
 0xda2   : > { %12462 = vtanh.f32 %v8272_v5 }
 0xda3   : > { %v8356_v56 = vpop.permute.xlu1 %8355 }
 0xda4   : > { %v8448_v43 = vmul.f32 %v16497_v53, %v8356_v56  ;;  %8383 = vrot.lane.b32.xlu0 %v12459_v31, %s12506_s23  ;;  %v8198_v62 = vpop.permute.xlu0 %8197  ;;  %v17491_v53 = vld [vmem:[#allocation48_spill] sm:$0xff]  ;;  %v17494_v56 = vld [vmem:[#allocation51_spill] sm:$0xff] }
 0xda5   : > { %v8273_v29 = vadd.f32 %v8198_v62, %v7953_v46  ;;  %v7955_v22 = vmul.f32 %v16684_v2, %v17491_v53  ;;  %v7958_v42 = vmul.f32 %v16706_v17, %v17494_v56 }
 0xda6   : > { %v8478_v4 = vpack.c.bf16 %v8448_v43, %v8447_v63 }
 0xda7   : > { %12464 = vtanh.f32 %v8273_v29  ;;  %v8200_v48 = vpop.permute.xlu1 %8199 }
 0xda8   : > { %v8274_v33 = vadd.f32 %v8200_v48, %v7954_v20  ;;  %8516 = vrot.lane.b32.xlu1 %v8478_v4, %s12505_s21  ;;  %v8358_v23 = vpop.permute.xlu0 %8357 }
 0xda9   : > { %v12461_v49 = vpop.eup %12460  ;;  %v8449_v8 = vmul.f32 %v16510_v54, %v8358_v23 }
 0xdaa   : > { %12466 = vtanh.f32 %v8274_v33  ;;  %8385 = vrot.lane.b32.xlu0 %v12461_v49, %s12506_s23  ;;  %v17496_v49 = vld [vmem:[#allocation55_spill] sm:$0xff] }
 0xdab   : > { %v8360_v21 = vpop.permute.xlu1 %8359 }
 0xdac   : > { %v12463_v41 = vpop.eup %12462  ;;  %v8450_v32 = vmul.f32 %v16519_v34, %v8360_v21  ;;  %v8202_v0 = vpop.permute.xlu0 %8201  ;;  %v17493_v34 = vld [vmem:[#allocation52_spill] sm:$0xff]  ;;  %v7960_v21 = vmul.f32 %v16720_v25, %v17496_v49 }
 0xdad   : > { %8387 = vrot.lane.b32.xlu1 %v12463_v41, %s12506_s23  ;;  %v8275_v28 = vadd.f32 %v8202_v0, %v7955_v22  ;;  %v7957_v18 = vmul.f32 %v16700_v40, %v17493_v34 }
 0xdae   : > { %v8479_v24 = vpack.c.bf16 %v8450_v32, %v8449_v8 }
 0xdaf   : > { %12468 = vtanh.f32 %v8275_v28  ;;  %v8204_v55 = vpop.permute.xlu1 %8203 }
 0xdb0   : > { %v8276_v9 = vadd.f32 %v8204_v55, %v7956_v19  ;;  %8518 = vrot.lane.b32.xlu0 %v8479_v24, %s12505_s21  ;;  %v8362_v30 = vpop.permute.xlu0 %8361 }
 0xdb1   : > { %v12465_v60 = vpop.eup %12464  ;;  %v8451_v13 = vmul.f32 %v16532_v51, %v8362_v30 }
 0xdb2   : > { %12470 = vtanh.f32 %v8276_v9  ;;  %8389 = vrot.lane.b32.xlu1 %v12465_v60, %s12506_s23  ;;  %v17498_v9 = vld [vmem:[#allocation59_spill] sm:$0xff] }
 0xdb3   : > { %v8364_v54 = vpop.permute.xlu1 %8363  ;;  %v7962_v30 = vmul.f32 %v16734_v59, %v17498_v9 }
 0xdb4   : > { %v12467_v6 = vpop.eup %12466  ;;  %v8452_v44 = vmul.f32 %v16541_v15, %v8364_v54  ;;  %v8206_v5 = vpop.permute.xlu0 %8205  ;;  %v17495_v15 = vld [vmem:[#allocation56_spill] sm:$0xff] }
 0xdb5   : > { %8391 = vrot.lane.b32.xlu0 %v12467_v6, %s12506_s23  ;;  %v8277_v38 = vadd.f32 %v8206_v5, %v7957_v18  ;;  %v7959_v29 = vmul.f32 %v16714_v26, %v17495_v15 }
 0xdb6   : > { %v8480_v31 = vpack.c.bf16 %v8452_v44, %v8451_v13 }
 0xdb7   : > { %12472 = vtanh.f32 %v8277_v38  ;;  %v8208_v46 = vpop.permute.xlu1 %8207 }
 0xdb8   : > { %v8278_v63 = vadd.f32 %v8208_v46, %v7958_v42  ;;  %8520 = vrot.lane.b32.xlu1 %v8480_v31, %s12505_s21  ;;  %v8366_v43 = vpop.permute.xlu0 %8365  ;;  %v17500_v42 = vld [vmem:[#allocation63_spill] sm:$0xff] }
 0xdb9   : > { %v12469_v62 = vpop.eup %12468  ;;  %v8453_v61 = vmul.f32 %v16554_v14, %v8366_v43  ;;  %v7964_v46 = vmul.f32 %v16752_v35, %v17500_v42 }
 0xdba   : > { %12474 = vtanh.f32 %v8278_v63  ;;  %8393 = vrot.lane.b32.xlu0 %v12469_v62, %s12506_s23 }
 0xdbb   : > { %v8368_v51 = vpop.permute.xlu1 %8367 }
 0xdbc   : > { %v12471_v4 = vpop.eup %12470  ;;  %v8454_v20 = vmul.f32 %v16562_v3, %v8368_v51  ;;  %v8210_v48 = vpop.permute.xlu0 %8209  ;;  %v17497_v3 = vld [vmem:[#allocation60_spill] sm:$0xff] }
 0xdbd   : > { %8395 = vrot.lane.b32.xlu1 %v12471_v4, %s12506_s23  ;;  %v8279_v33 = vadd.f32 %v8210_v48, %v7959_v29  ;;  %v7961_v32 = vmul.f32 %v16728_v37, %v17497_v3 }
 0xdbe   : > { %v8481_v23 = vpack.c.bf16 %v8454_v20, %v8453_v61 }
 0xdbf   : > { %12476 = vtanh.f32 %v8279_v33  ;;  %v8212_v53 = vpop.permute.xlu1 %8211 }
 0xdc0   : > { %v8280_v22 = vadd.f32 %v8212_v53, %v7960_v21  ;;  %8522 = vrot.lane.b32.xlu0 %v8481_v23, %s12505_s21  ;;  %v8370_v41 = vpop.permute.xlu0 %8369  ;;  %v17501_v23 = vmov 0  }
 0xdc1   : > { %v12473_v8 = vpop.eup %12472  ;;  %v8455_v28 = vmul.f32 %v16574_v10, %v8370_v41 }
 0xdc2   : > { %12478 = vtanh.f32 %v8280_v22  ;;  %8397 = vrot.lane.b32.xlu1 %v12473_v8, %s12506_s23 }
 0xdc3   : > { %v8372_v14 = vpop.permute.xlu1 %8371 }
 0xdc4   : > { %v12475_v0 = vpop.eup %12474  ;;  %v8456_v24 = vmul.f32 %v16582_v7, %v8372_v14  ;;  %v8214_v45 = vpop.permute.xlu0 %8213  ;;  %v17499_v7 = vld [vmem:[#allocation64_spill] sm:$0xff] }
 0xdc5   : > { %8399 = vrot.lane.b32.xlu0 %v12475_v0, %s12506_s23  ;;  %v8281_v19 = vadd.f32 %v8214_v45, %v7961_v32  ;;  %v7963_v6 = vmul.f32 %v16748_v58, %v17499_v7  ;;  %v11448_v0 = vld [vmem:[%s17085_s7 + $0x40] sm:$0xff]  }
 0xdc6   : > { %v8482_v55 = vpack.c.bf16 %v8456_v24, %v8455_v28  ;;  %10861 = vmatprep.subr.bf16.mxu0 %v11448_v0 }
 0xdc7   : > { %12480 = vtanh.f32 %v8281_v19  ;;  %v8216_v60 = vpop.permute.xlu1 %8215 }
 0xdc8   : > { %v8282_v54 = vadd.f32 %v8216_v60, %v7962_v30  ;;  %8524 = vrot.lane.b32.xlu1 %v8482_v55, %s12505_s21  ;;  %v8374_v34 = vpop.permute.xlu0 %8373 }
 0xdc9   : > { %v12477_v18 = vpop.eup %12476  ;;  %v8457_v44 = vmul.f32 %v16594_v16, %v8374_v34  ;;  %v11450_v34 = vld [vmem:[%s17085_s7 + $0x48] sm:$0xff]  }
 0xdca   : > { %12482 = vtanh.f32 %v8282_v54  ;;  %8401 = vrot.lane.b32.xlu0 %v12477_v18, %s12506_s23 }
 0xdcb   : > { %v8376_v10 = vpop.permute.xlu1 %8375 }
 0xdcc   : > { %v12479_v13 = vpop.eup %12478  ;;  %v8458_v5 = vmul.f32 %v16602_v36, %v8376_v10  ;;  %v8218_v38 = vpop.permute.xlu0 %8217 }
 0xdcd   : > { %8403 = vrot.lane.b32.xlu1 %v12479_v13, %s12506_s23  ;;  %v8283_v31 = vadd.f32 %v8218_v38, %v7963_v6 }
 0xdce   : > { %v8483_v56 = vpack.c.bf16 %v8458_v5, %v8457_v44 }
 0xdcf   : > { %12484 = vtanh.f32 %v8283_v31  ;;  %v8220_v63 = vpop.permute.xlu1 %8219 }
 0xdd0   : > { %v8284_v43 = vadd.f32 %v8220_v63, %v7964_v46  ;;  %8526 = vrot.lane.b32.xlu0 %v8483_v56, %s12505_s21  ;;  %v8378_v51 = vpop.permute.xlu0 %8377  ;;  %v11452_v56 = vld [vmem:[%s17085_s7 + $0x50] sm:$0xff]  }
 0xdd1   : > { %v12481_v62 = vpop.eup %12480  ;;  %v8459_v15 = vmul.f32 %v16614_v27, %v8378_v51  ;;  %v11456_v51 = vld [vmem:[%s17085_s7 + $0x60] sm:$0xff]  }
 0xdd2   : > { %12486 = vtanh.f32 %v8284_v43  ;;  %8405 = vrot.lane.b32.xlu1 %v12481_v62, %s12506_s23  ;;  %v11455_v62 = vld [vmem:[%s17085_s7 + $0x18] sm:$0xff]  }
 0xdd3   : > { %v8380_v16 = vpop.permute.xlu1 %8379 }
 0xdd4   : > { %v12483_v36 = vpop.eup %12482  ;;  %v8460_v29 = vmul.f32 %v16618_v47, %v8380_v16 }
 0xdd5   : > { %8407 = vrot.lane.b32.xlu0 %v12483_v36, %s12506_s23  ;;  %v11458_v36 = vld [vmem:[%s17085_s7 + $0x68] sm:$0xff]  }
 0xdd6   : > { %v8484_v4 = vpack.c.bf16 %v8460_v29, %v8459_v15 }
 0xdd8   : > { %8528 = vrot.lane.b32.xlu1 %v8484_v4, %s12505_s21 }
 0xdd9   : > { %v12485_v61 = vpop.eup %12484 }
 0xdda   : > { %8409 = vrot.lane.b32.xlu0 %v12485_v61, %s12506_s23  ;;  %v11459_v61 = vld [vmem:[%s17085_s7 + $0x28] sm:$0xff]  }
 0xddc   : > { %v12487_v20 = vpop.eup %12486 }
 0xddd   : > { %8411 = vrot.lane.b32.xlu1 %v12487_v20, %s12506_s23  ;;  %v11460_v20 = vld [vmem:[%s17085_s7 + $0x70] sm:$0xff]  }
 0xe11   : > { %v8382_v33 = vpop.permute.xlu1 %8381 }
 0xe12   : > { %v8515_v48 = vpop.permute.xlu0 %8514  ;;  %v8461_v47 = vmul.f32 %v16637_v52, %v8382_v33 }
 0xe13   : > { %10147 = vmatmul.mubr.msk.bf16.vlgmr.msra.gmra.mrb[224].mxu1 %vm2126_vm0, %v8515_v48  ;;  %v11463_v48 = vld [vmem:[%s17085_s7 + $0x38] sm:$0xff]  }
 0xe14   : > { %8656 = vmatprep.mubr.bf16.mxu1 %v17501_v23 }
 0xe16   : > { %v8384_v27 = vpop.permute.xlu0 %8383 }
 0xe17   : > { %v8462_v49 = vmul.f32 %v16640_v39, %v8384_v27 }
 0xe19   : > { %v8485_v21 = vpack.c.bf16 %v8462_v49, %v8461_v47 }
 0xe1a   : > { %v8517_v53 = vpop.permute.xlu1 %8516 }
 0xe1b   : > { %8530 = vrot.lane.b32.xlu0 %v8485_v21, %s12505_s21  ;;  %10148 = vmatmul.mubr.msk.bf16.gmra.mrb[228].mxu1 %vm2126_vm0, %v8517_v53 }
 0xe1c   : > { %v8386_v22 = vpop.permute.xlu0 %8385  ;;  %8666 = vmatprep.mubr.bf16.mxu1 %v17501_v23 }
 0xe1d   : > { %v8463_v8 = vmul.f32 %v16652_v57, %v8386_v22  ;;  %v11449_v57 = vld [vmem:[%s17085_s7] sm:$0xff]  }
 0xe1e   : > { %10862 = vmatpush3.bf16.msra.mxu0 %v11449_v57 }
 0xe1f   : > { %v8388_v41 = vpop.permute.xlu1 %8387  ;;  %10863 = vmatprep.subr.bf16.mxu0 %v11450_v34 }
 0xe20   : > { %v8464_v14 = vmul.f32 %v16659_v50, %v8388_v41 }
 0xe22   : > { %v8486_v3 = vpack.c.bf16 %v8464_v14, %v8463_v8  ;;  %v8519_v32 = vpop.permute.xlu0 %8518  ;;  %v10163_v8 = vld [vmem:[%s17086_s8 + $0x5] ss:$8 sm:$0x3] }
 0xe23   : > { %10149 = vmatmul.mubr.msk.bf16.gmra.mrb[232].mxu1 %vm2126_vm0, %v8519_v32  ;;  %v17502_v14 = vld [vmem:[#allocation2_spill] sm:$0xff] }
 0xe24   : > { %8532 = vrot.lane.b32.xlu1 %v8486_v3, %s12505_s21  ;;  %v8390_v52 = vpop.permute.xlu1 %8389  ;;  %8676 = vmatprep.mubr.bf16.mxu1 %v17501_v23  ;;  %v17503_v3 = vsub.s32 0, %v17502_v14 }
 0xe25   : > { %v8465_v50 = vmul.f32 %v16668_v1, %v8390_v52  ;;  %v17504_v52 = vsub.s32 1, %v17502_v14 }
 0xe26   : > { %v16945_v32 = vrot.slane %v10163_v8, %v17503_v3 }
 0xe27   : > { %v8392_v39 = vpop.permute.xlu0 %8391 }
 0xe28   : > { %v8466_v28 = vmul.f32 %v16675_v11, %v8392_v39  ;;  %v16949_v39 = vrot.slane %v10163_v8, %v17504_v52 }
 0xe2a   : > { %v8487_v24 = vpack.c.bf16 %v8466_v28, %v8465_v50  ;;  %v8521_v45 = vpop.permute.xlu1 %8520 }
 0xe2b   : > { %10150 = vmatmul.mubr.msk.bf16.gmra.mrb[236].mxu1 %vm2126_vm0, %v8521_v45 }
 0xe2c   : > { %8534 = vrot.lane.b32.xlu0 %v8487_v24, %s12505_s21  ;;  %v8394_v19 = vpop.permute.xlu0 %8393  ;;  %8686 = vmatprep.mubr.bf16.mxu1 %v17501_v23 }
 0xe2d   : > { %v8467_v9 = vmul.f32 %v16684_v2, %v8394_v19  ;;  %v11451_v2 = vld [vmem:[%s17085_s7 + $0x8] sm:$0xff]  }
 0xe2e   : > { %10864 = vmatpush3.bf16.msra.mxu0 %v11451_v2 }
 0xe2f   : > { %v8396_v55 = vpop.permute.xlu1 %8395  ;;  %10865 = vmatprep.subr.bf16.mxu0 %v11452_v56 }
 0xe30   : > { %v8468_v30 = vmul.f32 %v16691_v12, %v8396_v55 }
 0xe32   : > { %v8488_v60 = vpack.c.bf16 %v8468_v30, %v8467_v9  ;;  %v8523_v1 = vpop.permute.xlu0 %8522 }
 0xe33   : > { %10151 = vmatmul.mubr.msk.bf16.gmra.mrb[240].mxu1 %vm2126_vm0, %v8523_v1 }
 0xe34   : > { %8536 = vrot.lane.b32.xlu1 %v8488_v60, %s12505_s21  ;;  %v8398_v11 = vpop.permute.xlu1 %8397  ;;  %8696 = vmatprep.mubr.bf16.mxu1 %v17501_v23 }
 0xe35   : > { %v8469_v12 = vmul.f32 %v16700_v40, %v8398_v11 }
 0xe37   : > { %v8400_v54 = vpop.permute.xlu0 %8399 }
 0xe38   : > { %v8470_v18 = vmul.f32 %v16706_v17, %v8400_v54 }
 0xe3a   : > { %v8489_v10 = vpack.c.bf16 %v8470_v18, %v8469_v12  ;;  %v8525_v7 = vpop.permute.xlu1 %8524 }
 0xe3b   : > { %10152 = vmatmul.mubr.msk.bf16.gmra.mrb[244].mxu1 %vm2126_vm0, %v8525_v7 }
 0xe3c   : > { %8538 = vrot.lane.b32.xlu0 %v8489_v10, %s12505_s21  ;;  %v8402_v6 = vpop.permute.xlu0 %8401  ;;  %8706 = vmatprep.mubr.bf16.mxu1 %v17501_v23 }
 0xe3d   : > { %v8471_v44 = vmul.f32 %v16714_v26, %v8402_v6  ;;  %v11453_v26 = vld [vmem:[%s17085_s7 + $0x10] sm:$0xff]  }
 0xe3e   : > { %10866 = vmatpush3.bf16.msra.mxu0 %v11453_v26 }
 0xe3f   : > { %v8404_v13 = vpop.permute.xlu1 %8403 }
 0xe40   : > { %v8472_v5 = vmul.f32 %v16720_v25, %v8404_v13  ;;  %v11454_v25 = vld [vmem:[%s17085_s7 + $0x58] sm:$0xff]  }
 0xe41   : > { %10867 = vmatprep.subr.bf16.mxu0 %v11454_v25 }
 0xe42   : > { %v8490_v38 = vpack.c.bf16 %v8472_v5, %v8471_v44  ;;  %v8527_v40 = vpop.permute.xlu0 %8526  ;;  %10868 = vmatpush3.bf16.msra.mxu0 %v11455_v62 }
 0xe43   : > { %10153 = vmatmul.mubr.msk.bf16.gmra.mrb[248].mxu1 %vm2126_vm0, %v8527_v40  ;;  %10869 = vmatprep.subr.bf16.mxu0 %v11456_v51 }
 0xe44   : > { %8540 = vrot.lane.b32.xlu1 %v8490_v38, %s12505_s21  ;;  %v8406_v17 = vpop.permute.xlu1 %8405  ;;  %8716 = vmatprep.mubr.bf16.mxu1 %v17501_v23 }
 0xe45   : > { %v8473_v42 = vmul.f32 %v16728_v37, %v8406_v17 }
 0xe47   : > { %v8408_v31 = vpop.permute.xlu0 %8407 }
 0xe48   : > { %v8474_v46 = vmul.f32 %v16734_v59, %v8408_v31  ;;  %v11457_v59 = vld [vmem:[%s17085_s7 + $0x20] sm:$0xff]  }
 0xe49   : > { %10870 = vmatpush3.bf16.msra.mxu0 %v11457_v59 }
 0xe4a   : > { %v8491_v63 = vpack.c.bf16 %v8474_v46, %v8473_v42  ;;  %v8529_v43 = vpop.permute.xlu1 %8528  ;;  %10871 = vmatprep.subr.bf16.mxu0 %v11458_v36 }
 0xe4b   : > { %10154 = vmatmul.mubr.msk.bf16.gmra.mrb[252].mxu1 %vm2126_vm0, %v8529_v43 }
 0xe4c   : > { %8542 = vrot.lane.b32.xlu0 %v8491_v63, %s12505_s21  ;;  %8726 = vmatprep.mubr.bf16.mxu1 %v17501_v23  ;;  %v8410_v37 = vpop.permute.xlu0 %8409 }
 0xe4d   : > { %v8475_v15 = vmul.f32 %v16748_v58, %v8410_v37  ;;  %10872 = vmatpush3.bf16.msra.mxu0 %v11459_v61  ;;  %v11461_v58 = vld [vmem:[%s17085_s7 + $0x30] sm:$0xff]  }
 0xe4e   : > { %10873 = vmatprep.subr.bf16.mxu0 %v11460_v20 }
 0xe4f   : > { %v8412_v16 = vpop.permute.xlu1 %8411 }
 0xe50   : > { %v8476_v29 = vmul.f32 %v16752_v35, %v8412_v16  ;;  %v11462_v35 = vld [vmem:[%s17085_s7 + $0x78] sm:$0xff]  }
 0xe51   : > { %10874 = vmatpush3.bf16.msra.mxu0 %v11461_v58 }
 0xe52   : > { %v8492_v4 = vpack.c.bf16 %v8476_v29, %v8475_v15  ;;  %10875 = vmatprep.subr.bf16.mxu0 %v11462_v35 }
 0xe54   : > { %8544 = vrot.lane.b32.xlu1 %v8492_v4, %s12505_s21 }
 0xe55   : > { %10876 = vmatpush3.bf16.msra.mxu0 %v11463_v48 }
 0xe8d   : > { %v8531_v33 = vpop.permute.xlu0 %8530 }
 0xe8e   : > { %10155 = vmatmul.mubr.msk.bf16.gmra.mrb[0].mxu1 %vm2126_vm0, %v8531_v33 }
 0xe8f   : > { %8736 = vmatprep.mubr.bf16.mxu1 %v17501_v23 }
 0xe96   : > { %v8533_v27 = vpop.permute.xlu1 %8532 }
 0xe97   : > { %10156 = vmatmul.mubr.msk.bf16.gmra.mrb[4].mxu1 %vm2126_vm0, %v8533_v27 }
 0xe98   : > { %8746 = vmatprep.mubr.bf16.mxu1 %v17501_v23 }
 0xe9e   : > { %v8535_v47 = vpop.permute.xlu0 %8534 }
 0xe9f   : > { %10157 = vmatmul.mubr.msk.bf16.gmra.mrb[8].mxu1 %vm2126_vm0, %v8535_v47 }
 0xea0   : > { %8756 = vmatprep.mubr.bf16.mxu1 %v17501_v23 }
 0xea6   : > { %v8537_v49 = vpop.permute.xlu1 %8536 }
 0xea7   : > { %10158 = vmatmul.mubr.msk.bf16.gmra.mrb[12].mxu1 %vm2126_vm0, %v8537_v49 }
 0xea8   : > { %8766 = vmatprep.mubr.bf16.mxu1 %v17501_v23 }
 0xeae   : > { %v8539_v21 = vpop.permute.xlu0 %8538 }
 0xeaf   : > { %10159 = vmatmul.mubr.msk.bf16.gmra.mrb[16].mxu1 %vm2126_vm0, %v8539_v21 }
 0xeb0   : > { %8776 = vmatprep.mubr.bf16.mxu1 %v17501_v23 }
 0xeb6   : > { %v8541_v53 = vpop.permute.xlu1 %8540 }
 0xeb7   : > { %10160 = vmatmul.mubr.msk.bf16.gmra.mrb[20].mxu1 %vm2126_vm0, %v8541_v53 }
 0xeb8   : > { %8786 = vmatprep.mubr.bf16.mxu1 %v17501_v23 }
 0xebe   : > { %v8543_v22 = vpop.permute.xlu0 %8542 }
 0xebf   : > { %10161 = vmatmul.mubr.msk.bf16.gmra.mrb[24].mxu1 %vm2126_vm0, %v8543_v22 }
 0xec0   : > { %8796 = vmatprep.mubr.bf16.mxu1 %v17501_v23 }
 0xec6   : > { %v8545_v41 = vpop.permute.xlu1 %8544 }
 0xec7   : > { %10162 = vmatmul.mubr.msk.bf16.gmra.mrb[28].mxu1 %vm2126_vm0, %v8545_v41 }
 0xee6   : > { %v8648_v0 = vpop.f32.mrb[224].mxu1 }
 0xee7   : > { %v8885_v57 = vadd.f32 %v16945_v32, %v8648_v0  ;;  %v8650_v50 = vpop.f32.mrb[225].mxu1 }
 0xee8   : > { %v8886_v23 = vadd.f32 %v16949_v39, %v8650_v50  ;;  %v8652_v28 = vpop.f32.mrb[226].mxu1 }
 0xee9   : > { %v8887_v24 = vadd.f32 %v16945_v32, %v8652_v28  ;;  %v8654_v45 = vpop.f32.mrb[227].mxu1  ;;  %v8949_v55 = vmax.f32 %v8885_v57, 0.0 }
 0xeea   : > { %v8888_v19 = vadd.f32 %v16949_v39, %v8654_v45  ;;  %v8950_v30 = vmax.f32 %v8886_v23, 0.0 }
 0xeeb   : > { %v8951_v9 = vmax.f32 %v8887_v24, 0.0 }
 0xeec   : > { %v8952_v60 = vmax.f32 %v8888_v19, 0.0 }
 0xeed   : > { %v9013_v1 = vpack.c.bf16 %v8951_v9, %v8949_v55 }
 0xeee   : > { %v9014_v11 = vpack.c.bf16 %v8952_v60, %v8950_v30  ;;  %v8658_v54 = vpop.f32.mrb[228].mxu1 }
 0xeef   : > { %v8889_v34 = vadd.f32 %v16945_v32, %v8658_v54  ;;  %v8660_v2 = vpop.f32.mrb[229].mxu1 }
 0xef0   : > { %v8890_v12 = vadd.f32 %v16949_v39, %v8660_v2  ;;  %v8662_v18 = vpop.f32.mrb[230].mxu1  ;;  %9205 = vmatprep.mubr.bf16.mxu0 %v9014_v11 }
 0xef1   : > { %v8891_v10 = vadd.f32 %v16945_v32, %v8662_v18  ;;  %v8664_v7 = vpop.f32.mrb[231].mxu1  ;;  %9206 = vmatmul.mubr.bf16.vlgmr.msra.gmra.mrb[160].mxu0 %v9013_v1  ;;  %v8953_v13 = vmax.f32 %v8889_v34, 0.0 }
 0xef2   : > { %v8892_v6 = vadd.f32 %v16949_v39, %v8664_v7  ;;  %v8954_v5 = vmax.f32 %v8890_v12, 0.0 }
 0xef3   : > { %v8955_v44 = vmax.f32 %v8891_v10, 0.0 }
 0xef4   : > { %v8956_v38 = vmax.f32 %v8892_v6, 0.0 }
 0xef5   : > { %v9015_v40 = vpack.c.bf16 %v8955_v44, %v8953_v13 }
 0xef6   : > { %v9016_v17 = vpack.c.bf16 %v8956_v38, %v8954_v5  ;;  %v8668_v31 = vpop.f32.mrb[232].mxu1 }
 0xef7   : > { %v8893_v56 = vadd.f32 %v16945_v32, %v8668_v31  ;;  %v8670_v26 = vpop.f32.mrb[233].mxu1 }
 0xef8   : > { %v8894_v25 = vadd.f32 %v16949_v39, %v8670_v26  ;;  %v8672_v42 = vpop.f32.mrb[234].mxu1  ;;  %9213 = vmatprep.mubr.bf16.mxu0 %v9016_v17 }
 0xef9   : > { %v8895_v46 = vadd.f32 %v16945_v32, %v8672_v42  ;;  %v8674_v63 = vpop.f32.mrb[235].mxu1  ;;  %9214 = vmatmul.mubr.bf16.gmra.mrb[164].mxu0 %v9015_v40  ;;  %v8957_v62 = vmax.f32 %v8893_v56, 0.0 }
 0xefa   : > { %v8896_v43 = vadd.f32 %v16949_v39, %v8674_v63  ;;  %v8958_v37 = vmax.f32 %v8894_v25, 0.0 }
 0xefb   : > { %v8959_v51 = vmax.f32 %v8895_v46, 0.0 }
 0xefc   : > { %v8960_v59 = vmax.f32 %v8896_v43, 0.0 }
 0xefd   : > { %v9017_v16 = vpack.c.bf16 %v8959_v51, %v8957_v62 }
 0xefe   : > { %v9018_v36 = vpack.c.bf16 %v8960_v59, %v8958_v37  ;;  %v8678_v15 = vpop.f32.mrb[236].mxu1 }
 0xeff   : > { %v8897_v29 = vadd.f32 %v16945_v32, %v8678_v15  ;;  %v8680_v4 = vpop.f32.mrb[237].mxu1 }
 0xf00   : > { %v8898_v61 = vadd.f32 %v16949_v39, %v8680_v4  ;;  %v8682_v20 = vpop.f32.mrb[238].mxu1  ;;  %9221 = vmatprep.mubr.bf16.mxu0 %v9018_v36 }
 0xf01   : > { %v8899_v58 = vadd.f32 %v16945_v32, %v8682_v20  ;;  %v8684_v35 = vpop.f32.mrb[239].mxu1  ;;  %9222 = vmatmul.mubr.bf16.gmra.mrb[168].mxu0 %v9017_v16  ;;  %v8961_v33 = vmax.f32 %v8897_v29, 0.0 }
 0xf02   : > { %v8900_v48 = vadd.f32 %v16949_v39, %v8684_v35  ;;  %v8962_v47 = vmax.f32 %v8898_v61, 0.0 }
 0xf03   : > { %v8963_v27 = vmax.f32 %v8899_v58, 0.0 }
 0xf04   : > { %v8964_v49 = vmax.f32 %v8900_v48, 0.0 }
 0xf05   : > { %v9019_v21 = vpack.c.bf16 %v8963_v27, %v8961_v33 }
 0xf06   : > { %v9020_v53 = vpack.c.bf16 %v8964_v49, %v8962_v47  ;;  %v8688_v22 = vpop.f32.mrb[240].mxu1 }
 0xf07   : > { %v8901_v41 = vadd.f32 %v16945_v32, %v8688_v22  ;;  %v8690_v8 = vpop.f32.mrb[241].mxu1 }
 0xf08   : > { %v8902_v14 = vadd.f32 %v16949_v39, %v8690_v8  ;;  %v8692_v3 = vpop.f32.mrb[242].mxu1  ;;  %9229 = vmatprep.mubr.bf16.mxu0 %v9020_v53 }
 0xf09   : > { %v8903_v52 = vadd.f32 %v16945_v32, %v8692_v3  ;;  %v8694_v0 = vpop.f32.mrb[243].mxu1  ;;  %9230 = vmatmul.mubr.bf16.gmra.mrb[172].mxu0 %v9019_v21  ;;  %v8965_v50 = vmax.f32 %v8901_v41, 0.0 }
 0xf0a   : > { %v8904_v57 = vadd.f32 %v16949_v39, %v8694_v0  ;;  %v8966_v28 = vmax.f32 %v8902_v14, 0.0 }
 0xf0b   : > { %v8967_v23 = vmax.f32 %v8903_v52, 0.0 }
 0xf0c   : > { %v8968_v24 = vmax.f32 %v8904_v57, 0.0 }
 0xf0d   : > { %v9021_v45 = vpack.c.bf16 %v8967_v23, %v8965_v50 }
 0xf0e   : > { %v9022_v19 = vpack.c.bf16 %v8968_v24, %v8966_v28  ;;  %v8698_v55 = vpop.f32.mrb[244].mxu1 }
 0xf0f   : > { %v8905_v9 = vadd.f32 %v16945_v32, %v8698_v55  ;;  %v8700_v30 = vpop.f32.mrb[245].mxu1 }
 0xf10   : > { %v8906_v60 = vadd.f32 %v16949_v39, %v8700_v30  ;;  %v8702_v1 = vpop.f32.mrb[246].mxu1  ;;  %9237 = vmatprep.mubr.bf16.mxu0 %v9022_v19 }
 0xf11   : > { %v8907_v11 = vadd.f32 %v16945_v32, %v8702_v1  ;;  %v8704_v54 = vpop.f32.mrb[247].mxu1  ;;  %9238 = vmatmul.mubr.bf16.gmra.mrb[176].mxu0 %v9021_v45  ;;  %v8969_v2 = vmax.f32 %v8905_v9, 0.0 }
 0xf12   : > { %v8908_v34 = vadd.f32 %v16949_v39, %v8704_v54  ;;  %v8970_v18 = vmax.f32 %v8906_v60, 0.0 }
 0xf13   : > { %v8971_v12 = vmax.f32 %v8907_v11, 0.0 }
 0xf14   : > { %v8972_v10 = vmax.f32 %v8908_v34, 0.0 }
 0xf15   : > { %v9023_v7 = vpack.c.bf16 %v8971_v12, %v8969_v2 }
 0xf16   : > { %v9024_v6 = vpack.c.bf16 %v8972_v10, %v8970_v18  ;;  %v8708_v13 = vpop.f32.mrb[248].mxu1 }
 0xf17   : > { %v8909_v44 = vadd.f32 %v16945_v32, %v8708_v13  ;;  %v8710_v5 = vpop.f32.mrb[249].mxu1 }
 0xf18   : > { %v8910_v38 = vadd.f32 %v16949_v39, %v8710_v5  ;;  %v8712_v40 = vpop.f32.mrb[250].mxu1  ;;  %9245 = vmatprep.mubr.bf16.mxu0 %v9024_v6 }
 0xf19   : > { %v8911_v17 = vadd.f32 %v16945_v32, %v8712_v40  ;;  %v8714_v31 = vpop.f32.mrb[251].mxu1  ;;  %9246 = vmatmul.mubr.bf16.gmra.mrb[180].mxu0 %v9023_v7  ;;  %v8973_v26 = vmax.f32 %v8909_v44, 0.0 }
 0xf1a   : > { %v8912_v56 = vadd.f32 %v16949_v39, %v8714_v31  ;;  %v8974_v42 = vmax.f32 %v8910_v38, 0.0 }
 0xf1b   : > { %v8975_v25 = vmax.f32 %v8911_v17, 0.0 }
 0xf1c   : > { %v8976_v46 = vmax.f32 %v8912_v56, 0.0 }
 0xf1d   : > { %v9025_v63 = vpack.c.bf16 %v8975_v25, %v8973_v26 }
 0xf1e   : > { %v9026_v43 = vpack.c.bf16 %v8976_v46, %v8974_v42  ;;  %v8718_v62 = vpop.f32.mrb[252].mxu1 }
 0xf1f   : > { %v8913_v51 = vadd.f32 %v16945_v32, %v8718_v62  ;;  %v8720_v37 = vpop.f32.mrb[253].mxu1 }
 0xf20   : > { %v8914_v59 = vadd.f32 %v16949_v39, %v8720_v37  ;;  %v8722_v16 = vpop.f32.mrb[254].mxu1  ;;  %9253 = vmatprep.mubr.bf16.mxu0 %v9026_v43 }
 0xf21   : > { %v8915_v36 = vadd.f32 %v16945_v32, %v8722_v16  ;;  %v8724_v15 = vpop.f32.mrb[255].mxu1  ;;  %9254 = vmatmul.mubr.bf16.gmra.mrb[184].mxu0 %v9025_v63  ;;  %v8977_v4 = vmax.f32 %v8913_v51, 0.0 }
 0xf22   : > { %v8916_v29 = vadd.f32 %v16949_v39, %v8724_v15  ;;  %v8978_v20 = vmax.f32 %v8914_v59, 0.0 }
 0xf23   : > { %v8979_v61 = vmax.f32 %v8915_v36, 0.0 }
 0xf24   : > { %v8980_v58 = vmax.f32 %v8916_v29, 0.0 }
 0xf25   : > { %v9027_v35 = vpack.c.bf16 %v8979_v61, %v8977_v4 }
 0xf26   : > { %v9028_v48 = vpack.c.bf16 %v8980_v58, %v8978_v20 }
 0xf28   : > { %9261 = vmatprep.mubr.bf16.mxu0 %v9028_v48 }
 0xf29   : > { %9262 = vmatmul.mubr.bf16.gmra.mrb[188].mxu0 %v9027_v35 }
 0xf61   : > { %v8728_v33 = vpop.f32.mrb[0].mxu1 }
 0xf62   : > { %v8917_v27 = vadd.f32 %v16945_v32, %v8728_v33  ;;  %v8730_v47 = vpop.f32.mrb[1].mxu1 }
 0xf63   : > { %v8918_v49 = vadd.f32 %v16949_v39, %v8730_v47  ;;  %v8732_v21 = vpop.f32.mrb[2].mxu1 }
 0xf64   : > { %v8919_v53 = vadd.f32 %v16945_v32, %v8732_v21  ;;  %v8734_v22 = vpop.f32.mrb[3].mxu1  ;;  %v8981_v8 = vmax.f32 %v8917_v27, 0.0 }
 0xf65   : > { %v8920_v41 = vadd.f32 %v16949_v39, %v8734_v22  ;;  %v8982_v3 = vmax.f32 %v8918_v49, 0.0 }
 0xf66   : > { %v8983_v14 = vmax.f32 %v8919_v53, 0.0 }
 0xf67   : > { %v8984_v52 = vmax.f32 %v8920_v41, 0.0 }
 0xf68   : > { %v9029_v0 = vpack.c.bf16 %v8983_v14, %v8981_v8 }
 0xf69   : > { %v9030_v57 = vpack.c.bf16 %v8984_v52, %v8982_v3 }
 0xf6a   : > { %v8738_v50 = vpop.f32.mrb[4].mxu1 }
 0xf6b   : > { %v8921_v23 = vadd.f32 %v16945_v32, %v8738_v50  ;;  %v8740_v28 = vpop.f32.mrb[5].mxu1  ;;  %9269 = vmatprep.mubr.bf16.mxu0 %v9030_v57 }
 0xf6c   : > { %v8922_v24 = vadd.f32 %v16949_v39, %v8740_v28  ;;  %v8742_v45 = vpop.f32.mrb[6].mxu1  ;;  %9270 = vmatmul.mubr.bf16.gmra.mrb[192].mxu0 %v9029_v0 }
 0xf6d   : > { %v8923_v19 = vadd.f32 %v16945_v32, %v8742_v45  ;;  %v8744_v55 = vpop.f32.mrb[7].mxu1  ;;  %v8985_v30 = vmax.f32 %v8921_v23, 0.0 }
 0xf6e   : > { %v8924_v9 = vadd.f32 %v16949_v39, %v8744_v55  ;;  %v8986_v1 = vmax.f32 %v8922_v24, 0.0 }
 0xf6f   : > { %v8987_v60 = vmax.f32 %v8923_v19, 0.0 }
 0xf70   : > { %v8988_v11 = vmax.f32 %v8924_v9, 0.0 }
 0xf71   : > { %v9031_v54 = vpack.c.bf16 %v8987_v60, %v8985_v30 }
 0xf72   : > { %v9032_v34 = vpack.c.bf16 %v8988_v11, %v8986_v1  ;;  %v8748_v2 = vpop.f32.mrb[8].mxu1 }
 0xf73   : > { %v8925_v12 = vadd.f32 %v16945_v32, %v8748_v2  ;;  %v8750_v18 = vpop.f32.mrb[9].mxu1 }
 0xf74   : > { %v8926_v10 = vadd.f32 %v16949_v39, %v8750_v18  ;;  %v8752_v7 = vpop.f32.mrb[10].mxu1  ;;  %9277 = vmatprep.mubr.bf16.mxu0 %v9032_v34 }
 0xf75   : > { %v8927_v6 = vadd.f32 %v16945_v32, %v8752_v7  ;;  %v8754_v13 = vpop.f32.mrb[11].mxu1  ;;  %9278 = vmatmul.mubr.bf16.gmra.mrb[196].mxu0 %v9031_v54  ;;  %v8989_v5 = vmax.f32 %v8925_v12, 0.0 }
 0xf76   : > { %v8928_v44 = vadd.f32 %v16949_v39, %v8754_v13  ;;  %v8990_v40 = vmax.f32 %v8926_v10, 0.0 }
 0xf77   : > { %v8991_v38 = vmax.f32 %v8927_v6, 0.0 }
 0xf78   : > { %v8992_v17 = vmax.f32 %v8928_v44, 0.0 }
 0xf79   : > { %v9033_v31 = vpack.c.bf16 %v8991_v38, %v8989_v5 }
 0xf7a   : > { %v9034_v56 = vpack.c.bf16 %v8992_v17, %v8990_v40  ;;  %v8758_v26 = vpop.f32.mrb[12].mxu1 }
 0xf7b   : > { %v8929_v25 = vadd.f32 %v16945_v32, %v8758_v26  ;;  %v8760_v42 = vpop.f32.mrb[13].mxu1 }
 0xf7c   : > { %v8930_v46 = vadd.f32 %v16949_v39, %v8760_v42  ;;  %v8762_v63 = vpop.f32.mrb[14].mxu1  ;;  %9285 = vmatprep.mubr.bf16.mxu0 %v9034_v56 }
 0xf7d   : > { %v8931_v43 = vadd.f32 %v16945_v32, %v8762_v63  ;;  %v8764_v62 = vpop.f32.mrb[15].mxu1  ;;  %9286 = vmatmul.mubr.bf16.gmra.mrb[200].mxu0 %v9033_v31  ;;  %v8993_v37 = vmax.f32 %v8929_v25, 0.0 }
 0xf7e   : > { %v8932_v51 = vadd.f32 %v16949_v39, %v8764_v62  ;;  %v8994_v16 = vmax.f32 %v8930_v46, 0.0 }
 0xf7f   : > { %v8995_v59 = vmax.f32 %v8931_v43, 0.0 }
 0xf80   : > { %v8996_v36 = vmax.f32 %v8932_v51, 0.0 }
 0xf81   : > { %v9035_v15 = vpack.c.bf16 %v8995_v59, %v8993_v37  ;;  %v17018_v59 = vld [vmem:[%s17086_s8 + $0x6] ss:$0 sm:$0xff] }
 0xf82   : > { %v9036_v29 = vpack.c.bf16 %v8996_v36, %v8994_v16  ;;  %v8768_v4 = vpop.f32.mrb[16].mxu1 }
 0xf83   : > { %v8933_v61 = vadd.f32 %v16945_v32, %v8768_v4  ;;  %v8770_v20 = vpop.f32.mrb[17].mxu1 }
 0xf84   : > { %v8934_v58 = vadd.f32 %v16949_v39, %v8770_v20  ;;  %v8772_v35 = vpop.f32.mrb[18].mxu1  ;;  %9293 = vmatprep.mubr.bf16.mxu0 %v9036_v29 }
 0xf85   : > { %v8935_v48 = vadd.f32 %v16945_v32, %v8772_v35  ;;  %v8774_v33 = vpop.f32.mrb[19].mxu1  ;;  %9294 = vmatmul.mubr.bf16.gmra.mrb[204].mxu0 %v9035_v15  ;;  %v8997_v47 = vmax.f32 %v8933_v61, 0.0 }
 0xf86   : > { %v8936_v27 = vadd.f32 %v16949_v39, %v8774_v33  ;;  %v8998_v21 = vmax.f32 %v8934_v58, 0.0 }
 0xf87   : > { %v8999_v49 = vmax.f32 %v8935_v48, 0.0 }
 0xf88   : > { %v9000_v53 = vmax.f32 %v8936_v27, 0.0 }
 0xf89   : > { %v9037_v22 = vpack.c.bf16 %v8999_v49, %v8997_v47 }
 0xf8a   : > { %v9038_v41 = vpack.c.bf16 %v9000_v53, %v8998_v21  ;;  %v8778_v8 = vpop.f32.mrb[20].mxu1 }
 0xf8b   : > { %v8937_v14 = vadd.f32 %v16945_v32, %v8778_v8  ;;  %v8780_v3 = vpop.f32.mrb[21].mxu1 }
 0xf8c   : > { %v8938_v52 = vadd.f32 %v16949_v39, %v8780_v3  ;;  %v8782_v0 = vpop.f32.mrb[22].mxu1  ;;  %9301 = vmatprep.mubr.bf16.mxu0 %v9038_v41 }
 0xf8d   : > { %v8939_v57 = vadd.f32 %v16945_v32, %v8782_v0  ;;  %v8784_v50 = vpop.f32.mrb[23].mxu1  ;;  %9302 = vmatmul.mubr.bf16.gmra.mrb[208].mxu0 %v9037_v22  ;;  %v9001_v28 = vmax.f32 %v8937_v14, 0.0 }
 0xf8e   : > { %v8940_v23 = vadd.f32 %v16949_v39, %v8784_v50  ;;  %v9002_v45 = vmax.f32 %v8938_v52, 0.0 }
 0xf8f   : > { %v9003_v24 = vmax.f32 %v8939_v57, 0.0 }
 0xf90   : > { %v9004_v19 = vmax.f32 %v8940_v23, 0.0 }
 0xf91   : > { %v9039_v55 = vpack.c.bf16 %v9003_v24, %v9001_v28 }
 0xf92   : > { %v9040_v9 = vpack.c.bf16 %v9004_v19, %v9002_v45  ;;  %v8788_v30 = vpop.f32.mrb[24].mxu1 }
 0xf93   : > { %v8941_v60 = vadd.f32 %v16945_v32, %v8788_v30  ;;  %v8790_v1 = vpop.f32.mrb[25].mxu1 }
 0xf94   : > { %v8942_v11 = vadd.f32 %v16949_v39, %v8790_v1  ;;  %v8792_v54 = vpop.f32.mrb[26].mxu1  ;;  %9309 = vmatprep.mubr.bf16.mxu0 %v9040_v9 }
 0xf95   : > { %v8943_v34 = vadd.f32 %v16945_v32, %v8792_v54  ;;  %v8794_v2 = vpop.f32.mrb[27].mxu1  ;;  %9310 = vmatmul.mubr.bf16.gmra.mrb[212].mxu0 %v9039_v55  ;;  %v9005_v18 = vmax.f32 %v8941_v60, 0.0 }
 0xf96   : > { %v8944_v12 = vadd.f32 %v16949_v39, %v8794_v2  ;;  %v9006_v7 = vmax.f32 %v8942_v11, 0.0 }
 0xf97   : > { %v9007_v10 = vmax.f32 %v8943_v34, 0.0 }
 0xf98   : > { %v9008_v6 = vmax.f32 %v8944_v12, 0.0 }
 0xf99   : > { %v9041_v13 = vpack.c.bf16 %v9007_v10, %v9005_v18 }
 0xf9a   : > { %v9042_v44 = vpack.c.bf16 %v9008_v6, %v9006_v7  ;;  %v8798_v5 = vpop.f32.mrb[28].mxu1 }
 0xf9b   : > { %v8945_v38 = vadd.f32 %v16945_v32, %v8798_v5  ;;  %v8800_v40 = vpop.f32.mrb[29].mxu1 }
 0xf9c   : > { %v8946_v17 = vadd.f32 %v16949_v39, %v8800_v40  ;;  %v8802_v31 = vpop.f32.mrb[30].mxu1  ;;  %9317 = vmatprep.mubr.bf16.mxu0 %v9042_v44 }
 0xf9d   : > { %v8947_v56 = vadd.f32 %v16945_v32, %v8802_v31  ;;  %v8804_v26 = vpop.f32.mrb[31].mxu1  ;;  %9318 = vmatmul.mubr.bf16.gmra.mrb[216].mxu0 %v9041_v13  ;;  %v9009_v42 = vmax.f32 %v8945_v38, 0.0 }
 0xf9e   : > { %v8948_v25 = vadd.f32 %v16949_v39, %v8804_v26  ;;  %v9010_v63 = vmax.f32 %v8946_v17, 0.0 }
 0xf9f   : > { %v9011_v46 = vmax.f32 %v8947_v56, 0.0 }
 0xfa0   : > { %v9012_v43 = vmax.f32 %v8948_v25, 0.0 }
 0xfa1   : > { %v9043_v62 = vpack.c.bf16 %v9011_v46, %v9009_v42 }
 0xfa2   : > { %v9044_v51 = vpack.c.bf16 %v9012_v43, %v9010_v63 }
 0xfa4   : > { %9325 = vmatprep.mubr.bf16.mxu0 %v9044_v51 }
 0xfa5   : > { %9326 = vmatmul.mubr.bf16.gmra.mrb[220].mxu0 %v9043_v62 }
 0xfc4   : > { %v10877_v37 = vpop.f32.mrb[160].mxu0 }
 0xfc5   : > { %v10878_v32 = vpop.f32.mrb[161].mxu0 }
 0xfc6   : > { %v10879_v16 = vadd.f32 %v10878_v32, %v10877_v37  ;;  %v10880_v36 = vpop.f32.mrb[162].mxu0 }
 0xfc7   : > { %v10881_v15 = vpop.f32.mrb[163].mxu0 }
 0xfc8   : > { %v9208_v39 = vadd.f32 %v10879_v16, %v17018_v59  ;;  %v10882_v29 = vadd.f32 %v10881_v15, %v10880_v36 }
 0xfca   : > { %v9211_v4 = vadd.f32 %v10882_v29, %v17018_v59  ;;  %v9334_v61 = vmax.f32 %v9208_v39, 0.0 }
 0xfcc   : > { %v9335_v20 = vmax.f32 %v9211_v4, 0.0  ;;  %v10883_v58 = vpop.f32.mrb[164].mxu0 }
 0xfcd   : > { %v10884_v35 = vpop.f32.mrb[165].mxu0 }
 0xfce   : > { %v10249_v48 = vpack.c.bf16 %v9335_v20, %v9334_v61  ;;  %v10885_v33 = vadd.f32 %v10884_v35, %v10883_v58  ;;  %v10886_v27 = vpop.f32.mrb[166].mxu0 }
 0xfcf   : > { %v10887_v47 = vpop.f32.mrb[167].mxu0 }
 0xfd0   : > { %10250 = vst [vmem:[%s17027_s29] sm:$0xff] %v10249_v48   ;;  %v9216_v49 = vadd.f32 %v10885_v33, %v17018_v59  ;;  %v10888_v21 = vadd.f32 %v10887_v47, %v10886_v27 }
 0xfd2   : > { %v9219_v53 = vadd.f32 %v10888_v21, %v17018_v59  ;;  %v9336_v22 = vmax.f32 %v9216_v49, 0.0 }
 0xfd4   : > { %v9337_v41 = vmax.f32 %v9219_v53, 0.0  ;;  %v10889_v8 = vpop.f32.mrb[168].mxu0 }
 0xfd5   : > { %v10890_v14 = vpop.f32.mrb[169].mxu0 }
 0xfd6   : > { %v10254_v3 = vpack.c.bf16 %v9337_v41, %v9336_v22  ;;  %v10891_v52 = vadd.f32 %v10890_v14, %v10889_v8  ;;  %v10892_v0 = vpop.f32.mrb[170].mxu0 }
 0xfd7   : > { %v10893_v57 = vpop.f32.mrb[171].mxu0 }
 0xfd8   : > { %10326 = vst [vmem:[%s17027_s29 + $0x8] sm:$0xff] %v10254_v3   ;;  %v9224_v50 = vadd.f32 %v10891_v52, %v17018_v59  ;;  %v10894_v23 = vadd.f32 %v10893_v57, %v10892_v0 }
 0xfda   : > { %v9227_v28 = vadd.f32 %v10894_v23, %v17018_v59  ;;  %v9338_v24 = vmax.f32 %v9224_v50, 0.0 }
 0xfdc   : > { %v9339_v45 = vmax.f32 %v9227_v28, 0.0  ;;  %v10895_v19 = vpop.f32.mrb[172].mxu0 }
 0xfdd   : > { %v10896_v55 = vpop.f32.mrb[173].mxu0 }
 0xfde   : > { %v10259_v9 = vpack.c.bf16 %v9339_v45, %v9338_v24  ;;  %v10897_v30 = vadd.f32 %v10896_v55, %v10895_v19  ;;  %v10898_v60 = vpop.f32.mrb[174].mxu0 }
 0xfdf   : > { %v10899_v1 = vpop.f32.mrb[175].mxu0 }
 0xfe0   : > { %10327 = vst [vmem:[%s17027_s29 + $0x10] sm:$0xff] %v10259_v9   ;;  %v9232_v11 = vadd.f32 %v10897_v30, %v17018_v59  ;;  %v10900_v54 = vadd.f32 %v10899_v1, %v10898_v60 }
 0xfe2   : > { %v9235_v34 = vadd.f32 %v10900_v54, %v17018_v59  ;;  %v9340_v2 = vmax.f32 %v9232_v11, 0.0 }
 0xfe4   : > { %v9341_v12 = vmax.f32 %v9235_v34, 0.0  ;;  %v10901_v18 = vpop.f32.mrb[176].mxu0 }
 0xfe5   : > { %v10902_v10 = vpop.f32.mrb[177].mxu0 }
 0xfe6   : > { %v10264_v7 = vpack.c.bf16 %v9341_v12, %v9340_v2  ;;  %v10903_v6 = vadd.f32 %v10902_v10, %v10901_v18  ;;  %v10904_v13 = vpop.f32.mrb[178].mxu0 }
 0xfe7   : > { %v10905_v44 = vpop.f32.mrb[179].mxu0 }
 0xfe8   : > { %10328 = vst [vmem:[%s17027_s29 + $0x18] sm:$0xff] %v10264_v7   ;;  %v9240_v5 = vadd.f32 %v10903_v6, %v17018_v59  ;;  %v10906_v38 = vadd.f32 %v10905_v44, %v10904_v13 }
 0xfea   : > { %v9243_v40 = vadd.f32 %v10906_v38, %v17018_v59  ;;  %v9342_v17 = vmax.f32 %v9240_v5, 0.0 }
 0xfec   : > { %v9343_v31 = vmax.f32 %v9243_v40, 0.0  ;;  %v10907_v56 = vpop.f32.mrb[180].mxu0 }
 0xfed   : > { %v10908_v26 = vpop.f32.mrb[181].mxu0 }
 0xfee   : > { %v10269_v25 = vpack.c.bf16 %v9343_v31, %v9342_v17  ;;  %v10909_v42 = vadd.f32 %v10908_v26, %v10907_v56  ;;  %v10910_v46 = vpop.f32.mrb[182].mxu0 }
 0xfef   : > { %v10911_v63 = vpop.f32.mrb[183].mxu0 }
 0xff0   : > { %10329 = vst [vmem:[%s17027_s29 + $0x20] sm:$0xff] %v10269_v25   ;;  %v9248_v43 = vadd.f32 %v10909_v42, %v17018_v59  ;;  %v10912_v62 = vadd.f32 %v10911_v63, %v10910_v46 }
 0xff2   : > { %v9251_v51 = vadd.f32 %v10912_v62, %v17018_v59  ;;  %v9344_v37 = vmax.f32 %v9248_v43, 0.0 }
 0xff4   : > { %v9345_v32 = vmax.f32 %v9251_v51, 0.0  ;;  %v10913_v16 = vpop.f32.mrb[184].mxu0 }
 0xff5   : > { %v10914_v36 = vpop.f32.mrb[185].mxu0 }
 0xff6   : > { %v10274_v15 = vpack.c.bf16 %v9345_v32, %v9344_v37  ;;  %v10915_v39 = vadd.f32 %v10914_v36, %v10913_v16  ;;  %v10916_v29 = vpop.f32.mrb[186].mxu0 }
 0xff7   : > { %v10917_v4 = vpop.f32.mrb[187].mxu0 }
 0xff8   : > { %10330 = vst [vmem:[%s17027_s29 + $0x28] sm:$0xff] %v10274_v15   ;;  %v9256_v61 = vadd.f32 %v10915_v39, %v17018_v59  ;;  %v10918_v20 = vadd.f32 %v10917_v4, %v10916_v29 }
 0xffa   : > { %v9259_v58 = vadd.f32 %v10918_v20, %v17018_v59  ;;  %v9346_v35 = vmax.f32 %v9256_v61, 0.0 }
 0xffc   : > { %v9347_v48 = vmax.f32 %v9259_v58, 0.0  ;;  %v10919_v33 = vpop.f32.mrb[188].mxu0 }
 0xffd   : > { %v10920_v27 = vpop.f32.mrb[189].mxu0 }
 0xffe   : > { %v10279_v47 = vpack.c.bf16 %v9347_v48, %v9346_v35  ;;  %v10921_v49 = vadd.f32 %v10920_v27, %v10919_v33  ;;  %v10922_v21 = vpop.f32.mrb[190].mxu0 }
 0xfff   : > { %v10923_v53 = vpop.f32.mrb[191].mxu0 }
0x1000   : > { %10331 = vst [vmem:[%s17027_s29 + $0x30] sm:$0xff] %v10279_v47   ;;  %v9264_v22 = vadd.f32 %v10921_v49, %v17018_v59  ;;  %v10924_v41 = vadd.f32 %v10923_v53, %v10922_v21 }
0x1002   : > { %v9267_v8 = vadd.f32 %v10924_v41, %v17018_v59  ;;  %v9348_v14 = vmax.f32 %v9264_v22, 0.0 }
0x1004   : > { %v9349_v3 = vmax.f32 %v9267_v8, 0.0 }
0x1006   : > { %v10284_v52 = vpack.c.bf16 %v9349_v3, %v9348_v14 }
0x1008   : > { %10332 = vst [vmem:[%s17027_s29 + $0x38] sm:$0xff] %v10284_v52  }
0x103f   : > { %v10925_v0 = vpop.f32.mrb[192].mxu0 }
0x1040   : > { %v10926_v57 = vpop.f32.mrb[193].mxu0 }
0x1041   : > { %v10927_v50 = vadd.f32 %v10926_v57, %v10925_v0  ;;  %v10928_v23 = vpop.f32.mrb[194].mxu0 }
0x1042   : > { %v10929_v28 = vpop.f32.mrb[195].mxu0 }
0x1043   : > { %v9272_v24 = vadd.f32 %v10927_v50, %v17018_v59  ;;  %v10930_v45 = vadd.f32 %v10929_v28, %v10928_v23 }
0x1045   : > { %v9275_v19 = vadd.f32 %v10930_v45, %v17018_v59  ;;  %v9350_v55 = vmax.f32 %v9272_v24, 0.0 }
0x1047   : > { %v9351_v9 = vmax.f32 %v9275_v19, 0.0 }
0x1048   : > { %v10931_v30 = vpop.f32.mrb[196].mxu0 }
0x1049   : > { %v10289_v60 = vpack.c.bf16 %v9351_v9, %v9350_v55  ;;  %v10932_v1 = vpop.f32.mrb[197].mxu0 }
0x104a   : > { %v10933_v11 = vadd.f32 %v10932_v1, %v10931_v30  ;;  %v10934_v54 = vpop.f32.mrb[198].mxu0 }
0x104b   : > { %10333 = vst [vmem:[%s17027_s29 + $0x40] sm:$0xff] %v10289_v60   ;;  %v10935_v34 = vpop.f32.mrb[199].mxu0 }
0x104c   : > { %v9280_v2 = vadd.f32 %v10933_v11, %v17018_v59  ;;  %v10936_v12 = vadd.f32 %v10935_v34, %v10934_v54 }
0x104e   : > { %v9283_v18 = vadd.f32 %v10936_v12, %v17018_v59  ;;  %v9352_v10 = vmax.f32 %v9280_v2, 0.0 }
0x1050   : > { %v9353_v7 = vmax.f32 %v9283_v18, 0.0  ;;  %v10937_v6 = vpop.f32.mrb[200].mxu0 }
0x1051   : > { %v10938_v13 = vpop.f32.mrb[201].mxu0 }
0x1052   : > { %v10294_v44 = vpack.c.bf16 %v9353_v7, %v9352_v10  ;;  %v10939_v5 = vadd.f32 %v10938_v13, %v10937_v6  ;;  %v10940_v38 = vpop.f32.mrb[202].mxu0 }
0x1053   : > { %v10941_v40 = vpop.f32.mrb[203].mxu0 }
0x1054   : > { %10334 = vst [vmem:[%s17027_s29 + $0x48] sm:$0xff] %v10294_v44   ;;  %v9288_v17 = vadd.f32 %v10939_v5, %v17018_v59  ;;  %v10942_v31 = vadd.f32 %v10941_v40, %v10940_v38 }
0x1056   : > { %v9291_v56 = vadd.f32 %v10942_v31, %v17018_v59  ;;  %v9354_v26 = vmax.f32 %v9288_v17, 0.0 }
0x1058   : > { %v9355_v25 = vmax.f32 %v9291_v56, 0.0  ;;  %v10943_v42 = vpop.f32.mrb[204].mxu0 }
0x1059   : > { %v10944_v46 = vpop.f32.mrb[205].mxu0 }
0x105a   : > { %v10299_v63 = vpack.c.bf16 %v9355_v25, %v9354_v26  ;;  %v10945_v43 = vadd.f32 %v10944_v46, %v10943_v42  ;;  %v10946_v62 = vpop.f32.mrb[206].mxu0 }
0x105b   : > { %v10947_v51 = vpop.f32.mrb[207].mxu0 }
0x105c   : > { %10335 = vst [vmem:[%s17027_s29 + $0x50] sm:$0xff] %v10299_v63   ;;  %v9296_v37 = vadd.f32 %v10945_v43, %v17018_v59  ;;  %v10948_v32 = vadd.f32 %v10947_v51, %v10946_v62 }
0x105e   : > { %v9299_v16 = vadd.f32 %v10948_v32, %v17018_v59  ;;  %v9356_v36 = vmax.f32 %v9296_v37, 0.0 }
0x1060   : > { %v9357_v15 = vmax.f32 %v9299_v16, 0.0  ;;  %v10949_v39 = vpop.f32.mrb[208].mxu0 }
0x1061   : > { %v10950_v29 = vpop.f32.mrb[209].mxu0 }
0x1062   : > { %v10304_v4 = vpack.c.bf16 %v9357_v15, %v9356_v36  ;;  %v10951_v61 = vadd.f32 %v10950_v29, %v10949_v39  ;;  %v10952_v20 = vpop.f32.mrb[210].mxu0 }
0x1063   : > { %v10953_v58 = vpop.f32.mrb[211].mxu0 }
0x1064   : > { %10336 = vst [vmem:[%s17027_s29 + $0x58] sm:$0xff] %v10304_v4   ;;  %v9304_v35 = vadd.f32 %v10951_v61, %v17018_v59  ;;  %v10954_v48 = vadd.f32 %v10953_v58, %v10952_v20 }
0x1066   : > { %v9307_v33 = vadd.f32 %v10954_v48, %v17018_v59  ;;  %v9358_v27 = vmax.f32 %v9304_v35, 0.0 }
0x1068   : > { %v9359_v47 = vmax.f32 %v9307_v33, 0.0  ;;  %v10955_v49 = vpop.f32.mrb[212].mxu0 }
0x1069   : > { %v10956_v21 = vpop.f32.mrb[213].mxu0 }
0x106a   : > { %v10309_v53 = vpack.c.bf16 %v9359_v47, %v9358_v27  ;;  %v10957_v22 = vadd.f32 %v10956_v21, %v10955_v49  ;;  %v10958_v41 = vpop.f32.mrb[214].mxu0 }
0x106b   : > { %v10959_v8 = vpop.f32.mrb[215].mxu0 }
0x106c   : > { %10337 = vst [vmem:[%s17027_s29 + $0x60] sm:$0xff] %v10309_v53   ;;  %v9312_v14 = vadd.f32 %v10957_v22, %v17018_v59  ;;  %v10960_v3 = vadd.f32 %v10959_v8, %v10958_v41 }
0x106e   : > { %v9315_v52 = vadd.f32 %v10960_v3, %v17018_v59  ;;  %v9360_v0 = vmax.f32 %v9312_v14, 0.0 }
0x1070   : > { %v9361_v57 = vmax.f32 %v9315_v52, 0.0  ;;  %v10961_v50 = vpop.f32.mrb[216].mxu0 }
0x1071   : > { %v10962_v23 = vpop.f32.mrb[217].mxu0 }
0x1072   : > { %v10314_v28 = vpack.c.bf16 %v9361_v57, %v9360_v0  ;;  %v10963_v24 = vadd.f32 %v10962_v23, %v10961_v50  ;;  %v10964_v45 = vpop.f32.mrb[218].mxu0 }
0x1073   : > { %v10965_v19 = vpop.f32.mrb[219].mxu0 }
0x1074   : > { %10338 = vst [vmem:[%s17027_s29 + $0x68] sm:$0xff] %v10314_v28   ;;  %v9320_v55 = vadd.f32 %v10963_v24, %v17018_v59  ;;  %v10966_v9 = vadd.f32 %v10965_v19, %v10964_v45 }
0x1076   : > { %v9323_v30 = vadd.f32 %v10966_v9, %v17018_v59  ;;  %v9362_v60 = vmax.f32 %v9320_v55, 0.0 }
0x1078   : > { %v9363_v1 = vmax.f32 %v9323_v30, 0.0  ;;  %v10967_v11 = vpop.f32.mrb[220].mxu0 }
0x1079   : > { %v10968_v54 = vpop.f32.mrb[221].mxu0 }
0x107a   : > { %v10319_v34 = vpack.c.bf16 %v9363_v1, %v9362_v60  ;;  %v10969_v2 = vadd.f32 %v10968_v54, %v10967_v11  ;;  %v10970_v12 = vpop.f32.mrb[222].mxu0 }
0x107b   : > { %v10971_v18 = vpop.f32.mrb[223].mxu0 }
0x107c   : > { %10339 = vst [vmem:[%s17027_s29 + $0x70] sm:$0xff] %v10319_v34   ;;  %v9328_v10 = vadd.f32 %v10969_v2, %v17018_v59  ;;  %v10972_v7 = vadd.f32 %v10971_v18, %v10970_v12 }
0x107e   : > { %v9331_v6 = vadd.f32 %v10972_v7, %v17018_v59  ;;  %v9364_v13 = vmax.f32 %v9328_v10, 0.0 }
0x1080   : > { %v9365_v44 = vmax.f32 %v9331_v6, 0.0 }
0x1082   : > { %v10324_v5 = vpack.c.bf16 %v9365_v44, %v9364_v13 }
0x1084   : > { %10340 = vst [vmem:[%s17027_s29 + $0x78] sm:$0xff] %v10324_v5  }
0x1085 PF: > { %s19_s30 = sadd.s32 1, %s12502_s30  }
0x1086   : > { %p16_p4 = scmp.ge.s32.totalorder %s19_s30, 4  }
0x1088   :  { %18 = sbr.rel (!%p16_p4) target bundleno = 1 (0x1), region = 102 }

</bundles_post_ra>
